<compile_context>
chip_gen: v6e
topology: v6e:2x2x1
jax: 0.10.0
libtpu: 0.0.40
codegen_flags: <defaults>
</compile_context>

<pallas_src>
from functools import partial

import jax
import jax.numpy as jnp
from jax.experimental import pallas as pl
from jax.experimental.pallas import tpu as pltpu


# ----------------------------- Pallas kernel --------------------------------

def _fused_net_kernel(*refs, H, W, n_conv):
    """One batch element: the whole conv/tanh stack, VMEM-resident activations.

    refs = (x_ref, w0, b0, ..., w_{L-1}, b_{L-1}, o_ref, buf_in, buf_h)
      x_ref  : (1, H, W, Cin)         input block (NHWC)
      w_i    : (9*Cin_i, Cout_i) for hidden layers, (Cout, 9*Chid) for the last
      b_i    : (1, Cout_i)       for hidden layers, (Cout, 1)      for the last
      o_ref  : (1, Cout, H*W)    lane-dense output block (NCHW order)
      buf_in : (H+2, W+2, Cin)   padded-input VMEM scratch
      buf_h  : (H+2, W+2, Chid)  padded hidden-activation VMEM scratch
    """
    x_ref = refs[0]
    wb = refs[1:1 + 2 * n_conv]
    o_ref = refs[1 + 2 * n_conv]
    buf_in = refs[2 + 2 * n_conv]
    buf_h = refs[3 + 2 * n_conv]

    # Zero-filled padded buffers (dense, cheap VPU stores).  Only interiors are
    # written afterwards, so the 1-pixel halo stays zero ("same" padding).
    # NOTE: cannot zero only at program_id==0 -- with "parallel" megacore
    # sharding each core owns its own scratch and may never see step 0.
    buf_in[...] = jnp.zeros_like(buf_in)
    buf_h[...] = jnp.zeros_like(buf_h)
    buf_in[1:H + 1, 1:W + 1, :] = x_ref[0].astype(jnp.float32)

    def im2col(src):
        # src: padded (H+2, W+2, C) VMEM ref -> (H*W, 9*C) patch matrix.
        # K ordering is tap-major / channel-minor, matching the host-side
        # weight reshape (9, Cin, Cout) -> (9*Cin, Cout).
        patches = [src[dy:dy + H, dx:dx + W, :]
                   for dy in range(3) for dx in range(3)]
        return jnp.concatenate(patches, axis=-1).reshape(H * W, -1)

    # Hidden convs (+ fused tanh on the EUP); activations ping through VMEM only.
    src = buf_in
    for i in range(n_conv - 1):
        w_ref, b_ref = wb[2 * i], wb[2 * i + 1]
        cols = im2col(src)                                    # (H*W, 9*Cin_i)
        acc = jax.lax.dot_general(
            cols, w_ref[...],
            dimension_numbers=(((1,), (0,)), ((), ())),
            preferred_element_type=jnp.float32)               # (H*W, Chid)
        acc = jnp.tanh(acc + b_ref[...])
        buf_h[1:H + 1, 1:W + 1, :] = acc.reshape(H, W, -1)
        src = buf_h

    # Final (zero_module'd in the original module) conv.  Weight is
    # pre-transposed on the host so the result is (Cout, H*W): lane-dense store
    # and already NCHW-ordered -> no output transpose anywhere.
    w_ref, b_ref = wb[2 * (n_conv - 1)], wb[2 * (n_conv - 1) + 1]
    cols = im2col(src)                                        # (H*W, 9*Chid)
    out = jax.lax.dot_general(
        w_ref[...], cols,
        dimension_numbers=(((1,), (1,)), ((), ())),           # trans_b matmul
        preferred_element_type=jnp.float32)                   # (Cout, H*W)
    out = out + b_ref[...]
    o_ref[0] = out.astype(o_ref.dtype)


# ------------------------------ forward pass ---------------------------------

def ode_sde_func_net(x_nchw, params):
    """Matches nn.Sequential(conv, [tanh, conv]*n_layers, tanh, zero_conv).

    x_nchw: (N, Cin, H, W) float32.
    params: list of (w, b) per conv, w: (9, Cin_i, Cout_i), b: (1, Cout_i).
    Returns (N, Cout, H, W).
    """
    N, Cin, H, W = x_nchw.shape
    n_conv = len(params)
    Chid = params[0][0].shape[2]
    Cout = params[-1][0].shape[2]

    x_nhwc = jnp.transpose(x_nchw, (0, 2, 3, 1))              # tiny, one-off

    kernel_inputs = [x_nhwc]
    in_specs = [pl.BlockSpec((1, H, W, Cin), lambda n: (n, 0, 0, 0))]
    flops = 0
    transcendentals = 0
    for i, (w, b) in enumerate(params):
        cin, cout = w.shape[1], w.shape[2]
        if i < n_conv - 1:
            wk = w.reshape(9 * cin, cout)                     # (9*Cin, Cout)
            bk = b.reshape(1, cout)
            transcendentals += N * H * W * cout
        else:
            wk = w.reshape(9 * cin, cout).T                   # (Cout, 9*Chid)
            bk = b.reshape(cout, 1)
        kernel_inputs += [wk, bk]
        # Constant index maps -> weights DMA'd once, resident in VMEM.
        in_specs += [pl.BlockSpec(wk.shape, lambda n: (0, 0)),
                     pl.BlockSpec(bk.shape, lambda n: (0, 0))]
        flops += 2 * N * H * W * 9 * cin * cout

    bytes_accessed = (x_nhwc.size + N * Cout * H * W) * 4 + sum(
        w.size * 4 + b.size * 4 for w, b in params)

    kernel = partial(_fused_net_kernel, H=H, W=W, n_conv=n_conv)
    out_flat = pl.pallas_call(
        kernel,
        out_shape=jax.ShapeDtypeStruct((N, Cout, H * W), x_nchw.dtype),
        grid_spec=pltpu.PrefetchScalarGridSpec(
            num_scalar_prefetch=0,
            grid=(N,),
            in_specs=in_specs,
            out_specs=pl.BlockSpec((1, Cout, H * W), lambda n: (n, 0, 0)),
            scratch_shapes=[
                pltpu.VMEM((H + 2, W + 2, Cin), jnp.float32),
                pltpu.VMEM((H + 2, W + 2, Chid), jnp.float32),
            ]),
        compiler_params=pltpu.CompilerParams(
            dimension_semantics=("parallel",)),
        cost_estimate=pl.CostEstimate(
            flops=int(flops), transcendentals=int(transcendentals),
            bytes_accessed=int(bytes_accessed)),
    )(*kernel_inputs)

    return out_flat.reshape(N, Cout, H, W)                    # already NCHW


# --------------------------- parameter setup ---------------------------------

def init_params(key, in_channels, hidden_channels, out_channels, n_layers):
    """Deterministic synthetic init.  Weight layout: (9, Cin, Cout) (== torch
    (Cout, Cin, 3, 3) transposed to (kh, kw, Cin, Cout)), bias (1, Cout).
    Final conv is zero_module'd -> zeros."""
    params = []
    chans = [in_channels] + [hidden_channels] * (n_layers + 1)
    for i in range(len(chans) - 1):
        cin, cout = chans[i], chans[i + 1]
        key, kw, kb = jax.random.split(key, 3)
        w = 0.1 * jax.random.normal(kw, (9, cin, cout), jnp.float32)
        b = 0.1 * jax.random.normal(kb, (1, cout), jnp.float32)
        params.append((w, b))
    params.append((jnp.zeros((9, hidden_channels, out_channels), jnp.float32),
                   jnp.zeros((1, out_channels), jnp.float32)))
    return params


# ------------------------------ reference ------------------------------------

def ode_sde_func_net_ref(x_nchw, params):
    x = jnp.transpose(x_nchw, (0, 2, 3, 1))
    n = len(params)
    for i, (w, b) in enumerate(params):
        cin, cout = w.shape[1], w.shape[2]
        w_hwio = w.reshape(3, 3, cin, cout)
        x = jax.lax.conv_general_dilated(
            x, w_hwio, window_strides=(1, 1), padding="SAME",
            dimension_numbers=("NHWC", "HWIO", "NHWC"),
            precision=jax.lax.Precision.HIGHEST) + b[0]
        if i < n - 1:
            x = jnp.tanh(x)
    return jnp.transpose(x, (0, 3, 1, 2))


# --------------------------------- main ---------------------------------------

if __name__ == "__main__":
    in_channels, hidden_channels, out_channels, n_layers = 4, 32, 4, 2
    N, H, W = 2, 16, 16

    key = jax.random.PRNGKey(0)
    key, kx = jax.random.split(key)
    x = jax.random.normal(kx, (N, in_channels, H, W), jnp.float32)

    fwd = jax.jit(ode_sde_func_net)

    # 1) Exact module semantics (final conv zero-initialized -> output is 0).
    params = init_params(key, in_channels, hidden_channels, out_channels, n_layers)
    out = jax.block_until_ready(fwd(x, params))
    ref = ode_sde_func_net_ref(x, params)
    assert out.shape == (N, out_channels, H, W)
    assert jnp.allclose(out, ref, atol=1e-6, rtol=1e-6)

    # 2) Non-trivial check: replace the zero final conv with random weights so
    #    the conv math of every layer is actually exercised (the zero-init test
    #    alone passes trivially).  Tolerance accounts for TPU matmul default
    #    precision vs the HIGHEST-precision XLA reference.
    key, kw, kb = jax.random.split(key, 3)
    params_nz = list(params)
    params_nz[-1] = (
        0.1 * jax.random.normal(kw, params[-1][0].shape, jnp.float32),
        0.1 * jax.random.normal(kb, params[-1][1].shape, jnp.float32))
    out2 = jax.block_until_ready(fwd(x, params_nz))
    ref2 = ode_sde_func_net_ref(x, params_nz)
    assert jnp.allclose(out2, ref2, atol=5e-2, rtol=5e-2), \
        float(jnp.max(jnp.abs(out2 - ref2)))

    print("KERNEL_OK")
</pallas_src>

<mosaic_0001>
module attributes {stable_mosaic.version = 11 : i64} {
  func.func @_fused_net_kernel(%arg0: i32, %arg1: memref<1x16x16x4xf32, #tpu.memory_space<vmem>>, %arg2: memref<36x32xf32, #tpu.memory_space<vmem>>, %arg3: memref<1x32xf32, #tpu.memory_space<vmem>>, %arg4: memref<288x32xf32, #tpu.memory_space<vmem>>, %arg5: memref<1x32xf32, #tpu.memory_space<vmem>>, %arg6: memref<288x32xf32, #tpu.memory_space<vmem>>, %arg7: memref<1x32xf32, #tpu.memory_space<vmem>>, %arg8: memref<4x288xf32, #tpu.memory_space<vmem>>, %arg9: memref<4x1xf32, #tpu.memory_space<vmem>>, %arg10: memref<1x4x256xf32, #tpu.memory_space<vmem>>, %arg11: memref<18x18x4xf32, #tpu.memory_space<vmem>>, %arg12: memref<18x18x32xf32, #tpu.memory_space<vmem>>) attributes {dimension_semantics = [#tpu.dimension_semantics<parallel>], iteration_bounds = array<i64: 2>, scalar_prefetch = 0 : i64, scratch_operands = 2 : i64, tpu.core_type = #tpu.core_type<tc>, window_params = [{transform_indices = @transform_0, window_bounds = array<i64: 1, 16, 16, 4>}, {pipeline_mode = #tpu.pipeline_mode<synchronous>, transform_indices = @transform_1, window_bounds = array<i64: 36, 32>}, {pipeline_mode = #tpu.pipeline_mode<synchronous>, transform_indices = @transform_2, window_bounds = array<i64: 1, 32>}, {pipeline_mode = #tpu.pipeline_mode<synchronous>, transform_indices = @transform_3, window_bounds = array<i64: 288, 32>}, {pipeline_mode = #tpu.pipeline_mode<synchronous>, transform_indices = @transform_4, window_bounds = array<i64: 1, 32>}, {pipeline_mode = #tpu.pipeline_mode<synchronous>, transform_indices = @transform_5, window_bounds = array<i64: 288, 32>}, {pipeline_mode = #tpu.pipeline_mode<synchronous>, transform_indices = @transform_6, window_bounds = array<i64: 1, 32>}, {pipeline_mode = #tpu.pipeline_mode<synchronous>, transform_indices = @transform_7, window_bounds = array<i64: 4, 288>}, {pipeline_mode = #tpu.pipeline_mode<synchronous>, transform_indices = @transform_8, window_bounds = array<i64: 4, 1>}, {transform_indices = @transform_9, window_bounds = array<i64: 1, 4, 256>}]} {
    %cst = arith.constant 0.000000e+00 : f32
    %0 = vector.broadcast %cst : f32 to vector<18x18x4xf32>
    %c0 = arith.constant 0 : index
    %c0_0 = arith.constant 0 : index
    %c0_1 = arith.constant 0 : index
    %1 = vector.load %arg11[%c0, %c0_0, %c0_1] : memref<18x18x4xf32, #tpu.memory_space<vmem>>, vector<18x18x4xf32>
    tpu.vector_store %arg11[%c0, %c0_0, %c0_1], %0 {strides = array<i32>} : memref<18x18x4xf32, #tpu.memory_space<vmem>>, vector<18x18x4xf32>,
    %cst_2 = arith.constant 0.000000e+00 : f32
    %2 = vector.broadcast %cst_2 : f32 to vector<18x18x32xf32>
    %c0_3 = arith.constant 0 : index
    %c0_4 = arith.constant 0 : index
    %c0_5 = arith.constant 0 : index
    %3 = vector.load %arg12[%c0_3, %c0_4, %c0_5] : memref<18x18x32xf32, #tpu.memory_space<vmem>>, vector<18x18x32xf32>
    tpu.vector_store %arg12[%c0_3, %c0_4, %c0_5], %2 {strides = array<i32>} : memref<18x18x32xf32, #tpu.memory_space<vmem>>, vector<18x18x32xf32>,
    %c0_6 = arith.constant 0 : index
    %c0_7 = arith.constant 0 : index
    %c0_8 = arith.constant 0 : index
    %c0_9 = arith.constant 0 : index
    %4 = vector.load %arg1[%c0_6, %c0_7, %c0_8, %c0_9] : memref<1x16x16x4xf32, #tpu.memory_space<vmem>>, vector<1x16x16x4xf32>
    %5 = vector.shape_cast %4 : vector<1x16x16x4xf32> to vector<16x16x4xf32>
    %c1 = arith.constant 1 : index
    %c1_10 = arith.constant 1 : index
    %c0_11 = arith.constant 0 : index
    %6 = vector.load %arg11[%c1, %c1_10, %c0_11] : memref<18x18x4xf32, #tpu.memory_space<vmem>>, vector<16x16x4xf32>
    tpu.vector_store %arg11[%c1, %c1_10, %c0_11], %5 {strides = array<i32>} : memref<18x18x4xf32, #tpu.memory_space<vmem>>, vector<16x16x4xf32>,
    %c0_12 = arith.constant 0 : index
    %c0_13 = arith.constant 0 : index
    %c0_14 = arith.constant 0 : index
    %7 = vector.load %arg11[%c0_12, %c0_13, %c0_14] : memref<18x18x4xf32, #tpu.memory_space<vmem>>, vector<16x16x4xf32>
    %c0_15 = arith.constant 0 : index
    %c1_16 = arith.constant 1 : index
    %c0_17 = arith.constant 0 : index
    %8 = vector.load %arg11[%c0_15, %c1_16, %c0_17] : memref<18x18x4xf32, #tpu.memory_space<vmem>>, vector<16x16x4xf32>
    %c0_18 = arith.constant 0 : index
    %c2 = arith.constant 2 : index
    %c0_19 = arith.constant 0 : index
    %9 = vector.load %arg11[%c0_18, %c2, %c0_19] : memref<18x18x4xf32, #tpu.memory_space<vmem>>, vector<16x16x4xf32>
    %c1_20 = arith.constant 1 : index
    %c0_21 = arith.constant 0 : index
    %c0_22 = arith.constant 0 : index
    %10 = vector.load %arg11[%c1_20, %c0_21, %c0_22] : memref<18x18x4xf32, #tpu.memory_space<vmem>>, vector<16x16x4xf32>
    %c1_23 = arith.constant 1 : index
    %c1_24 = arith.constant 1 : index
    %c0_25 = arith.constant 0 : index
    %11 = vector.load %arg11[%c1_23, %c1_24, %c0_25] : memref<18x18x4xf32, #tpu.memory_space<vmem>>, vector<16x16x4xf32>
    %c1_26 = arith.constant 1 : index
    %c2_27 = arith.constant 2 : index
    %c0_28 = arith.constant 0 : index
    %12 = vector.load %arg11[%c1_26, %c2_27, %c0_28] : memref<18x18x4xf32, #tpu.memory_space<vmem>>, vector<16x16x4xf32>
    %c2_29 = arith.constant 2 : index
    %c0_30 = arith.constant 0 : index
    %c0_31 = arith.constant 0 : index
    %13 = vector.load %arg11[%c2_29, %c0_30, %c0_31] : memref<18x18x4xf32, #tpu.memory_space<vmem>>, vector<16x16x4xf32>
    %c2_32 = arith.constant 2 : index
    %c1_33 = arith.constant 1 : index
    %c0_34 = arith.constant 0 : index
    %14 = vector.load %arg11[%c2_32, %c1_33, %c0_34] : memref<18x18x4xf32, #tpu.memory_space<vmem>>, vector<16x16x4xf32>
    %c2_35 = arith.constant 2 : index
    %c2_36 = arith.constant 2 : index
    %c0_37 = arith.constant 0 : index
    %15 = vector.load %arg11[%c2_35, %c2_36, %c0_37] : memref<18x18x4xf32, #tpu.memory_space<vmem>>, vector<16x16x4xf32>
    %16 = tpu.concatenate %7, %8, %9, %10, %11, %12, %13, %14, %15 in 2 : vector<16x16x4xf32>, vector<16x16x4xf32>, vector<16x16x4xf32>, vector<16x16x4xf32>, vector<16x16x4xf32>, vector<16x16x4xf32>, vector<16x16x4xf32>, vector<16x16x4xf32>, vector<16x16x4xf32> -> vector<16x16x36xf32>
    %17 = vector.shape_cast %16 : vector<16x16x36xf32> to vector<256x36xf32>
    %c0_38 = arith.constant 0 : index
    %c0_39 = arith.constant 0 : index
    %18 = vector.load %arg2[%c0_38, %c0_39] : memref<36x32xf32, #tpu.memory_space<vmem>>, vector<36x32xf32>
    %cst_40 = arith.constant dense<0.000000e+00> : vector<256x32xf32>
    %19 = tpu.matmul %17, %18, %cst_40 {dimension_numbers = #tpu.dot_dimension_numbers<[1], [0], [0], [1], [0, 0, 1, 1], [], []>} : vector<256x36xf32>, vector<36x32xf32>, vector<256x32xf32> -> vector<256x32xf32>
    %c0_41 = arith.constant 0 : index
    %c0_42 = arith.constant 0 : index
    %20 = vector.load %arg3[%c0_41, %c0_42] : memref<1x32xf32, #tpu.memory_space<vmem>>, vector<1x32xf32>
    %21 = vector.broadcast %20 : vector<1x32xf32> to vector<256x32xf32>
    %22 = arith.addf %19, %21 : vector<256x32xf32>
    %23 = math.tanh %22 : vector<256x32xf32>
    %24 = vector.shape_cast %23 : vector<256x32xf32> to vector<16x16x32xf32>
    %c1_43 = arith.constant 1 : index
    %c1_44 = arith.constant 1 : index
    %c0_45 = arith.constant 0 : index
    %25 = vector.load %arg12[%c1_43, %c1_44, %c0_45] : memref<18x18x32xf32, #tpu.memory_space<vmem>>, vector<16x16x32xf32>
    tpu.vector_store %arg12[%c1_43, %c1_44, %c0_45], %24 {strides = array<i32>} : memref<18x18x32xf32, #tpu.memory_space<vmem>>, vector<16x16x32xf32>,
    %c0_46 = arith.constant 0 : index
    %c0_47 = arith.constant 0 : index
    %c0_48 = arith.constant 0 : index
    %26 = vector.load %arg12[%c0_46, %c0_47, %c0_48] : memref<18x18x32xf32, #tpu.memory_space<vmem>>, vector<16x16x32xf32>
    %c0_49 = arith.constant 0 : index
    %c1_50 = arith.constant 1 : index
    %c0_51 = arith.constant 0 : index
    %27 = vector.load %arg12[%c0_49, %c1_50, %c0_51] : memref<18x18x32xf32, #tpu.memory_space<vmem>>, vector<16x16x32xf32>
    %c0_52 = arith.constant 0 : index
    %c2_53 = arith.constant 2 : index
    %c0_54 = arith.constant 0 : index
    %28 = vector.load %arg12[%c0_52, %c2_53, %c0_54] : memref<18x18x32xf32, #tpu.memory_space<vmem>>, vector<16x16x32xf32>
    %c1_55 = arith.constant 1 : index
    %c0_56 = arith.constant 0 : index
    %c0_57 = arith.constant 0 : index
    %29 = vector.load %arg12[%c1_55, %c0_56, %c0_57] : memref<18x18x32xf32, #tpu.memory_space<vmem>>, vector<16x16x32xf32>
    %c1_58 = arith.constant 1 : index
    %c1_59 = arith.constant 1 : index
    %c0_60 = arith.constant 0 : index
    %30 = vector.load %arg12[%c1_58, %c1_59, %c0_60] : memref<18x18x32xf32, #tpu.memory_space<vmem>>, vector<16x16x32xf32>
    %c1_61 = arith.constant 1 : index
    %c2_62 = arith.constant 2 : index
    %c0_63 = arith.constant 0 : index
    %31 = vector.load %arg12[%c1_61, %c2_62, %c0_63] : memref<18x18x32xf32, #tpu.memory_space<vmem>>, vector<16x16x32xf32>
    %c2_64 = arith.constant 2 : index
    %c0_65 = arith.constant 0 : index
    %c0_66 = arith.constant 0 : index
    %32 = vector.load %arg12[%c2_64, %c0_65, %c0_66] : memref<18x18x32xf32, #tpu.memory_space<vmem>>, vector<16x16x32xf32>
    %c2_67 = arith.constant 2 : index
    %c1_68 = arith.constant 1 : index
    %c0_69 = arith.constant 0 : index
    %33 = vector.load %arg12[%c2_67, %c1_68, %c0_69] : memref<18x18x32xf32, #tpu.memory_space<vmem>>, vector<16x16x32xf32>
    %c2_70 = arith.constant 2 : index
    %c2_71 = arith.constant 2 : index
    %c0_72 = arith.constant 0 : index
    %34 = vector.load %arg12[%c2_70, %c2_71, %c0_72] : memref<18x18x32xf32, #tpu.memory_space<vmem>>, vector<16x16x32xf32>
    %35 = tpu.concatenate %26, %27, %28, %29, %30, %31, %32, %33, %34 in 2 : vector<16x16x32xf32>, vector<16x16x32xf32>, vector<16x16x32xf32>, vector<16x16x32xf32>, vector<16x16x32xf32>, vector<16x16x32xf32>, vector<16x16x32xf32>, vector<16x16x32xf32>, vector<16x16x32xf32> -> vector<16x16x288xf32>
    %36 = vector.shape_cast %35 : vector<16x16x288xf32> to vector<256x288xf32>
    %c0_73 = arith.constant 0 : index
    %c0_74 = arith.constant 0 : index
    %37 = vector.load %arg4[%c0_73, %c0_74] : memref<288x32xf32, #tpu.memory_space<vmem>>, vector<288x32xf32>
    %cst_75 = arith.constant dense<0.000000e+00> : vector<256x32xf32>
    %38 = tpu.matmul %36, %37, %cst_75 {dimension_numbers = #tpu.dot_dimension_numbers<[1], [0], [0], [1], [0, 0, 1, 1], [], []>} : vector<256x288xf32>, vector<288x32xf32>, vector<256x32xf32> -> vector<256x32xf32>
    %c0_76 = arith.constant 0 : index
    %c0_77 = arith.constant 0 : index
    %39 = vector.load %arg5[%c0_76, %c0_77] : memref<1x32xf32, #tpu.memory_space<vmem>>, vector<1x32xf32>
    %40 = vector.broadcast %39 : vector<1x32xf32> to vector<256x32xf32>
    %41 = arith.addf %38, %40 : vector<256x32xf32>
    %42 = math.tanh %41 : vector<256x32xf32>
    %43 = vector.shape_cast %42 : vector<256x32xf32> to vector<16x16x32xf32>
    %c1_78 = arith.constant 1 : index
    %c1_79 = arith.constant 1 : index
    %c0_80 = arith.constant 0 : index
    %44 = vector.load %arg12[%c1_78, %c1_79, %c0_80] : memref<18x18x32xf32, #tpu.memory_space<vmem>>, vector<16x16x32xf32>
    tpu.vector_store %arg12[%c1_78, %c1_79, %c0_80], %43 {strides = array<i32>} : memref<18x18x32xf32, #tpu.memory_space<vmem>>, vector<16x16x32xf32>,
    %c0_81 = arith.constant 0 : index
    %c0_82 = arith.constant 0 : index
    %c0_83 = arith.constant 0 : index
    %45 = vector.load %arg12[%c0_81, %c0_82, %c0_83] : memref<18x18x32xf32, #tpu.memory_space<vmem>>, vector<16x16x32xf32>
    %c0_84 = arith.constant 0 : index
    %c1_85 = arith.constant 1 : index
    %c0_86 = arith.constant 0 : index
    %46 = vector.load %arg12[%c0_84, %c1_85, %c0_86] : memref<18x18x32xf32, #tpu.memory_space<vmem>>, vector<16x16x32xf32>
    %c0_87 = arith.constant 0 : index
    %c2_88 = arith.constant 2 : index
    %c0_89 = arith.constant 0 : index
    %47 = vector.load %arg12[%c0_87, %c2_88, %c0_89] : memref<18x18x32xf32, #tpu.memory_space<vmem>>, vector<16x16x32xf32>
    %c1_90 = arith.constant 1 : index
    %c0_91 = arith.constant 0 : index
    %c0_92 = arith.constant 0 : index
    %48 = vector.load %arg12[%c1_90, %c0_91, %c0_92] : memref<18x18x32xf32, #tpu.memory_space<vmem>>, vector<16x16x32xf32>
    %c1_93 = arith.constant 1 : index
    %c1_94 = arith.constant 1 : index
    %c0_95 = arith.constant 0 : index
    %49 = vector.load %arg12[%c1_93, %c1_94, %c0_95] : memref<18x18x32xf32, #tpu.memory_space<vmem>>, vector<16x16x32xf32>
    %c1_96 = arith.constant 1 : index
    %c2_97 = arith.constant 2 : index
    %c0_98 = arith.constant 0 : index
    %50 = vector.load %arg12[%c1_96, %c2_97, %c0_98] : memref<18x18x32xf32, #tpu.memory_space<vmem>>, vector<16x16x32xf32>
    %c2_99 = arith.constant 2 : index
    %c0_100 = arith.constant 0 : index
    %c0_101 = arith.constant 0 : index
    %51 = vector.load %arg12[%c2_99, %c0_100, %c0_101] : memref<18x18x32xf32, #tpu.memory_space<vmem>>, vector<16x16x32xf32>
    %c2_102 = arith.constant 2 : index
    %c1_103 = arith.constant 1 : index
    %c0_104 = arith.constant 0 : index
    %52 = vector.load %arg12[%c2_102, %c1_103, %c0_104] : memref<18x18x32xf32, #tpu.memory_space<vmem>>, vector<16x16x32xf32>
    %c2_105 = arith.constant 2 : index
    %c2_106 = arith.constant 2 : index
    %c0_107 = arith.constant 0 : index
    %53 = vector.load %arg12[%c2_105, %c2_106, %c0_107] : memref<18x18x32xf32, #tpu.memory_space<vmem>>, vector<16x16x32xf32>
    %54 = tpu.concatenate %45, %46, %47, %48, %49, %50, %51, %52, %53 in 2 : vector<16x16x32xf32>, vector<16x16x32xf32>, vector<16x16x32xf32>, vector<16x16x32xf32>, vector<16x16x32xf32>, vector<16x16x32xf32>, vector<16x16x32xf32>, vector<16x16x32xf32>, vector<16x16x32xf32> -> vector<16x16x288xf32>
    %55 = vector.shape_cast %54 : vector<16x16x288xf32> to vector<256x288xf32>
    %c0_108 = arith.constant 0 : index
    %c0_109 = arith.constant 0 : index
    %56 = vector.load %arg6[%c0_108, %c0_109] : memref<288x32xf32, #tpu.memory_space<vmem>>, vector<288x32xf32>
    %cst_110 = arith.constant dense<0.000000e+00> : vector<256x32xf32>
    %57 = tpu.matmul %55, %56, %cst_110 {dimension_numbers = #tpu.dot_dimension_numbers<[1], [0], [0], [1], [0, 0, 1, 1], [], []>} : vector<256x288xf32>, vector<288x32xf32>, vector<256x32xf32> -> vector<256x32xf32>
    %c0_111 = arith.constant 0 : index
    %c0_112 = arith.constant 0 : index
    %58 = vector.load %arg7[%c0_111, %c0_112] : memref<1x32xf32, #tpu.memory_space<vmem>>, vector<1x32xf32>
    %59 = vector.broadcast %58 : vector<1x32xf32> to vector<256x32xf32>
    %60 = arith.addf %57, %59 : vector<256x32xf32>
    %61 = math.tanh %60 : vector<256x32xf32>
    %62 = vector.shape_cast %61 : vector<256x32xf32> to vector<16x16x32xf32>
    %c1_113 = arith.constant 1 : index
    %c1_114 = arith.constant 1 : index
    %c0_115 = arith.constant 0 : index
    %63 = vector.load %arg12[%c1_113, %c1_114, %c0_115] : memref<18x18x32xf32, #tpu.memory_space<vmem>>, vector<16x16x32xf32>
    tpu.vector_store %arg12[%c1_113, %c1_114, %c0_115], %62 {strides = array<i32>} : memref<18x18x32xf32, #tpu.memory_space<vmem>>, vector<16x16x32xf32>,
    %c0_116 = arith.constant 0 : index
    %c0_117 = arith.constant 0 : index
    %c0_118 = arith.constant 0 : index
    %64 = vector.load %arg12[%c0_116, %c0_117, %c0_118] : memref<18x18x32xf32, #tpu.memory_space<vmem>>, vector<16x16x32xf32>
    %c0_119 = arith.constant 0 : index
    %c1_120 = arith.constant 1 : index
    %c0_121 = arith.constant 0 : index
    %65 = vector.load %arg12[%c0_119, %c1_120, %c0_121] : memref<18x18x32xf32, #tpu.memory_space<vmem>>, vector<16x16x32xf32>
    %c0_122 = arith.constant 0 : index
    %c2_123 = arith.constant 2 : index
    %c0_124 = arith.constant 0 : index
    %66 = vector.load %arg12[%c0_122, %c2_123, %c0_124] : memref<18x18x32xf32, #tpu.memory_space<vmem>>, vector<16x16x32xf32>
    %c1_125 = arith.constant 1 : index
    %c0_126 = arith.constant 0 : index
    %c0_127 = arith.constant 0 : index
    %67 = vector.load %arg12[%c1_125, %c0_126, %c0_127] : memref<18x18x32xf32, #tpu.memory_space<vmem>>, vector<16x16x32xf32>
    %c1_128 = arith.constant 1 : index
    %c1_129 = arith.constant 1 : index
    %c0_130 = arith.constant 0 : index
    %68 = vector.load %arg12[%c1_128, %c1_129, %c0_130] : memref<18x18x32xf32, #tpu.memory_space<vmem>>, vector<16x16x32xf32>
    %c1_131 = arith.constant 1 : index
    %c2_132 = arith.constant 2 : index
    %c0_133 = arith.constant 0 : index
    %69 = vector.load %arg12[%c1_131, %c2_132, %c0_133] : memref<18x18x32xf32, #tpu.memory_space<vmem>>, vector<16x16x32xf32>
    %c2_134 = arith.constant 2 : index
    %c0_135 = arith.constant 0 : index
    %c0_136 = arith.constant 0 : index
    %70 = vector.load %arg12[%c2_134, %c0_135, %c0_136] : memref<18x18x32xf32, #tpu.memory_space<vmem>>, vector<16x16x32xf32>
    %c2_137 = arith.constant 2 : index
    %c1_138 = arith.constant 1 : index
    %c0_139 = arith.constant 0 : index
    %71 = vector.load %arg12[%c2_137, %c1_138, %c0_139] : memref<18x18x32xf32, #tpu.memory_space<vmem>>, vector<16x16x32xf32>
    %c2_140 = arith.constant 2 : index
    %c2_141 = arith.constant 2 : index
    %c0_142 = arith.constant 0 : index
    %72 = vector.load %arg12[%c2_140, %c2_141, %c0_142] : memref<18x18x32xf32, #tpu.memory_space<vmem>>, vector<16x16x32xf32>
    %73 = tpu.concatenate %64, %65, %66, %67, %68, %69, %70, %71, %72 in 2 : vector<16x16x32xf32>, vector<16x16x32xf32>, vector<16x16x32xf32>, vector<16x16x32xf32>, vector<16x16x32xf32>, vector<16x16x32xf32>, vector<16x16x32xf32>, vector<16x16x32xf32>, vector<16x16x32xf32> -> vector<16x16x288xf32>
    %74 = vector.shape_cast %73 : vector<16x16x288xf32> to vector<256x288xf32>
    %c0_143 = arith.constant 0 : index
    %c0_144 = arith.constant 0 : index
    %75 = vector.load %arg8[%c0_143, %c0_144] : memref<4x288xf32, #tpu.memory_space<vmem>>, vector<4x288xf32>
    %cst_145 = arith.constant dense<0.000000e+00> : vector<4x256xf32>
    %76 = tpu.matmul %75, %74, %cst_145 {dimension_numbers = #tpu.dot_dimension_numbers<[1], [1], [0], [0], [0, 0, 1, 0], [], []>} : vector<4x288xf32>, vector<256x288xf32>, vector<4x256xf32> -> vector<4x256xf32>
    %c0_146 = arith.constant 0 : index
    %c0_147 = arith.constant 0 : index
    %77 = vector.load %arg9[%c0_146, %c0_147] : memref<4x1xf32, #tpu.memory_space<vmem>>, vector<4x1xf32>
    %78 = vector.broadcast %77 : vector<4x1xf32> to vector<4x256xf32>
    %79 = arith.addf %76, %78 : vector<4x256xf32>
    %c0_148 = arith.constant 0 : index
    %c0_149 = arith.constant 0 : index
    %c0_150 = arith.constant 0 : index
    %80 = vector.load %arg10[%c0_148, %c0_149, %c0_150] : memref<1x4x256xf32, #tpu.memory_space<vmem>>, vector<1x4x256xf32>
    %81 = vector.shape_cast %80 : vector<1x4x256xf32> to vector<4x256xf32>
    %82 = vector.shape_cast %79 : vector<4x256xf32> to vector<1x4x256xf32>
    tpu.vector_store %arg10[%c0_148, %c0_149, %c0_150], %82 {strides = array<i32>} : memref<1x4x256xf32, #tpu.memory_space<vmem>>, vector<1x4x256xf32>,
    return
  }
  func.func @transform_0(%arg0: i32) -> (i32, i32, i32, i32) {
    %c0_i32 = arith.constant 0 : i32
    %c0_i32_0 = arith.constant 0 : i32
    %c0_i32_1 = arith.constant 0 : i32
    %c0_i32_2 = arith.constant 0 : i32
    return %arg0, %c0_i32, %c0_i32_0, %c0_i32_1 : i32, i32, i32, i32
  }
  func.func @transform_1(%arg0: i32) -> (i32, i32) {
    %c0_i32 = arith.constant 0 : i32
    %c0_i32_0 = arith.constant 0 : i32
    %c0_i32_1 = arith.constant 0 : i32
    return %c0_i32, %c0_i32_0 : i32, i32
  }
  func.func @transform_2(%arg0: i32) -> (i32, i32) {
    %c0_i32 = arith.constant 0 : i32
    %c0_i32_0 = arith.constant 0 : i32
    %c0_i32_1 = arith.constant 0 : i32
    return %c0_i32, %c0_i32_0 : i32, i32
  }
  func.func @transform_3(%arg0: i32) -> (i32, i32) {
    %c0_i32 = arith.constant 0 : i32
    %c0_i32_0 = arith.constant 0 : i32
    %c0_i32_1 = arith.constant 0 : i32
    return %c0_i32, %c0_i32_0 : i32, i32
  }
  func.func @transform_4(%arg0: i32) -> (i32, i32) {
    %c0_i32 = arith.constant 0 : i32
    %c0_i32_0 = arith.constant 0 : i32
    %c0_i32_1 = arith.constant 0 : i32
    return %c0_i32, %c0_i32_0 : i32, i32
  }
  func.func @transform_5(%arg0: i32) -> (i32, i32) {
    %c0_i32 = arith.constant 0 : i32
    %c0_i32_0 = arith.constant 0 : i32
    %c0_i32_1 = arith.constant 0 : i32
    return %c0_i32, %c0_i32_0 : i32, i32
  }
  func.func @transform_6(%arg0: i32) -> (i32, i32) {
    %c0_i32 = arith.constant 0 : i32
    %c0_i32_0 = arith.constant 0 : i32
    %c0_i32_1 = arith.constant 0 : i32
    return %c0_i32, %c0_i32_0 : i32, i32
  }
  func.func @transform_7(%arg0: i32) -> (i32, i32) {
    %c0_i32 = arith.constant 0 : i32
    %c0_i32_0 = arith.constant 0 : i32
    %c0_i32_1 = arith.constant 0 : i32
    return %c0_i32, %c0_i32_0 : i32, i32
  }
  func.func @transform_8(%arg0: i32) -> (i32, i32) {
    %c0_i32 = arith.constant 0 : i32
    %c0_i32_0 = arith.constant 0 : i32
    %c0_i32_1 = arith.constant 0 : i32
    return %c0_i32, %c0_i32_0 : i32, i32
  }
  func.func @transform_9(%arg0: i32) -> (i32, i32, i32) {
    %c0_i32 = arith.constant 0 : i32
    %c0_i32_0 = arith.constant 0 : i32
    %c0_i32_1 = arith.constant 0 : i32
    return %arg0, %c0_i32, %c0_i32_0 : i32, i32, i32
  }
}

</mosaic_0001>

<bundles_post_ra>
// kernel: ode_sde_func_net.1
= control target key start
LH: loop header
LB: loop body
LE: loop exit
PB: predicated region body
PF: predicated region fallthrough
CT: control target
= control target key end

     0   :  { %s9601_s30 = smov 0   ;;  %s14654_s0 = inlined_call_operand.vmem [shape: f32[2,16,16,4], index: 0, kind: input, shape index: {}]   ;;  %s14655_s1 = inlined_call_operand.vmem [shape: f32[36,32], index: 1, kind: input, shape index: {}]   ;;  %s14656_s2 = inlined_call_operand.vmem [shape: f32[1,32], index: 2, kind: input, shape index: {}]   ;;  %s14657_s3 = inlined_call_operand.vmem [shape: f32[288,32], index: 3, kind: input, shape index: {}]   ;;  %s14658_s4 = inlined_call_operand.vmem [shape: f32[1,32], index: 4, kind: input, shape index: {}]   ;;  %s14659_s5 = inlined_call_operand.vmem [shape: f32[288,32], index: 5, kind: input, shape index: {}]   ;;  %s14660_s6 = inlined_call_operand.vmem [shape: f32[1,32], index: 6, kind: input, shape index: {}]   ;;  %s14661_s7 = inlined_call_operand.vmem [shape: f32[4,288], index: 7, kind: input, shape index: {}]   ;;  %s14662_s8 = inlined_call_operand.vmem [shape: f32[4,1], index: 8, kind: input, shape index: {}]   ;;  %s14663_s9 = inlined_call_operand.vmem [shape: f32[2,4,256], index: 9, kind: output, shape index: {}]  }
   0x1 LB: > { %s7853_s10 = sadd.s32 4294967295, %s9537_s30   ;;  %p7857_p0 = scmp.ge.s32.totalorder %s9537_s30, 1  ;;  %s9537_s30 = sphi %s9601_s30, %s19_s30  }
   0x2   : > { %p287_p1 = scmp.lt.s32.totalorder %s9537_s30, 3 }
   0x4   : > { %p288_p2 = pnand %p7857_p0, %p287_p1 }
   0x6   : > { %291 = sbr.rel (%p288_p2) target bundleno = 2358 (0x936), region = 56 }
   0xb   : > { %vm333_vm0 = vcmask 31744   ;;  %vm336_vm1 = vcmask 25600   ;;  %p9611_p3 = scmp.lt.s32.totalorder %s7853_s10, 1  ;;  %v14664_v0 = vmov 0.0   ;;  %s9540_s16 = smov 4   ;;  %vm2194_vm2 = vcmask 1043456  }
   0xc   : > { %334 = vst.msk [vmem:[#allocation2] sm:$0xff] %vm333_vm0, %v14664_v0  ;;  %335 = vst.msk [vmem:[#allocation2 + $0x8] sm:$0xff] %vm333_vm0, %v14664_v0  ;;  %3878 = vmatprep.subr.mxu1 %v14664_v0  ;;  %s9541_s17 = smov 8   ;;  %s9542_s18 = smov 12   ;;  %vm389_vm3 = vcmask 261120   ;;  %vm1855_vm4 = vcmask 64512  }
   0xd   : > { %338 = vst.msk [vmem:[#allocation2 + $0x18] sm:$0xff] %vm333_vm0, %v14664_v0  ;;  %339 = vst.msk [vmem:[#allocation2 + $0x20] sm:$0xff] %vm333_vm0, %v14664_v0  ;;  %s15216_s10 = smov (!%p9611_p3, %s7853_s10), 1  ;;  %s9543_s19 = smov 16   ;;  %vm1888_vm5 = vcmask 97280   ;;  %vm1921_vm6 = vcmask 130048  }
   0xe   : > { %341 = vst.msk [vmem:[#allocation2 + $0x30] sm:$0xff] %vm333_vm0, %v14664_v0  ;;  %342 = vst.msk [vmem:[#allocation2 + $0x38] sm:$0xff] %vm333_vm0, %v14664_v0  ;;  %s7997_s12 = sshll.u32 %s15216_s10, 8  ;;  %s9544_s20 = smov 20   ;;  %vm1954_vm7 = vcmask 162816   ;;  %vm1987_vm8 = vcmask 195584  }
   0xf   : > { %344 = vst.msk [vmem:[#allocation2 + $0x48] sm:$0xff] %vm333_vm0, %v14664_v0  ;;  %345 = vst.msk [vmem:[#allocation2 + $0x50] sm:$0xff] %vm333_vm0, %v14664_v0  ;;  %s9734_s15 = scalar_lea.vmem %s14654_s0, %s7997_s12  ;;  %s9545_s21 = smov 24   ;;  %vm2020_vm9 = vcmask 228352   ;;  %vm2097_vm10 = vcmask 293888   ;;  %vm392_vm11 = vcmask 254976  }
  0x10   : > { %347 = vst.msk [vmem:[#allocation2 + $0x60] sm:$0xff] %vm333_vm0, %v14664_v0  ;;  %348 = vst.msk [vmem:[#allocation2 + $0x68] sm:$0xff] %vm333_vm0, %v14664_v0  ;;  %v445_v1 = vld [vmem:[%s9734_s15] sm:$0xff]  ;;  %v447_v2 = vld [vmem:[%s9734_s15 + $0x10] sm:$0xff]  ;;  %s9546_s13 = smov 28   ;;  %s9547_s14 = smov 32  }
  0x11   : > { %350 = vst.msk [vmem:[#allocation2 + $0x78] sm:$0xff] %vm333_vm0, %v14664_v0  ;;  %351 = vst.msk [vmem:[#allocation2 + $0x80] sm:$0xff] %vm333_vm0, %v14664_v0  ;;  %v446_v3 = vld [vmem:[%s9734_s15 + $0x8] sm:$0xff]  ;;  %v449_v4 = vld [vmem:[%s9734_s15 + $0x20] sm:$0xff]  ;;  %s9549_s27 = smov 96   ;;  %vm3577_vm12 = vcmask 523264  }
  0x12   : > { %353 = vst.msk [vmem:[#allocation2 + $0x90] sm:$0xff] %vm333_vm0, %v14664_v0  ;;  %354 = vst.msk [vmem:[#allocation2 + $0x98] sm:$0xff] %vm333_vm0, %v14664_v0  ;;  %v448_v5 = vld [vmem:[%s9734_s15 + $0x18] sm:$0xff]  ;;  %v451_v6 = vld [vmem:[%s9734_s15 + $0x30] sm:$0xff]  ;;  %vm3610_vm13 = vcmask 785408  }
  0x13   : > { %356 = vst.msk [vmem:[#allocation2 + $0xa8] sm:$0xff] %vm333_vm0, %v14664_v0  ;;  %357 = vst.msk [vmem:[#allocation2 + $0xb0] sm:$0xff] %vm333_vm0, %v14664_v0  ;;  %v542_v7 = vld [vmem:[#allocation2 + $0x1] sm:$0xff]  ;;  %v452_v11 = vld [vmem:[%s9734_s15 + $0x38] sm:$0xff] }
  0x14   : > { %359 = vst.msk [vmem:[#allocation2 + $0xc0] sm:$0xff] %vm333_vm0, %v14664_v0  ;;  %360 = vst.msk [vmem:[#allocation2 + $0xc8] sm:$0xff] %vm333_vm0, %v14664_v0  ;;  %v450_v9 = vld [vmem:[%s9734_s15 + $0x28] sm:$0xff]  ;;  %831 = vrot.lane.b32.xlu0 %v542_v7, %s9540_s16  ;;  %v453_v10 = vld [vmem:[%s9734_s15 + $0x40] sm:$0xff] }
  0x15   : > { %362 = vst.msk [vmem:[#allocation2 + $0xd8] sm:$0xff] %vm333_vm0, %v14664_v0  ;;  %363 = vst.msk [vmem:[#allocation2 + $0xe0] sm:$0xff] %vm333_vm0, %v14664_v0  ;;  %v455_v12 = vld [vmem:[%s9734_s15 + $0x50] sm:$0xff]  ;;  %v454_v13 = vld [vmem:[%s9734_s15 + $0x48] sm:$0xff] }
  0x16   : > { %365 = vst.msk [vmem:[#allocation2 + $0xf0] sm:$0xff] %vm333_vm0, %v14664_v0  ;;  %366 = vst.msk [vmem:[#allocation2 + $0xf8] sm:$0xff] %vm333_vm0, %v14664_v0  ;;  %v457_v14 = vld [vmem:[%s9734_s15 + $0x60] sm:$0xff]  ;;  %v456_v15 = vld [vmem:[%s9734_s15 + $0x58] sm:$0xff] }
  0x17   : > { %368 = vst.msk [vmem:[#allocation2 + $0x108] sm:$0xff] %vm333_vm0, %v14664_v0  ;;  %369 = vst.msk [vmem:[#allocation2 + $0x110] sm:$0xff] %vm333_vm0, %v14664_v0  ;;  %v459_v16 = vld [vmem:[%s9734_s15 + $0x70] sm:$0xff]  ;;  %v458_v17 = vld [vmem:[%s9734_s15 + $0x68] sm:$0xff] }
  0x18   : > { %371 = vst.msk [vmem:[#allocation2 + $0x120] sm:$0xff] %vm333_vm0, %v14664_v0  ;;  %372 = vst.msk [vmem:[#allocation2 + $0x128] sm:$0xff] %vm333_vm0, %v14664_v0  ;;  %v461_v18 = vld [vmem:[%s9734_s15 + $0x80] sm:$0xff]  ;;  %v460_v19 = vld [vmem:[%s9734_s15 + $0x78] sm:$0xff] }
  0x19   : > { %374 = vst.msk [vmem:[#allocation2 + $0x138] sm:$0xff] %vm333_vm0, %v14664_v0  ;;  %375 = vst.msk [vmem:[#allocation2 + $0x140] sm:$0xff] %vm333_vm0, %v14664_v0  ;;  %v463_v20 = vld [vmem:[%s9734_s15 + $0x90] sm:$0xff]  ;;  %v462_v21 = vld [vmem:[%s9734_s15 + $0x88] sm:$0xff] }
  0x1a   : > { %377 = vst.msk [vmem:[#allocation2 + $0x150] sm:$0xff] %vm333_vm0, %v14664_v0  ;;  %378 = vst.msk [vmem:[#allocation2 + $0x158] sm:$0xff] %vm333_vm0, %v14664_v0  ;;  %v465_v22 = vld [vmem:[%s9734_s15 + $0xa0] sm:$0xff]  ;;  %v464_v23 = vld [vmem:[%s9734_s15 + $0x98] sm:$0xff] }
  0x1b   : > { %380 = vst.msk [vmem:[#allocation2 + $0x168] sm:$0xff] %vm333_vm0, %v14664_v0  ;;  %381 = vst.msk [vmem:[#allocation2 + $0x170] sm:$0xff] %vm333_vm0, %v14664_v0  ;;  %v467_v24 = vld [vmem:[%s9734_s15 + $0xb0] sm:$0xff]  ;;  %v466_v28 = vld [vmem:[%s9734_s15 + $0xa8] sm:$0xff] }
  0x1c   : > { %383 = vst.msk [vmem:[#allocation2 + $0x180] sm:$0xff] %vm333_vm0, %v14664_v0  ;;  %384 = vst.msk [vmem:[#allocation2 + $0x188] sm:$0xff] %vm333_vm0, %v14664_v0  ;;  %v469_v29 = vld [vmem:[%s9734_s15 + $0xc0] sm:$0xff]  ;;  %v468_v33 = vld [vmem:[%s9734_s15 + $0xb8] sm:$0xff] }
  0x1d   : > { %386 = vst.msk [vmem:[#allocation2 + $0x198] sm:$0xff] %vm333_vm0, %v14664_v0  ;;  %387 = vst.msk [vmem:[#allocation2 + $0x1a0] sm:$0xff] %vm333_vm0, %v14664_v0  ;;  %v471_v34 = vld [vmem:[%s9734_s15 + $0xd0] sm:$0xff]  ;;  %v470_v35 = vld [vmem:[%s9734_s15 + $0xc8] sm:$0xff] }
  0x1e   : > { %337 = vst.msk [vmem:[#allocation2 + $0x10] sm:$0x3] %vm336_vm1, %v14664_v0  ;;  %340 = vst.msk [vmem:[#allocation2 + $0x28] sm:$0x3] %vm336_vm1, %v14664_v0  ;;  %v473_v36 = vld [vmem:[%s9734_s15 + $0xe0] sm:$0xff]  ;;  %v472_v37 = vld [vmem:[%s9734_s15 + $0xd8] sm:$0xff] }
  0x1f   : > { %343 = vst.msk [vmem:[#allocation2 + $0x40] sm:$0x3] %vm336_vm1, %v14664_v0  ;;  %346 = vst.msk [vmem:[#allocation2 + $0x58] sm:$0x3] %vm336_vm1, %v14664_v0  ;;  %v474_v39 = vld [vmem:[%s9734_s15 + $0xe8] sm:$0xff]  ;;  %v475_v58 = vld [vmem:[%s9734_s15 + $0xf0] sm:$0xff] }
  0x20   : > { %349 = vst.msk [vmem:[#allocation2 + $0x70] sm:$0x3] %vm336_vm1, %v14664_v0  ;;  %352 = vst.msk [vmem:[#allocation2 + $0x88] sm:$0x3] %vm336_vm1, %v14664_v0  ;;  %v476_v62 = vld [vmem:[%s9734_s15 + $0xf8] sm:$0xff] }
  0x21   : > { %355 = vst.msk [vmem:[#allocation2 + $0xa0] sm:$0x3] %vm336_vm1, %v14664_v0  ;;  %358 = vst.msk [vmem:[#allocation2 + $0xb8] sm:$0x3] %vm336_vm1, %v14664_v0 }
  0x22   : > { %361 = vst.msk [vmem:[#allocation2 + $0xd0] sm:$0x3] %vm336_vm1, %v14664_v0  ;;  %364 = vst.msk [vmem:[#allocation2 + $0xe8] sm:$0x3] %vm336_vm1, %v14664_v0 }
  0x23   : > { %367 = vst.msk [vmem:[#allocation2 + $0x100] sm:$0x3] %vm336_vm1, %v14664_v0  ;;  %370 = vst.msk [vmem:[#allocation2 + $0x118] sm:$0x3] %vm336_vm1, %v14664_v0 }
  0x24   : > { %373 = vst.msk [vmem:[#allocation2 + $0x130] sm:$0x3] %vm336_vm1, %v14664_v0  ;;  %376 = vst.msk [vmem:[#allocation2 + $0x148] sm:$0x3] %vm336_vm1, %v14664_v0 }
  0x25   : > { %379 = vst.msk [vmem:[#allocation2 + $0x160] sm:$0x3] %vm336_vm1, %v14664_v0  ;;  %382 = vst.msk [vmem:[#allocation2 + $0x178] sm:$0x3] %vm336_vm1, %v14664_v0  ;;  %v543_v8 = vld [vmem:[#allocation2 + $0x9] sm:$0xff] }
  0x26   : > { %385 = vst.msk [vmem:[#allocation2 + $0x190] sm:$0x3] %vm336_vm1, %v14664_v0  ;;  %388 = vst.msk [vmem:[#allocation2 + $0x1a8] sm:$0x3] %vm336_vm1, %v14664_v0  ;;  %833 = vrot.lane.b32.xlu0 %v543_v8, %s9540_s16 }
  0x27   : > { %478 = vst.msk [vmem:[#allocation2 + $0x19] sm:$0xff] %vm333_vm0, %v445_v1  ;;  %480 = vst.msk [vmem:[#allocation2 + $0x31] sm:$0xff] %vm333_vm0, %v447_v2  ;;  %v574_v1 = vld [vmem:[#allocation2 + $0x2] sm:$0xff] }
  0x28   : > { %479 = vst.msk [vmem:[#allocation2 + $0x21] sm:$0xff] %vm333_vm0, %v446_v3  ;;  %482 = vst.msk [vmem:[#allocation2 + $0x49] sm:$0xff] %vm333_vm0, %v449_v4  ;;  %v575_v4 = vld [vmem:[#allocation2 + $0xa] sm:$0xff] }
  0x29   : > { %481 = vst.msk [vmem:[#allocation2 + $0x39] sm:$0xff] %vm333_vm0, %v448_v5  ;;  %484 = vst.msk [vmem:[#allocation2 + $0x61] sm:$0xff] %vm333_vm0, %v451_v6 }
  0x2a   : > { %483 = vst.msk [vmem:[#allocation2 + $0x51] sm:$0xff] %vm333_vm0, %v450_v9  ;;  %486 = vst.msk [vmem:[#allocation2 + $0x79] sm:$0xff] %vm333_vm0, %v453_v10 }
  0x2b   : > { %485 = vst.msk [vmem:[#allocation2 + $0x69] sm:$0xff] %vm333_vm0, %v452_v11  ;;  %488 = vst.msk [vmem:[#allocation2 + $0x91] sm:$0xff] %vm333_vm0, %v455_v12 }
  0x2c   : > { %487 = vst.msk [vmem:[#allocation2 + $0x81] sm:$0xff] %vm333_vm0, %v454_v13  ;;  %490 = vst.msk [vmem:[#allocation2 + $0xa9] sm:$0xff] %vm333_vm0, %v457_v14 }
  0x2d   : > { %489 = vst.msk [vmem:[#allocation2 + $0x99] sm:$0xff] %vm333_vm0, %v456_v15  ;;  %492 = vst.msk [vmem:[#allocation2 + $0xc1] sm:$0xff] %vm333_vm0, %v459_v16 }
  0x2e   : > { %491 = vst.msk [vmem:[#allocation2 + $0xb1] sm:$0xff] %vm333_vm0, %v458_v17  ;;  %494 = vst.msk [vmem:[#allocation2 + $0xd9] sm:$0xff] %vm333_vm0, %v461_v18  ;;  %v9779_v25 = vld [vmem:[#allocation2 + $0x19] sm:$0xff]  ;;  %v9781_v26 = vld [vmem:[#allocation2 + $0x31] sm:$0xff] }
  0x2f   : > { %493 = vst.msk [vmem:[#allocation2 + $0xc9] sm:$0xff] %vm333_vm0, %v460_v19  ;;  %496 = vst.msk [vmem:[#allocation2 + $0xf1] sm:$0xff] %vm333_vm0, %v463_v20  ;;  %835 = vrot.lane.b32.xlu1 %v9779_v25, %s9540_s16  ;;  %v9788_v27 = vld [vmem:[#allocation2 + $0x21] sm:$0xff]  ;;  %839 = vrot.lane.b32.xlu0 %v9781_v26, %s9540_s16  ;;  %v9796_v30 = vld [vmem:[#allocation2 + $0x49] sm:$0xff] }
  0x30   : > { %495 = vst.msk [vmem:[#allocation2 + $0xe1] sm:$0xff] %vm333_vm0, %v462_v21  ;;  %498 = vst.msk [vmem:[#allocation2 + $0x109] sm:$0xff] %vm333_vm0, %v465_v22  ;;  %v9800_v31 = vld [vmem:[#allocation2 + $0x39] sm:$0xff]  ;;  %v9804_v32 = vld [vmem:[#allocation2 + $0x61] sm:$0xff] }
  0x31   : > { %497 = vst.msk [vmem:[#allocation2 + $0xf9] sm:$0xff] %vm333_vm0, %v464_v23  ;;  %500 = vst.msk [vmem:[#allocation2 + $0x121] sm:$0xff] %vm333_vm0, %v467_v24  ;;  %v9816_v38 = vld [vmem:[#allocation2 + $0x51] sm:$0xff]  ;;  %v9824_v40 = vld [vmem:[#allocation2 + $0x79] sm:$0xff] }
  0x32   : > { %499 = vst.msk [vmem:[#allocation2 + $0x111] sm:$0xff] %vm333_vm0, %v466_v28  ;;  %502 = vst.msk [vmem:[#allocation2 + $0x139] sm:$0xff] %vm333_vm0, %v469_v29  ;;  %v9828_v41 = vld [vmem:[#allocation2 + $0x69] sm:$0xff]  ;;  %v9832_v42 = vld [vmem:[#allocation2 + $0x91] sm:$0xff] }
  0x33   : > { %837 = vrot.lane.b32.xlu1 %v9788_v27, %s9540_s16  ;;  %843 = vrot.lane.b32.xlu0 %v9796_v30, %s9540_s16  ;;  %501 = vst.msk [vmem:[#allocation2 + $0x129] sm:$0xff] %vm333_vm0, %v468_v33  ;;  %504 = vst.msk [vmem:[#allocation2 + $0x151] sm:$0xff] %vm333_vm0, %v471_v34  ;;  %v9836_v43 = vld [vmem:[#allocation2 + $0x81] sm:$0xff]  ;;  %v9840_v44 = vld [vmem:[#allocation2 + $0xa9] sm:$0xff] }
  0x34   : > { %503 = vst.msk [vmem:[#allocation2 + $0x141] sm:$0xff] %vm333_vm0, %v470_v35  ;;  %506 = vst.msk [vmem:[#allocation2 + $0x169] sm:$0xff] %vm333_vm0, %v473_v36  ;;  %v9844_v45 = vld [vmem:[#allocation2 + $0x99] sm:$0xff]  ;;  %v9848_v46 = vld [vmem:[#allocation2 + $0xc1] sm:$0xff] }
  0x35   : > { %505 = vst.msk [vmem:[#allocation2 + $0x159] sm:$0xff] %vm333_vm0, %v472_v37  ;;  %507 = vst.msk [vmem:[#allocation2 + $0x171] sm:$0xff] %vm333_vm0, %v474_v39  ;;  %v9852_v47 = vld [vmem:[#allocation2 + $0xb1] sm:$0xff]  ;;  %v9856_v48 = vld [vmem:[#allocation2 + $0xd9] sm:$0xff] }
  0x36   : > { %v9860_v49 = vld [vmem:[#allocation2 + $0xc9] sm:$0xff]  ;;  %v9864_v50 = vld [vmem:[#allocation2 + $0xf1] sm:$0xff]  ;;  %508 = vst.msk [vmem:[#allocation2 + $0x181] sm:$0xff] %vm333_vm0, %v475_v58  ;;  %509 = vst.msk [vmem:[#allocation2 + $0x189] sm:$0xff] %vm333_vm0, %v476_v62 }
  0x37   : > { %841 = vrot.lane.b32.xlu1 %v9800_v31, %s9540_s16  ;;  %847 = vrot.lane.b32.xlu0 %v9804_v32, %s9540_s16  ;;  %v9868_v51 = vld [vmem:[#allocation2 + $0xe1] sm:$0xff]  ;;  %v9872_v52 = vld [vmem:[#allocation2 + $0x109] sm:$0xff]  ;;  %v9927_v5 = vld [vmem:[#allocation2 + $0x32] sm:$0xff] }
  0x38   : > { %v9876_v53 = vld [vmem:[#allocation2 + $0xf9] sm:$0xff]  ;;  %v9880_v54 = vld [vmem:[#allocation2 + $0x121] sm:$0xff]  ;;  %v9934_v7 = vld [vmem:[#allocation2 + $0x4a] sm:$0xff] }
  0x39   : > { %v9884_v55 = vld [vmem:[#allocation2 + $0x111] sm:$0xff]  ;;  %v9888_v56 = vld [vmem:[#allocation2 + $0x139] sm:$0xff]  ;;  %v9930_v6 = vld [vmem:[#allocation2 + $0x22] sm:$0xff] }
  0x3a   : > { %v9892_v57 = vld [vmem:[#allocation2 + $0x129] sm:$0xff]  ;;  %v9898_v59 = vld [vmem:[#allocation2 + $0x151] sm:$0xff]  ;;  %v9921_v3 = vld [vmem:[#allocation2 + $0x1a] sm:$0xff] }
  0x3b   : > { %845 = vrot.lane.b32.xlu1 %v9816_v38, %s9540_s16  ;;  %851 = vrot.lane.b32.xlu0 %v9824_v40, %s9540_s16  ;;  %v9902_v60 = vld [vmem:[#allocation2 + $0x141] sm:$0xff]  ;;  %v9906_v61 = vld [vmem:[#allocation2 + $0x169] sm:$0xff]  ;;  %v9946_v10 = vld [vmem:[#allocation2 + $0x52] sm:$0xff] }
  0x3c   : > { %v9912_v63 = vld [vmem:[#allocation2 + $0x159] sm:$0xff]  ;;  %v9918_v2 = vld [vmem:[#allocation2 + $0x171] sm:$0xff]  ;;  %v9942_v9 = vld [vmem:[#allocation2 + $0x62] sm:$0xff] }
  0x3d   : > { %v9938_v8 = vld [vmem:[#allocation2 + $0x3a] sm:$0xff]  ;;  %v9954_v12 = vld [vmem:[#allocation2 + $0x6a] sm:$0xff]  ;;  %v9958_v13 = vld [vmem:[#allocation2 + $0x92] sm:$0xff] }
  0x3e   : > { %v9950_v11 = vld [vmem:[#allocation2 + $0x7a] sm:$0xff]  ;;  %v9962_v14 = vld [vmem:[#allocation2 + $0x82] sm:$0xff]  ;;  %v9966_v15 = vld [vmem:[#allocation2 + $0xaa] sm:$0xff] }
  0x3f   : > { %849 = vrot.lane.b32.xlu1 %v9828_v41, %s9540_s16  ;;  %855 = vrot.lane.b32.xlu0 %v9832_v42, %s9540_s16  ;;  %v9970_v16 = vld [vmem:[#allocation2 + $0x9a] sm:$0xff]  ;;  %v9974_v17 = vld [vmem:[#allocation2 + $0xc2] sm:$0xff]  ;;  %v9978_v18 = vld [vmem:[#allocation2 + $0xb2] sm:$0xff] }
  0x40   : > { %v9982_v19 = vld [vmem:[#allocation2 + $0xda] sm:$0xff]  ;;  %v9986_v20 = vld [vmem:[#allocation2 + $0xca] sm:$0xff]  ;;  %v9990_v21 = vld [vmem:[#allocation2 + $0xf2] sm:$0xff] }
  0x41   : > { %v9994_v22 = vld [vmem:[#allocation2 + $0xe2] sm:$0xff]  ;;  %v9998_v23 = vld [vmem:[#allocation2 + $0x10a] sm:$0xff]  ;;  %v10002_v24 = vld [vmem:[#allocation2 + $0xfa] sm:$0xff] }
  0x42   : > { %v10006_v28 = vld [vmem:[#allocation2 + $0x122] sm:$0xff]  ;;  %v10010_v29 = vld [vmem:[#allocation2 + $0x112] sm:$0xff]  ;;  %v10014_v33 = vld [vmem:[#allocation2 + $0x13a] sm:$0xff] }
  0x43   : > { %853 = vrot.lane.b32.xlu1 %v9836_v43, %s9540_s16  ;;  %859 = vrot.lane.b32.xlu0 %v9840_v44, %s9540_s16  ;;  %v10020_v35 = vld [vmem:[#allocation2 + $0x12a] sm:$0xff]  ;;  %v10024_v36 = vld [vmem:[#allocation2 + $0x152] sm:$0xff]  ;;  %v10030_v39 = vld [vmem:[#allocation2 + $0x142] sm:$0xff] }
  0x44   : > { %14722 = vst [vmem:[#allocation5_spill] sm:$0xff] %v10020_v35  ;;  %14723 = vst [vmem:[#allocation6_spill] sm:$0xff] %v10024_v36  ;;  %v10036_v62 = vld [vmem:[#allocation2 + $0x16a] sm:$0xff] }
  0x45   : > { %14725 = vst [vmem:[#allocation8_spill] sm:$0xff] %v10030_v39  ;;  %14727 = vst [vmem:[#allocation10_spill] sm:$0xff] %v10036_v62 }
  0x47   : > { %857 = vrot.lane.b32.xlu1 %v9844_v45, %s9540_s16  ;;  %863 = vrot.lane.b32.xlu0 %v9848_v46, %s9540_s16 }
  0x4b   : > { %861 = vrot.lane.b32.xlu1 %v9852_v47, %s9540_s16  ;;  %867 = vrot.lane.b32.xlu0 %v9856_v48, %s9540_s16 }
  0x4f   : > { %865 = vrot.lane.b32.xlu1 %v9860_v49, %s9540_s16  ;;  %871 = vrot.lane.b32.xlu0 %v9864_v50, %s9540_s16 }
  0x53   : > { %869 = vrot.lane.b32.xlu1 %v9868_v51, %s9540_s16  ;;  %875 = vrot.lane.b32.xlu0 %v9872_v52, %s9540_s16 }
  0x57   : > { %873 = vrot.lane.b32.xlu1 %v9876_v53, %s9540_s16  ;;  %879 = vrot.lane.b32.xlu0 %v9880_v54, %s9540_s16 }
  0x5b   : > { %877 = vrot.lane.b32.xlu1 %v9884_v55, %s9540_s16  ;;  %883 = vrot.lane.b32.xlu0 %v9888_v56, %s9540_s16 }
  0x5f   : > { %881 = vrot.lane.b32.xlu1 %v9892_v57, %s9540_s16  ;;  %887 = vrot.lane.b32.xlu0 %v9898_v59, %s9540_s16 }
  0x63   : > { %885 = vrot.lane.b32.xlu1 %v9902_v60, %s9540_s16  ;;  %891 = vrot.lane.b32.xlu0 %v9906_v61, %s9540_s16 }
  0x67   : > { %889 = vrot.lane.b32.xlu1 %v9912_v63, %s9540_s16  ;;  %959 = vrot.lane.b32.xlu0 %v574_v1, %s9541_s17 }
  0x6b   : > { %893 = vrot.lane.b32.xlu1 %v9918_v2, %s9540_s16  ;;  %963 = vrot.lane.b32.xlu0 %v9921_v3, %s9541_s17 }
  0x6f   : > { %961 = vrot.lane.b32.xlu1 %v575_v4, %s9541_s17  ;;  %967 = vrot.lane.b32.xlu0 %v9927_v5, %s9541_s17  ;;  %v10042_v4 = vld [vmem:[#allocation2 + $0x15a] sm:$0xff] }
  0x70   : > { %14729 = vst [vmem:[#allocation12_spill] sm:$0xff] %v10042_v4 }
  0x73   : > { %965 = vrot.lane.b32.xlu1 %v9930_v6, %s9541_s17  ;;  %971 = vrot.lane.b32.xlu0 %v9934_v7, %s9541_s17 }
  0x77   : > { %969 = vrot.lane.b32.xlu1 %v9938_v8, %s9541_s17  ;;  %975 = vrot.lane.b32.xlu0 %v9942_v9, %s9541_s17 }
  0x7b   : > { %973 = vrot.lane.b32.xlu1 %v9946_v10, %s9541_s17  ;;  %979 = vrot.lane.b32.xlu0 %v9950_v11, %s9541_s17 }
  0x7f   : > { %977 = vrot.lane.b32.xlu1 %v9954_v12, %s9541_s17  ;;  %983 = vrot.lane.b32.xlu0 %v9958_v13, %s9541_s17 }
  0x83   : > { %981 = vrot.lane.b32.xlu1 %v9962_v14, %s9541_s17  ;;  %987 = vrot.lane.b32.xlu0 %v9966_v15, %s9541_s17 }
  0x86   : > { %v10016_v34 = vpop.permute.xlu0 %831 }
  0x87   : > { %985 = vrot.lane.b32.xlu1 %v9970_v16, %s9541_s17  ;;  %991 = vrot.lane.b32.xlu0 %v9974_v17, %s9541_s17  ;;  %14721 = vst [vmem:[#allocation4_spill] sm:$0xff] %v10016_v34  ;;  %v10052_v34 = vld [vmem:[#allocation2 + $0x172] sm:$0xff] }
  0x88   : > { %14732 = vst [vmem:[#allocation15_spill] sm:$0xff] %v10052_v34 }
  0x8b   : > { %989 = vrot.lane.b32.xlu1 %v9978_v18, %s9541_s17  ;;  %995 = vrot.lane.b32.xlu0 %v9982_v19, %s9541_s17 }
  0x8f   : > { %993 = vrot.lane.b32.xlu1 %v9986_v20, %s9541_s17  ;;  %999 = vrot.lane.b32.xlu0 %v9990_v21, %s9541_s17 }
  0x93   : > { %997 = vrot.lane.b32.xlu1 %v9994_v22, %s9541_s17  ;;  %1003 = vrot.lane.b32.xlu0 %v9998_v23, %s9541_s17 }
  0x97   : > { %1001 = vrot.lane.b32.xlu1 %v10002_v24, %s9541_s17  ;;  %1007 = vrot.lane.b32.xlu0 %v10006_v28, %s9541_s17 }
  0x98   : > { %v10026_v37 = vpop.permute.xlu0 %833 }
  0x99   : > { %14724 = vst [vmem:[#allocation7_spill] sm:$0xff] %v10026_v37 }
  0x9b   : > { %1005 = vrot.lane.b32.xlu1 %v10010_v29, %s9541_s17  ;;  %1011 = vrot.lane.b32.xlu0 %v10014_v33, %s9541_s17 }
  0x9f   : > { %1009 = vrot.lane.b32.xlu1 %v10020_v35, %s9541_s17  ;;  %1015 = vrot.lane.b32.xlu0 %v10024_v36, %s9541_s17  ;;  %v636_v35 = vld [vmem:[#allocation2 + $0x180] sm:$0xff] }
  0xa1   : > { %v10034_v58 = vpop.permute.xlu1 %835  ;;  %v10038_v1 = vpop.permute.xlu0 %839 }
  0xa2   : > { %14726 = vst [vmem:[#allocation9_spill] sm:$0xff] %v10034_v58  ;;  %14728 = vst [vmem:[#allocation11_spill] sm:$0xff] %v10038_v1  ;;  %v512_v58 = vld [vmem:[#allocation2 + $0x18] sm:$0xff] }
  0xa3   : > { %1013 = vrot.lane.b32.xlu1 %v10030_v39, %s9541_s17  ;;  %1019 = vrot.lane.b32.xlu0 %v10036_v62, %s9541_s17  ;;  %v10061_v62 = vld [vmem:[#allocation2 + $0x30] sm:$0xff] }
  0xa4   : > { %14735 = vst [vmem:[#allocation18_spill] sm:$0xff] %v10061_v62 }
  0xa5   : > { %v10046_v0 = vpop.permute.xlu1 %837  ;;  %v10048_v37 = vpop.permute.xlu0 %843 }
  0xa6   : > { %14730 = vst [vmem:[#allocation13_spill] sm:$0xff] %v10046_v0  ;;  %14731 = vst [vmem:[#allocation14_spill] sm:$0xff] %v10048_v37  ;;  %v513_v0 = vld [vmem:[#allocation2 + $0x20] sm:$0xff] }
  0xa7   : > { %1017 = vrot.lane.b32.xlu1 %v10042_v4, %s9541_s17  ;;  %1087 = vrot.lane.b32.xlu0 %v512_v58, %s9542_s18  ;;  %v10070_v58 = vld [vmem:[#allocation2 + $0x48] sm:$0xff] }
  0xa8   : > { %14738 = vst [vmem:[#allocation21_spill] sm:$0xff] %v10070_v58 }
  0xa9   : > { %v10055_v1 = vpop.permute.xlu1 %841  ;;  %v10057_v39 = vpop.permute.xlu0 %847 }
  0xaa   : > { %14733 = vst [vmem:[#allocation16_spill] sm:$0xff] %v10055_v1  ;;  %14734 = vst [vmem:[#allocation17_spill] sm:$0xff] %v10057_v39  ;;  %v10076_v1 = vld [vmem:[#allocation2 + $0x38] sm:$0xff] }
  0xab   : > { %1021 = vrot.lane.b32.xlu1 %v10052_v34, %s9541_s17  ;;  %1091 = vrot.lane.b32.xlu0 %v10061_v62, %s9542_s18  ;;  %14740 = vst [vmem:[#allocation23_spill] sm:$0xff] %v10076_v1  ;;  %s9548_s17 = smov 64  }
  0xad   : > { %v10065_v37 = vpop.permute.xlu1 %845  ;;  %v10067_v4 = vpop.permute.xlu0 %851 }
  0xae   : > { %14736 = vst [vmem:[#allocation19_spill] sm:$0xff] %v10065_v37  ;;  %14737 = vst [vmem:[#allocation20_spill] sm:$0xff] %v10067_v4  ;;  %v10082_v37 = vld [vmem:[#allocation2 + $0x60] sm:$0xff]  ;;  %v10088_v4 = vld [vmem:[#allocation2 + $0x50] sm:$0xff] }
  0xaf   : > { %1089 = vrot.lane.b32.xlu1 %v513_v0, %s9542_s18  ;;  %1095 = vrot.lane.b32.xlu0 %v10070_v58, %s9542_s18  ;;  %14742 = vst [vmem:[#allocation25_spill] sm:$0xff] %v10082_v37  ;;  %14744 = vst [vmem:[#allocation27_spill] sm:$0xff] %v10088_v4 }
  0xb1   : > { %v10074_v39 = vpop.permute.xlu1 %849  ;;  %v10078_v34 = vpop.permute.xlu0 %855 }
  0xb2   : > { %14739 = vst [vmem:[#allocation22_spill] sm:$0xff] %v10074_v39  ;;  %14741 = vst [vmem:[#allocation24_spill] sm:$0xff] %v10078_v34  ;;  %v10094_v39 = vld [vmem:[#allocation2 + $0x78] sm:$0xff] }
  0xb3   : > { %1093 = vrot.lane.b32.xlu1 %v10076_v1, %s9542_s18  ;;  %1099 = vrot.lane.b32.xlu0 %v10082_v37, %s9542_s18  ;;  %14746 = vst [vmem:[#allocation29_spill] sm:$0xff] %v10094_v39  ;;  %v10100_v1 = vld [vmem:[#allocation2 + $0x68] sm:$0xff] }
  0xb4   : > { %14748 = vst [vmem:[#allocation31_spill] sm:$0xff] %v10100_v1 }
  0xb5   : > { %v10086_v0 = vpop.permute.xlu1 %853  ;;  %v10090_v62 = vpop.permute.xlu0 %859 }
  0xb6   : > { %14743 = vst [vmem:[#allocation26_spill] sm:$0xff] %v10086_v0  ;;  %14745 = vst [vmem:[#allocation28_spill] sm:$0xff] %v10090_v62  ;;  %v10106_v0 = vld [vmem:[#allocation2 + $0x90] sm:$0xff] }
  0xb7   : > { %1097 = vrot.lane.b32.xlu1 %v10088_v4, %s9542_s18  ;;  %1103 = vrot.lane.b32.xlu0 %v10094_v39, %s9542_s18  ;;  %14750 = vst [vmem:[#allocation33_spill] sm:$0xff] %v10106_v0  ;;  %v10112_v4 = vld [vmem:[#allocation2 + $0x80] sm:$0xff] }
  0xb8   : > { %14752 = vst [vmem:[#allocation35_spill] sm:$0xff] %v10112_v4 }
  0xb9   : > { %v10098_v34 = vpop.permute.xlu1 %857  ;;  %v10102_v58 = vpop.permute.xlu0 %863 }
  0xba   : > { %14747 = vst [vmem:[#allocation30_spill] sm:$0xff] %v10098_v34  ;;  %14749 = vst [vmem:[#allocation32_spill] sm:$0xff] %v10102_v58  ;;  %v10118_v34 = vld [vmem:[#allocation2 + $0xa8] sm:$0xff] }
  0xbb   : > { %1101 = vrot.lane.b32.xlu1 %v10100_v1, %s9542_s18  ;;  %1107 = vrot.lane.b32.xlu0 %v10106_v0, %s9542_s18  ;;  %14754 = vst [vmem:[#allocation37_spill] sm:$0xff] %v10118_v34  ;;  %v10124_v1 = vld [vmem:[#allocation2 + $0x98] sm:$0xff] }
  0xbc   : > { %14756 = vst [vmem:[#allocation39_spill] sm:$0xff] %v10124_v1 }
  0xbd   : > { %v10110_v62 = vpop.permute.xlu1 %861  ;;  %v10114_v37 = vpop.permute.xlu0 %867 }
  0xbe   : > { %14751 = vst [vmem:[#allocation34_spill] sm:$0xff] %v10110_v62  ;;  %14753 = vst [vmem:[#allocation36_spill] sm:$0xff] %v10114_v37  ;;  %v10130_v62 = vld [vmem:[#allocation2 + $0xc0] sm:$0xff] }
  0xbf   : > { %1105 = vrot.lane.b32.xlu1 %v10112_v4, %s9542_s18  ;;  %1111 = vrot.lane.b32.xlu0 %v10118_v34, %s9542_s18  ;;  %14758 = vst [vmem:[#allocation41_spill] sm:$0xff] %v10130_v62  ;;  %v10136_v4 = vld [vmem:[#allocation2 + $0xb0] sm:$0xff] }
  0xc0   : > { %14760 = vst [vmem:[#allocation43_spill] sm:$0xff] %v10136_v4 }
  0xc1   : > { %v10122_v58 = vpop.permute.xlu1 %865  ;;  %v10126_v39 = vpop.permute.xlu0 %871 }
  0xc2   : > { %14755 = vst [vmem:[#allocation38_spill] sm:$0xff] %v10122_v58  ;;  %14757 = vst [vmem:[#allocation40_spill] sm:$0xff] %v10126_v39  ;;  %v10142_v58 = vld [vmem:[#allocation2 + $0xd8] sm:$0xff] }
  0xc3   : > { %1109 = vrot.lane.b32.xlu1 %v10124_v1, %s9542_s18  ;;  %1115 = vrot.lane.b32.xlu0 %v10130_v62, %s9542_s18  ;;  %14762 = vst [vmem:[#allocation45_spill] sm:$0xff] %v10142_v58  ;;  %v10148_v1 = vld [vmem:[#allocation2 + $0xc8] sm:$0xff] }
  0xc4   : > { %14764 = vst [vmem:[#allocation47_spill] sm:$0xff] %v10148_v1 }
  0xc5   : > { %v10134_v37 = vpop.permute.xlu1 %869  ;;  %v10138_v0 = vpop.permute.xlu0 %875 }
  0xc6   : > { %14759 = vst [vmem:[#allocation42_spill] sm:$0xff] %v10134_v37  ;;  %14761 = vst [vmem:[#allocation44_spill] sm:$0xff] %v10138_v0  ;;  %v10154_v37 = vld [vmem:[#allocation2 + $0xf0] sm:$0xff] }
  0xc7   : > { %1113 = vrot.lane.b32.xlu1 %v10136_v4, %s9542_s18  ;;  %1119 = vrot.lane.b32.xlu0 %v10142_v58, %s9542_s18  ;;  %14766 = vst [vmem:[#allocation49_spill] sm:$0xff] %v10154_v37  ;;  %v10160_v4 = vld [vmem:[#allocation2 + $0xe0] sm:$0xff] }
  0xc8   : > { %14768 = vst [vmem:[#allocation51_spill] sm:$0xff] %v10160_v4 }
  0xc9   : > { %v10146_v39 = vpop.permute.xlu1 %873  ;;  %v10150_v34 = vpop.permute.xlu0 %879 }
  0xca   : > { %14763 = vst [vmem:[#allocation46_spill] sm:$0xff] %v10146_v39  ;;  %14765 = vst [vmem:[#allocation48_spill] sm:$0xff] %v10150_v34  ;;  %v10166_v39 = vld [vmem:[#allocation2 + $0x108] sm:$0xff] }
  0xcb   : > { %1117 = vrot.lane.b32.xlu1 %v10148_v1, %s9542_s18  ;;  %1123 = vrot.lane.b32.xlu0 %v10154_v37, %s9542_s18  ;;  %14770 = vst [vmem:[#allocation53_spill] sm:$0xff] %v10166_v39  ;;  %v10172_v1 = vld [vmem:[#allocation2 + $0xf8] sm:$0xff] }
  0xcc   : > { %14772 = vst [vmem:[#allocation55_spill] sm:$0xff] %v10172_v1 }
  0xcd   : > { %v10158_v0 = vpop.permute.xlu1 %877  ;;  %v10162_v62 = vpop.permute.xlu0 %883 }
  0xce   : > { %14767 = vst [vmem:[#allocation50_spill] sm:$0xff] %v10158_v0  ;;  %14769 = vst [vmem:[#allocation52_spill] sm:$0xff] %v10162_v62  ;;  %v534_v0 = vld [vmem:[#allocation2 + $0x120] sm:$0xff] }
  0xcf   : > { %1121 = vrot.lane.b32.xlu1 %v10160_v4, %s9542_s18  ;;  %1127 = vrot.lane.b32.xlu0 %v10166_v39, %s9542_s18  ;;  %v10181_v4 = vld [vmem:[#allocation2 + $0x110] sm:$0xff] }
  0xd0   : > { %14775 = vst [vmem:[#allocation58_spill] sm:$0xff] %v10181_v4 }
  0xd1   : > { %v10170_v34 = vpop.permute.xlu1 %881  ;;  %v10174_v58 = vpop.permute.xlu0 %887 }
  0xd2   : > { %14771 = vst [vmem:[#allocation54_spill] sm:$0xff] %v10170_v34  ;;  %14773 = vst [vmem:[#allocation56_spill] sm:$0xff] %v10174_v58  ;;  %v536_v34 = vld [vmem:[#allocation2 + $0x138] sm:$0xff]  ;;  %v535_v58 = vld [vmem:[#allocation2 + $0x128] sm:$0xff] }
  0xd3   : > { %1125 = vrot.lane.b32.xlu1 %v10172_v1, %s9542_s18  ;;  %1131 = vrot.lane.b32.xlu0 %v534_v0, %s9542_s18  ;;  %v538_v0 = vld [vmem:[#allocation2 + $0x150] sm:$0xff]  ;;  %v537_v1 = vld [vmem:[#allocation2 + $0x140] sm:$0xff] }
  0xd5   : > { %v10179_v62 = vpop.permute.xlu1 %885  ;;  %v10183_v37 = vpop.permute.xlu0 %891 }
  0xd6   : > { %14774 = vst [vmem:[#allocation57_spill] sm:$0xff] %v10179_v62  ;;  %14776 = vst [vmem:[#allocation59_spill] sm:$0xff] %v10183_v37 }
  0xd7   : > { %1129 = vrot.lane.b32.xlu1 %v10181_v4, %s9542_s18  ;;  %1135 = vrot.lane.b32.xlu0 %v536_v34, %s9542_s18  ;;  %v540_v4 = vld [vmem:[#allocation2 + $0x168] sm:$0xff] }
  0xd9   : > { %v10188_v39 = vpop.permute.xlu1 %889  ;;  %v10190_v36 = vpop.permute.xlu0 %959 }
  0xda   : > { %14777 = vst [vmem:[#allocation60_spill] sm:$0xff] %v10188_v39  ;;  %14778 = vst [vmem:[#allocation61_spill] sm:$0xff] %v10190_v36  ;;  %v539_v39 = vld [vmem:[#allocation2 + $0x158] sm:$0xff] }
  0xdb   : > { %1133 = vrot.lane.b32.xlu1 %v535_v58, %s9542_s18  ;;  %1139 = vrot.lane.b32.xlu0 %v538_v0, %s9542_s18  ;;  %v541_v0 = vld [vmem:[#allocation2 + $0x170] sm:$0xff] }
  0xdd   : > { %v10194_v62 = vpop.permute.xlu1 %893  ;;  %v10196_v37 = vpop.permute.xlu0 %963 }
  0xde   : > { %14779 = vst [vmem:[#allocation62_spill] sm:$0xff] %v10194_v62  ;;  %14780 = vst [vmem:[#allocation63_spill] sm:$0xff] %v10196_v37 }
  0xdf   : > { %1137 = vrot.lane.b32.xlu1 %v537_v1, %s9542_s18  ;;  %1143 = vrot.lane.b32.xlu0 %v540_v4, %s9542_s18  ;;  %v637_v1 = vld [vmem:[#allocation2 + $0x188] sm:$0xff] }
  0xe1   : > { %v10200_v34 = vpop.permute.xlu1 %961  ;;  %v10202_v36 = vpop.permute.xlu0 %967 }
  0xe3   : > { %1141 = vrot.lane.b32.xlu1 %v539_v39, %s9542_s18  ;;  %1147 = vrot.lane.b32.xlu0 %v636_v35, %s9542_s18 }
  0xe5   : > { %v10206_v58 = vpop.permute.xlu1 %965  ;;  %v10208_v62 = vpop.permute.xlu0 %971 }
  0xe7   : > { %1145 = vrot.lane.b32.xlu1 %v541_v0, %s9542_s18  ;;  %1215 = vrot.lane.b32.xlu0 %v9779_v25, %s9543_s19 }
  0xe9   : > { %v10213_v4 = vpop.permute.xlu1 %969  ;;  %v10215_v37 = vpop.permute.xlu0 %975 }
  0xeb   : > { %1149 = vrot.lane.b32.xlu1 %v637_v1, %s9542_s18  ;;  %1219 = vrot.lane.b32.xlu0 %v9781_v26, %s9543_s19 }
  0xed   : > { %v10220_v35 = vpop.permute.xlu1 %973  ;;  %v10222_v39 = vpop.permute.xlu0 %979 }
  0xef   : > { %1217 = vrot.lane.b32.xlu1 %v9788_v27, %s9543_s19  ;;  %1223 = vrot.lane.b32.xlu0 %v9796_v30, %s9543_s19 }
  0xf1   : > { %v10228_v25 = vpop.permute.xlu1 %977  ;;  %v10230_v0 = vpop.permute.xlu0 %983 }
  0xf2   : > { %14781 = vst [vmem:[#allocation64_spill] sm:$0xff] %v10230_v0 }
  0xf3   : > { %1221 = vrot.lane.b32.xlu1 %v9800_v31, %s9543_s19  ;;  %1227 = vrot.lane.b32.xlu0 %v9804_v32, %s9543_s19 }
  0xf5   : > { %v10236_v26 = vpop.permute.xlu1 %981  ;;  %v10238_v1 = vpop.permute.xlu0 %987 }
  0xf6   : > { %14782 = vst [vmem:[#allocation65_spill] sm:$0xff] %v10236_v26  ;;  %14783 = vst [vmem:[#allocation66_spill] sm:$0xff] %v10238_v1  ;;  %v747_v1 = vld [vmem:[#allocation2 + $0xc1] sm:$0xff] }
  0xf7   : > { %1225 = vrot.lane.b32.xlu1 %v9816_v38, %s9543_s19  ;;  %1231 = vrot.lane.b32.xlu0 %v9824_v40, %s9543_s19 }
  0xf9   : > { %v10244_v27 = vpop.permute.xlu1 %985  ;;  %v10246_v30 = vpop.permute.xlu0 %991 }
  0xfa   : > { %14784 = vst [vmem:[#allocation67_spill] sm:$0xff] %v10244_v27  ;;  %14785 = vst [vmem:[#allocation68_spill] sm:$0xff] %v10246_v30  ;;  %v775_v30 = vld [vmem:[#allocation2 + $0x92] sm:$0xff] }
  0xfb   : > { %1229 = vrot.lane.b32.xlu1 %v9828_v41, %s9543_s19  ;;  %1235 = vrot.lane.b32.xlu0 %v9832_v42, %s9543_s19 }
  0xfd   : > { %v10252_v31 = vpop.permute.xlu1 %989  ;;  %v10254_v32 = vpop.permute.xlu0 %995 }
  0xfe   : > { %14786 = vst [vmem:[#allocation69_spill] sm:$0xff] %v10252_v31  ;;  %14787 = vst [vmem:[#allocation70_spill] sm:$0xff] %v10254_v32  ;;  %v745_v31 = vld [vmem:[#allocation2 + $0xa9] sm:$0xff] }
  0xff   : > { %1233 = vrot.lane.b32.xlu1 %v9836_v43, %s9543_s19  ;;  %1239 = vrot.lane.b32.xlu0 %v9840_v44, %s9543_s19 }
 0x101   : > { %v10260_v38 = vpop.permute.xlu1 %993  ;;  %v10262_v40 = vpop.permute.xlu0 %999 }
 0x102   : > { %14788 = vst [vmem:[#allocation71_spill] sm:$0xff] %v10260_v38  ;;  %14789 = vst [vmem:[#allocation72_spill] sm:$0xff] %v10262_v40  ;;  %v773_v38 = vld [vmem:[#allocation2 + $0x7a] sm:$0xff] }
 0x103   : > { %1237 = vrot.lane.b32.xlu1 %v9844_v45, %s9543_s19  ;;  %1243 = vrot.lane.b32.xlu0 %v9848_v46, %s9543_s19 }
 0x105   : > { %v10268_v41 = vpop.permute.xlu1 %997  ;;  %v10270_v42 = vpop.permute.xlu0 %1003 }
 0x106   : > { %14790 = vst [vmem:[#allocation73_spill] sm:$0xff] %v10268_v41  ;;  %14791 = vst [vmem:[#allocation74_spill] sm:$0xff] %v10270_v42 }
 0x107   : > { %1241 = vrot.lane.b32.xlu1 %v9852_v47, %s9543_s19  ;;  %1247 = vrot.lane.b32.xlu0 %v9856_v48, %s9543_s19 }
 0x109   : > { %v10276_v43 = vpop.permute.xlu1 %1001  ;;  %v10278_v44 = vpop.permute.xlu0 %1007 }
 0x10a   : > { %14792 = vst [vmem:[#allocation75_spill] sm:$0xff] %v10276_v43  ;;  %14793 = vst [vmem:[#allocation76_spill] sm:$0xff] %v10278_v44  ;;  %v14834_v44 = vld [vmem:[#allocation27_spill] sm:$0xff] }
 0x10b   : > { %1245 = vrot.lane.b32.xlu1 %v9860_v49, %s9543_s19  ;;  %1251 = vrot.lane.b32.xlu0 %v9864_v50, %s9543_s19 }
 0x10d   : > { %v10284_v45 = vpop.permute.xlu1 %1005  ;;  %v10286_v46 = vpop.permute.xlu0 %1011 }
 0x10e   : > { %14794 = vst [vmem:[#allocation77_spill] sm:$0xff] %v10284_v45  ;;  %14795 = vst [vmem:[#allocation78_spill] sm:$0xff] %v10286_v46 }
 0x10f   : > { %1249 = vrot.lane.b32.xlu1 %v9868_v51, %s9543_s19  ;;  %1255 = vrot.lane.b32.xlu0 %v9872_v52, %s9543_s19 }
 0x111   : > { %v10292_v47 = vpop.permute.xlu1 %1009  ;;  %v10294_v48 = vpop.permute.xlu0 %1015 }
 0x112   : > { %14796 = vst [vmem:[#allocation79_spill] sm:$0xff] %v10292_v47  ;;  %14797 = vst [vmem:[#allocation80_spill] sm:$0xff] %v10294_v48  ;;  %v14832_v47 = vld [vmem:[#allocation25_spill] sm:$0xff] }
 0x113   : > { %1253 = vrot.lane.b32.xlu1 %v9876_v53, %s9543_s19  ;;  %1259 = vrot.lane.b32.xlu0 %v9880_v54, %s9543_s19 }
 0x115   : > { %v10300_v49 = vpop.permute.xlu1 %1013  ;;  %v10302_v50 = vpop.permute.xlu0 %1019 }
 0x116   : > { %14798 = vst [vmem:[#allocation81_spill] sm:$0xff] %v10300_v49  ;;  %14799 = vst [vmem:[#allocation82_spill] sm:$0xff] %v10302_v50 }
 0x117   : > { %1257 = vrot.lane.b32.xlu1 %v9884_v55, %s9543_s19  ;;  %1263 = vrot.lane.b32.xlu0 %v9888_v56, %s9543_s19  ;;  %v668_v56 = vld [vmem:[#allocation2 + $0x181] sm:$0xff] }
 0x119   : > { %v10308_v51 = vpop.permute.xlu1 %1017  ;;  %v10310_v52 = vpop.permute.xlu0 %1087 }
 0x11a   : > { %14800 = vst [vmem:[#allocation83_spill] sm:$0xff] %v10308_v51  ;;  %v14822_v51 = vld [vmem:[#allocation5_spill] sm:$0xff] }
 0x11b   : > { %1261 = vrot.lane.b32.xlu1 %v9892_v57, %s9543_s19  ;;  %1267 = vrot.lane.b32.xlu0 %v9898_v59, %s9543_s19 }
 0x11d   : > { %v10316_v53 = vpop.permute.xlu1 %1021  ;;  %v10318_v54 = vpop.permute.xlu0 %1091 }
 0x11e   : > { %14801 = vst [vmem:[#allocation84_spill] sm:$0xff] %v10316_v53 }
 0x11f   : > { %1265 = vrot.lane.b32.xlu1 %v9902_v60, %s9543_s19  ;;  %1271 = vrot.lane.b32.xlu0 %v9906_v61, %s9543_s19  ;;  %v669_v60 = vld [vmem:[#allocation2 + $0x189] sm:$0xff] }
 0x121   : > { %v10324_v55 = vpop.permute.xlu1 %1089  ;;  %v10326_v50 = vpop.permute.xlu0 %1095 }
 0x123   : > { %1269 = vrot.lane.b32.xlu1 %v9912_v63, %s9543_s19  ;;  %1275 = vrot.lane.b32.xlu0 %v668_v56, %s9543_s19 }
 0x125   : > { %v10331_v57 = vpop.permute.xlu1 %1093  ;;  %v10333_v59 = vpop.permute.xlu0 %1099 }
 0x127   : > { %1273 = vrot.lane.b32.xlu1 %v9918_v2, %s9543_s19  ;;  %1343 = vrot.lane.b32.xlu0 %v9921_v3, %s9544_s20 }
 0x129   : > { %v10339_v61 = vpop.permute.xlu1 %1097  ;;  %v10341_v53 = vpop.permute.xlu0 %1103 }
 0x12b   : > { %1277 = vrot.lane.b32.xlu1 %v669_v60, %s9543_s19  ;;  %1347 = vrot.lane.b32.xlu0 %v9927_v5, %s9544_s20 }
 0x12d   : > { %v10346_v63 = vpop.permute.xlu1 %1101  ;;  %v10348_v56 = vpop.permute.xlu0 %1107 }
 0x12f   : > { %1345 = vrot.lane.b32.xlu1 %v9930_v6, %s9544_s20  ;;  %1351 = vrot.lane.b32.xlu0 %v9934_v7, %s9544_s20 }
 0x131   : > { %v10354_v2 = vpop.permute.xlu1 %1105  ;;  %v10356_v3 = vpop.permute.xlu0 %1111 }
 0x132   : > { %14802 = vst [vmem:[#allocation85_spill] sm:$0xff] %v10356_v3 }
 0x133   : > { %1349 = vrot.lane.b32.xlu1 %v9938_v8, %s9544_s20  ;;  %1355 = vrot.lane.b32.xlu0 %v9942_v9, %s9544_s20 }
 0x135   : > { %v10362_v5 = vpop.permute.xlu1 %1109  ;;  %v10364_v60 = vpop.permute.xlu0 %1115 }
 0x136   : > { %14803 = vst [vmem:[#allocation86_spill] sm:$0xff] %v10362_v5  ;;  %14804 = vst [vmem:[#allocation87_spill] sm:$0xff] %v10364_v60  ;;  %v777_v60 = vld [vmem:[#allocation2 + $0xaa] sm:$0xff] }
 0x137   : > { %1353 = vrot.lane.b32.xlu1 %v9946_v10, %s9544_s20  ;;  %1359 = vrot.lane.b32.xlu0 %v9950_v11, %s9544_s20  ;;  %v727_v5 = vld [vmem:[#allocation2 + $0x150] sm:$0xff] }
 0x139   : > { %v10370_v6 = vpop.permute.xlu1 %1113  ;;  %v10372_v7 = vpop.permute.xlu0 %1119 }
 0x13a   : > { %14805 = vst [vmem:[#allocation88_spill] sm:$0xff] %v10370_v6  ;;  %14806 = vst [vmem:[#allocation89_spill] sm:$0xff] %v10372_v7  ;;  %v743_v7 = vld [vmem:[#allocation2 + $0x91] sm:$0xff] }
 0x13b   : > { %1357 = vrot.lane.b32.xlu1 %v9954_v12, %s9544_s20  ;;  %1363 = vrot.lane.b32.xlu0 %v9958_v13, %s9544_s20 }
 0x13d   : > { %v10378_v8 = vpop.permute.xlu1 %1117  ;;  %v10380_v9 = vpop.permute.xlu0 %1123 }
 0x13e   : > { %14807 = vst [vmem:[#allocation90_spill] sm:$0xff] %v10378_v8  ;;  %14808 = vst [vmem:[#allocation91_spill] sm:$0xff] %v10380_v9 }
 0x13f   : > { %1361 = vrot.lane.b32.xlu1 %v9962_v14, %s9544_s20  ;;  %1367 = vrot.lane.b32.xlu0 %v9966_v15, %s9544_s20 }
 0x141   : > { %v10386_v10 = vpop.permute.xlu1 %1121  ;;  %v10388_v11 = vpop.permute.xlu0 %1127 }
 0x142   : > { %14809 = vst [vmem:[#allocation92_spill] sm:$0xff] %v10386_v10  ;;  %14810 = vst [vmem:[#allocation93_spill] sm:$0xff] %v10388_v11  ;;  %v14846_v11 = vld [vmem:[#allocation39_spill] sm:$0xff] }
 0x143   : > { %1365 = vrot.lane.b32.xlu1 %v9970_v16, %s9544_s20  ;;  %1371 = vrot.lane.b32.xlu0 %v9974_v17, %s9544_s20 }
 0x145   : > { %v10394_v12 = vpop.permute.xlu1 %1125  ;;  %v10396_v13 = vpop.permute.xlu0 %1131 }
 0x146   : > { %14811 = vst [vmem:[#allocation94_spill] sm:$0xff] %v10394_v12  ;;  %14812 = vst [vmem:[#allocation95_spill] sm:$0xff] %v10396_v13  ;;  %v14838_v13 = vld [vmem:[#allocation31_spill] sm:$0xff] }
 0x147   : > { %1369 = vrot.lane.b32.xlu1 %v9978_v18, %s9544_s20  ;;  %1375 = vrot.lane.b32.xlu0 %v9982_v19, %s9544_s20  ;;  %v14850_v12 = vld [vmem:[#allocation43_spill] sm:$0xff] }
 0x149   : > { %v10402_v14 = vpop.permute.xlu1 %1129  ;;  %v10404_v15 = vpop.permute.xlu0 %1135 }
 0x14a   : > { %14813 = vst [vmem:[#allocation96_spill] sm:$0xff] %v10402_v14  ;;  %14814 = vst [vmem:[#allocation97_spill] sm:$0xff] %v10404_v15  ;;  %v14842_v14 = vld [vmem:[#allocation35_spill] sm:$0xff] }
 0x14b   : > { %1373 = vrot.lane.b32.xlu1 %v9986_v20, %s9544_s20  ;;  %1379 = vrot.lane.b32.xlu0 %v9990_v21, %s9544_s20 }
 0x14d   : > { %v10410_v16 = vpop.permute.xlu1 %1133  ;;  %v10412_v17 = vpop.permute.xlu0 %1139 }
 0x14e   : > { %14815 = vst [vmem:[#allocation98_spill] sm:$0xff] %v10410_v16  ;;  %14816 = vst [vmem:[#allocation99_spill] sm:$0xff] %v10412_v17  ;;  %v14835_v16 = vld [vmem:[#allocation29_spill] sm:$0xff] }
 0x14f   : > { %1377 = vrot.lane.b32.xlu1 %v9994_v22, %s9544_s20  ;;  %1383 = vrot.lane.b32.xlu0 %v9998_v23, %s9544_s20 }
 0x151   : > { %v10418_v18 = vpop.permute.xlu1 %1137  ;;  %v10420_v19 = vpop.permute.xlu0 %1143 }
 0x152   : > { %14817 = vst [vmem:[#allocation100_spill] sm:$0xff] %v10418_v18  ;;  %14818 = vst [vmem:[#allocation101_spill] sm:$0xff] %v10420_v19 }
 0x153   : > { %1381 = vrot.lane.b32.xlu1 %v10002_v24, %s9544_s20  ;;  %1387 = vrot.lane.b32.xlu0 %v10006_v28, %s9544_s20  ;;  %v14823_v24 = vld [vmem:[#allocation6_spill] sm:$0xff] }
 0x155   : > { %v10426_v20 = vpop.permute.xlu1 %1141  ;;  %v10428_v21 = vpop.permute.xlu0 %1147 }
 0x156   : > { %14819 = vst [vmem:[#allocation102_spill] sm:$0xff] %v10426_v20  ;;  %14820 = vst [vmem:[#allocation103_spill] sm:$0xff] %v10428_v21  ;;  %v14825_v21 = vld [vmem:[#allocation8_spill] sm:$0xff]  ;;  %v14829_v20 = vld [vmem:[#allocation18_spill] sm:$0xff] }
 0x157   : > { %1385 = vrot.lane.b32.xlu1 %v10010_v29, %s9544_s20  ;;  %1391 = vrot.lane.b32.xlu0 %v10014_v33, %s9544_s20  ;;  %v14826_v29 = vld [vmem:[#allocation10_spill] sm:$0xff] }
 0x159   : > { %v10434_v22 = vpop.permute.xlu1 %1145  ;;  %v10436_v23 = vpop.permute.xlu0 %1215 }
 0x15a   : > { %14821 = vst [vmem:[#allocation104_spill] sm:$0xff] %v10434_v22  ;;  %v10452_v22 = vld [vmem:[#allocation2 + $0x182] sm:$0xff] }
 0x15b   : > { %1389 = vrot.lane.b32.xlu1 %v14822_v51, %s9544_s20  ;;  %1395 = vrot.lane.b32.xlu0 %v14823_v24, %s9544_s20  ;;  %v14827_v51 = vld [vmem:[#allocation12_spill] sm:$0xff] }
 0x15d   : > { %v10442_v28 = vpop.permute.xlu1 %1149  ;;  %v10444_v19 = vpop.permute.xlu0 %1219 }
 0x15e   : > { %14824 = vst [vmem:[#allocation5_spill] sm:$0xff] %v10442_v28 }
 0x15f   : > { %1393 = vrot.lane.b32.xlu1 %v14825_v21, %s9544_s20  ;;  %1399 = vrot.lane.b32.xlu0 %v14826_v29, %s9544_s20  ;;  %v14828_v21 = vld [vmem:[#allocation15_spill] sm:$0xff]  ;;  %v10466_v29 = vld [vmem:[#allocation2 + $0x18a] sm:$0xff] }
 0x161   : > { %v10450_v33 = vpop.permute.xlu1 %1217  ;;  %v10454_v48 = vpop.permute.xlu0 %1223 }
 0x163   : > { %1397 = vrot.lane.b32.xlu1 %v14827_v51, %s9544_s20  ;;  %1403 = vrot.lane.b32.xlu0 %v10452_v22, %s9544_s20  ;;  %v14830_v51 = vld [vmem:[#allocation21_spill] sm:$0xff] }
 0x165   : > { %v10460_v24 = vpop.permute.xlu1 %1221  ;;  %v10462_v28 = vpop.permute.xlu0 %1227 }
 0x167   : > { %1401 = vrot.lane.b32.xlu1 %v14828_v21, %s9544_s20  ;;  %1471 = vrot.lane.b32.xlu0 %v14829_v20, %s9545_s21  ;;  %v14831_v21 = vld [vmem:[#allocation23_spill] sm:$0xff] }
 0x169   : > { %v10470_v49 = vpop.permute.xlu1 %1225  ;;  %v10472_v17 = vpop.permute.xlu0 %1231 }
 0x16b   : > { %1405 = vrot.lane.b32.xlu1 %v10466_v29, %s9544_s20  ;;  %1475 = vrot.lane.b32.xlu0 %v14830_v51, %s9545_s21 }
 0x16d   : > { %v10478_v46 = vpop.permute.xlu1 %1229  ;;  %v10480_v18 = vpop.permute.xlu0 %1235 }
 0x16f   : > { %1473 = vrot.lane.b32.xlu1 %v14831_v21, %s9545_s21  ;;  %1479 = vrot.lane.b32.xlu0 %v14832_v47, %s9545_s21  ;;  %v14839_v21 = vld [vmem:[#allocation33_spill] sm:$0xff] }
 0x171   : > { %v10486_v20 = vpop.permute.xlu1 %1233  ;;  %v10488_v15 = vpop.permute.xlu0 %1239 }
 0x172   : > { %14833 = vst [vmem:[#allocation6_spill] sm:$0xff] %v10488_v15 }
 0x173   : > { %1477 = vrot.lane.b32.xlu1 %v14834_v44, %s9545_s21  ;;  %1483 = vrot.lane.b32.xlu0 %v14835_v16, %s9545_s21  ;;  %v14843_v44 = vld [vmem:[#allocation37_spill] sm:$0xff] }
 0x175   : > { %v10494_v51 = vpop.permute.xlu1 %1237  ;;  %v10496_v45 = vpop.permute.xlu0 %1243 }
 0x176   : > { %14836 = vst [vmem:[#allocation8_spill] sm:$0xff] %v10494_v51  ;;  %14837 = vst [vmem:[#allocation10_spill] sm:$0xff] %v10496_v45  ;;  %v789_v51 = vld [vmem:[#allocation2 + $0x13a] sm:$0xff] }
 0x177   : > { %1481 = vrot.lane.b32.xlu1 %v14838_v13, %s9545_s21  ;;  %1487 = vrot.lane.b32.xlu0 %v14839_v21, %s9545_s21  ;;  %v14847_v13 = vld [vmem:[#allocation41_spill] sm:$0xff] }
 0x179   : > { %v10502_v47 = vpop.permute.xlu1 %1241  ;;  %v10504_v42 = vpop.permute.xlu0 %1247 }
 0x17a   : > { %14840 = vst [vmem:[#allocation12_spill] sm:$0xff] %v10502_v47  ;;  %14841 = vst [vmem:[#allocation15_spill] sm:$0xff] %v10504_v42 }
 0x17b   : > { %1485 = vrot.lane.b32.xlu1 %v14842_v14, %s9545_s21  ;;  %1491 = vrot.lane.b32.xlu0 %v14843_v44, %s9545_s21  ;;  %v2089_v14 = vld [vmem:[%s14655_s1 + $0x20] sm:$0xf]  ;;  %v14851_v44 = vld [vmem:[#allocation45_spill] sm:$0xff] }
 0x17c   : > { %8142 = vmatprep.subr.msk.mxu0 %vm2194_vm2, %v2089_v14 }
 0x17d   : > { %v10510_v16 = vpop.permute.xlu1 %1245  ;;  %v10512_v43 = vpop.permute.xlu0 %1251  ;;  %8143 = vmatpush3.msk.msra.mxu0 %vm2194_vm2, %v2089_v14  ;;  %v14856_v14 = vld [vmem:[#allocation49_spill] sm:$0xff] }
 0x17e   : > { %14844 = vst [vmem:[#allocation18_spill] sm:$0xff] %v10510_v16  ;;  %14845 = vst [vmem:[#allocation21_spill] sm:$0xff] %v10512_v43 }
 0x17f   : > { %1489 = vrot.lane.b32.xlu1 %v14846_v11, %s9545_s21  ;;  %1495 = vrot.lane.b32.xlu0 %v14847_v13, %s9545_s21  ;;  %v2088_v11 = vld [vmem:[%s14655_s1 + $0x18] sm:$0xff] }
 0x180   : > { %8144 = vmatprep.subr.mxu0 %v2088_v11 }
 0x181   : > { %v10518_v21 = vpop.permute.xlu1 %1249  ;;  %v10520_v40 = vpop.permute.xlu0 %1255  ;;  %8145 = vmatpush3.msra.mxu0 %v2088_v11 }
 0x182   : > { %14848 = vst [vmem:[#allocation23_spill] sm:$0xff] %v10518_v21  ;;  %14849 = vst [vmem:[#allocation25_spill] sm:$0xff] %v10520_v40  ;;  %v2087_v40 = vld [vmem:[%s14655_s1 + $0x10] sm:$0xff] }
 0x183   : > { %1493 = vrot.lane.b32.xlu1 %v14850_v12, %s9545_s21  ;;  %1499 = vrot.lane.b32.xlu0 %v14851_v44, %s9545_s21  ;;  %v14854_v12 = vld [vmem:[#allocation47_spill] sm:$0xff]  ;;  %v14855_v44 = vmov 0.0  }
 0x184   : > { %390 = vst.msk [vmem:[#allocation3] sm:$0xff] %vm389_vm3, %v14855_v44  ;;  %391 = vst.msk [vmem:[#allocation3 + $0x8] sm:$0xff] %vm389_vm3, %v14855_v44  ;;  %8146 = vmatprep.subr.mxu0 %v2087_v40 }
 0x185   : > { %v10529_v41 = vpop.permute.xlu1 %1253  ;;  %v10534_v13 = vpop.permute.xlu0 %1259  ;;  %394 = vst.msk [vmem:[#allocation3 + $0x18] sm:$0xff] %vm389_vm3, %v14855_v44  ;;  %395 = vst.msk [vmem:[#allocation3 + $0x20] sm:$0xff] %vm389_vm3, %v14855_v44  ;;  %8147 = vmatpush3.msra.mxu0 %v2087_v40  ;;  %v735_v40 = vld [vmem:[#allocation2 + $0x31] sm:$0xff] }
 0x186   : > { %14852 = vst [vmem:[#allocation27_spill] sm:$0xff] %v10529_v41  ;;  %14853 = vst [vmem:[#allocation29_spill] sm:$0xff] %v10534_v13  ;;  %v14859_v41 = vld [vmem:[#allocation51_spill] sm:$0xff] }
 0x187   : > { %1497 = vrot.lane.b32.xlu1 %v14854_v12, %s9545_s21  ;;  %397 = vst.msk [vmem:[#allocation3 + $0x30] sm:$0xff] %vm389_vm3, %v14855_v44  ;;  %398 = vst.msk [vmem:[#allocation3 + $0x38] sm:$0xff] %vm389_vm3, %v14855_v44  ;;  %1503 = vrot.lane.b32.xlu0 %v14856_v14, %s9545_s21  ;;  %v2086_v12 = vld [vmem:[%s14655_s1 + $0x8] sm:$0xff] }
 0x188   : > { %400 = vst.msk [vmem:[#allocation3 + $0x48] sm:$0xff] %vm389_vm3, %v14855_v44  ;;  %401 = vst.msk [vmem:[#allocation3 + $0x50] sm:$0xff] %vm389_vm3, %v14855_v44  ;;  %8148 = vmatprep.subr.mxu0 %v2086_v12  ;;  %v14860_v14 = vld [vmem:[#allocation53_spill] sm:$0xff] }
 0x189   : > { %403 = vst.msk [vmem:[#allocation3 + $0x60] sm:$0xff] %vm389_vm3, %v14855_v44  ;;  %404 = vst.msk [vmem:[#allocation3 + $0x68] sm:$0xff] %vm389_vm3, %v14855_v44  ;;  %v10615_v11 = vpop.permute.xlu1 %1257  ;;  %v10620_v13 = vpop.permute.xlu0 %1263  ;;  %8149 = vmatpush3.msra.mxu0 %v2086_v12  ;;  %v767_v12 = vld [vmem:[#allocation2 + $0x32] sm:$0xff] }
 0x18a   : > { %406 = vst.msk [vmem:[#allocation3 + $0x78] sm:$0xff] %vm389_vm3, %v14855_v44  ;;  %407 = vst.msk [vmem:[#allocation3 + $0x80] sm:$0xff] %vm389_vm3, %v14855_v44 }
 0x18b   : > { %409 = vst.msk [vmem:[#allocation3 + $0x90] sm:$0xff] %vm389_vm3, %v14855_v44  ;;  %410 = vst.msk [vmem:[#allocation3 + $0x98] sm:$0xff] %vm389_vm3, %v14855_v44  ;;  %1501 = vrot.lane.b32.xlu1 %v14859_v41, %s9545_s21  ;;  %1507 = vrot.lane.b32.xlu0 %v14860_v14, %s9545_s21  ;;  %v14866_v14 = vld [vmem:[#allocation58_spill] sm:$0xff] }
 0x18c   : > { %412 = vst.msk [vmem:[#allocation3 + $0xa8] sm:$0xff] %vm389_vm3, %v14855_v44  ;;  %413 = vst.msk [vmem:[#allocation3 + $0xb0] sm:$0xff] %vm389_vm3, %v14855_v44 }
 0x18d   : > { %415 = vst.msk [vmem:[#allocation3 + $0xc0] sm:$0xff] %vm389_vm3, %v14855_v44  ;;  %416 = vst.msk [vmem:[#allocation3 + $0xc8] sm:$0xff] %vm389_vm3, %v14855_v44  ;;  %v10631_v43 = vpop.permute.xlu0 %1267 }
 0x18e   : > { %418 = vst.msk [vmem:[#allocation3 + $0xd8] sm:$0xff] %vm389_vm3, %v14855_v44  ;;  %419 = vst.msk [vmem:[#allocation3 + $0xe0] sm:$0xff] %vm389_vm3, %v14855_v44 }
 0x18f   : > { %421 = vst.msk [vmem:[#allocation3 + $0xf0] sm:$0xff] %vm389_vm3, %v14855_v44  ;;  %422 = vst.msk [vmem:[#allocation3 + $0xf8] sm:$0xff] %vm389_vm3, %v14855_v44  ;;  %1599 = vrot.lane.b32.xlu0 %v735_v40, %s9546_s13 }
 0x190   : > { %424 = vst.msk [vmem:[#allocation3 + $0x108] sm:$0xff] %vm389_vm3, %v14855_v44  ;;  %425 = vst.msk [vmem:[#allocation3 + $0x110] sm:$0xff] %vm389_vm3, %v14855_v44 }
 0x191   : > { %427 = vst.msk [vmem:[#allocation3 + $0x120] sm:$0xff] %vm389_vm3, %v14855_v44  ;;  %428 = vst.msk [vmem:[#allocation3 + $0x128] sm:$0xff] %vm389_vm3, %v14855_v44  ;;  %v10638_v9 = vpop.permute.xlu0 %1271 }
 0x192   : > { %430 = vst.msk [vmem:[#allocation3 + $0x138] sm:$0xff] %vm389_vm3, %v14855_v44  ;;  %431 = vst.msk [vmem:[#allocation3 + $0x140] sm:$0xff] %vm389_vm3, %v14855_v44 }
 0x193   : > { %433 = vst.msk [vmem:[#allocation3 + $0x150] sm:$0xff] %vm389_vm3, %v14855_v44  ;;  %434 = vst.msk [vmem:[#allocation3 + $0x158] sm:$0xff] %vm389_vm3, %v14855_v44  ;;  %1727 = vrot.lane.b32.xlu0 %v767_v12, %s9547_s14 }
 0x194   : > { %436 = vst.msk [vmem:[#allocation3 + $0x168] sm:$0xff] %vm389_vm3, %v14855_v44  ;;  %437 = vst.msk [vmem:[#allocation3 + $0x170] sm:$0xff] %vm389_vm3, %v14855_v44 }
 0x195   : > { %439 = vst.msk [vmem:[#allocation3 + $0x180] sm:$0xff] %vm389_vm3, %v14855_v44  ;;  %440 = vst.msk [vmem:[#allocation3 + $0x188] sm:$0xff] %vm389_vm3, %v14855_v44  ;;  %v10645_v21 = vpop.permute.xlu0 %1275 }
 0x196   : > { %442 = vst.msk [vmem:[#allocation3 + $0x198] sm:$0xff] %vm389_vm3, %v14855_v44  ;;  %443 = vst.msk [vmem:[#allocation3 + $0x1a0] sm:$0xff] %vm389_vm3, %v14855_v44  ;;  %v2085_v44 = vld [vmem:[%s14655_s1] sm:$0xff] }
 0x197   : > { %14857 = vst [vmem:[#allocation31_spill] sm:$0xff] %v10615_v11  ;;  %14858 = vst [vmem:[#allocation33_spill] sm:$0xff] %v10620_v13  ;;  %v10629_v11 = vpop.permute.xlu1 %1261  ;;  %8150 = vmatprep.subr.mxu0 %v2085_v44  ;;  %v14863_v13 = vld [vmem:[#allocation55_spill] sm:$0xff] }
 0x198   : > { %14861 = vst [vmem:[#allocation35_spill] sm:$0xff] %v10629_v11  ;;  %8151 = vmatpush3.msra.mxu0 %v2085_v44  ;;  %14862 = vst [vmem:[#allocation37_spill] sm:$0xff] %v10631_v43  ;;  %1505 = vrot.lane.b32.xlu1 %v14863_v13, %s9545_s21  ;;  %v736_v11 = vld [vmem:[#allocation2 + $0x39] sm:$0xff]  ;;  %v737_v43 = vld [vmem:[#allocation2 + $0x49] sm:$0xff] }
 0x199   : > { %14865 = vst [vmem:[#allocation41_spill] sm:$0xff] %v10638_v9  ;;  %14868 = vst [vmem:[#allocation45_spill] sm:$0xff] %v10645_v21  ;;  %v768_v13 = vld [vmem:[#allocation2 + $0x3a] sm:$0xff]  ;;  %1603 = vrot.lane.b32.xlu0 %v737_v43, %s9546_s13  ;;  %v769_v9 = vld [vmem:[#allocation2 + $0x4a] sm:$0xff] }
 0x19a   : > { %v771_v21 = vld [vmem:[#allocation2 + $0x62] sm:$0xff] }
 0x19b   : > { %v10636_v41 = vpop.permute.xlu1 %1265 }
 0x19c   : > { %14864 = vst [vmem:[#allocation39_spill] sm:$0xff] %v10636_v41  ;;  %1509 = vrot.lane.b32.xlu1 %v14866_v14, %s9545_s21  ;;  %v10651_v41 = vpop.permute.xlu0 %1343  ;;  %v738_v14 = vld [vmem:[#allocation2 + $0x51] sm:$0xff] }
 0x19d   : > { %1731 = vrot.lane.b32.xlu0 %v769_v9, %s9547_s14 }
 0x19f   : > { %v10643_v44 = vpop.permute.xlu1 %1269 }
 0x1a0   : > { %14867 = vst [vmem:[#allocation43_spill] sm:$0xff] %v10643_v44  ;;  %1601 = vrot.lane.b32.xlu1 %v736_v11, %s9546_s13  ;;  %v739_v44 = vld [vmem:[#allocation2 + $0x61] sm:$0xff]  ;;  %v10657_v32 = vpop.permute.xlu0 %1347  ;;  %v770_v11 = vld [vmem:[#allocation2 + $0x52] sm:$0xff] }
 0x1a1   : > { %1607 = vrot.lane.b32.xlu0 %v739_v44, %s9546_s13 }
 0x1a3   : > { %v10649_v40 = vpop.permute.xlu1 %1273 }
 0x1a4   : > { %14869 = vst [vmem:[#allocation47_spill] sm:$0xff] %v10649_v40  ;;  %1729 = vrot.lane.b32.xlu1 %v768_v13, %s9547_s14  ;;  %v10663_v40 = vpop.permute.xlu0 %1351  ;;  %v740_v13 = vld [vmem:[#allocation2 + $0x69] sm:$0xff] }
 0x1a5   : > { %1735 = vrot.lane.b32.xlu0 %v771_v21, %s9547_s14 }
 0x1a7   : > { %v10655_v12 = vpop.permute.xlu1 %1277 }
 0x1a8   : > { %14870 = vst [vmem:[#allocation49_spill] sm:$0xff] %v10655_v12  ;;  %1605 = vrot.lane.b32.xlu1 %v738_v14, %s9546_s13  ;;  %v741_v12 = vld [vmem:[#allocation2 + $0x79] sm:$0xff]  ;;  %v10669_v10 = vpop.permute.xlu0 %1355  ;;  %v772_v14 = vld [vmem:[#allocation2 + $0x6a] sm:$0xff] }
 0x1a9   : > { %1611 = vrot.lane.b32.xlu0 %v741_v12, %s9546_s13 }
 0x1ab   : > { %v10661_v43 = vpop.permute.xlu1 %1345 }
 0x1ac   : > { %1733 = vrot.lane.b32.xlu1 %v770_v11, %s9547_s14  ;;  %v10675_v42 = vpop.permute.xlu0 %1359  ;;  %v742_v11 = vld [vmem:[#allocation2 + $0x81] sm:$0xff] }
 0x1ad   : > { %1739 = vrot.lane.b32.xlu0 %v773_v38, %s9547_s14 }
 0x1af   : > { %v10667_v9 = vpop.permute.xlu1 %1349 }
 0x1b0   : > { %1609 = vrot.lane.b32.xlu1 %v740_v13, %s9546_s13  ;;  %v10681_v16 = vpop.permute.xlu0 %1363  ;;  %v774_v13 = vld [vmem:[#allocation2 + $0x82] sm:$0xff] }
 0x1b1   : > { %14871 = vst [vmem:[#allocation51_spill] sm:$0xff] %v10681_v16  ;;  %1615 = vrot.lane.b32.xlu0 %v743_v7, %s9546_s13 }
 0x1b3   : > { %v10673_v44 = vpop.permute.xlu1 %1353 }
 0x1b4   : > { %1737 = vrot.lane.b32.xlu1 %v772_v14, %s9547_s14  ;;  %v10687_v8 = vpop.permute.xlu0 %1367  ;;  %v744_v14 = vld [vmem:[#allocation2 + $0x99] sm:$0xff] }
 0x1b5   : > { %14872 = vst [vmem:[#allocation53_spill] sm:$0xff] %v10687_v8  ;;  %1743 = vrot.lane.b32.xlu0 %v775_v30, %s9547_s14  ;;  %v725_v8 = vld [vmem:[#allocation2 + $0x138] sm:$0xff] }
 0x1b7   : > { %v10679_v21 = vpop.permute.xlu1 %1357 }
 0x1b8   : > { %1613 = vrot.lane.b32.xlu1 %v742_v11, %s9546_s13  ;;  %v10693_v45 = vpop.permute.xlu0 %1371  ;;  %v776_v11 = vld [vmem:[#allocation2 + $0x9a] sm:$0xff] }
 0x1b9   : > { %14874 = vst [vmem:[#allocation58_spill] sm:$0xff] %v10693_v45  ;;  %1619 = vrot.lane.b32.xlu0 %v745_v31, %s9546_s13  ;;  %v779_v45 = vld [vmem:[#allocation2 + $0xc2] sm:$0xff] }
 0x1bb   : > { %v10685_v12 = vpop.permute.xlu1 %1361 }
 0x1bc   : > { %1741 = vrot.lane.b32.xlu1 %v774_v13, %s9547_s14  ;;  %v10699_v47 = vpop.permute.xlu0 %1375  ;;  %v746_v13 = vld [vmem:[#allocation2 + $0xb1] sm:$0xff] }
 0x1bd   : > { %14876 = vst [vmem:[#allocation106_spill] sm:$0xff] %v10699_v47  ;;  %1747 = vrot.lane.b32.xlu0 %v777_v60, %s9547_s14  ;;  %v749_v47 = vld [vmem:[#allocation2 + $0xd9] sm:$0xff] }
 0x1bf   : > { %v10691_v38 = vpop.permute.xlu1 %1365 }
 0x1c0   : > { %14873 = vst [vmem:[#allocation55_spill] sm:$0xff] %v10691_v38  ;;  %1617 = vrot.lane.b32.xlu1 %v744_v14, %s9546_s13  ;;  %v10705_v6 = vpop.permute.xlu0 %1379  ;;  %v778_v14 = vld [vmem:[#allocation2 + $0xb2] sm:$0xff] }
 0x1c1   : > { %14878 = vst [vmem:[#allocation108_spill] sm:$0xff] %v10705_v6  ;;  %1623 = vrot.lane.b32.xlu0 %v747_v1, %s9546_s13  ;;  %v781_v6 = vld [vmem:[#allocation2 + $0xda] sm:$0xff] }
 0x1c2   : > { %v757_v38 = vld [vmem:[#allocation2 + $0x139] sm:$0xff] }
 0x1c3   : > { %v10697_v7 = vpop.permute.xlu1 %1369 }
 0x1c4   : > { %14875 = vst [vmem:[#allocation105_spill] sm:$0xff] %v10697_v7  ;;  %1745 = vrot.lane.b32.xlu1 %v776_v11, %s9547_s14  ;;  %v10711_v7 = vpop.permute.xlu0 %1383  ;;  %v748_v11 = vld [vmem:[#allocation2 + $0xc9] sm:$0xff] }
 0x1c5   : > { %14880 = vst [vmem:[#allocation110_spill] sm:$0xff] %v10711_v7  ;;  %1751 = vrot.lane.b32.xlu0 %v779_v45, %s9547_s14  ;;  %v751_v7 = vld [vmem:[#allocation2 + $0xf1] sm:$0xff] }
 0x1c7   : > { %v10703_v30 = vpop.permute.xlu1 %1373 }
 0x1c8   : > { %14877 = vst [vmem:[#allocation107_spill] sm:$0xff] %v10703_v30  ;;  %1621 = vrot.lane.b32.xlu1 %v746_v13, %s9546_s13  ;;  %v10717_v30 = vpop.permute.xlu0 %1387  ;;  %v780_v13 = vld [vmem:[#allocation2 + $0xca] sm:$0xff] }
 0x1c9   : > { %14882 = vst [vmem:[#allocation112_spill] sm:$0xff] %v10717_v30  ;;  %1627 = vrot.lane.b32.xlu0 %v749_v47, %s9546_s13  ;;  %v783_v30 = vld [vmem:[#allocation2 + $0xf2] sm:$0xff] }
 0x1cb   : > { %v10709_v31 = vpop.permute.xlu1 %1377 }
 0x1cc   : > { %14879 = vst [vmem:[#allocation109_spill] sm:$0xff] %v10709_v31  ;;  %1749 = vrot.lane.b32.xlu1 %v778_v14, %s9547_s14  ;;  %v10723_v31 = vpop.permute.xlu0 %1391  ;;  %v750_v14 = vld [vmem:[#allocation2 + $0xe1] sm:$0xff] }
 0x1cd   : > { %14884 = vst [vmem:[#allocation114_spill] sm:$0xff] %v10723_v31  ;;  %1755 = vrot.lane.b32.xlu0 %v781_v6, %s9547_s14  ;;  %v753_v31 = vld [vmem:[#allocation2 + $0x109] sm:$0xff] }
 0x1cf   : > { %v10715_v60 = vpop.permute.xlu1 %1381 }
 0x1d0   : > { %14881 = vst [vmem:[#allocation111_spill] sm:$0xff] %v10715_v60  ;;  %1625 = vrot.lane.b32.xlu1 %v748_v11, %s9546_s13  ;;  %v10729_v60 = vpop.permute.xlu0 %1395  ;;  %v782_v11 = vld [vmem:[#allocation2 + $0xe2] sm:$0xff] }
 0x1d1   : > { %14886 = vst [vmem:[#allocation116_spill] sm:$0xff] %v10729_v60  ;;  %1631 = vrot.lane.b32.xlu0 %v751_v7, %s9546_s13  ;;  %v785_v60 = vld [vmem:[#allocation2 + $0x10a] sm:$0xff] }
 0x1d3   : > { %v10721_v1 = vpop.permute.xlu1 %1385 }
 0x1d4   : > { %14883 = vst [vmem:[#allocation113_spill] sm:$0xff] %v10721_v1  ;;  %1753 = vrot.lane.b32.xlu1 %v780_v13, %s9547_s14  ;;  %v10735_v1 = vpop.permute.xlu0 %1399  ;;  %v752_v13 = vld [vmem:[#allocation2 + $0xf9] sm:$0xff] }
 0x1d5   : > { %14888 = vst [vmem:[#allocation118_spill] sm:$0xff] %v10735_v1  ;;  %1759 = vrot.lane.b32.xlu0 %v783_v30, %s9547_s14  ;;  %v723_v1 = vld [vmem:[#allocation2 + $0x120] sm:$0xff] }
 0x1d7   : > { %v10727_v45 = vpop.permute.xlu1 %1389 }
 0x1d8   : > { %14885 = vst [vmem:[#allocation115_spill] sm:$0xff] %v10727_v45  ;;  %1629 = vrot.lane.b32.xlu1 %v750_v14, %s9546_s13  ;;  %v10741_v45 = vpop.permute.xlu0 %1403  ;;  %v784_v14 = vld [vmem:[#allocation2 + $0xfa] sm:$0xff] }
 0x1d9   : > { %14890 = vst [vmem:[#allocation120_spill] sm:$0xff] %v10741_v45  ;;  %1635 = vrot.lane.b32.xlu0 %v753_v31, %s9546_s13  ;;  %v755_v45 = vld [vmem:[#allocation2 + $0x121] sm:$0xff] }
 0x1db   : > { %v10733_v47 = vpop.permute.xlu1 %1393 }
 0x1dc   : > { %14887 = vst [vmem:[#allocation117_spill] sm:$0xff] %v10733_v47  ;;  %1757 = vrot.lane.b32.xlu1 %v782_v11, %s9547_s14  ;;  %v10747_v47 = vpop.permute.xlu0 %1471  ;;  %v754_v11 = vld [vmem:[#allocation2 + $0x111] sm:$0xff] }
 0x1dd   : > { %1763 = vrot.lane.b32.xlu0 %v785_v60, %s9547_s14 }
 0x1df   : > { %v10739_v6 = vpop.permute.xlu1 %1397 }
 0x1e0   : > { %14889 = vst [vmem:[#allocation119_spill] sm:$0xff] %v10739_v6  ;;  %1633 = vrot.lane.b32.xlu1 %v752_v13, %s9546_s13  ;;  %v10753_v6 = vpop.permute.xlu0 %1475  ;;  %v786_v13 = vld [vmem:[#allocation2 + $0x112] sm:$0xff] }
 0x1e1   : > { %1511 = vrot.lane.b32.xlu0 %v723_v1, %s9545_s21 }
 0x1e3   : > { %v10745_v7 = vpop.permute.xlu1 %1401 }
 0x1e4   : > { %14891 = vst [vmem:[#allocation121_spill] sm:$0xff] %v10745_v7  ;;  %1761 = vrot.lane.b32.xlu1 %v784_v14, %s9547_s14  ;;  %v10759_v7 = vpop.permute.xlu0 %1479  ;;  %v724_v14 = vld [vmem:[#allocation2 + $0x128] sm:$0xff] }
 0x1e5   : > { %1639 = vrot.lane.b32.xlu0 %v755_v45, %s9546_s13 }
 0x1e7   : > { %v10751_v30 = vpop.permute.xlu1 %1405 }
 0x1e8   : > { %14892 = vst [vmem:[#allocation122_spill] sm:$0xff] %v10751_v30  ;;  %1637 = vrot.lane.b32.xlu1 %v754_v11, %s9546_s13  ;;  %v787_v30 = vld [vmem:[#allocation2 + $0x122] sm:$0xff]  ;;  %v10765_v27 = vpop.permute.xlu0 %1483 }
 0x1e9   : > { %v756_v11 = vld [vmem:[#allocation2 + $0x129] sm:$0xff]  ;;  %1767 = vrot.lane.b32.xlu0 %v787_v30, %s9547_s14 }
 0x1eb   : > { %v10757_v31 = vpop.permute.xlu1 %1473 }
 0x1ec   : > { %1765 = vrot.lane.b32.xlu1 %v786_v13, %s9547_s14  ;;  %v10771_v15 = vpop.permute.xlu0 %1487  ;;  %v788_v13 = vld [vmem:[#allocation2 + $0x12a] sm:$0xff] }
 0x1ed   : > { %1515 = vrot.lane.b32.xlu0 %v725_v8, %s9545_s21 }
 0x1ef   : > { %v10763_v60 = vpop.permute.xlu1 %1477 }
 0x1f0   : > { %1513 = vrot.lane.b32.xlu1 %v724_v14, %s9545_s21  ;;  %v10777_v3 = vpop.permute.xlu0 %1491  ;;  %v726_v14 = vld [vmem:[#allocation2 + $0x140] sm:$0xff] }
 0x1f1   : > { %14893 = vst [vmem:[#allocation123_spill] sm:$0xff] %v10777_v3  ;;  %1643 = vrot.lane.b32.xlu0 %v757_v38, %s9546_s13  ;;  %v759_v3 = vld [vmem:[#allocation2 + $0x151] sm:$0xff] }
 0x1f3   : > { %v10769_v1 = vpop.permute.xlu1 %1481 }
 0x1f4   : > { %1641 = vrot.lane.b32.xlu1 %v756_v11, %s9546_s13  ;;  %v10783_v0 = vpop.permute.xlu0 %1495  ;;  %v758_v11 = vld [vmem:[#allocation2 + $0x141] sm:$0xff] }
 0x1f5   : > { %14895 = vst [vmem:[#allocation125_spill] sm:$0xff] %v10783_v0  ;;  %1771 = vrot.lane.b32.xlu0 %v789_v51, %s9547_s14  ;;  %v510_v0 = vld [vmem:[#allocation2] sm:$0xff] }
 0x1f7   : > { %v10775_v45 = vpop.permute.xlu1 %1485 }
 0x1f8   : > { %1769 = vrot.lane.b32.xlu1 %v788_v13, %s9547_s14  ;;  %v10789_v26 = vpop.permute.xlu0 %1499  ;;  %v790_v13 = vld [vmem:[#allocation2 + $0x142] sm:$0xff] }
 0x1f9   : > { %14897 = vst [vmem:[#allocation127_spill] sm:$0xff] %v10789_v26  ;;  %1519 = vrot.lane.b32.xlu0 %v727_v5, %s9545_s21  ;;  %v760_v5 = vld [vmem:[#allocation2 + $0x159] sm:$0xff] }
 0x1fb   : > { %v10781_v30 = vpop.permute.xlu1 %1489 }
 0x1fc   : > { %14894 = vst [vmem:[#allocation124_spill] sm:$0xff] %v10781_v30  ;;  %1517 = vrot.lane.b32.xlu1 %v726_v14, %s9545_s21  ;;  %v10795_v16 = vpop.permute.xlu0 %1503  ;;  %v728_v14 = vld [vmem:[#allocation2 + $0x158] sm:$0xff]  ;;  %v511_v30 = vld [vmem:[#allocation2 + $0x8] sm:$0xff] }
 0x1fd   : > { %14899 = vst [vmem:[#allocation129_spill] sm:$0xff] %v10795_v16  ;;  %1647 = vrot.lane.b32.xlu0 %v759_v3, %s9546_s13  ;;  %v14904_v3 = vld [vmem:[#allocation61_spill] sm:$0xff] }
 0x1ff   : > { %v10787_v8 = vpop.permute.xlu1 %1493 }
 0x200   : > { %14896 = vst [vmem:[#allocation126_spill] sm:$0xff] %v10787_v8  ;;  %1645 = vrot.lane.b32.xlu1 %v758_v11, %s9546_s13  ;;  %v791_v8 = vld [vmem:[#allocation2 + $0x152] sm:$0xff]  ;;  %v10801_v26 = vpop.permute.xlu0 %1507  ;;  %v14902_v11 = vld [vmem:[#allocation4_spill] sm:$0xff] }
 0x201   : > { %14901 = vst [vmem:[#allocation131_spill] sm:$0xff] %v10801_v26  ;;  %1775 = vrot.lane.b32.xlu0 %v791_v8, %s9547_s14  ;;  %v792_v8 = vld [vmem:[#allocation2 + $0x15a] sm:$0xff] }
 0x203   : > { %v10793_v38 = vpop.permute.xlu1 %1497 }
 0x204   : > { %14898 = vst [vmem:[#allocation128_spill] sm:$0xff] %v10793_v38  ;;  %1773 = vrot.lane.b32.xlu1 %v790_v13, %s9547_s14  ;;  %v1823_v38 = vsel %vm333_vm0, %v510_v0, %v14902_v11 }
 0x205   : > { %v1856_v16 = vsel %vm1855_vm4, %v1823_v38, %v14904_v3  ;;  %v14906_v3 = vld [vmem:[#allocation7_spill] sm:$0xff] }
 0x206   : > { %v1889_v26 = vsel %vm1888_vm5, %v1856_v16, %v10310_v52  ;;  %v761_v16 = vld [vmem:[#allocation2 + $0x169] sm:$0xff] }
 0x207   : > { %v10799_v51 = vpop.permute.xlu1 %1501  ;;  %v1922_v0 = vsel %vm1921_vm6, %v1889_v26, %v10436_v23 }
 0x208   : > { %14900 = vst [vmem:[#allocation130_spill] sm:$0xff] %v10799_v51  ;;  %1521 = vrot.lane.b32.xlu1 %v728_v14, %s9545_s21  ;;  %v729_v51 = vld [vmem:[#allocation2 + $0x168] sm:$0xff]  ;;  %v1600_v14 = vpop.permute.xlu0 %1599  ;;  %v1955_v11 = vsel %vm1954_vm7, %v1922_v0, %v10651_v41  ;;  %v9486_v0 = vld [vmem:[#allocation2 + $0x18] sm:$0xff] }
 0x209   : > { %1523 = vrot.lane.b32.xlu0 %v729_v51, %s9545_s21  ;;  %v1988_v52 = vsel %vm1987_vm8, %v1955_v11, %v10747_v47  ;;  %v730_v51 = vld [vmem:[#allocation2 + $0x170] sm:$0xff] }
 0x20b   : > { %v10807_v13 = vpop.permute.xlu1 %1505 }
 0x20c   : > { %14903 = vst [vmem:[#allocation4_spill] sm:$0xff] %v10807_v13  ;;  %1649 = vrot.lane.b32.xlu1 %v760_v5, %s9546_s13  ;;  %v1824_v5 = vsel %vm333_vm0, %v511_v30, %v14906_v3  ;;  %v2021_v13 = vsel %vm2020_vm9, %v1988_v52, %v1600_v14  ;;  %v1728_v26 = vpop.permute.xlu0 %1727  ;;  %v14908_v14 = vld [vmem:[#allocation63_spill] sm:$0xff] }
 0x20d   : > { %v1857_v23 = vsel %vm1855_vm4, %v1824_v5, %v10200_v34  ;;  %v2053_v41 = vsel %vm389_vm3, %v2021_v13, %v1728_v26  ;;  %1651 = vrot.lane.b32.xlu0 %v761_v16, %s9546_s13  ;;  %v793_v13 = vld [vmem:[#allocation2 + $0x16a] sm:$0xff] }
 0x20e   : > { %v1890_v11 = vsel %vm1888_vm5, %v1857_v23, %v10324_v55  ;;  %8152 = vmatprep.mubr.msk.f32.mxu0 %vm2097_vm10, %v2053_v41  ;;  %v762_v5 = vld [vmem:[#allocation2 + $0x171] sm:$0xff]  ;;  %v731_v41 = vld [vmem:[#allocation2 + $0x180] sm:$0xff] }
 0x20f   : > { %v10819_v38 = vpop.permute.xlu1 %1509  ;;  %v1923_v34 = vsel %vm1921_vm6, %v1890_v11, %v10450_v33 }
 0x210   : > { %14905 = vst [vmem:[#allocation61_spill] sm:$0xff] %v10819_v38  ;;  %1777 = vrot.lane.b32.xlu1 %v792_v8, %s9547_s14  ;;  %v14907_v38 = vld [vmem:[#allocation9_spill] sm:$0xff]  ;;  %v1604_v3 = vpop.permute.xlu0 %1603 }
 0x211   : > { %v1825_v47 = vsel %vm333_vm0, %v9486_v0, %v14907_v38  ;;  %v1956_v38 = vsel %vm1954_vm7, %v1923_v34, %v10661_v43  ;;  %1779 = vrot.lane.b32.xlu0 %v793_v13, %s9547_s14 }
 0x212   : > { %v1858_v8 = vsel %vm1855_vm4, %v1825_v47, %v14908_v14  ;;  %v1989_v16 = vsel %vm1987_vm8, %v1956_v38, %v10757_v31  ;;  %v14910_v14 = vld [vmem:[#allocation11_spill] sm:$0xff]  ;;  %v763_v38 = vld [vmem:[#allocation2 + $0x181] sm:$0xff] }
 0x213   : > { %v1602_v30 = vpop.permute.xlu1 %1601  ;;  %v1891_v52 = vsel %vm1888_vm5, %v1858_v8, %v10318_v54 }
 0x214   : > { %1525 = vrot.lane.b32.xlu1 %v730_v51, %s9545_s21  ;;  %v1924_v55 = vsel %vm1921_vm6, %v1891_v52, %v10444_v19  ;;  %v2022_v26 = vsel %vm2020_vm9, %v1989_v16, %v1602_v30  ;;  %v9487_v51 = vld [vmem:[#allocation2 + $0x20] sm:$0xff]  ;;  %v14909_v19 = vld [vmem:[#allocation13_spill] sm:$0xff]  ;;  %v1732_v47 = vpop.permute.xlu0 %1731  ;;  %v9488_v30 = vld [vmem:[#allocation2 + $0x30] sm:$0xff] }
 0x215   : > { %v1957_v33 = vsel %vm1954_vm7, %v1924_v55, %v10657_v32  ;;  %v1826_v0 = vsel %vm333_vm0, %v9487_v51, %v14909_v19  ;;  %v1827_v8 = vsel %vm333_vm0, %v9488_v30, %v14910_v14  ;;  %1527 = vrot.lane.b32.xlu0 %v731_v41, %s9545_s21  ;;  %v764_v51 = vld [vmem:[#allocation2 + $0x189] sm:$0xff] }
 0x216   : > { %v1990_v43 = vsel %vm1987_vm8, %v1957_v33, %v10753_v6  ;;  %v1859_v32 = vsel %vm1855_vm4, %v1826_v0, %v10206_v58  ;;  %v794_v6 = vld [vmem:[#allocation2 + $0x172] sm:$0xff]  ;;  %v1860_v52 = vsel %vm1855_vm4, %v1827_v8, %v10202_v36  ;;  %v732_v36 = vld [vmem:[#allocation2 + $0x188] sm:$0xff] }
 0x217   : > { %v1730_v54 = vpop.permute.xlu1 %1729  ;;  %v2023_v31 = vsel %vm2020_vm9, %v1990_v43, %v1604_v3  ;;  %v1892_v34 = vsel %vm1888_vm5, %v1859_v32, %v10331_v57  ;;  %v1893_v3 = vsel %vm1888_vm5, %v1860_v52, %v10326_v50  ;;  %v14911_v43 = vld [vmem:[#allocation16_spill] sm:$0xff]  ;;  %v14912_v19 = vld [vmem:[#allocation14_spill] sm:$0xff]  ;;  %v14913_v52 = vld [vmem:[#allocation19_spill] sm:$0xff] }
 0x218   : > { %v2054_v23 = vsel %vm389_vm3, %v2022_v26, %v1730_v54  ;;  %1653 = vrot.lane.b32.xlu1 %v762_v5, %s9546_s13  ;;  %v2055_v11 = vsel %vm389_vm3, %v2023_v31, %v1732_v47  ;;  %v1925_v58 = vsel %vm1921_vm6, %v1892_v34, %v10460_v24  ;;  %v1608_v16 = vpop.permute.xlu0 %1607  ;;  %v1926_v57 = vsel %vm1921_vm6, %v1893_v3, %v10454_v48  ;;  %v9489_v54 = vld [vmem:[#allocation2 + $0x38] sm:$0xff]  ;;  %v9492_v3 = vld [vmem:[#allocation2 + $0x60] sm:$0xff] }
 0x219   : > { %8153 = vmatmul.mubr.msk.f32.vlgmr.msra.gmra.mxu0 %vm2097_vm10, %v2054_v23  ;;  %v1958_v55 = vsel %vm1954_vm7, %v1925_v58, %v10667_v9  ;;  %v1959_v24 = vsel %vm1954_vm7, %v1926_v57, %v10663_v40  ;;  %1655 = vrot.lane.b32.xlu0 %v763_v38, %s9546_s13  ;;  %v1828_v48 = vsel %vm333_vm0, %v9489_v54, %v14911_v43  ;;  %v765_v34 = vld [vmem:[#allocation2 + $0x199] sm:$0xff]  ;;  %v9493_v43 = vld [vmem:[#allocation2 + $0x68] sm:$0xff] }
 0x21a   : > { %8155 = vmatprep.mubr.msk.f32.mxu0 %vm2097_vm10, %v2055_v11  ;;  %v1991_v5 = vsel %vm1987_vm8, %v1958_v55, %v10763_v60  ;;  %v1992_v9 = vsel %vm1987_vm8, %v1959_v24, %v10759_v7  ;;  %v1861_v40 = vsel %vm1855_vm4, %v1828_v48, %v10213_v4  ;;  %v9490_v7 = vld [vmem:[#allocation2 + $0x48] sm:$0xff]  ;;  %v733_v11 = vld [vmem:[#allocation2 + $0x198] sm:$0xff]  ;;  %v734_v38 = vld [vmem:[#allocation2 + $0x1a0] sm:$0xff] }
 0x21b   : > { %v1606_v13 = vpop.permute.xlu1 %1605  ;;  %v2025_v60 = vsel %vm2020_vm9, %v1992_v9, %v1608_v16  ;;  %v1829_v0 = vsel %vm333_vm0, %v9490_v7, %v14912_v19  ;;  %v1894_v31 = vsel %vm1888_vm5, %v1861_v40, %v10339_v61  ;;  %v14914_v55 = vld [vmem:[#allocation17_spill] sm:$0xff]  ;;  %v14915_v48 = vld [vmem:[#allocation22_spill] sm:$0xff] }
 0x21c   : > { %1781 = vrot.lane.b32.xlu1 %v794_v6, %s9547_s14  ;;  %v2024_v33 = vsel %vm2020_vm9, %v1991_v5, %v1606_v13  ;;  %v1736_v23 = vpop.permute.xlu0 %1735  ;;  %v1862_v32 = vsel %vm1855_vm4, %v1829_v0, %v10208_v62  ;;  %v1927_v4 = vsel %vm1921_vm6, %v1894_v31, %v10470_v49  ;;  %v9491_v13 = vld [vmem:[#allocation2 + $0x50] sm:$0xff]  ;;  %v1831_v16 = vsel %vm333_vm0, %v9492_v3, %v14914_v55  ;;  %v798_v40 = vld [vmem:[#allocation2 + $0x1a2] sm:$0xff] }
 0x21d   : > { %v2057_v41 = vsel %vm389_vm3, %v2025_v60, %v1736_v23  ;;  %1783 = vrot.lane.b32.xlu0 %v10452_v22, %s9547_s14  ;;  %v1895_v6 = vsel %vm1888_vm5, %v1862_v32, %v10333_v59  ;;  %v1960_v30 = vsel %vm1954_vm7, %v1927_v4, %v10673_v44  ;;  %v14917_v4 = vld [vmem:[#allocation124_spill] sm:$0xff]  ;;  %v14926_v55 = vld [vmem:[#allocation85_spill] sm:$0xff] }
 0x21e   : > { %v1928_v22 = vsel %vm1921_vm6, %v1895_v6, %v10462_v28  ;;  %v1993_v14 = vsel %vm1987_vm8, %v1960_v30, %v10769_v1  ;;  %v1830_v28 = vsel %vm333_vm0, %v9491_v13, %v14913_v52  ;;  %v14918_v6 = vld [vmem:[#allocation51_spill] sm:$0xff]  ;;  %v14922_v13 = vld [vmem:[#allocation24_spill] sm:$0xff] }
 0x21f   : > { %v1734_v50 = vpop.permute.xlu1 %1733  ;;  %v1961_v62 = vsel %vm1954_vm7, %v1928_v22, %v10669_v10  ;;  %v1863_v10 = vsel %vm1855_vm4, %v1830_v28, %v10220_v35  ;;  %v9495_v22 = vld [vmem:[#allocation2 + $0x80] sm:$0xff]  ;;  %v14923_v28 = vld [vmem:[#allocation86_spill] sm:$0xff] }
 0x220   : > { %v2056_v26 = vsel %vm389_vm3, %v2024_v33, %v1734_v50  ;;  %1529 = vrot.lane.b32.xlu1 %v732_v36, %s9545_s21  ;;  %v1612_v61 = vpop.permute.xlu0 %1611  ;;  %v1994_v44 = vsel %vm1987_vm8, %v1961_v62, %v10765_v27  ;;  %v1896_v57 = vsel %vm1888_vm5, %v1863_v10, %v10346_v63  ;;  %v797_v36 = vld [vmem:[#allocation2 + $0x19a] sm:$0xff] }
 0x221   : > { %8156 = vmatmul.mubr.msk.f32.gmra.mxu0 %vm2097_vm10, %v2056_v26  ;;  %1531 = vrot.lane.b32.xlu0 %v733_v11, %s9545_s21  ;;  %v2027_v1 = vsel %vm2020_vm9, %v1994_v44, %v1612_v61  ;;  %v1929_v35 = vsel %vm1921_vm6, %v1896_v57, %v10478_v46  ;;  %v14919_v61 = vld [vmem:[#allocation123_spill] sm:$0xff]  ;;  %v14924_v10 = vld [vmem:[#allocation64_spill] sm:$0xff] }
 0x222   : > { %8158 = vmatprep.mubr.msk.f32.mxu0 %vm2097_vm10, %v2057_v41  ;;  %v1962_v33 = vsel %vm1954_vm7, %v1929_v35, %v10679_v21  ;;  %v14916_v41 = vld [vmem:[#allocation20_spill] sm:$0xff]  ;;  %v14927_v57 = vld [vmem:[#allocation55_spill] sm:$0xff]  ;;  %v14928_v35 = vld [vmem:[#allocation6_spill] sm:$0xff] }
 0x223   : > { %v1610_v47 = vpop.permute.xlu1 %1609  ;;  %v1995_v9 = vsel %vm1987_vm8, %v1962_v33, %v10775_v45 }
 0x224   : > { %1657 = vrot.lane.b32.xlu1 %v764_v51, %s9546_s13  ;;  %v2026_v49 = vsel %vm2020_vm9, %v1993_v14, %v1610_v47  ;;  %v1740_v58 = vpop.permute.xlu0 %1739  ;;  %v14920_v14 = vld [vmem:[#allocation26_spill] sm:$0xff] }
 0x225   : > { %v2059_v27 = vsel %vm389_vm3, %v2027_v1, %v1740_v58  ;;  %1659 = vrot.lane.b32.xlu0 %v765_v34, %s9546_s13  ;;  %v1834_v62 = vsel %vm333_vm0, %v9495_v22, %v14920_v14  ;;  %v9496_v34 = vld [vmem:[#allocation2 + $0x90] sm:$0xff]  ;;  %v14943_v14 = vld [vmem:[#allocation127_spill] sm:$0xff] }
 0x226   : > { %v1835_v52 = vsel %vm333_vm0, %v9496_v34, %v14922_v13  ;;  %v14945_v13 = vld [vmem:[#allocation69_spill] sm:$0xff] }
 0x227   : > { %v1738_v59 = vpop.permute.xlu1 %1737 }
 0x228   : > { %v2058_v8 = vsel %vm389_vm3, %v2026_v49, %v1738_v59  ;;  %1785 = vrot.lane.b32.xlu1 %v10466_v29, %s9547_s14  ;;  %v1864_v29 = vsel %vm1855_vm4, %v1831_v16, %v10215_v37  ;;  %v1616_v50 = vpop.permute.xlu0 %1615  ;;  %v766_v37 = vld [vmem:[#allocation2 + $0x1a1] sm:$0xff] }
 0x229   : > { %8159 = vmatmul.mubr.msk.f32.gmra.mxu0 %vm2097_vm10, %v2058_v8  ;;  %v1897_v24 = vsel %vm1888_vm5, %v1864_v29, %v10341_v53  ;;  %1787 = vrot.lane.b32.xlu0 %v797_v36, %s9547_s14  ;;  %v14921_v59 = vld [vmem:[#allocation65_spill] sm:$0xff] }
 0x22a   : > { %8161 = vmatprep.mubr.msk.f32.mxu0 %vm2097_vm10, %v2059_v27  ;;  %v1930_v63 = vsel %vm1921_vm6, %v1897_v24, %v10472_v17  ;;  %v1832_v17 = vsel %vm333_vm0, %v9493_v43, %v14915_v48  ;;  %v1867_v44 = vsel %vm1855_vm4, %v1834_v62, %v14921_v59  ;;  %v1868_v27 = vsel %vm1855_vm4, %v1835_v52, %v14924_v10  ;;  %v14929_v24 = vld [vmem:[#allocation126_spill] sm:$0xff] }
 0x22b   : > { %v1614_v5 = vpop.permute.xlu1 %1613  ;;  %v1963_v46 = vsel %vm1954_vm7, %v1930_v63, %v10675_v42  ;;  %v1865_v42 = vsel %vm1855_vm4, %v1832_v17, %v10228_v25  ;;  %v1900_v1 = vsel %vm1888_vm5, %v1867_v44, %v14923_v28  ;;  %v1901_v16 = vsel %vm1888_vm5, %v1868_v27, %v14926_v55  ;;  %v14944_v59 = vld [vmem:[#allocation34_spill] sm:$0xff]  ;;  %v14948_v55 = vld [vmem:[#allocation68_spill] sm:$0xff] }
 0x22c   : > { %1533 = vrot.lane.b32.xlu1 %v734_v38, %s9545_s21  ;;  %v2028_v26 = vsel %vm2020_vm9, %v1995_v9, %v1614_v5  ;;  %v1996_v21 = vsel %vm1987_vm8, %v1963_v46, %v10771_v15  ;;  %v1744_v60 = vpop.permute.xlu0 %1743  ;;  %v9494_v15 = vld [vmem:[#allocation2 + $0x78] sm:$0xff]  ;;  %v1898_v7 = vsel %vm1888_vm5, %v1865_v42, %v10354_v2  ;;  %v14925_v38 = vld [vmem:[#allocation8_spill] sm:$0xff]  ;;  %v1934_v36 = vsel %vm1921_vm6, %v1901_v16, %v14928_v35  ;;  %v14931_v46 = vld [vmem:[#allocation125_spill] sm:$0xff] }
 0x22d   : > { %v2029_v45 = vsel %vm2020_vm9, %v1996_v21, %v1616_v50  ;;  %v1833_v51 = vsel %vm333_vm0, %v9494_v15, %v14916_v41  ;;  %v1931_v31 = vsel %vm1921_vm6, %v1898_v7, %v10486_v20  ;;  %v1933_v3 = vsel %vm1921_vm6, %v1900_v1, %v14925_v38  ;;  %v14930_v50 = vld [vmem:[#allocation53_spill] sm:$0xff]  ;;  %v9497_v21 = vld [vmem:[#allocation2 + $0x98] sm:$0xff]  ;;  %v14935_v41 = vld [vmem:[#allocation88_spill] sm:$0xff] }
 0x22e   : > { %v2061_v23 = vsel %vm389_vm3, %v2029_v45, %v1744_v60  ;;  %v1866_v0 = vsel %vm1855_vm4, %v1833_v51, %v10222_v39  ;;  %v1964_v47 = vsel %vm1954_vm7, %v1931_v31, %v10685_v12  ;;  %v1966_v5 = vsel %vm1954_vm7, %v1933_v3, %v14927_v57  ;;  %v14933_v45 = vld [vmem:[#allocation67_spill] sm:$0xff]  ;;  %v14937_v31 = vld [vmem:[#allocation12_spill] sm:$0xff]  ;;  %v14947_v27 = vld [vmem:[#allocation90_spill] sm:$0xff] }
 0x22f   : > { %v1742_v53 = vpop.permute.xlu1 %1741  ;;  %v1899_v25 = vsel %vm1888_vm5, %v1866_v0, %v10348_v56  ;;  %v1997_v11 = vsel %vm1987_vm8, %v1964_v47, %v14917_v4  ;;  %v1999_v33 = vsel %vm1987_vm8, %v1966_v5, %v14929_v24  ;;  %v1967_v63 = vsel %vm1954_vm7, %v1934_v36, %v14930_v50  ;;  %v14938_v47 = vld [vmem:[#allocation87_spill] sm:$0xff]  ;;  %v9500_v1 = vld [vmem:[#allocation2 + $0xc0] sm:$0xff]  ;;  %v14949_v57 = vld [vmem:[#allocation18_spill] sm:$0xff] }
 0x230   : > { %v2060_v54 = vsel %vm389_vm3, %v2028_v26, %v1742_v53  ;;  %1661 = vrot.lane.b32.xlu1 %v766_v37, %s9546_s13  ;;  %v1620_v32 = vpop.permute.xlu0 %1619  ;;  %v1932_v2 = vsel %vm1921_vm6, %v1899_v25, %v10480_v18  ;;  %v2000_v26 = vsel %vm1987_vm8, %v1967_v63, %v14931_v46  ;;  %v14951_v36 = vld [vmem:[#allocation107_spill] sm:$0xff]  ;;  %v14954_v46 = vld [vmem:[#allocation106_spill] sm:$0xff] }
 0x231   : > { %8162 = vmatmul.mubr.msk.f32.gmra.mxu0 %vm2097_vm10, %v2060_v54  ;;  %v1965_v39 = vsel %vm1954_vm7, %v1932_v2, %v14918_v6  ;;  %v14932_v54 = vld [vmem:[#allocation30_spill] sm:$0xff]  ;;  %v14939_v2 = vld [vmem:[#allocation105_spill] sm:$0xff]  ;;  %v14952_v50 = vld [vmem:[#allocation15_spill] sm:$0xff] }
 0x232   : > { %8164 = vmatprep.mubr.msk.f32.mxu0 %vm2097_vm10, %v2061_v23  ;;  %v1998_v56 = vsel %vm1987_vm8, %v1965_v39, %v14919_v61  ;;  %v1836_v43 = vsel %vm333_vm0, %v9497_v21, %v14932_v54  ;;  %v9498_v23 = vld [vmem:[#allocation2 + $0xa8] sm:$0xff]  ;;  %v14940_v6 = vld [vmem:[#allocation10_spill] sm:$0xff] }
 0x233   : > { %v1618_v19 = vpop.permute.xlu1 %1617  ;;  %v2031_v18 = vsel %vm2020_vm9, %v1998_v56, %v1620_v32  ;;  %v1869_v60 = vsel %vm1855_vm4, %v1836_v43, %v14933_v45  ;;  %v14942_v61 = vld [vmem:[#allocation58_spill] sm:$0xff]  ;;  %v14955_v54 = vld [vmem:[#allocation129_spill] sm:$0xff] }
 0x234   : > { %1789 = vrot.lane.b32.xlu1 %v798_v40, %s9547_s14  ;;  %v2030_v20 = vsel %vm2020_vm9, %v1997_v11, %v1618_v19  ;;  %v1748_v49 = vpop.permute.xlu0 %1747  ;;  %v14934_v40 = vld [vmem:[#allocation28_spill] sm:$0xff]  ;;  %v1902_v51 = vsel %vm1888_vm5, %v1869_v60, %v14935_v41  ;;  %v14936_v19 = vld [vmem:[#allocation66_spill] sm:$0xff] }
 0x235   : > { %v2063_v8 = vsel %vm389_vm3, %v2031_v18, %v1748_v49  ;;  %v1837_v15 = vsel %vm333_vm0, %v9498_v23, %v14934_v40  ;;  %v1935_v25 = vsel %vm1921_vm6, %v1902_v51, %v14937_v31  ;;  %v9499_v49 = vld [vmem:[#allocation2 + $0xb0] sm:$0xff]  ;;  %v14957_v40 = vld [vmem:[#allocation71_spill] sm:$0xff] }
 0x236   : > { %v1870_v0 = vsel %vm1855_vm4, %v1837_v15, %v14936_v19  ;;  %v1968_v4 = vsel %vm1954_vm7, %v1935_v25, %v14939_v2  ;;  %v1838_v44 = vsel %vm333_vm0, %v9499_v49, %v14944_v59  ;;  %v14956_v45 = vld [vmem:[#allocation38_spill] sm:$0xff]  ;;  %v9502_v51 = vld [vmem:[#allocation2 + $0xd8] sm:$0xff] }
 0x237   : > { %v1746_v30 = vpop.permute.xlu1 %1745  ;;  %v1903_v32 = vsel %vm1888_vm5, %v1870_v0, %v14938_v47  ;;  %v1871_v52 = vsel %vm1855_vm4, %v1838_v44, %v14945_v13  ;;  %v14959_v0 = vld [vmem:[#allocation92_spill] sm:$0xff]  ;;  %v14960_v47 = vld [vmem:[#allocation70_spill] sm:$0xff]  ;;  %v14961_v2 = vld [vmem:[#allocation23_spill] sm:$0xff] }
 0x238   : > { %v2062_v12 = vsel %vm389_vm3, %v2030_v20, %v1746_v30  ;;  %v1624_v29 = vpop.permute.xlu0 %1623  ;;  %v1936_v39 = vsel %vm1921_vm6, %v1903_v32, %v14940_v6  ;;  %v14941_v20 = vld [vmem:[#allocation128_spill] sm:$0xff]  ;;  %v1904_v38 = vsel %vm1888_vm5, %v1871_v52, %v14947_v27  ;;  %v14967_v59 = vld [vmem:[#allocation131_spill] sm:$0xff]  ;;  %v14968_v13 = vld [vmem:[#allocation42_spill] sm:$0xff] }
 0x239   : > { %8165 = vmatmul.mubr.msk.f32.gmra.mxu0 %vm2097_vm10, %v2062_v12  ;;  %v2033_v48 = vsel %vm2020_vm9, %v2000_v26, %v1624_v29  ;;  %v2001_v30 = vsel %vm1987_vm8, %v1968_v4, %v14941_v20  ;;  %v1969_v56 = vsel %vm1954_vm7, %v1936_v39, %v14942_v61  ;;  %v1937_v5 = vsel %vm1921_vm6, %v1904_v38, %v14949_v57  ;;  %v14950_v29 = vld [vmem:[#allocation89_spill] sm:$0xff]  ;;  %v14970_v38 = vld [vmem:[#allocation94_spill] sm:$0xff] }
 0x23a   : > { %8167 = vmatprep.mubr.msk.f32.mxu0 %vm2097_vm10, %v2063_v8  ;;  %v2002_v62 = vsel %vm1987_vm8, %v1969_v56, %v14943_v14  ;;  %v1970_v24 = vsel %vm1954_vm7, %v1937_v5, %v14951_v36  ;;  %v14963_v39 = vld [vmem:[#allocation109_spill] sm:$0xff]  ;;  %v14966_v14 = vld [vmem:[#allocation108_spill] sm:$0xff]  ;;  %v14972_v5 = vld [vmem:[#allocation111_spill] sm:$0xff] }
 0x23b   : > { %v1622_v58 = vpop.permute.xlu1 %1621  ;;  %v14964_v61 = vld [vmem:[#allocation21_spill] sm:$0xff] }
 0x23c   : > { %v2032_v9 = vsel %vm2020_vm9, %v1999_v33, %v1622_v58  ;;  %v1752_v17 = vpop.permute.xlu0 %1751  ;;  %v14946_v58 = vld [vmem:[#allocation32_spill] sm:$0xff]  ;;  %v14973_v36 = vld [vmem:[#allocation61_spill] sm:$0xff] }
 0x23d   : > { %v2065_v42 = vsel %vm389_vm3, %v2033_v48, %v1752_v17  ;;  %v1839_v10 = vsel %vm333_vm0, %v9500_v1, %v14946_v58  ;;  %v9501_v17 = vld [vmem:[#allocation2 + $0xc8] sm:$0xff] }
 0x23e   : > { %v1872_v16 = vsel %vm1855_vm4, %v1839_v10, %v14948_v55  ;;  %v1840_v60 = vsel %vm333_vm0, %v9501_v17, %v14956_v45  ;;  %v14969_v58 = vld [vmem:[#allocation73_spill] sm:$0xff]  ;;  %v14978_v45 = vld [vmem:[#allocation110_spill] sm:$0xff] }
 0x23f   : > { %v1750_v37 = vpop.permute.xlu1 %1749  ;;  %v1905_v35 = vsel %vm1888_vm5, %v1872_v16, %v14950_v29  ;;  %v1873_v15 = vsel %vm1855_vm4, %v1840_v60, %v14957_v40  ;;  %v14971_v16 = vld [vmem:[#allocation27_spill] sm:$0xff] }
 0x240   : > { %v2064_v53 = vsel %vm389_vm3, %v2032_v9, %v1750_v37  ;;  %v1628_v11 = vpop.permute.xlu0 %1627  ;;  %v1938_v63 = vsel %vm1921_vm6, %v1905_v35, %v14952_v50  ;;  %v14953_v9 = vld [vmem:[#allocation130_spill] sm:$0xff]  ;;  %v1906_v31 = vsel %vm1888_vm5, %v1873_v15, %v14959_v0  ;;  %v14974_v50 = vld [vmem:[#allocation40_spill] sm:$0xff]  ;;  %v9505_v40 = vld [vmem:[#allocation2 + $0xf8] sm:$0xff] }
 0x241   : > { %8168 = vmatmul.mubr.msk.f32.gmra.mxu0 %vm2097_vm10, %v2064_v53  ;;  %v2035_v8 = vsel %vm2020_vm9, %v2002_v62, %v1628_v11  ;;  %v2003_v37 = vsel %vm1987_vm8, %v1970_v24, %v14953_v9  ;;  %v1971_v26 = vsel %vm1954_vm7, %v1938_v63, %v14954_v46  ;;  %v1939_v4 = vsel %vm1921_vm6, %v1906_v31, %v14961_v2  ;;  %v14962_v11 = vld [vmem:[#allocation91_spill] sm:$0xff]  ;;  %v14975_v46 = vld [vmem:[#allocation72_spill] sm:$0xff]  ;;  %v14979_v15 = vld [vmem:[#allocation46_spill] sm:$0xff] }
 0x242   : > { %8170 = vmatprep.mubr.msk.f32.mxu0 %vm2097_vm10, %v2065_v42  ;;  %v2004_v43 = vsel %vm1987_vm8, %v1971_v26, %v14955_v54  ;;  %v1972_v20 = vsel %vm1954_vm7, %v1939_v4, %v14963_v39  ;;  %v14982_v2 = vld [vmem:[#allocation31_spill] sm:$0xff] }
 0x243   : > { %v1626_v7 = vpop.permute.xlu1 %1625 }
 0x244   : > { %v2034_v12 = vsel %vm2020_vm9, %v2001_v30, %v1626_v7  ;;  %v1756_v34 = vpop.permute.xlu0 %1755  ;;  %v14958_v7 = vld [vmem:[#allocation36_spill] sm:$0xff] }
 0x245   : > { %v2067_v28 = vsel %vm389_vm3, %v2035_v8, %v1756_v34  ;;  %v1841_v19 = vsel %vm333_vm0, %v9502_v51, %v14958_v7  ;;  %v9503_v34 = vld [vmem:[#allocation2 + $0xe0] sm:$0xff] }
 0x246   : > { %v1874_v32 = vsel %vm1855_vm4, %v1841_v19, %v14960_v47  ;;  %v1842_v52 = vsel %vm333_vm0, %v9503_v34, %v14968_v13  ;;  %v14980_v19 = vld [vmem:[#allocation75_spill] sm:$0xff]  ;;  %v14988_v34 = vld [vmem:[#allocation29_spill] sm:$0xff] }
 0x247   : > { %v1754_v22 = vpop.permute.xlu1 %1753  ;;  %v1907_v6 = vsel %vm1888_vm5, %v1874_v32, %v14962_v11  ;;  %v1875_v10 = vsel %vm1855_vm4, %v1842_v52, %v14969_v58  ;;  %v14983_v11 = vld [vmem:[#allocation113_spill] sm:$0xff]  ;;  %v14989_v52 = vld [vmem:[#allocation112_spill] sm:$0xff] }
 0x248   : > { %v2066_v18 = vsel %vm389_vm3, %v2034_v12, %v1754_v22  ;;  %v1632_v33 = vpop.permute.xlu0 %1631  ;;  %v1940_v56 = vsel %vm1921_vm6, %v1907_v6, %v14964_v61  ;;  %v14965_v12 = vld [vmem:[#allocation4_spill] sm:$0xff]  ;;  %v9506_v61 = vld [vmem:[#allocation2 + $0x108] sm:$0xff] }
 0x249   : > { %8171 = vmatmul.mubr.msk.f32.gmra.mxu0 %vm2097_vm10, %v2066_v18  ;;  %v2037_v42 = vsel %vm2020_vm9, %v2004_v43, %v1632_v33  ;;  %v2005_v22 = vsel %vm1987_vm8, %v1972_v20, %v14965_v12  ;;  %v1973_v62 = vsel %vm1954_vm7, %v1940_v56, %v14966_v14  ;;  %v9504_v33 = vld [vmem:[#allocation2 + $0xf0] sm:$0xff]  ;;  %v14984_v20 = vmov 0.0   ;;  %v14985_v56 = vld [vmem:[#allocation44_spill] sm:$0xff] }
 0x24a   : > { %8173 = vmatprep.mubr.msk.f32.mxu0 %vm2097_vm10, %v2067_v28  ;;  %v2006_v44 = vsel %vm1987_vm8, %v1973_v62, %v14967_v59  ;;  %v1843_v63 = vsel %vm333_vm0, %v9504_v33, %v14974_v50  ;;  %396 = vst.msk [vmem:[#allocation3 + $0x28] sm:$0x3] %vm392_vm11, %v14984_v20  ;;  %393 = vst.msk [vmem:[#allocation3 + $0x10] sm:$0x3] %vm392_vm11, %v14984_v20  ;;  %v1845_v12 = vsel %vm333_vm0, %v9506_v61, %v14985_v56  ;;  %v14986_v62 = vld [vmem:[#allocation74_spill] sm:$0xff]  ;;  %v14987_v59 = vld [vmem:[#allocation95_spill] sm:$0xff] }
 0x24b   : > { %v1630_v3 = vpop.permute.xlu1 %1629  ;;  %v1876_v26 = vsel %vm1855_vm4, %v1843_v63, %v14975_v46  ;;  %399 = vst.msk [vmem:[#allocation3 + $0x40] sm:$0x3] %vm392_vm11, %v14984_v20  ;;  %402 = vst.msk [vmem:[#allocation3 + $0x58] sm:$0x3] %vm392_vm11, %v14984_v20  ;;  %v3774_v50 = vld [vmem:[%s14657_s3 + $0x118] sm:$0xff] }
 0x24c   : > { %v2036_v53 = vsel %vm2020_vm9, %v2003_v37, %v1630_v3  ;;  %v1760_v23 = vpop.permute.xlu0 %1759  ;;  %v1908_v3 = vsel %vm1888_vm5, %v1875_v10, %v14970_v38  ;;  %405 = vst.msk [vmem:[#allocation3 + $0x70] sm:$0x3] %vm392_vm11, %v14984_v20  ;;  %408 = vst.msk [vmem:[#allocation3 + $0x88] sm:$0x3] %vm392_vm11, %v14984_v20  ;;  %v9507_v10 = vld [vmem:[#allocation2 + $0x110] sm:$0xff]  ;;  %v14994_v63 = vld [vmem:[#allocation115_spill] sm:$0xff]  ;;  %8200 = vmatprep.subr.mxu0 %v3774_v50 }
 0x24d   : > { %v2069_v41 = vsel %vm389_vm3, %v2037_v42, %v1760_v23  ;;  %v1941_v57 = vsel %vm1921_vm6, %v1908_v3, %v14971_v16  ;;  %411 = vst.msk [vmem:[#allocation3 + $0xa0] sm:$0x3] %vm392_vm11, %v14984_v20  ;;  %414 = vst.msk [vmem:[#allocation3 + $0xb8] sm:$0x3] %vm392_vm11, %v14984_v20  ;;  %v14991_v16 = vld [vmem:[#allocation77_spill] sm:$0xff]  ;;  %8201 = vmatpush3.msra.mxu0 %v3774_v50  ;;  %v15001_v61 = vld [vmem:[#allocation79_spill] sm:$0xff] }
 0x24e   : > { %v1974_v29 = vsel %vm1954_vm7, %v1941_v57, %v14972_v5  ;;  %417 = vst.msk [vmem:[#allocation3 + $0xd0] sm:$0x3] %vm392_vm11, %v14984_v20  ;;  %420 = vst.msk [vmem:[#allocation3 + $0xe8] sm:$0x3] %vm392_vm11, %v14984_v20  ;;  %v15010_v50 = vld [vmem:[#allocation57_spill] sm:$0xff] }
 0x24f   : > { %v1758_v21 = vpop.permute.xlu1 %1757  ;;  %v2007_v24 = vsel %vm1987_vm8, %v1974_v29, %v14973_v36  ;;  %423 = vst.msk [vmem:[#allocation3 + $0x100] sm:$0x3] %vm392_vm11, %v14984_v20  ;;  %426 = vst.msk [vmem:[#allocation3 + $0x118] sm:$0x3] %vm392_vm11, %v14984_v20  ;;  %v14992_v29 = vld [vmem:[#allocation98_spill] sm:$0xff] }
 0x250   : > { %v2068_v48 = vsel %vm389_vm3, %v2036_v53, %v1758_v21  ;;  %v1636_v30 = vpop.permute.xlu0 %1635  ;;  %v14976_v21 = vld [vmem:[#allocation93_spill] sm:$0xff]  ;;  %429 = vst.msk [vmem:[#allocation3 + $0x130] sm:$0x3] %vm392_vm11, %v14984_v20  ;;  %432 = vst.msk [vmem:[#allocation3 + $0x148] sm:$0x3] %vm392_vm11, %v14984_v20 }
 0x251   : > { %8174 = vmatmul.mubr.msk.f32.gmra.mxu0 %vm2097_vm10, %v2068_v48  ;;  %v2039_v28 = vsel %vm2020_vm9, %v2006_v44, %v1636_v30  ;;  %v1909_v54 = vsel %vm1888_vm5, %v1876_v26, %v14976_v21  ;;  %v14977_v48 = vld [vmem:[#allocation25_spill] sm:$0xff]  ;;  %435 = vst.msk [vmem:[#allocation3 + $0x160] sm:$0x3] %vm392_vm11, %v14984_v20  ;;  %438 = vst.msk [vmem:[#allocation3 + $0x178] sm:$0x3] %vm392_vm11, %v14984_v20  ;;  %v3773_v26 = vld [vmem:[%s14657_s3 + $0x110] sm:$0xff] }
 0x252   : > { %8176 = vmatprep.mubr.msk.f32.mxu0 %vm2097_vm10, %v2069_v41  ;;  %v1942_v17 = vsel %vm1921_vm6, %v1909_v54, %v14977_v48  ;;  %v1844_v41 = vsel %vm333_vm0, %v9505_v40, %v14979_v15  ;;  %441 = vst.msk [vmem:[#allocation3 + $0x190] sm:$0x3] %vm392_vm11, %v14984_v20  ;;  %444 = vst.msk [vmem:[#allocation3 + $0x1a8] sm:$0x3] %vm392_vm11, %v14984_v20  ;;  %v14995_v21 = vld [vmem:[#allocation48_spill] sm:$0xff]  ;;  %8202 = vmatprep.subr.mxu0 %v3773_v26  ;;  %v3772_v40 = vld [vmem:[%s14657_s3 + $0x108] sm:$0xff] }
 0x253   : > { %v1634_v25 = vpop.permute.xlu1 %1633  ;;  %v1975_v60 = vsel %vm1954_vm7, %v1942_v17, %v14978_v45  ;;  %v1877_v0 = vsel %vm1855_vm4, %v1844_v41, %v14980_v19  ;;  %v2520_v17 = vld [vmem:[#allocation3 + $0x1] sm:$0xff]  ;;  %v2521_v45 = vld [vmem:[#allocation3 + $0x9] sm:$0xff]  ;;  %8203 = vmatpush3.msra.mxu0 %v3773_v26  ;;  %v14997_v41 = vld [vmem:[#allocation97_spill] sm:$0xff] }
 0x254   : > { %v2038_v18 = vsel %vm2020_vm9, %v2005_v22, %v1634_v25  ;;  %v1764_v1 = vpop.permute.xlu0 %1763  ;;  %v14981_v25 = vld [vmem:[#allocation96_spill] sm:$0xff]  ;;  %v8332_v15 = vpack.i.bf16 %v2521_v45, %v2520_v17  ;;  %8204 = vmatprep.subr.mxu0 %v3772_v40  ;;  %v14998_v19 = vld [vmem:[#allocation33_spill] sm:$0xff]  ;;  %v15014_v45 = vld [vmem:[#allocation119_spill] sm:$0xff] }
 0x255   : > { %v2071_v27 = vsel %vm389_vm3, %v2039_v28, %v1764_v1  ;;  %v1910_v47 = vsel %vm1888_vm5, %v1877_v0, %v14981_v25  ;;  %8205 = vmatpush3.msra.mxu0 %v3772_v40  ;;  %v14999_v25 = vld [vmem:[#allocation114_spill] sm:$0xff] }
 0x256   : > { %v1943_v4 = vsel %vm1921_vm6, %v1910_v47, %v14982_v2  ;;  %8333 = vrot.lane.b32.xlu0 %v8332_v15, %s9547_s14  ;;  %v9512_v40 = vld [vmem:[#allocation2 + $0x150] sm:$0xff]  ;;  %v15015_v15 = vld [vmem:[#allocation56_spill] sm:$0xff] }
 0x257   : > { %v1762_v49 = vpop.permute.xlu1 %1761  ;;  %v1976_v6 = vsel %vm1954_vm7, %v1943_v4, %v14983_v11  ;;  %v9509_v4 = vld [vmem:[#allocation2 + $0x128] sm:$0xff]  ;;  %v15000_v11 = vld [vmem:[#allocation54_spill] sm:$0xff] }
 0x258   : > { %v2070_v8 = vsel %vm389_vm3, %v2038_v18, %v1762_v49  ;;  %v1512_v35 = vpop.permute.xlu0 %1511  ;;  %v1878_v18 = vsel %vm1855_vm4, %v1845_v12, %v14986_v62 }
 0x259   : > { %8177 = vmatmul.mubr.msk.f32.gmra.mxu0 %vm2097_vm10, %v2070_v8  ;;  %v2008_v23 = vsel %vm1987_vm8, %v1975_v60, %v1512_v35  ;;  %v1911_v44 = vsel %vm1888_vm5, %v1878_v18, %v14987_v59  ;;  %v14996_v60 = vld [vmem:[#allocation76_spill] sm:$0xff]  ;;  %v15003_v18 = vld [vmem:[#allocation39_spill] sm:$0xff]  ;;  %v15004_v59 = vld [vmem:[#allocation117_spill] sm:$0xff] }
 0x25a   : > { %8179 = vmatprep.mubr.msk.f32.mxu0 %vm2097_vm10, %v2071_v27  ;;  %v1944_v13 = vsel %vm1921_vm6, %v1911_v44, %v14988_v34  ;;  %v14990_v27 = vld [vmem:[#allocation50_spill] sm:$0xff] }
 0x25b   : > { %v1638_v55 = vpop.permute.xlu1 %1637  ;;  %v1977_v28 = vsel %vm1954_vm7, %v1944_v13, %v14989_v52  ;;  %v1846_v38 = vsel %vm333_vm0, %v9507_v10, %v14990_v27  ;;  %v9510_v13 = vld [vmem:[#allocation2 + $0x138] sm:$0xff]  ;;  %v15005_v52 = vld [vmem:[#allocation52_spill] sm:$0xff]  ;;  %v15006_v10 = vld [vmem:[#allocation78_spill] sm:$0xff] }
 0x25c   : > { %v2040_v9 = vsel %vm2020_vm9, %v2007_v24, %v1638_v55  ;;  %v1640_v43 = vpop.permute.xlu0 %1639  ;;  %v1879_v57 = vsel %vm1855_vm4, %v1846_v38, %v14991_v16  ;;  %v14993_v24 = vld [vmem:[#allocation35_spill] sm:$0xff] }
 0x25d   : > { %v2041_v51 = vsel %vm2020_vm9, %v2008_v23, %v1640_v43  ;;  %v1912_v35 = vsel %vm1888_vm5, %v1879_v57, %v14992_v29  ;;  %v15008_v57 = vld [vmem:[#allocation37_spill] sm:$0xff]  ;;  %v15009_v29 = vld [vmem:[#allocation116_spill] sm:$0xff] }
 0x25e   : > { %v1945_v33 = vsel %vm1921_vm6, %v1912_v35, %v14993_v24 }
 0x25f   : > { %v1766_v37 = vpop.permute.xlu1 %1765 }
 0x260   : > { %v2072_v53 = vsel %vm389_vm3, %v2040_v9, %v1766_v37  ;;  %v1768_v7 = vpop.permute.xlu0 %1767  ;;  %v1978_v9 = vsel %vm1954_vm7, %v1945_v33, %v14994_v63  ;;  %v9511_v33 = vld [vmem:[#allocation2 + $0x140] sm:$0xff] }
 0x261   : > { %8180 = vmatmul.mubr.msk.f32.gmra.mxu0 %vm2097_vm10, %v2072_v53  ;;  %v2073_v31 = vsel %vm389_vm3, %v2041_v51, %v1768_v7  ;;  %v9508_v53 = vld [vmem:[#allocation2 + $0x120] sm:$0xff]  ;;  %v1850_v63 = vsel %vm333_vm0, %v9511_v33, %v15010_v50 }
 0x262   : > { %8182 = vmatprep.mubr.msk.f32.mxu0 %vm2097_vm10, %v2073_v31  ;;  %v1847_v54 = vsel %vm333_vm0, %v9508_v53, %v14995_v21  ;;  %v3771_v31 = vld [vmem:[%s14657_s3 + $0x100] sm:$0xff]  ;;  %v15012_v21 = vld [vmem:[#allocation102_spill] sm:$0xff] }
 0x263   : > { %v1514_v42 = vpop.permute.xlu1 %1513  ;;  %8206 = vmatprep.subr.mxu0 %v3771_v31  ;;  %v15029_v50 = vld [vmem:[#allocation120_spill] sm:$0xff] }
 0x264   : > { %v1516_v39 = vpop.permute.xlu0 %1515  ;;  %v2009_v30 = vsel %vm1987_vm8, %v1976_v6, %v1514_v42  ;;  %v1880_v42 = vsel %vm1855_vm4, %v1847_v54, %v14996_v60  ;;  %8207 = vmatpush3.msra.mxu0 %v3771_v31  ;;  %v1848_v6 = vsel %vm333_vm0, %v9509_v4, %v15000_v11  ;;  %v15019_v11 = vld [vmem:[#allocation118_spill] sm:$0xff] }
 0x265   : > { %v2010_v58 = vsel %vm1987_vm8, %v1977_v28, %v1516_v39  ;;  %v1913_v51 = vsel %vm1888_vm5, %v1880_v42, %v14997_v41  ;;  %5779 = vmatprep.subr.mxu0 %v14984_v20  ;;  %v1881_v56 = vsel %vm1855_vm4, %v1848_v6, %v15001_v61  ;;  %v1849_v28 = vsel %vm333_vm0, %v9510_v13, %v15005_v52  ;;  %v9513_v61 = vld [vmem:[#allocation2 + $0x158] sm:$0xff]  ;;  %v15024_v52 = vld [vmem:[#allocation121_spill] sm:$0xff] }
 0x266   : > { %v1946_v0 = vsel %vm1921_vm6, %v1913_v51, %v14998_v19  ;;  %v1882_v27 = vsel %vm1855_vm4, %v1849_v28, %v15006_v10  ;;  %v1851_v41 = vsel %vm333_vm0, %v9512_v40, %v15015_v15  ;;  %v15016_v19 = vld [vmem:[#allocation80_spill] sm:$0xff]  ;;  %v9514_v10 = vld [vmem:[#allocation2 + $0x168] sm:$0xff]  ;;  %v15034_v15 = vld [vmem:[#allocation122_spill] sm:$0xff] }
 0x267   : > { %v1642_v32 = vpop.permute.xlu1 %1641  ;;  %v1979_v47 = vsel %vm1954_vm7, %v1946_v0, %v14999_v25  ;;  %v1884_v0 = vsel %vm1855_vm4, %v1851_v41, %v15016_v19  ;;  %v15017_v25 = vld [vmem:[#allocation101_spill] sm:$0xff] }
 0x268   : > { %v2042_v22 = vsel %vm2020_vm9, %v2009_v30, %v1642_v32  ;;  %v1644_v8 = vpop.permute.xlu0 %1643 }
 0x269   : > { %v2043_v3 = vsel %vm2020_vm9, %v2010_v58, %v1644_v8 }
 0x26b   : > { %v1770_v14 = vpop.permute.xlu1 %1769 }
 0x26c   : > { %v2074_v49 = vsel %vm389_vm3, %v2042_v22, %v1770_v14  ;;  %v1772_v55 = vpop.permute.xlu0 %1771  ;;  %v15002_v22 = vld [vmem:[#allocation100_spill] sm:$0xff] }
 0x26d   : > { %8183 = vmatmul.mubr.msk.f32.gmra.mxu0 %vm2097_vm10, %v2074_v49  ;;  %v2075_v5 = vsel %vm389_vm3, %v2043_v3, %v1772_v55  ;;  %v1914_v14 = vsel %vm1888_vm5, %v1881_v56, %v15002_v22  ;;  %v15007_v3 = vld [vmem:[#allocation99_spill] sm:$0xff]  ;;  %v15020_v56 = vld [vmem:[#allocation60_spill] sm:$0xff] }
 0x26e   : > { %8185 = vmatprep.mubr.msk.f32.mxu0 %vm2097_vm10, %v2075_v5  ;;  %v1947_v49 = vsel %vm1921_vm6, %v1914_v14, %v15003_v18  ;;  %v1915_v55 = vsel %vm1888_vm5, %v1882_v27, %v15007_v3  ;;  %v15025_v27 = vld [vmem:[#allocation59_spill] sm:$0xff] }
 0x26f   : > { %v1518_v1 = vpop.permute.xlu1 %1517  ;;  %v1980_v44 = vsel %vm1954_vm7, %v1947_v49, %v15004_v59  ;;  %v1948_v5 = vsel %vm1921_vm6, %v1915_v55, %v15008_v57  ;;  %v15022_v59 = vld [vmem:[#allocation104_spill] sm:$0xff] }
 0x270   : > { %v1520_v37 = vpop.permute.xlu0 %1519  ;;  %v2011_v46 = vsel %vm1987_vm8, %v1978_v9, %v1518_v1  ;;  %v1981_v35 = vsel %vm1954_vm7, %v1948_v5, %v15009_v29  ;;  %v15027_v29 = vld [vmem:[#allocation103_spill] sm:$0xff] }
 0x271   : > { %v2012_v2 = vsel %vm1987_vm8, %v1979_v47, %v1520_v37  ;;  %v1917_v47 = vsel %vm1888_vm5, %v1884_v0, %v15017_v25 }
 0x273   : > { %v1646_v36 = vpop.permute.xlu1 %1645 }
 0x274   : > { %v2044_v43 = vsel %vm2020_vm9, %v2011_v46, %v1646_v36  ;;  %v1648_v7 = vpop.permute.xlu0 %1647  ;;  %v15011_v46 = vld [vmem:[#allocation81_spill] sm:$0xff] }
 0x275   : > { %v2045_v39 = vsel %vm2020_vm9, %v2012_v2, %v1648_v7  ;;  %v1883_v26 = vsel %vm1855_vm4, %v1850_v63, %v15011_v46  ;;  %v15018_v2 = vld [vmem:[#allocation41_spill] sm:$0xff]  ;;  %v9515_v46 = vld [vmem:[#allocation2 + $0x170] sm:$0xff] }
 0x276   : > { %v1916_v54 = vsel %vm1888_vm5, %v1883_v26, %v15012_v21  ;;  %v1950_v4 = vsel %vm1921_vm6, %v1917_v47, %v15018_v2  ;;  %v15030_v26 = vld [vmem:[#allocation62_spill] sm:$0xff] }
 0x277   : > { %v1774_v48 = vpop.permute.xlu1 %1773  ;;  %v1983_v6 = vsel %vm1954_vm7, %v1950_v4, %v15019_v11 }
 0x278   : > { %v2076_v23 = vsel %vm389_vm3, %v2044_v43, %v1774_v48  ;;  %v1776_v30 = vpop.permute.xlu0 %1775  ;;  %v15013_v48 = vld [vmem:[#allocation43_spill] sm:$0xff] }
 0x279   : > { %8186 = vmatmul.mubr.msk.f32.gmra.mxu0 %vm2097_vm10, %v2076_v23  ;;  %v2077_v12 = vsel %vm389_vm3, %v2045_v39, %v1776_v30  ;;  %v1949_v17 = vsel %vm1921_vm6, %v1916_v54, %v15013_v48 }
 0x27a   : > { %8188 = vmatprep.mubr.msk.f32.mxu0 %vm2097_vm10, %v2077_v12  ;;  %v1982_v60 = vsel %vm1954_vm7, %v1949_v17, %v15014_v45  ;;  %v1852_v12 = vsel %vm333_vm0, %v9513_v61, %v15020_v56  ;;  %v15032_v45 = vld [vmem:[#allocation5_spill] sm:$0xff] }
 0x27b   : > { %v1522_v32 = vpop.permute.xlu1 %1521 }
 0x27c   : > { %v1524_v8 = vpop.permute.xlu0 %1523  ;;  %v2013_v34 = vsel %vm1987_vm8, %v1980_v44, %v1522_v32 }
 0x27d   : > { %v2014_v24 = vsel %vm1987_vm8, %v1981_v35, %v1524_v8 }
 0x27f   : > { %v1650_v62 = vpop.permute.xlu1 %1649 }
 0x280   : > { %v2046_v1 = vsel %vm2020_vm9, %v2013_v34, %v1650_v62  ;;  %v1652_v16 = vpop.permute.xlu0 %1651  ;;  %v15021_v62 = vld [vmem:[#allocation83_spill] sm:$0xff] }
 0x281   : > { %v2047_v9 = vsel %vm2020_vm9, %v2014_v24, %v1652_v16  ;;  %v1885_v18 = vsel %vm1855_vm4, %v1852_v12, %v15021_v62  ;;  %v15023_v34 = vld [vmem:[#allocation47_spill] sm:$0xff]  ;;  %v15026_v16 = vld [vmem:[#allocation82_spill] sm:$0xff]  ;;  %v15028_v24 = vld [vmem:[#allocation45_spill] sm:$0xff] }
 0x282   : > { %v1918_v44 = vsel %vm1888_vm5, %v1885_v18, %v15022_v59 }
 0x283   : > { %v1778_v58 = vpop.permute.xlu1 %1777  ;;  %v1951_v13 = vsel %vm1921_vm6, %v1918_v44, %v15023_v34 }
 0x284   : > { %v2078_v38 = vsel %vm389_vm3, %v2046_v1, %v1778_v58  ;;  %v1780_v37 = vpop.permute.xlu0 %1779  ;;  %v1984_v28 = vsel %vm1954_vm7, %v1951_v13, %v15024_v52 }
 0x285   : > { %8189 = vmatmul.mubr.msk.f32.gmra.mxu0 %vm2097_vm10, %v2078_v38  ;;  %v2079_v53 = vsel %vm389_vm3, %v2047_v9, %v1780_v37  ;;  %v1853_v38 = vsel %vm333_vm0, %v9514_v10, %v15025_v27 }
 0x286   : > { %8191 = vmatprep.mubr.msk.f32.mxu0 %vm2097_vm10, %v2079_v53  ;;  %v1886_v57 = vsel %vm1855_vm4, %v1853_v38, %v15026_v16  ;;  %v1854_v53 = vsel %vm333_vm0, %v9515_v46, %v15030_v26 }
 0x287   : > { %v1526_v36 = vpop.permute.xlu1 %1525  ;;  %v1919_v35 = vsel %vm1888_vm5, %v1886_v57, %v15027_v29 }
 0x288   : > { %v1528_v42 = vpop.permute.xlu0 %1527  ;;  %v2015_v23 = vsel %vm1987_vm8, %v1982_v60, %v1526_v36  ;;  %v1952_v33 = vsel %vm1921_vm6, %v1919_v35, %v15028_v24 }
 0x289   : > { %v2016_v30 = vsel %vm1987_vm8, %v1983_v6, %v1528_v42  ;;  %v1985_v63 = vsel %vm1954_vm7, %v1952_v33, %v15029_v50 }
 0x28b   : > { %v1654_v43 = vpop.permute.xlu1 %1653 }
 0x28c   : > { %v2048_v51 = vsel %vm2020_vm9, %v2015_v23, %v1654_v43  ;;  %v1656_v32 = vpop.permute.xlu0 %1655  ;;  %v15031_v43 = vld [vmem:[#allocation84_spill] sm:$0xff]  ;;  %v15033_v23 = vld [vmem:[#allocation49_spill] sm:$0xff] }
 0x28d   : > { %v2049_v22 = vsel %vm2020_vm9, %v2016_v30, %v1656_v32  ;;  %v1887_v48 = vsel %vm1855_vm4, %v1854_v53, %v15031_v43 }
 0x28e   : > { %v1920_v60 = vsel %vm1888_vm5, %v1887_v48, %v15032_v45 }
 0x28f   : > { %v1782_v7 = vpop.permute.xlu1 %1781  ;;  %v1953_v40 = vsel %vm1921_vm6, %v1920_v60, %v15033_v23 }
 0x290   : > { %v2080_v31 = vsel %vm389_vm3, %v2048_v51, %v1782_v7  ;;  %v1784_v14 = vpop.permute.xlu0 %1783  ;;  %v1986_v41 = vsel %vm1954_vm7, %v1953_v40, %v15034_v15 }
 0x291   : > { %8192 = vmatmul.mubr.msk.f32.gmra.mxu0 %vm2097_vm10, %v2080_v31  ;;  %v2081_v49 = vsel %vm389_vm3, %v2049_v22, %v1784_v14  ;;  %v11352_v31 = vld [vmem:[%s14656_s2] ss:$0 sm:$0xff] }
 0x292   : > { %8194 = vmatprep.mubr.msk.f32.mxu0 %vm2097_vm10, %v2081_v49 }
 0x293   : > { %v1530_v39 = vpop.permute.xlu1 %1529 }
 0x294   : > { %v1532_v1 = vpop.permute.xlu0 %1531  ;;  %v2017_v58 = vsel %vm1987_vm8, %v1984_v28, %v1530_v39 }
 0x295   : > { %v2018_v37 = vsel %vm1987_vm8, %v1985_v63, %v1532_v1 }
 0x297   : > { %v1658_v8 = vpop.permute.xlu1 %1657 }
 0x298   : > { %v2050_v3 = vsel %vm2020_vm9, %v2017_v58, %v1658_v8  ;;  %v1660_v36 = vpop.permute.xlu0 %1659 }
 0x299   : > { %v2051_v21 = vsel %vm2020_vm9, %v2018_v37, %v1660_v36 }
 0x29b   : > { %v1786_v55 = vpop.permute.xlu1 %1785 }
 0x29c   : > { %v2082_v5 = vsel %vm389_vm3, %v2050_v3, %v1786_v55  ;;  %v1788_v54 = vpop.permute.xlu0 %1787 }
 0x29d   : > { %8195 = vmatmul.mubr.msk.f32.gmra.mxu0 %vm2097_vm10, %v2082_v5  ;;  %v2083_v17 = vsel %vm389_vm3, %v2051_v21, %v1788_v54 }
 0x29e   : > { %8197 = vmatprep.mubr.msk.f32.mxu0 %vm2097_vm10, %v2083_v17 }
 0x29f   : > { %v1534_v9 = vpop.permute.xlu1 %1533 }
 0x2a0   : > { %v2019_v51 = vsel %vm1987_vm8, %v1986_v41, %v1534_v9 }
 0x2a3   : > { %v1662_v42 = vpop.permute.xlu1 %1661 }
 0x2a4   : > { %v2052_v7 = vsel %vm2020_vm9, %v2019_v51, %v1662_v42 }
 0x2a7   : > { %v1790_v19 = vpop.permute.xlu1 %1789 }
 0x2a8   : > { %v2084_v0 = vsel %vm389_vm3, %v2052_v7, %v1790_v19 }
 0x2a9   : > { %8198 = vmatmul.mubr.msk.f32.gmra.mxu0 %vm2097_vm10, %v2084_v0 }
 0x2d9   : > { %v8154_v25 = vpop.f32.mrf.mxu0 }
 0x2da   : > { %v2270_v47 = vadd.f32 %v8154_v25, %v11352_v31 }
 0x2db   : > { %v2264_v32 = vpop.f32.mrf.mxu0 }
 0x2dc   : > { %9294 = vtanh.f32 %v2270_v47  ;;  %v2265_v2 = vadd.f32 %v11352_v31, %v2264_v32 }
 0x2de   : > { %9296 = vtanh.f32 %v2265_v2 }
 0x2e1   : > { %v8157_v4 = vpop.f32.mrf.mxu0 }
 0x2e2   : > { %v2280_v11 = vadd.f32 %v8157_v4, %v11352_v31 }
 0x2e3   : > { %v2274_v6 = vpop.f32.mrf.mxu0 }
 0x2e4   : > { %9298 = vtanh.f32 %v2280_v11  ;;  %v2275_v39 = vadd.f32 %v11352_v31, %v2274_v6 }
 0x2e6   : > { %9300 = vtanh.f32 %v2275_v39 }
 0x2e9   : > { %v9295_v30 = vpop.eup %9294  ;;  %v8160_v61 = vpop.f32.mrf.mxu0 }
 0x2ea   : > { %v2290_v56 = vadd.f32 %v8160_v61, %v11352_v31  ;;  %2457 = vst.msk [vmem:[#allocation3 + $0x21] sm:$0xff] %vm389_vm3, %v9295_v30 }
 0x2eb   : > { %v9297_v12 = vpop.eup %9296  ;;  %v2284_v22 = vpop.f32.mrf.mxu0 }
 0x2ec   : > { %2456 = vst.msk [vmem:[#allocation3 + $0x19] sm:$0xff] %vm389_vm3, %v9297_v12  ;;  %9302 = vtanh.f32 %v2290_v56  ;;  %v2285_v14 = vadd.f32 %v11352_v31, %v2284_v22 }
 0x2ee   : > { %9304 = vtanh.f32 %v2285_v14 }
 0x2f1   : > { %v9299_v62 = vpop.eup %9298  ;;  %v8163_v18 = vpop.f32.mrf.mxu0  ;;  %v2523_v34 = vld [vmem:[#allocation3 + $0x21] sm:$0xff] }
 0x2f2   : > { %v2300_v49 = vadd.f32 %v8163_v18, %v11352_v31  ;;  %2459 = vst.msk [vmem:[#allocation3 + $0x39] sm:$0xff] %vm389_vm3, %v9299_v62 }
 0x2f3   : > { %v9301_v59 = vpop.eup %9300  ;;  %v2294_v44 = vpop.f32.mrf.mxu0  ;;  %v2522_v8 = vld [vmem:[#allocation3 + $0x19] sm:$0xff] }
 0x2f4   : > { %2458 = vst.msk [vmem:[#allocation3 + $0x31] sm:$0xff] %vm389_vm3, %v9301_v59  ;;  %9306 = vtanh.f32 %v2300_v49  ;;  %v2295_v13 = vadd.f32 %v11352_v31, %v2294_v44  ;;  %v8337_v52 = vpack.i.bf16 %v2523_v34, %v2522_v8 }
 0x2f6   : > { %9308 = vtanh.f32 %v2295_v13  ;;  %8338 = vrot.lane.b32.xlu1 %v8337_v52, %s9547_s14 }
 0x2f9   : > { %v9303_v28 = vpop.eup %9302  ;;  %v8166_v1 = vpop.f32.mrf.mxu0  ;;  %v11373_v55 = vld [vmem:[#allocation3 + $0x39] sm:$0xff] }
 0x2fa   : > { %2461 = vst.msk [vmem:[#allocation3 + $0x51] sm:$0xff] %vm389_vm3, %v9303_v28  ;;  %v2310_v58 = vadd.f32 %v8166_v1, %v11352_v31  ;;  %v11379_v57 = vld [vmem:[#allocation3 + $0x3a] sm:$0xff] }
 0x2fb   : > { %v9305_v10 = vpop.eup %9304  ;;  %v2304_v27 = vpop.f32.mrf.mxu0  ;;  %v11369_v38 = vld [vmem:[#allocation3 + $0x32] sm:$0xff] }
 0x2fc   : > { %v11371_v3 = vld [vmem:[#allocation3 + $0x31] sm:$0xff]  ;;  %2460 = vst.msk [vmem:[#allocation3 + $0x49] sm:$0xff] %vm389_vm3, %v9305_v10  ;;  %9310 = vtanh.f32 %v2310_v58  ;;  %v2305_v16 = vadd.f32 %v11352_v31, %v2304_v27  ;;  %8208 = vmatprep.mubr.msk.f32.mxu0 %vm389_vm3, %v11369_v38 }
 0x2fd   : > { %v8342_v5 = vpack.i.bf16 %v11373_v55, %v11371_v3  ;;  %8209 = vmatmul.mubr.msk.f32.vlgmr.msra.gmra.mxu0 %vm389_vm3, %v11379_v57 }
 0x2fe   : > { %9312 = vtanh.f32 %v2305_v16 }
 0x2ff   : > { %8343 = vrot.lane.b32.xlu0 %v8342_v5, %s9547_s14 }
 0x301   : > { %v9307_v29 = vpop.eup %9306  ;;  %v8169_v35 = vpop.f32.mrf.mxu0  ;;  %v11392_v9 = vld [vmem:[#allocation3 + $0x51] sm:$0xff] }
 0x302   : > { %2463 = vst.msk [vmem:[#allocation3 + $0x69] sm:$0xff] %vm389_vm3, %v9307_v29  ;;  %v2320_v36 = vadd.f32 %v8169_v35, %v11352_v31  ;;  %v11398_v46 = vld [vmem:[#allocation3 + $0x52] sm:$0xff] }
 0x303   : > { %v9309_v24 = vpop.eup %9308  ;;  %v2314_v33 = vpop.f32.mrf.mxu0  ;;  %v11388_v50 = vld [vmem:[#allocation3 + $0x4a] sm:$0xff] }
 0x304   : > { %v11390_v63 = vld [vmem:[#allocation3 + $0x49] sm:$0xff]  ;;  %2462 = vst.msk [vmem:[#allocation3 + $0x61] sm:$0xff] %vm389_vm3, %v9309_v24  ;;  %9314 = vtanh.f32 %v2320_v36  ;;  %v2315_v37 = vadd.f32 %v11352_v31, %v2314_v33  ;;  %8211 = vmatprep.mubr.msk.f32.mxu0 %vm389_vm3, %v11388_v50 }
 0x305   : > { %v8347_v26 = vpack.i.bf16 %v11392_v9, %v11390_v63  ;;  %8212 = vmatmul.mubr.msk.f32.gmra.mxu0 %vm389_vm3, %v11398_v46 }
 0x306   : > { %9316 = vtanh.f32 %v2315_v37 }
 0x307   : > { %8348 = vrot.lane.b32.xlu1 %v8347_v26, %s9547_s14 }
 0x309   : > { %v9311_v53 = vpop.eup %9310  ;;  %v8172_v21 = vpop.f32.mrf.mxu0  ;;  %v11411_v60 = vld [vmem:[#allocation3 + $0x69] sm:$0xff] }
 0x30a   : > { %2465 = vst.msk [vmem:[#allocation3 + $0x81] sm:$0xff] %vm389_vm3, %v9311_v53  ;;  %v2330_v54 = vadd.f32 %v8172_v21, %v11352_v31  ;;  %v11417_v23 = vld [vmem:[#allocation3 + $0x6a] sm:$0xff] }
 0x30b   : > { %v9313_v43 = vpop.eup %9312  ;;  %v2324_v48 = vpop.f32.mrf.mxu0  ;;  %v11407_v17 = vld [vmem:[#allocation3 + $0x62] sm:$0xff] }
 0x30c   : > { %v11409_v45 = vld [vmem:[#allocation3 + $0x61] sm:$0xff]  ;;  %2464 = vst.msk [vmem:[#allocation3 + $0x79] sm:$0xff] %vm389_vm3, %v9313_v43  ;;  %9318 = vtanh.f32 %v2330_v54  ;;  %v2325_v42 = vadd.f32 %v11352_v31, %v2324_v48  ;;  %8214 = vmatprep.mubr.msk.f32.mxu0 %vm389_vm3, %v11407_v17 }
 0x30d   : > { %v8352_v40 = vpack.i.bf16 %v11411_v60, %v11409_v45  ;;  %8215 = vmatmul.mubr.msk.f32.gmra.mxu0 %vm389_vm3, %v11417_v23 }
 0x30e   : > { %9320 = vtanh.f32 %v2325_v42 }
 0x30f   : > { %8353 = vrot.lane.b32.xlu0 %v8352_v40, %s9547_s14 }
 0x311   : > { %v9315_v15 = vpop.eup %9314  ;;  %v8175_v41 = vpop.f32.mrf.mxu0  ;;  %v11430_v47 = vld [vmem:[#allocation3 + $0x81] sm:$0xff] }
 0x312   : > { %2467 = vst.msk [vmem:[#allocation3 + $0x99] sm:$0xff] %vm389_vm3, %v9315_v15  ;;  %v2340_v51 = vadd.f32 %v8175_v41, %v11352_v31  ;;  %v11436_v2 = vld [vmem:[#allocation3 + $0x82] sm:$0xff] }
 0x313   : > { %v9317_v7 = vpop.eup %9316  ;;  %v2334_v19 = vpop.f32.mrf.mxu0  ;;  %v11426_v0 = vld [vmem:[#allocation3 + $0x7a] sm:$0xff] }
 0x314   : > { %v11428_v25 = vld [vmem:[#allocation3 + $0x79] sm:$0xff]  ;;  %2466 = vst.msk [vmem:[#allocation3 + $0x91] sm:$0xff] %vm389_vm3, %v9317_v7  ;;  %9322 = vtanh.f32 %v2340_v51  ;;  %v2335_v32 = vadd.f32 %v11352_v31, %v2334_v19  ;;  %8217 = vmatprep.mubr.msk.f32.mxu0 %vm389_vm3, %v11426_v0 }
 0x315   : > { %v8357_v4 = vpack.i.bf16 %v11430_v47, %v11428_v25  ;;  %8218 = vmatmul.mubr.msk.f32.gmra.mxu0 %vm389_vm3, %v11436_v2 }
 0x316   : > { %9324 = vtanh.f32 %v2335_v32 }
 0x317   : > { %8358 = vrot.lane.b32.xlu1 %v8357_v4, %s9547_s14 }
 0x319   : > { %v9319_v11 = vpop.eup %9318  ;;  %v8178_v6 = vpop.f32.mrf.mxu0  ;;  %v11449_v22 = vld [vmem:[#allocation3 + $0x99] sm:$0xff] }
 0x31a   : > { %2469 = vst.msk [vmem:[#allocation3 + $0xb1] sm:$0xff] %vm389_vm3, %v9319_v11  ;;  %v2350_v39 = vadd.f32 %v8178_v6, %v11352_v31  ;;  %v11455_v62 = vld [vmem:[#allocation3 + $0x9a] sm:$0xff] }
 0x31b   : > { %v9321_v30 = vpop.eup %9320  ;;  %v2344_v61 = vpop.f32.mrf.mxu0  ;;  %v11445_v56 = vld [vmem:[#allocation3 + $0x92] sm:$0xff] }
 0x31c   : > { %v11447_v12 = vld [vmem:[#allocation3 + $0x91] sm:$0xff]  ;;  %2468 = vst.msk [vmem:[#allocation3 + $0xa9] sm:$0xff] %vm389_vm3, %v9321_v30  ;;  %9326 = vtanh.f32 %v2350_v39  ;;  %v2345_v14 = vadd.f32 %v11352_v31, %v2344_v61  ;;  %8220 = vmatprep.mubr.msk.f32.mxu0 %vm389_vm3, %v11445_v56 }
 0x31d   : > { %v8362_v18 = vpack.i.bf16 %v11449_v22, %v11447_v12  ;;  %8221 = vmatmul.mubr.msk.f32.gmra.mxu0 %vm389_vm3, %v11455_v62 }
 0x31e   : > { %9328 = vtanh.f32 %v2345_v14 }
 0x31f   : > { %8363 = vrot.lane.b32.xlu0 %v8362_v18, %s9547_s14 }
 0x321   : > { %v9323_v49 = vpop.eup %9322  ;;  %v8181_v59 = vpop.f32.mrf.mxu0  ;;  %v11468_v28 = vld [vmem:[#allocation3 + $0xb1] sm:$0xff] }
 0x322   : > { %2471 = vst.msk [vmem:[#allocation3 + $0xc9] sm:$0xff] %vm389_vm3, %v9323_v49  ;;  %v2360_v44 = vadd.f32 %v8181_v59, %v11352_v31  ;;  %v11474_v58 = vld [vmem:[#allocation3 + $0xb2] sm:$0xff] }
 0x323   : > { %v9325_v8 = vpop.eup %9324  ;;  %v2354_v34 = vpop.f32.mrf.mxu0  ;;  %v11464_v13 = vld [vmem:[#allocation3 + $0xaa] sm:$0xff] }
 0x324   : > { %v11466_v52 = vld [vmem:[#allocation3 + $0xa9] sm:$0xff]  ;;  %2470 = vst.msk [vmem:[#allocation3 + $0xc1] sm:$0xff] %vm389_vm3, %v9325_v8  ;;  %9330 = vtanh.f32 %v2360_v44  ;;  %v2355_v1 = vadd.f32 %v11352_v31, %v2354_v34  ;;  %8223 = vmatprep.mubr.msk.f32.mxu0 %vm389_vm3, %v11464_v13 }
 0x325   : > { %v8367_v10 = vpack.i.bf16 %v11468_v28, %v11466_v52  ;;  %8224 = vmatmul.mubr.msk.f32.gmra.mxu0 %vm389_vm3, %v11474_v58 }
 0x326   : > { %9332 = vtanh.f32 %v2355_v1 }
 0x327   : > { %8368 = vrot.lane.b32.xlu1 %v8367_v10, %s9547_s14 }
 0x329   : > { %v9327_v27 = vpop.eup %9326  ;;  %v11486_v35 = vld [vmem:[#allocation3 + $0xc9] sm:$0xff] }
 0x32a   : > { %2473 = vst.msk [vmem:[#allocation3 + $0xe1] sm:$0xff] %vm389_vm3, %v9327_v27  ;;  %v11491_v36 = vld [vmem:[#allocation3 + $0xca] sm:$0xff] }
 0x32b   : > { %v9329_v16 = vpop.eup %9328  ;;  %v11482_v5 = vld [vmem:[#allocation3 + $0xc2] sm:$0xff] }
 0x32c   : > { %v11484_v29 = vld [vmem:[#allocation3 + $0xc1] sm:$0xff]  ;;  %2472 = vst.msk [vmem:[#allocation3 + $0xd9] sm:$0xff] %vm389_vm3, %v9329_v16  ;;  %8226 = vmatprep.mubr.msk.f32.mxu0 %vm389_vm3, %v11482_v5 }
 0x32d   : > { %v8372_v24 = vpack.i.bf16 %v11486_v35, %v11484_v29  ;;  %v8184_v33 = vpop.f32.mrf.mxu0  ;;  %8227 = vmatmul.mubr.msk.f32.gmra.mxu0 %vm389_vm3, %v11491_v36 }
 0x32e   : > { %v2370_v37 = vadd.f32 %v8184_v33, %v11352_v31 }
 0x32f   : > { %8373 = vrot.lane.b32.xlu0 %v8372_v24, %s9547_s14  ;;  %v2364_v26 = vpop.f32.mrf.mxu0 }
 0x330   : > { %9334 = vtanh.f32 %v2370_v37  ;;  %v2365_v53 = vadd.f32 %v11352_v31, %v2364_v26 }
 0x331   : > { %v9331_v21 = vpop.eup %9330  ;;  %v11505_v42 = vld [vmem:[#allocation3 + $0xe1] sm:$0xff] }
 0x332   : > { %2475 = vst.msk [vmem:[#allocation3 + $0xf9] sm:$0xff] %vm389_vm3, %v9331_v21  ;;  %9336 = vtanh.f32 %v2365_v53  ;;  %v11510_v40 = vld [vmem:[#allocation3 + $0xe2] sm:$0xff] }
 0x333   : > { %v9333_v54 = vpop.eup %9332  ;;  %v11501_v43 = vld [vmem:[#allocation3 + $0xda] sm:$0xff] }
 0x334   : > { %v11503_v48 = vld [vmem:[#allocation3 + $0xd9] sm:$0xff]  ;;  %2474 = vst.msk [vmem:[#allocation3 + $0xf1] sm:$0xff] %vm389_vm3, %v9333_v54  ;;  %8229 = vmatprep.mubr.msk.f32.mxu0 %vm389_vm3, %v11501_v43 }
 0x335   : > { %v8377_v15 = vpack.i.bf16 %v11505_v42, %v11503_v48  ;;  %8230 = vmatmul.mubr.msk.f32.gmra.mxu0 %vm389_vm3, %v11510_v40 }
 0x337   : > { %8378 = vrot.lane.b32.xlu1 %v8377_v15, %s9547_s14 }
 0x339   : > { %v8187_v41 = vpop.f32.mrf.mxu0  ;;  %v11522_v4 = vld [vmem:[#allocation3 + $0xf9] sm:$0xff] }
 0x33a   : > { %v2380_v51 = vadd.f32 %v8187_v41, %v11352_v31  ;;  %v11527_v6 = vld [vmem:[#allocation3 + $0xfa] sm:$0xff] }
 0x33b   : > { %v2374_v7 = vpop.f32.mrf.mxu0  ;;  %v11518_v19 = vld [vmem:[#allocation3 + $0xf2] sm:$0xff] }
 0x33c   : > { %v11520_v32 = vld [vmem:[#allocation3 + $0xf1] sm:$0xff]  ;;  %9338 = vtanh.f32 %v2380_v51  ;;  %v2375_v11 = vadd.f32 %v11352_v31, %v2374_v7  ;;  %8232 = vmatprep.mubr.msk.f32.mxu0 %vm389_vm3, %v11518_v19 }
 0x33d   : > { %v8382_v39 = vpack.i.bf16 %v11522_v4, %v11520_v32  ;;  %v9335_v30 = vpop.eup %9334  ;;  %8233 = vmatmul.mubr.msk.f32.gmra.mxu0 %vm389_vm3, %v11527_v6 }
 0x33e   : > { %2477 = vst.msk [vmem:[#allocation3 + $0x111] sm:$0xff] %vm389_vm3, %v9335_v30  ;;  %9340 = vtanh.f32 %v2375_v11  ;;  %v3754_v11 = vld [vmem:[%s14657_s3 + $0x78] sm:$0xff]  ;;  %v3752_v30 = vld [vmem:[%s14657_s3 + $0x68] sm:$0xff] }
 0x33f   : > { %8383 = vrot.lane.b32.xlu0 %v8382_v39, %s9547_s14  ;;  %v9337_v61 = vpop.eup %9336  ;;  %v3753_v39 = vld [vmem:[%s14657_s3 + $0x70] sm:$0xff]  ;;  %3879 = vmatpush1.msra.mxu1 %v3754_v11  ;;  %v3747_v11 = vld [vmem:[%s14657_s3 + $0x40] sm:$0xff] }
 0x340   : > { %2476 = vst.msk [vmem:[#allocation3 + $0x109] sm:$0xff] %vm389_vm3, %v9337_v61  ;;  %3880 = vmatprep.subr.mxu1 %v14984_v20 }
 0x341   : > { %3881 = vmatpush1.msra.mxu1 %v3753_v39  ;;  %v3746_v39 = vld [vmem:[%s14657_s3 + $0x38] sm:$0xff] }
 0x342   : > { %3882 = vmatprep.subr.mxu1 %v14984_v20 }
 0x343   : > { %3883 = vmatpush1.msra.mxu1 %v3752_v30 }
 0x344   : > { %3884 = vmatprep.subr.mxu1 %v14984_v20 }
 0x345   : > { %v8190_v14 = vpop.f32.mrf.mxu0  ;;  %v11541_v8 = vld [vmem:[#allocation3 + $0x111] sm:$0xff] }
 0x346   : > { %v2390_v18 = vadd.f32 %v8190_v14, %v11352_v31  ;;  %v11546_v1 = vld [vmem:[#allocation3 + $0x112] sm:$0xff] }
 0x347   : > { %v2384_v49 = vpop.f32.mrf.mxu0  ;;  %v11537_v59 = vld [vmem:[#allocation3 + $0x10a] sm:$0xff] }
 0x348   : > { %v11539_v44 = vld [vmem:[#allocation3 + $0x109] sm:$0xff]  ;;  %9342 = vtanh.f32 %v2390_v18  ;;  %v2385_v34 = vadd.f32 %v11352_v31, %v2384_v49  ;;  %8235 = vmatprep.mubr.msk.f32.mxu0 %vm389_vm3, %v11537_v59 }
 0x349   : > { %v8387_v10 = vpack.i.bf16 %v11541_v8, %v11539_v44  ;;  %v9339_v27 = vpop.eup %9338  ;;  %8236 = vmatmul.mubr.msk.f32.gmra.mxu0 %vm389_vm3, %v11546_v1  ;;  %v3751_v14 = vld [vmem:[%s14657_s3 + $0x60] sm:$0xff] }
 0x34a   : > { %2479 = vst.msk [vmem:[#allocation3 + $0x129] sm:$0xff] %vm389_vm3, %v9339_v27  ;;  %9344 = vtanh.f32 %v2385_v34  ;;  %3885 = vmatpush1.msra.mxu1 %v3751_v14 }
 0x34b   : > { %8388 = vrot.lane.b32.xlu1 %v8387_v10, %s9547_s14  ;;  %v9341_v16 = vpop.eup %9340  ;;  %3886 = vmatprep.subr.mxu1 %v14984_v20 }
 0x34c   : > { %2478 = vst.msk [vmem:[#allocation3 + $0x121] sm:$0xff] %vm389_vm3, %v9341_v16  ;;  %v3750_v16 = vld [vmem:[%s14657_s3 + $0x58] sm:$0xff] }
 0x34d   : > { %3887 = vmatpush1.msra.mxu1 %v3750_v16  ;;  %v3744_v16 = vld [vmem:[%s14657_s3 + $0x28] sm:$0xff] }
 0x34e   : > { %3888 = vmatprep.subr.mxu1 %v14984_v20 }
 0x351   : > { %v8193_v24 = vpop.f32.mrf.mxu0  ;;  %v11560_v21 = vld [vmem:[#allocation3 + $0x129] sm:$0xff] }
 0x352   : > { %v2400_v33 = vadd.f32 %v8193_v24, %v11352_v31  ;;  %v11565_v15 = vld [vmem:[#allocation3 + $0x12a] sm:$0xff] }
 0x353   : > { %v2394_v37 = vpop.f32.mrf.mxu0  ;;  %v11556_v26 = vld [vmem:[#allocation3 + $0x122] sm:$0xff] }
 0x354   : > { %v11558_v53 = vld [vmem:[#allocation3 + $0x121] sm:$0xff]  ;;  %9346 = vtanh.f32 %v2400_v33  ;;  %v2395_v54 = vadd.f32 %v11352_v31, %v2394_v37  ;;  %8238 = vmatprep.mubr.msk.f32.mxu0 %vm389_vm3, %v11556_v26 }
 0x355   : > { %v8392_v41 = vpack.i.bf16 %v11560_v21, %v11558_v53  ;;  %v9343_v51 = vpop.eup %9342  ;;  %8239 = vmatmul.mubr.msk.f32.gmra.mxu0 %vm389_vm3, %v11565_v15 }
 0x356   : > { %2481 = vst.msk [vmem:[#allocation3 + $0x141] sm:$0xff] %vm389_vm3, %v9343_v51  ;;  %9348 = vtanh.f32 %v2395_v54  ;;  %v3748_v51 = vld [vmem:[%s14657_s3 + $0x48] sm:$0xff] }
 0x357   : > { %8393 = vrot.lane.b32.xlu0 %v8392_v41, %s9547_s14  ;;  %v9345_v7 = vpop.eup %9344  ;;  %v3749_v41 = vld [vmem:[%s14657_s3 + $0x50] sm:$0xff] }
 0x358   : > { %2480 = vst.msk [vmem:[#allocation3 + $0x139] sm:$0xff] %vm389_vm3, %v9345_v7  ;;  %3889 = vmatpush1.msra.mxu1 %v3749_v41 }
 0x359   : > { %3890 = vmatprep.subr.mxu1 %v14984_v20 }
 0x35a   : > { %3891 = vmatpush1.msra.mxu1 %v3748_v51 }
 0x35b   : > { %3892 = vmatprep.subr.mxu1 %v14984_v20 }
 0x35c   : > { %3893 = vmatpush1.msra.mxu1 %v3747_v11 }
 0x35d   : > { %v8196_v61 = vpop.f32.mrf.mxu0  ;;  %v11590_v49 = vld [vmem:[#allocation3 + $0x141] sm:$0xff]  ;;  %3894 = vmatprep.subr.mxu1 %v14984_v20 }
 0x35e   : > { %v2410_v18 = vadd.f32 %v8196_v61, %v11352_v31  ;;  %v11603_v33 = vld [vmem:[#allocation3 + $0x142] sm:$0xff]  ;;  %3895 = vmatpush1.msra.mxu1 %v3746_v39 }
 0x35f   : > { %v2404_v34 = vpop.f32.mrf.mxu0  ;;  %v11592_v10 = vld [vmem:[#allocation3 + $0x13a] sm:$0xff]  ;;  %3896 = vmatprep.subr.mxu1 %v14984_v20 }
 0x360   : > { %v11594_v27 = vld [vmem:[#allocation3 + $0x139] sm:$0xff]  ;;  %9350 = vtanh.f32 %v2410_v18  ;;  %v2405_v24 = vadd.f32 %v11352_v31, %v2404_v34  ;;  %8241 = vmatprep.mubr.msk.f32.mxu0 %vm389_vm3, %v11592_v10  ;;  %v2552_v18 = vld [vmem:[#allocation3 + $0x2] sm:$0xff]  ;;  %v2553_v34 = vld [vmem:[#allocation3 + $0xa] sm:$0xff] }
 0x361   : > { %v8397_v37 = vpack.i.bf16 %v11590_v49, %v11594_v27  ;;  %v9347_v54 = vpop.eup %9346  ;;  %8242 = vmatmul.mubr.msk.f32.gmra.mxu0 %vm389_vm3, %v11603_v33  ;;  %v3745_v61 = vld [vmem:[%s14657_s3 + $0x30] sm:$0xff] }
 0x362   : > { %2483 = vst.msk [vmem:[#allocation3 + $0x159] sm:$0xff] %vm389_vm3, %v9347_v54  ;;  %9352 = vtanh.f32 %v2405_v24  ;;  %3897 = vmatpush1.msra.mxu1 %v3745_v61 }
 0x363   : > { %8398 = vrot.lane.b32.xlu1 %v8397_v37, %s9547_s14  ;;  %v9349_v7 = vpop.eup %9348  ;;  %3898 = vmatprep.subr.mxu1 %v14984_v20 }
 0x364   : > { %2482 = vst.msk [vmem:[#allocation3 + $0x151] sm:$0xff] %vm389_vm3, %v9349_v7  ;;  %3899 = vmatpush1.msra.mxu1 %v3744_v16  ;;  %v3741_v16 = vld [vmem:[%s14657_s3 + $0x10] sm:$0xff] }
 0x365   : > { %3900 = vmatprep.subr.mxu1 %v14984_v20 }
 0x369   : > { %v8199_v30 = vpop.f32.mrf.mxu0  ;;  %v11640_v41 = vld [vmem:[#allocation3 + $0x159] sm:$0xff] }
 0x36a   : > { %v2420_v14 = vadd.f32 %v8199_v30, %v11352_v31  ;;  %v11646_v7 = vld [vmem:[#allocation3 + $0x15a] sm:$0xff]  ;;  %v3743_v30 = vld [vmem:[%s14657_s3 + $0x20] sm:$0xff] }
 0x36b   : > { %v2414_v24 = vpop.f32.mrf.mxu0  ;;  %v11636_v37 = vld [vmem:[#allocation3 + $0x152] sm:$0xff]  ;;  %3901 = vmatpush1.msra.mxu1 %v3743_v30 }
 0x36c   : > { %v11638_v54 = vld [vmem:[#allocation3 + $0x151] sm:$0xff]  ;;  %9354 = vtanh.f32 %v2420_v14  ;;  %v2415_v51 = vadd.f32 %v11352_v31, %v2414_v24  ;;  %8244 = vmatprep.mubr.msk.f32.mxu0 %vm389_vm3, %v11636_v37  ;;  %v8412_v31 = vpack.i.bf16 %v2553_v34, %v2552_v18  ;;  %3902 = vmatprep.subr.mxu1 %v14984_v20  ;;  %v3742_v14 = vld [vmem:[%s14657_s3 + $0x18] sm:$0xff]  ;;  %v11674_v34 = vpack.i.bf16 %v11379_v57, %v11369_v38 }
 0x36d   : > { %v8402_v11 = vpack.i.bf16 %v11640_v41, %v11638_v54  ;;  %v9351_v39 = vpop.eup %9350  ;;  %8245 = vmatmul.mubr.msk.f32.gmra.mxu0 %vm389_vm3, %v11646_v7  ;;  %3903 = vmatpush1.msra.mxu1 %v3742_v14  ;;  %v3740_v18 = vld [vmem:[%s14657_s3 + $0x8] sm:$0xff]  ;;  %v3739_v24 = vld [vmem:[%s14657_s3] sm:$0xff]  ;;  %v3770_v38 = vld [vmem:[%s14657_s3 + $0xf8] sm:$0xff] }
 0x36e   : > { %2485 = vst.msk [vmem:[#allocation3 + $0x171] sm:$0xff] %vm389_vm3, %v9351_v39  ;;  %9356 = vtanh.f32 %v2415_v51  ;;  %3904 = vmatprep.subr.mxu1 %v14984_v20  ;;  %v2554_v14 = vld [vmem:[#allocation3 + $0x1a] sm:$0xff] }
 0x36f   : > { %8403 = vrot.lane.b32.xlu0 %v8402_v11, %s9547_s14  ;;  %v9353_v61 = vpop.eup %9352  ;;  %3905 = vmatpush1.msra.mxu1 %v3741_v16  ;;  %v3769_v16 = vld [vmem:[%s14657_s3 + $0xf0] sm:$0xff] }
 0x370   : > { %2484 = vst.msk [vmem:[#allocation3 + $0x169] sm:$0xff] %vm389_vm3, %v9353_v61  ;;  %3906 = vmatprep.subr.mxu1 %v14984_v20 }
 0x371   : > { %3907 = vmatpush1.msra.mxu1 %v3740_v18  ;;  %v2555_v18 = vld [vmem:[#allocation3 + $0x22] sm:$0xff] }
 0x372   : > { %3908 = vmatprep.subr.mxu1 %v14984_v20 }
 0x373   : > { %8413 = vrot.lane.b32.xlu0 %v8412_v31, %s9548_s17  ;;  %3909 = vmatpush1.msra.mxu1 %v3739_v24  ;;  %v11700_v31 = vpack.i.bf16 %v11417_v23, %v11407_v17  ;;  %v3768_v17 = vld [vmem:[%s14657_s3 + $0xe8] sm:$0xff]  ;;  %v11716_v24 = vpack.i.bf16 %v2555_v18, %v2554_v14  ;;  %v11762_v14 = vpack.i.bf16 %v11527_v6, %v11518_v19  ;;  %v3763_v19 = vld [vmem:[%s14657_s3 + $0xc0] sm:$0xff] }
 0x374   : > { %3910 = vmatprep.subr.mxu1 %v14984_v20  ;;  %v11800_v6 = vpack.i.bf16 %v11646_v7, %v11636_v37  ;;  %v3760_v37 = vld [vmem:[%s14657_s3 + $0xa8] sm:$0xff]  ;;  %v2681_v7 = vld [vmem:[#allocation3 + $0x30] sm:$0xff] }
 0x375   : > { %v11682_v51 = vld [vmem:[#allocation3 + $0x171] sm:$0xff]  ;;  %3911 = vmatpush2.msra.mxu1 %v3770_v38  ;;  %v11720_v38 = vpack.i.bf16 %v11455_v62, %v11445_v56  ;;  %v11737_v56 = vpack.i.bf16 %v11491_v36, %v11482_v5  ;;  %v3766_v62 = vld [vmem:[%s14657_s3 + $0xd8] sm:$0xff]  ;;  %v11758_v36 = vpack.i.bf16 %v11436_v2, %v11426_v0  ;;  %v11777_v0 = vpack.i.bf16 %v11474_v58, %v11464_v13 }
 0x376   : > { %v11694_v57 = vld [vmem:[#allocation3 + $0x172] sm:$0xff]  ;;  %3912 = vmatprep.subr.mxu1 %v14984_v20  ;;  %v11781_v2 = vpack.i.bf16 %v11565_v15, %v11556_v26  ;;  %v3762_v13 = vld [vmem:[%s14657_s3 + $0xb8] sm:$0xff]  ;;  %v11796_v58 = vpack.i.bf16 %v11510_v40, %v11501_v43  ;;  %v3761_v26 = vld [vmem:[%s14657_s3 + $0xb0] sm:$0xff]  ;;  %v11813_v43 = vpack.i.bf16 %v11546_v1, %v11537_v59 }
 0x377   : > { %8423 = vrot.lane.b32.xlu0 %v11674_v34, %s9548_s17  ;;  %v11684_v11 = vld [vmem:[#allocation3 + $0x16a] sm:$0xff]  ;;  %3913 = vmatpush2.msra.mxu1 %v3769_v16  ;;  %v3764_v16 = vld [vmem:[%s14657_s3 + $0xc8] sm:$0xff] }
 0x378   : > { %v11686_v39 = vld [vmem:[#allocation3 + $0x169] sm:$0xff]  ;;  %8247 = vmatprep.mubr.msk.f32.mxu0 %vm389_vm3, %v11684_v11  ;;  %3914 = vmatprep.subr.mxu1 %v14984_v20  ;;  %v2584_v15 = vld [vmem:[#allocation3 + $0x18] sm:$0xff]  ;;  %v11840_v18 = vpack.i.bf16 %v11694_v57, %v11684_v11  ;;  %v8522_v11 = vpack.i.bf16 %v2681_v7, %v11390_v63 }
 0x379   : > { %v8407_v30 = vpack.i.bf16 %v11682_v51, %v11686_v39  ;;  %v9355_v61 = vpop.eup %9354  ;;  %8248 = vmatmul.mubr.msk.f32.gmra.mxu0 %vm389_vm3, %v11694_v57  ;;  %3915 = vmatpush2.msra.mxu1 %v3768_v17  ;;  %v8492_v40 = vpack.i.bf16 %v11371_v3, %v2584_v15  ;;  %v2682_v17 = vld [vmem:[#allocation3 + $0x38] sm:$0xff]  ;;  %v3759_v59 = vld [vmem:[%s14657_s3 + $0xa0] sm:$0xff]  ;;  %v11828_v3 = vpack.i.bf16 %v11603_v33, %v11592_v10  ;;  %v3757_v10 = vld [vmem:[%s14657_s3 + $0x90] sm:$0xff] }
 0x37a   : > { %2487 = vst.msk [vmem:[#allocation3 + $0x189] sm:$0xff] %vm389_vm3, %v9355_v61  ;;  %3916 = vmatprep.subr.mxu1 %v14984_v20  ;;  %v11733_v61 = vpack.i.bf16 %v11398_v46, %v11388_v50  ;;  %v3765_v50 = vld [vmem:[%s14657_s3 + $0xd0] sm:$0xff]  ;;  %v8502_v1 = vpack.i.bf16 %v2682_v17, %v2681_v7  ;;  %v3756_v33 = vld [vmem:[%s14657_s3 + $0x88] sm:$0xff]  ;;  %v3755_v57 = vld [vmem:[%s14657_s3 + $0x80] sm:$0xff] }
 0x37b   : > { %8408 = vrot.lane.b32.xlu1 %v8407_v30, %s9547_s14  ;;  %8433 = vrot.lane.b32.xlu0 %v11700_v31, %s9548_s17  ;;  %v9357_v23 = vpop.eup %9356  ;;  %v3767_v30 = vld [vmem:[%s14657_s3 + $0xe0] sm:$0xff]  ;;  %v2683_v63 = vld [vmem:[#allocation3 + $0x48] sm:$0xff]  ;;  %v2688_v15 = vld [vmem:[#allocation3 + $0x80] sm:$0xff] }
 0x37c   : > { %2486 = vst.msk [vmem:[#allocation3 + $0x181] sm:$0xff] %vm389_vm3, %v9357_v23  ;;  %3917 = vmatpush2.msra.mxu1 %v3767_v30  ;;  %v3758_v23 = vld [vmem:[%s14657_s3 + $0x98] sm:$0xff] }
 0x37d   : > { %3918 = vmatprep.subr.mxu1 %v14984_v20 }
 0x37e   : > { %3919 = vmatpush2.msra.mxu1 %v3766_v62  ;;  %v2684_v62 = vld [vmem:[#allocation3 + $0x50] sm:$0xff] }
 0x37f   : > { %8418 = vrot.lane.b32.xlu1 %v11716_v24, %s9548_s17  ;;  %8443 = vrot.lane.b32.xlu0 %v11720_v38, %s9548_s17 }
 0x380   : > { %3920 = vmatprep.subr.mxu1 %v14984_v20 }
 0x381   : > { %v11754_v5 = vld [vmem:[#allocation3 + $0x18a] sm:$0xff]  ;;  %3921 = vmatpush2.msra.mxu1 %v3765_v50  ;;  %v8517_v50 = vpack.i.bf16 %v2684_v62, %v2683_v63 }
 0x382   : > { %3922 = vmatprep.subr.mxu1 %v14984_v20 }
 0x383   : > { %8428 = vrot.lane.b32.xlu1 %v11733_v61, %s9548_s17  ;;  %8453 = vrot.lane.b32.xlu0 %v11737_v56, %s9548_s17  ;;  %v11750_v46 = vld [vmem:[#allocation3 + $0x182] sm:$0xff] }
 0x384   : > { %8250 = vmatprep.mubr.msk.f32.mxu0 %vm389_vm3, %v11750_v46  ;;  %3923 = vmatpush2.msra.mxu1 %v3764_v16  ;;  %v8527_v16 = vpack.i.bf16 %v2682_v17, %v11392_v9  ;;  %v2692_v17 = vld [vmem:[#allocation3 + $0xb0] sm:$0xff] }
 0x385   : > { %8251 = vmatmul.mubr.msk.f32.gmra.mxu0 %vm389_vm3, %v11754_v5  ;;  %3924 = vmatprep.subr.mxu1 %v14984_v20 }
 0x386   : > { %3925 = vmatpush2.msra.mxu1 %v3763_v19  ;;  %v2685_v19 = vld [vmem:[#allocation3 + $0x60] sm:$0xff] }
 0x387   : > { %8438 = vrot.lane.b32.xlu1 %v11758_v36, %s9548_s17  ;;  %8463 = vrot.lane.b32.xlu0 %v11762_v14, %s9548_s17 }
 0x388   : > { %3926 = vmatprep.subr.mxu1 %v14984_v20 }
 0x389   : > { %3927 = vmatpush2.msra.mxu1 %v3762_v13  ;;  %v2686_v13 = vld [vmem:[#allocation3 + $0x68] sm:$0xff] }
 0x38a   : > { %3928 = vmatprep.subr.mxu1 %v14984_v20 }
 0x38b   : > { %8448 = vrot.lane.b32.xlu1 %v11777_v0, %s9548_s17  ;;  %8473 = vrot.lane.b32.xlu0 %v11781_v2, %s9548_s17 }
 0x38c   : > { %3929 = vmatpush2.msra.mxu1 %v3761_v26  ;;  %v8562_v26 = vpack.i.bf16 %v2685_v19, %v11428_v25  ;;  %v8567_v25 = vpack.i.bf16 %v2686_v13, %v11430_v47 }
 0x38d   : > { %3930 = vmatprep.subr.mxu1 %v14984_v20 }
 0x38e   : > { %3931 = vmatpush2.msra.mxu1 %v3760_v37  ;;  %v2690_v37 = vld [vmem:[#allocation3 + $0x98] sm:$0xff] }
 0x38f   : > { %8458 = vrot.lane.b32.xlu1 %v11796_v58, %s9548_s17  ;;  %8483 = vrot.lane.b32.xlu0 %v11800_v6, %s9548_s17 }
 0x390   : > { %3932 = vmatprep.subr.mxu1 %v14984_v20 }
 0x391   : > { %3933 = vmatpush2.msra.mxu1 %v3759_v59  ;;  %v11894_v59 = vpop.permute.xlu0 %8333 }
 0x392   : > { %3934 = vmatprep.subr.mxu1 %v14984_v20 }
 0x393   : > { %8468 = vrot.lane.b32.xlu1 %v11813_v43, %s9548_s17  ;;  %8493 = vrot.lane.b32.xlu0 %v8492_v40, %s9549_s27 }
 0x394   : > { %3935 = vmatpush2.msra.mxu1 %v3758_v23  ;;  %v2694_v23 = vld [vmem:[#allocation3 + $0xc8] sm:$0xff] }
 0x395   : > { %3936 = vmatprep.subr.mxu1 %v14984_v20 }
 0x396   : > { %3937 = vmatpush2.msra.mxu1 %v3757_v10 }
 0x397   : > { %8478 = vrot.lane.b32.xlu1 %v11828_v3, %s9548_s17  ;;  %8503 = vrot.lane.b32.xlu0 %v8502_v1, %s9548_s17  ;;  %v2693_v1 = vld [vmem:[#allocation3 + $0xc0] sm:$0xff] }
 0x398   : > { %3938 = vmatprep.subr.mxu1 %v14984_v20 }
 0x399   : > { %3939 = vmatpush2.msra.mxu1 %v3756_v33  ;;  %v11913_v33 = vpop.permute.xlu1 %8338 }
 0x39a   : > { %3940 = vmatprep.subr.mxu1 %v14984_v20 }
 0x39b   : > { %8488 = vrot.lane.b32.xlu1 %v11840_v18, %s9548_s17  ;;  %8513 = vrot.lane.b32.xlu0 %v11674_v34, %s9547_s14  ;;  %v11861_v34 = vld [vmem:[#allocation3 + $0x20] sm:$0xff] }
 0x39c   : > { %v8507_v30 = vpack.i.bf16 %v11861_v34, %v11373_v55  ;;  %3941 = vmatpush2.msra.mxu1 %v3755_v57  ;;  %v8537_v55 = vpack.i.bf16 %v2686_v13, %v2685_v19  ;;  %v2695_v57 = vld [vmem:[#allocation3 + $0xd8] sm:$0xff] }
 0x39d   : > { %v2698_v19 = vld [vmem:[#allocation3 + $0xf8] sm:$0xff] }
 0x39f   : > { %8498 = vrot.lane.b32.xlu1 %v11716_v24, %s9547_s14  ;;  %8523 = vrot.lane.b32.xlu0 %v8522_v11, %s9549_s27  ;;  %v8542_v24 = vpack.i.bf16 %v2683_v63, %v11409_v45  ;;  %v8547_v45 = vpack.i.bf16 %v2684_v62, %v11411_v60  ;;  %v8662_v62 = vpack.i.bf16 %v2695_v57, %v11520_v32 }
 0x3a3   : > { %8508 = vrot.lane.b32.xlu1 %v8507_v30, %s9549_s27  ;;  %8533 = vrot.lane.b32.xlu0 %v11733_v61, %s9547_s14  ;;  %v2687_v61 = vld [vmem:[#allocation3 + $0x78] sm:$0xff]  ;;  %v2696_v30 = vld [vmem:[#allocation3 + $0xe0] sm:$0xff] }
 0x3a4   : > { %v8557_v9 = vpack.i.bf16 %v2688_v15, %v2687_v61  ;;  %v8582_v40 = vpack.i.bf16 %v2687_v61, %v11447_v12  ;;  %v8587_v12 = vpack.i.bf16 %v2688_v15, %v11449_v22  ;;  %v8607_v22 = vpack.i.bf16 %v2690_v37, %v11468_v28  ;;  %v2699_v61 = vld [vmem:[#allocation3 + $0x108] sm:$0xff]  ;;  %v2700_v15 = vld [vmem:[#allocation3 + $0x110] sm:$0xff] }
 0x3a5   : > { %v8627_v28 = vpack.i.bf16 %v2692_v17, %v11486_v35  ;;  %v8637_v63 = vpack.i.bf16 %v2696_v30, %v2695_v57 }
 0x3a7   : > { %8518 = vrot.lane.b32.xlu1 %v8517_v50, %s9548_s17  ;;  %8543 = vrot.lane.b32.xlu0 %v8542_v24, %s9549_s27  ;;  %v8647_v24 = vpack.i.bf16 %v2694_v23, %v11505_v42 }
 0x3ab   : > { %8528 = vrot.lane.b32.xlu1 %v8527_v16, %s9549_s27  ;;  %8553 = vrot.lane.b32.xlu0 %v11700_v31, %s9547_s14  ;;  %v2689_v31 = vld [vmem:[#allocation3 + $0x90] sm:$0xff] }
 0x3ac   : > { %v8577_v60 = vpack.i.bf16 %v2690_v37, %v2689_v31  ;;  %v8602_v7 = vpack.i.bf16 %v2689_v31, %v11466_v52  ;;  %v11902_v52 = vpop.permute.xlu0 %8343  ;;  %v2697_v16 = vld [vmem:[#allocation3 + $0xf0] sm:$0xff]  ;;  %v8687_v31 = vpack.i.bf16 %v2698_v19, %v11541_v8  ;;  %v2701_v37 = vld [vmem:[#allocation3 + $0x120] sm:$0xff] }
 0x3ad   : > { %v8657_v13 = vpack.i.bf16 %v2698_v19, %v2697_v16 }
 0x3af   : > { %8538 = vrot.lane.b32.xlu1 %v8537_v55, %s9548_s17  ;;  %8563 = vrot.lane.b32.xlu0 %v8562_v26, %s9549_s27  ;;  %v8682_v55 = vpack.i.bf16 %v2697_v16, %v11539_v44  ;;  %v2708_v16 = vld [vmem:[#allocation3 + $0x170] sm:$0xff] }
 0x3b0   : > { %v11908_v10 = vpop.permute.xlu0 %8353 }
 0x3b3   : > { %8548 = vrot.lane.b32.xlu1 %v8547_v45, %s9549_s27  ;;  %8573 = vrot.lane.b32.xlu0 %v11758_v36, %s9547_s14  ;;  %v2691_v36 = vld [vmem:[#allocation3 + $0xa8] sm:$0xff]  ;;  %v8667_v45 = vpack.i.bf16 %v2696_v30, %v11522_v4 }
 0x3b4   : > { %v8597_v47 = vpack.i.bf16 %v2692_v17, %v2691_v36  ;;  %v11915_v11 = vpop.permute.xlu0 %8363  ;;  %v8707_v17 = vpack.i.bf16 %v2700_v15, %v11560_v21 }
 0x3b7   : > { %8558 = vrot.lane.b32.xlu1 %v8557_v9, %s9548_s17  ;;  %8583 = vrot.lane.b32.xlu0 %v8582_v40, %s9549_s27  ;;  %v8677_v9 = vpack.i.bf16 %v2700_v15, %v2699_v61  ;;  %v8702_v40 = vpack.i.bf16 %v2699_v61, %v11558_v53  ;;  %v8792_v15 = vpack.i.bf16 %v11754_v5, %v11750_v46  ;;  %v2711_v46 = vld [vmem:[#allocation3 + $0x198] sm:$0xff]  ;;  %v2712_v5 = vld [vmem:[#allocation3 + $0x1a0] sm:$0xff] }
 0x3bb   : > { %8568 = vrot.lane.b32.xlu1 %v8567_v25, %s9549_s27  ;;  %8593 = vrot.lane.b32.xlu0 %v11720_v38, %s9547_s14  ;;  %v8622_v38 = vpack.i.bf16 %v2691_v36, %v11484_v29  ;;  %v8642_v29 = vpack.i.bf16 %v2693_v1, %v11503_v48  ;;  %v11923_v48 = vpop.permute.xlu0 %8373 }
 0x3bf   : > { %8578 = vrot.lane.b32.xlu1 %v8577_v60, %s9548_s17  ;;  %8603 = vrot.lane.b32.xlu0 %v8602_v7, %s9549_s27  ;;  %v11930_v35 = vpop.permute.xlu0 %8383  ;;  %v2702_v60 = vld [vmem:[#allocation3 + $0x128] sm:$0xff] }
 0x3c0   : > { %v8697_v7 = vpack.i.bf16 %v2702_v60, %v2701_v37 }
 0x3c3   : > { %8588 = vrot.lane.b32.xlu1 %v8587_v12, %s9549_s27  ;;  %8613 = vrot.lane.b32.xlu0 %v11777_v0, %s9547_s14  ;;  %v8617_v0 = vpack.i.bf16 %v2694_v23, %v2693_v1  ;;  %v8722_v12 = vpack.i.bf16 %v2701_v37, %v11594_v27 }
 0x3c7   : > { %8598 = vrot.lane.b32.xlu1 %v8597_v47, %s9548_s17  ;;  %8623 = vrot.lane.b32.xlu0 %v8622_v38, %s9549_s27  ;;  %v2703_v47 = vld [vmem:[#allocation3 + $0x138] sm:$0xff]  ;;  %v2704_v38 = vld [vmem:[#allocation3 + $0x140] sm:$0xff] }
 0x3c8   : > { %v8742_v1 = vpack.i.bf16 %v2703_v47, %v11638_v54 }
 0x3c9   : > { %v11938_v32 = vpop.permute.xlu0 %8393 }
 0x3cb   : > { %8608 = vrot.lane.b32.xlu1 %v8607_v22, %s9549_s27  ;;  %8633 = vrot.lane.b32.xlu0 %v11737_v56, %s9547_s14  ;;  %v11921_v56 = vpop.permute.xlu1 %8348  ;;  %v8717_v22 = vpack.i.bf16 %v2704_v38, %v2703_v47 }
 0x3cf   : > { %8618 = vrot.lane.b32.xlu1 %v8617_v0, %s9548_s17  ;;  %8643 = vrot.lane.b32.xlu0 %v8642_v29, %s9549_s27  ;;  %v11928_v50 = vpop.permute.xlu1 %8358  ;;  %v8727_v0 = vpack.i.bf16 %v2702_v60, %v11590_v49  ;;  %v2705_v29 = vld [vmem:[#allocation3 + $0x150] sm:$0xff] }
 0x3d0   : > { %v8762_v30 = vpack.i.bf16 %v2705_v29, %v11686_v39 }
 0x3d3   : > { %8628 = vrot.lane.b32.xlu1 %v8627_v28, %s9549_s27  ;;  %8653 = vrot.lane.b32.xlu0 %v11796_v58, %s9547_s14  ;;  %v11936_v58 = vpop.permute.xlu1 %8368  ;;  %v2706_v28 = vld [vmem:[#allocation3 + $0x158] sm:$0xff] }
 0x3d4   : > { %v8737_v57 = vpack.i.bf16 %v2706_v28, %v2705_v29  ;;  %v8767_v61 = vpack.i.bf16 %v2706_v28, %v11682_v51  ;;  %v2775_v51 = vld [vmem:[#allocation3 + $0x19a] sm:$0xff]  ;;  %v8336_v28 = vunpack.i.h.bf16 %v11894_v59 }
 0x3d5   : > { %8253 = vmatprep.mubr.msk.f32.mxu0 %vm389_vm3, %v2775_v51 }
 0x3d7   : > { %8638 = vrot.lane.b32.xlu1 %v8637_v63, %s9548_s17  ;;  %8663 = vrot.lane.b32.xlu0 %v8662_v62, %s9549_s27  ;;  %v11943_v26 = vpop.permute.xlu1 %8378  ;;  %v8747_v62 = vpack.i.bf16 %v2704_v38, %v11640_v41 }
 0x3db   : > { %8648 = vrot.lane.b32.xlu1 %v8647_v24, %s9549_s27  ;;  %8673 = vrot.lane.b32.xlu0 %v11762_v14, %s9547_s14  ;;  %v11951_v14 = vpop.permute.xlu1 %8388  ;;  %v2707_v24 = vld [vmem:[#allocation3 + $0x168] sm:$0xff] }
 0x3df   : > { %8658 = vrot.lane.b32.xlu1 %v8657_v13, %s9548_s17  ;;  %8683 = vrot.lane.b32.xlu0 %v8682_v55, %s9549_s27  ;;  %v11958_v25 = vpop.permute.xlu1 %8398  ;;  %v8757_v13 = vpack.i.bf16 %v2708_v16, %v2707_v24 }
 0x3e1   : > { %v11945_v42 = vpop.permute.xlu0 %8403 }
 0x3e3   : > { %8668 = vrot.lane.b32.xlu1 %v8667_v45, %s9549_s27  ;;  %8693 = vrot.lane.b32.xlu0 %v11813_v43, %s9547_s14 }
 0x3e5   : > { %v11953_v44 = vpop.permute.xlu0 %8413 }
 0x3e7   : > { %8678 = vrot.lane.b32.xlu1 %v8677_v9, %s9548_s17  ;;  %8703 = vrot.lane.b32.xlu0 %v8702_v40, %s9549_s27  ;;  %v2709_v9 = vld [vmem:[#allocation3 + $0x180] sm:$0xff] }
 0x3e8   : > { %v2743_v40 = vld [vmem:[#allocation3 + $0x199] sm:$0xff] }
 0x3e9   : > { %v11960_v4 = vpop.permute.xlu0 %8423 }
 0x3eb   : > { %8688 = vrot.lane.b32.xlu1 %v8687_v31, %s9549_s27  ;;  %8713 = vrot.lane.b32.xlu0 %v11781_v2, %s9547_s14 }
 0x3ed   : > { %v11966_v43 = vpop.permute.xlu1 %8408  ;;  %v11968_v53 = vpop.permute.xlu0 %8433 }
 0x3ef   : > { %8698 = vrot.lane.b32.xlu1 %v8697_v7, %s9548_s17  ;;  %8723 = vrot.lane.b32.xlu0 %v8722_v12, %s9549_s27  ;;  %v8802_v7 = vpack.i.bf16 %v2709_v9, %v2743_v40  ;;  %v2742_v12 = vld [vmem:[#allocation3 + $0x189] sm:$0xff] }
 0x3f0   : > { %v8787_v38 = vpack.i.bf16 %v2708_v16, %v2742_v12 }
 0x3f1   : > { %v11973_v36 = vpop.permute.xlu1 %8418  ;;  %v11975_v8 = vpop.permute.xlu0 %8443 }
 0x3f3   : > { %8708 = vrot.lane.b32.xlu1 %v8707_v17, %s9549_s27  ;;  %8733 = vrot.lane.b32.xlu0 %v11828_v3, %s9547_s14 }
 0x3f5   : > { %v11981_v2 = vpop.permute.xlu1 %8428  ;;  %v11983_v27 = vpop.permute.xlu0 %8453 }
 0x3f7   : > { %8718 = vrot.lane.b32.xlu1 %v8717_v22, %s9548_s17  ;;  %8743 = vrot.lane.b32.xlu0 %v8742_v1, %s9549_s27  ;;  %v2776_v22 = vld [vmem:[#allocation3 + $0x1a2] sm:$0xff]  ;;  %v8335_v1 = vunpack.i.l.bf16 %v11894_v59 }
 0x3f8   : > { %8254 = vmatmul.mubr.msk.f32.gmra.mxu0 %vm389_vm3, %v2776_v22 }
 0x3f9   : > { %v11988_v23 = vpop.permute.xlu1 %8438  ;;  %v11990_v21 = vpop.permute.xlu0 %8463 }
 0x3fb   : > { %8728 = vrot.lane.b32.xlu1 %v8727_v0, %s9549_s27  ;;  %8753 = vrot.lane.b32.xlu0 %v11800_v6, %s9547_s14  ;;  %v2741_v6 = vld [vmem:[#allocation3 + $0x181] sm:$0xff] }
 0x3fc   : > { %v8782_v55 = vpack.i.bf16 %v2707_v24, %v2741_v6  ;;  %v2616_v24 = vld [vmem:[#allocation3 + $0x19] sm:$0xff] }
 0x3fd   : > { %v11996_v3 = vpop.permute.xlu1 %8448  ;;  %v11998_v54 = vpop.permute.xlu0 %8473  ;;  %v2488_v6 = vld [vmem:[#allocation3] sm:$0xff] }
 0x3fe   : > { %v3545_v51 = vsel %vm389_vm3, %v2488_v6, %v8335_v1 }
 0x3ff   : > { %8738 = vrot.lane.b32.xlu1 %v8737_v57, %s9548_s17  ;;  %8763 = vrot.lane.b32.xlu0 %v8762_v30, %s9549_s27  ;;  %v8415_v57 = vunpack.i.l.bf16 %v11953_v44 }
 0x401   : > { %v12003_v63 = vpop.permute.xlu1 %8458  ;;  %v12005_v49 = vpop.permute.xlu0 %8483 }
 0x403   : > { %8748 = vrot.lane.b32.xlu1 %v8747_v62, %s9549_s27  ;;  %8773 = vrot.lane.b32.xlu0 %v11840_v18, %s9547_s14  ;;  %v12022_v18 = vld [vmem:[#allocation3 + $0x188] sm:$0xff]  ;;  %v8797_v62 = vpack.i.bf16 %v2712_v5, %v2711_v46 }
 0x404   : > { %v8777_v60 = vpack.i.bf16 %v12022_v18, %v2709_v9  ;;  %v2744_v46 = vld [vmem:[#allocation3 + $0x1a1] sm:$0xff] }
 0x405   : > { %v12011_v19 = vpop.permute.xlu1 %8468  ;;  %v12013_v39 = vpop.permute.xlu0 %8493  ;;  %v2489_v5 = vld [vmem:[#allocation3 + $0x8] sm:$0xff] }
 0x406   : > { %v8495_v16 = vunpack.i.l.bf16 %v12013_v39 }
 0x407   : > { %8758 = vrot.lane.b32.xlu1 %v8757_v13, %s9548_s17  ;;  %8783 = vrot.lane.b32.xlu0 %v8782_v55, %s9549_s27  ;;  %v2617_v13 = vld [vmem:[#allocation3 + $0x21] sm:$0xff] }
 0x409   : > { %v12017_v45 = vpop.permute.xlu1 %8478  ;;  %v8504_v41 = vpop.permute.xlu0 %8503 }
 0x40a   : > { %v8505_v30 = vunpack.i.l.bf16 %v8504_v41  ;;  %v8506_v9 = vunpack.i.h.bf16 %v8504_v41  ;;  %v3578_v41 = vsel %vm3577_vm12, %v3545_v51, %v8415_v57  ;;  %v2490_v51 = vld [vmem:[#allocation3 + $0x18] sm:$0xff] }
 0x40b   : > { %8768 = vrot.lane.b32.xlu1 %v8767_v61, %s9549_s27  ;;  %8793 = vrot.lane.b32.xlu0 %v8792_v15, %s9547_s14  ;;  %v8496_v15 = vunpack.i.h.bf16 %v12013_v39 }
 0x40d   : > { %v12026_v31 = vpop.permute.xlu1 %8488  ;;  %v12028_v37 = vpop.permute.xlu0 %8513 }
 0x40e   : > { %v8516_v57 = vunpack.i.h.bf16 %v12028_v37 }
 0x40f   : > { %8778 = vrot.lane.b32.xlu1 %v8777_v60, %s9548_s17  ;;  %8803 = vrot.lane.b32.xlu0 %v8802_v7, %s9549_s27  ;;  %v8416_v7 = vunpack.i.h.bf16 %v11953_v44 }
 0x411   : > { %v8499_v17 = vpop.permute.xlu1 %8498  ;;  %v12034_v47 = vpop.permute.xlu0 %8523 }
 0x412   : > { %v8501_v0 = vunpack.i.h.bf16 %v8499_v17  ;;  %v8500_v29 = vunpack.i.l.bf16 %v8499_v17  ;;  %v8515_v17 = vunpack.i.l.bf16 %v12028_v37 }
 0x413   : > { %8788 = vrot.lane.b32.xlu1 %v8787_v38, %s9549_s27 }
 0x414   : > { %v3643_v55 = vsel %vm389_vm3, %v2616_v24, %v8500_v29  ;;  %v3644_v61 = vsel %vm389_vm3, %v2617_v13, %v8501_v0  ;;  %v3611_v0 = vsel %vm3610_vm13, %v3578_v41, %v8495_v16  ;;  %v8340_v24 = vunpack.i.l.bf16 %v11913_v33 }
 0x415   : > { %v8509_v59 = vpop.permute.xlu1 %8508  ;;  %v12045_v40 = vpop.permute.xlu0 %8533  ;;  %v3675_v60 = vsel %vm3577_vm12, %v3643_v55, %v8505_v30  ;;  %v3676_v38 = vsel %vm3577_vm12, %v3644_v61, %v8506_v9  ;;  %v8807_v30 = vpack.i.bf16 %v12022_v18, %v2744_v46  ;;  %v2618_v55 = vld [vmem:[#allocation3 + $0x31] sm:$0xff]  ;;  %v8420_v16 = vunpack.i.l.bf16 %v11973_v36  ;;  %v2619_v46 = vld [vmem:[#allocation3 + $0x39] sm:$0xff] }
 0x416   : > { %v8510_v12 = vunpack.i.l.bf16 %v8509_v59  ;;  %v3707_v39 = vsel %vm3610_vm13, %v3675_v60, %v8496_v15  ;;  %v8511_v22 = vunpack.i.h.bf16 %v8509_v59  ;;  %v8525_v61 = vunpack.i.l.bf16 %v12034_v47 }
 0x417   : > { %8798 = vrot.lane.b32.xlu1 %v8797_v62, %s9548_s17  ;;  %3942 = vmatprep.mubr.f32.mxu1 %v3707_v39  ;;  %v3546_v62 = vsel %vm389_vm3, %v2489_v5, %v8336_v28  ;;  %v3645_v18 = vsel %vm389_vm3, %v2618_v55, %v8515_v17  ;;  %v8526_v28 = vunpack.i.h.bf16 %v12034_v47  ;;  %v8341_v59 = vunpack.i.h.bf16 %v11913_v33 }
 0x418   : > { %v3708_v44 = vsel %vm3610_vm13, %v3676_v38, %v8510_v12  ;;  %3943 = vmatmul.mubr.f32.vlgmr.msra.gmra.mxu1 %v3611_v0  ;;  %v3579_v13 = vsel %vm3577_vm12, %v3546_v62, %v8416_v7  ;;  %v3547_v17 = vsel %vm389_vm3, %v2490_v51, %v8340_v24  ;;  %v3646_v47 = vsel %vm389_vm3, %v2619_v46, %v8516_v57 }
 0x419   : > { %v8519_v1 = vpop.permute.xlu1 %8518  ;;  %v12057_v29 = vpop.permute.xlu0 %8543  ;;  %3947 = vmatprep.mubr.f32.mxu1 %v3708_v44  ;;  %v3612_v9 = vsel %vm3610_vm13, %v3579_v13, %v8511_v22  ;;  %v8421_v39 = vunpack.i.h.bf16 %v11973_v36  ;;  %v8535_v41 = vunpack.i.l.bf16 %v12045_v40  ;;  %v3580_v33 = vsel %vm3577_vm12, %v3547_v17, %v8420_v16  ;;  %v2620_v13 = vld [vmem:[#allocation3 + $0x49] sm:$0xff] }
 0x41a   : > { %v8520_v6 = vunpack.i.l.bf16 %v8519_v1  ;;  %v8521_v15 = vunpack.i.h.bf16 %v8519_v1  ;;  %v3613_v0 = vsel %vm3610_vm13, %v3580_v33, %v8526_v28  ;;  %v3548_v62 = vsel %vm389_vm3, %v11861_v34, %v8341_v59 }
 0x41b   : > { %8808 = vrot.lane.b32.xlu1 %v8807_v30, %s9549_s27  ;;  %v8345_v36 = vunpack.i.l.bf16 %v11902_v52  ;;  %v8425_v24 = vunpack.i.l.bf16 %v11960_v4  ;;  %v8536_v57 = vunpack.i.h.bf16 %v12045_v40  ;;  %v8545_v55 = vunpack.i.l.bf16 %v12057_v29 }
 0x41c   : > { %v3677_v37 = vsel %vm3577_vm12, %v3645_v18, %v8520_v6  ;;  %3948 = vmatmul.mubr.f32.gmra.mxu1 %v3612_v9  ;;  %v3678_v38 = vsel %vm3577_vm12, %v3646_v47, %v8521_v15  ;;  %v3647_v15 = vsel %vm389_vm3, %v2620_v13, %v8535_v41  ;;  %v8546_v18 = vunpack.i.h.bf16 %v12057_v29 }
 0x41d   : > { %v8529_v60 = vpop.permute.xlu1 %8528  ;;  %v12072_v7 = vpop.permute.xlu0 %8553  ;;  %v3709_v12 = vsel %vm3610_vm13, %v3677_v37, %v8525_v61  ;;  %v3581_v61 = vsel %vm3577_vm12, %v3548_v62, %v8421_v39  ;;  %v8346_v9 = vunpack.i.h.bf16 %v11902_v52  ;;  %v8426_v51 = vunpack.i.h.bf16 %v11960_v4 }
 0x41e   : > { %v8530_v5 = vunpack.i.l.bf16 %v8529_v60  ;;  %3952 = vmatprep.mubr.f32.mxu1 %v3709_v12  ;;  %v8531_v22 = vunpack.i.h.bf16 %v8529_v60  ;;  %v2492_v60 = vld [vmem:[#allocation3 + $0x30] sm:$0xff]  ;;  %v8555_v17 = vunpack.i.l.bf16 %v12072_v7 }
 0x41f   : > { %v2621_v12 = vld [vmem:[#allocation3 + $0x51] sm:$0xff]  ;;  %v3549_v29 = vsel %vm389_vm3, %v2492_v60, %v8345_v36 }
 0x420   : > { %v3710_v44 = vsel %vm3610_vm13, %v3678_v38, %v8530_v5  ;;  %3953 = vmatmul.mubr.f32.gmra.mxu1 %v3613_v0  ;;  %v3614_v34 = vsel %vm3610_vm13, %v3581_v61, %v8531_v22  ;;  %v3648_v5 = vsel %vm389_vm3, %v2621_v12, %v8536_v57  ;;  %v3582_v52 = vsel %vm3577_vm12, %v3549_v29, %v8425_v24  ;;  %v2493_v38 = vld [vmem:[#allocation3 + $0x38] sm:$0xff]  ;;  %v2622_v24 = vld [vmem:[#allocation3 + $0x61] sm:$0xff] }
 0x421   : > { %v8539_v1 = vpop.permute.xlu1 %8538  ;;  %v12083_v30 = vpop.permute.xlu0 %8563  ;;  %3957 = vmatprep.mubr.f32.mxu1 %v3710_v44  ;;  %v3615_v41 = vsel %vm3610_vm13, %v3582_v52, %v8546_v18  ;;  %v3550_v0 = vsel %vm389_vm3, %v2493_v38, %v8346_v9  ;;  %v8350_v44 = vunpack.i.l.bf16 %v11921_v56  ;;  %v8430_v57 = vunpack.i.l.bf16 %v11981_v2  ;;  %v2494_v9 = vld [vmem:[#allocation3 + $0x48] sm:$0xff]  ;;  %v2495_v52 = vld [vmem:[#allocation3 + $0x50] sm:$0xff] }
 0x422   : > { %v8540_v6 = vunpack.i.l.bf16 %v8539_v1  ;;  %v8541_v16 = vunpack.i.h.bf16 %v8539_v1  ;;  %v8556_v1 = vunpack.i.h.bf16 %v12072_v7  ;;  %v3583_v36 = vsel %vm3577_vm12, %v3550_v0, %v8426_v51  ;;  %v2624_v0 = vld [vmem:[#allocation3 + $0x79] sm:$0xff] }
 0x423   : > { %v8351_v7 = vunpack.i.h.bf16 %v11921_v56  ;;  %v3551_v60 = vsel %vm389_vm3, %v2494_v9, %v8350_v44  ;;  %v8431_v12 = vunpack.i.h.bf16 %v11981_v2  ;;  %v8355_v2 = vunpack.i.l.bf16 %v11908_v10 }
 0x424   : > { %v3679_v28 = vsel %vm3577_vm12, %v3647_v15, %v8540_v6  ;;  %3958 = vmatmul.mubr.f32.gmra.mxu1 %v3614_v34  ;;  %v3680_v47 = vsel %vm3577_vm12, %v3648_v5, %v8541_v16  ;;  %v8565_v6 = vunpack.i.l.bf16 %v12083_v30  ;;  %v8566_v16 = vunpack.i.h.bf16 %v12083_v30 }
 0x425   : > { %v8549_v40 = vpop.permute.xlu1 %8548  ;;  %v12097_v37 = vpop.permute.xlu0 %8573  ;;  %v3711_v59 = vsel %vm3610_vm13, %v3679_v28, %v8545_v55  ;;  %v3649_v55 = vsel %vm389_vm3, %v2622_v24, %v8555_v17  ;;  %v3584_v56 = vsel %vm3577_vm12, %v3551_v60, %v8430_v57 }
 0x426   : > { %v8550_v46 = vunpack.i.l.bf16 %v8549_v40  ;;  %3962 = vmatprep.mubr.f32.mxu1 %v3711_v59  ;;  %v8551_v39 = vunpack.i.h.bf16 %v8549_v40  ;;  %v2623_v40 = vld [vmem:[#allocation3 + $0x69] sm:$0xff]  ;;  %v8575_v51 = vunpack.i.l.bf16 %v12097_v37  ;;  %v3617_v5 = vsel %vm3610_vm13, %v3584_v56, %v8566_v16 }
 0x427   : > { %v3650_v30 = vsel %vm389_vm3, %v2623_v40, %v8556_v1  ;;  %v8576_v38 = vunpack.i.h.bf16 %v12097_v37 }
 0x428   : > { %v3712_v33 = vsel %vm3610_vm13, %v3680_v47, %v8550_v46  ;;  %3963 = vmatmul.mubr.f32.gmra.mxu1 %v3615_v41  ;;  %v3616_v61 = vsel %vm3610_vm13, %v3583_v36, %v8551_v39  ;;  %v3552_v41 = vsel %vm389_vm3, %v2495_v52, %v8351_v7  ;;  %v3651_v36 = vsel %vm389_vm3, %v2624_v0, %v8575_v51  ;;  %v2626_v52 = vld [vmem:[#allocation3 + $0x91] sm:$0xff] }
 0x429   : > { %v8559_v4 = vpop.permute.xlu1 %8558  ;;  %v12108_v22 = vpop.permute.xlu0 %8583  ;;  %3967 = vmatprep.mubr.f32.mxu1 %v3712_v33  ;;  %v8435_v33 = vunpack.i.l.bf16 %v11968_v53  ;;  %v8436_v7 = vunpack.i.h.bf16 %v11968_v53 }
 0x42a   : > { %v8560_v62 = vunpack.i.l.bf16 %v8559_v4  ;;  %v8561_v13 = vunpack.i.h.bf16 %v8559_v4  ;;  %v8585_v44 = vunpack.i.l.bf16 %v12108_v22  ;;  %v8586_v24 = vunpack.i.h.bf16 %v12108_v22 }
 0x42c   : > { %v3681_v15 = vsel %vm3577_vm12, %v3649_v55, %v8560_v62  ;;  %3968 = vmatmul.mubr.f32.gmra.mxu1 %v3616_v61  ;;  %v3682_v46 = vsel %vm3577_vm12, %v3650_v30, %v8561_v13  ;;  %v3585_v62 = vsel %vm3577_vm12, %v3552_v41, %v8431_v12  ;;  %v8356_v13 = vunpack.i.h.bf16 %v11908_v10  ;;  %v2496_v61 = vld [vmem:[#allocation3 + $0x60] sm:$0xff]  ;;  %v2497_v12 = vld [vmem:[#allocation3 + $0x68] sm:$0xff] }
 0x42d   : > { %v8569_v18 = vpop.permute.xlu1 %8568  ;;  %v12121_v34 = vpop.permute.xlu0 %8593  ;;  %v3713_v28 = vsel %vm3610_vm13, %v3681_v15, %v8565_v6  ;;  %v2625_v15 = vld [vmem:[#allocation3 + $0x81] sm:$0xff]  ;;  %v3553_v22 = vsel %vm389_vm3, %v2496_v61, %v8355_v2 }
 0x42e   : > { %v8570_v59 = vunpack.i.l.bf16 %v8569_v18  ;;  %3972 = vmatprep.mubr.f32.mxu1 %v3713_v28  ;;  %v8571_v29 = vunpack.i.h.bf16 %v8569_v18  ;;  %v3652_v28 = vsel %vm389_vm3, %v2625_v15, %v8576_v38  ;;  %v8595_v9 = vunpack.i.l.bf16 %v12121_v34 }
 0x42f   : > { %v3586_v10 = vsel %vm3577_vm12, %v3553_v22, %v8435_v33  ;;  %v3554_v56 = vsel %vm389_vm3, %v2497_v12, %v8356_v13  ;;  %v8441_v13 = vunpack.i.h.bf16 %v11988_v23 }
 0x430   : > { %v3714_v17 = vsel %vm3610_vm13, %v3682_v46, %v8570_v59  ;;  %3973 = vmatmul.mubr.f32.gmra.mxu1 %v3617_v5  ;;  %v3618_v57 = vsel %vm3610_vm13, %v3585_v62, %v8571_v29  ;;  %v3619_v60 = vsel %vm3610_vm13, %v3586_v10, %v8586_v24  ;;  %v8360_v46 = vunpack.i.l.bf16 %v11928_v50  ;;  %v2627_v24 = vld [vmem:[#allocation3 + $0x99] sm:$0xff] }
 0x431   : > { %v8579_v47 = vpop.permute.xlu1 %8578  ;;  %v12132_v39 = vpop.permute.xlu0 %8603  ;;  %3977 = vmatprep.mubr.f32.mxu1 %v3714_v17  ;;  %v8596_v29 = vunpack.i.h.bf16 %v12121_v34  ;;  %v3587_v17 = vsel %vm3577_vm12, %v3554_v56, %v8436_v7  ;;  %v3653_v33 = vsel %vm389_vm3, %v2626_v52, %v8595_v9  ;;  %v8361_v34 = vunpack.i.h.bf16 %v11928_v50 }
 0x432   : > { %v8580_v4 = vunpack.i.l.bf16 %v8579_v47  ;;  %v8581_v1 = vunpack.i.h.bf16 %v8579_v47  ;;  %v8440_v47 = vunpack.i.l.bf16 %v11988_v23  ;;  %v8605_v41 = vunpack.i.l.bf16 %v12132_v39 }
 0x433   : > { %v8606_v38 = vunpack.i.h.bf16 %v12132_v39  ;;  %v3654_v39 = vsel %vm389_vm3, %v2627_v24, %v8596_v29  ;;  %v8365_v23 = vunpack.i.l.bf16 %v11915_v11  ;;  %v8445_v10 = vunpack.i.l.bf16 %v11975_v8  ;;  %v2501_v24 = vld [vmem:[#allocation3 + $0x98] sm:$0xff] }
 0x434   : > { %v3683_v6 = vsel %vm3577_vm12, %v3651_v36, %v8580_v4  ;;  %3978 = vmatmul.mubr.f32.gmra.mxu1 %v3618_v57  ;;  %v3684_v40 = vsel %vm3577_vm12, %v3652_v28, %v8581_v1  ;;  %v2498_v36 = vld [vmem:[#allocation3 + $0x78] sm:$0xff] }
 0x435   : > { %v8589_v37 = vpop.permute.xlu1 %8588  ;;  %v12145_v55 = vpop.permute.xlu0 %8613  ;;  %v3715_v16 = vsel %vm3610_vm13, %v3683_v6, %v8585_v44  ;;  %v3555_v6 = vsel %vm389_vm3, %v2498_v36, %v8360_v46 }
 0x436   : > { %v8590_v18 = vunpack.i.l.bf16 %v8589_v37  ;;  %3982 = vmatprep.mubr.f32.mxu1 %v3715_v16  ;;  %v8591_v59 = vunpack.i.h.bf16 %v8589_v37  ;;  %v8615_v37 = vunpack.i.l.bf16 %v12145_v55  ;;  %v3588_v50 = vsel %vm3577_vm12, %v3555_v6, %v8440_v47 }
 0x437   : > { %v3621_v15 = vsel %vm3610_vm13, %v3588_v50, %v8606_v38 }
 0x438   : > { %v3716_v30 = vsel %vm3610_vm13, %v3684_v40, %v8590_v18  ;;  %3983 = vmatmul.mubr.f32.gmra.mxu1 %v3619_v60  ;;  %v3620_v4 = vsel %vm3610_vm13, %v3587_v17, %v8591_v59  ;;  %v2499_v18 = vld [vmem:[#allocation3 + $0x80] sm:$0xff]  ;;  %v8616_v40 = vunpack.i.h.bf16 %v12145_v55  ;;  %v2628_v60 = vld [vmem:[#allocation3 + $0xa9] sm:$0xff]  ;;  %v8366_v17 = vunpack.i.h.bf16 %v11915_v11 }
 0x439   : > { %v8599_v53 = vpop.permute.xlu1 %8598  ;;  %v12156_v51 = vpop.permute.xlu0 %8623  ;;  %3987 = vmatprep.mubr.f32.mxu1 %v3716_v30  ;;  %v3556_v9 = vsel %vm389_vm3, %v2499_v18, %v8361_v34  ;;  %v3655_v56 = vsel %vm389_vm3, %v2628_v60, %v8615_v37  ;;  %v2502_v60 = vld [vmem:[#allocation3 + $0xa8] sm:$0xff] }
 0x43a   : > { %v8600_v5 = vunpack.i.l.bf16 %v8599_v53  ;;  %v8601_v2 = vunpack.i.h.bf16 %v8599_v53  ;;  %v8625_v30 = vunpack.i.l.bf16 %v12156_v51  ;;  %v3589_v53 = vsel %vm3577_vm12, %v3556_v9, %v8441_v13 }
 0x43b   : > { %v8626_v46 = vunpack.i.h.bf16 %v12156_v51  ;;  %v3558_v6 = vsel %vm389_vm3, %v2501_v24, %v8366_v17 }
 0x43c   : > { %v3685_v0 = vsel %vm3577_vm12, %v3653_v33, %v8600_v5  ;;  %3988 = vmatmul.mubr.f32.gmra.mxu1 %v3620_v4  ;;  %v3686_v16 = vsel %vm3577_vm12, %v3654_v39, %v8601_v2  ;;  %v2629_v2 = vld [vmem:[#allocation3 + $0xb1] sm:$0xff]  ;;  %v8446_v33 = vunpack.i.h.bf16 %v11975_v8  ;;  %v8370_v39 = vunpack.i.l.bf16 %v11936_v58 }
 0x43d   : > { %v8609_v44 = vpop.permute.xlu1 %8608  ;;  %v12169_v1 = vpop.permute.xlu0 %8633  ;;  %v3717_v62 = vsel %vm3610_vm13, %v3685_v0, %v8605_v41  ;;  %v2500_v41 = vld [vmem:[#allocation3 + $0x90] sm:$0xff]  ;;  %v3656_v4 = vsel %vm389_vm3, %v2629_v2, %v8616_v40 }
 0x43e   : > { %v8610_v57 = vunpack.i.l.bf16 %v8609_v44  ;;  %3992 = vmatprep.mubr.f32.mxu1 %v3717_v62  ;;  %v8611_v61 = vunpack.i.h.bf16 %v8609_v44  ;;  %v3557_v51 = vsel %vm389_vm3, %v2500_v41, %v8365_v23  ;;  %v8635_v0 = vunpack.i.l.bf16 %v12169_v1 }
 0x43f   : > { %v3590_v11 = vsel %vm3577_vm12, %v3557_v51, %v8445_v10  ;;  %v8636_v13 = vunpack.i.h.bf16 %v12169_v1  ;;  %v3591_v50 = vsel %vm3577_vm12, %v3558_v6, %v8446_v33  ;;  %v8371_v1 = vunpack.i.h.bf16 %v11936_v58 }
 0x440   : > { %v3718_v7 = vsel %vm3610_vm13, %v3686_v16, %v8610_v57  ;;  %3993 = vmatmul.mubr.f32.gmra.mxu1 %v3621_v15  ;;  %v3622_v29 = vsel %vm3610_vm13, %v3589_v53, %v8611_v61  ;;  %v3623_v62 = vsel %vm3610_vm13, %v3590_v11, %v8626_v46  ;;  %v2630_v16 = vld [vmem:[#allocation3 + $0xc1] sm:$0xff]  ;;  %v8450_v61 = vunpack.i.l.bf16 %v11996_v3 }
 0x441   : > { %v8619_v22 = vpop.permute.xlu1 %8618  ;;  %v12180_v28 = vpop.permute.xlu0 %8643  ;;  %3997 = vmatprep.mubr.f32.mxu1 %v3718_v7  ;;  %v3657_v18 = vsel %vm389_vm3, %v2630_v16, %v8635_v0  ;;  %v3559_v53 = vsel %vm389_vm3, %v2502_v60, %v8370_v39  ;;  %v2632_v0 = vld [vmem:[#allocation3 + $0xd9] sm:$0xff]  ;;  %v8376_v6 = vunpack.i.h.bf16 %v11923_v48  ;;  %v8456_v16 = vunpack.i.h.bf16 %v11983_v27 }
 0x442   : > { %v8620_v59 = vunpack.i.l.bf16 %v8619_v22  ;;  %v8621_v12 = vunpack.i.h.bf16 %v8619_v22  ;;  %v8645_v15 = vunpack.i.l.bf16 %v12180_v28  ;;  %v8646_v22 = vunpack.i.h.bf16 %v12180_v28 }
 0x443   : > { %v3592_v58 = vsel %vm3577_vm12, %v3559_v53, %v8450_v61  ;;  %v8380_v60 = vunpack.i.l.bf16 %v11943_v26 }
 0x444   : > { %v3687_v5 = vsel %vm3577_vm12, %v3655_v56, %v8620_v59  ;;  %3998 = vmatmul.mubr.f32.gmra.mxu1 %v3622_v29  ;;  %v3688_v34 = vsel %vm3577_vm12, %v3656_v4, %v8621_v12  ;;  %v8451_v56 = vunpack.i.h.bf16 %v11996_v3  ;;  %v3625_v17 = vsel %vm3610_vm13, %v3592_v58, %v8646_v22 }
 0x445   : > { %v8629_v55 = vpop.permute.xlu1 %8628  ;;  %v12193_v52 = vpop.permute.xlu0 %8653  ;;  %v3719_v47 = vsel %vm3610_vm13, %v3687_v5, %v8625_v30  ;;  %v2631_v30 = vld [vmem:[#allocation3 + $0xc9] sm:$0xff]  ;;  %v8375_v3 = vunpack.i.l.bf16 %v11923_v48 }
 0x446   : > { %v8630_v38 = vunpack.i.l.bf16 %v8629_v55  ;;  %4002 = vmatprep.mubr.f32.mxu1 %v3719_v47  ;;  %v8631_v44 = vunpack.i.h.bf16 %v8629_v55  ;;  %v3658_v28 = vsel %vm389_vm3, %v2631_v30, %v8636_v13  ;;  %v8655_v46 = vunpack.i.l.bf16 %v12193_v52  ;;  %v2503_v47 = vld [vmem:[#allocation3 + $0xb0] sm:$0xff] }
 0x447   : > { %v3560_v33 = vsel %vm389_vm3, %v2503_v47, %v8371_v1  ;;  %v8656_v51 = vunpack.i.h.bf16 %v12193_v52  ;;  %v2505_v1 = vld [vmem:[#allocation3 + $0xc8] sm:$0xff] }
 0x448   : > { %v3720_v36 = vsel %vm3610_vm13, %v3688_v34, %v8630_v38  ;;  %4003 = vmatmul.mubr.f32.gmra.mxu1 %v3623_v62  ;;  %v3624_v9 = vsel %vm3610_vm13, %v3591_v50, %v8631_v44  ;;  %v8455_v38 = vunpack.i.l.bf16 %v11983_v27  ;;  %v3593_v44 = vsel %vm3577_vm12, %v3560_v33, %v8451_v56  ;;  %v2633_v50 = vld [vmem:[#allocation3 + $0xe1] sm:$0xff] }
 0x449   : > { %v8639_v8 = vpop.permute.xlu1 %8638  ;;  %v12204_v57 = vpop.permute.xlu0 %8663  ;;  %4007 = vmatprep.mubr.f32.mxu1 %v3720_v36  ;;  %v3659_v62 = vsel %vm389_vm3, %v2632_v0, %v8655_v46  ;;  %v8460_v56 = vunpack.i.l.bf16 %v12003_v63  ;;  %v8461_v0 = vunpack.i.h.bf16 %v12003_v63  ;;  %v8385_v63 = vunpack.i.l.bf16 %v11930_v35 }
 0x44a   : > { %v8640_v37 = vunpack.i.l.bf16 %v8639_v8  ;;  %v8641_v7 = vunpack.i.h.bf16 %v8639_v8  ;;  %v8665_v11 = vunpack.i.l.bf16 %v12204_v57  ;;  %v8666_v36 = vunpack.i.h.bf16 %v12204_v57 }
 0x44c   : > { %v3689_v23 = vsel %vm3577_vm12, %v3657_v18, %v8640_v37  ;;  %4008 = vmatmul.mubr.f32.gmra.mxu1 %v3624_v9  ;;  %v3690_v29 = vsel %vm3577_vm12, %v3658_v28, %v8641_v7  ;;  %v2504_v37 = vld [vmem:[#allocation3 + $0xc0] sm:$0xff]  ;;  %v2634_v28 = vld [vmem:[#allocation3 + $0xf1] sm:$0xff] }
 0x44d   : > { %v8649_v10 = vpop.permute.xlu1 %8648  ;;  %v12217_v40 = vpop.permute.xlu0 %8673  ;;  %v3721_v59 = vsel %vm3610_vm13, %v3689_v23, %v8645_v15  ;;  %v3561_v57 = vsel %vm389_vm3, %v2504_v37, %v8375_v3  ;;  %v3660_v15 = vsel %vm389_vm3, %v2633_v50, %v8656_v51  ;;  %v2506_v3 = vld [vmem:[#allocation3 + $0xd8] sm:$0xff] }
 0x44e   : > { %v8650_v12 = vunpack.i.l.bf16 %v8649_v10  ;;  %4012 = vmatprep.mubr.f32.mxu1 %v3721_v59  ;;  %v8651_v5 = vunpack.i.h.bf16 %v8649_v10  ;;  %v8675_v7 = vunpack.i.l.bf16 %v12217_v40  ;;  %v3594_v48 = vsel %vm3577_vm12, %v3561_v57, %v8455_v38  ;;  %v2635_v38 = vld [vmem:[#allocation3 + $0xf9] sm:$0xff] }
 0x44f   : > { %v3627_v9 = vsel %vm3610_vm13, %v3594_v48, %v8666_v36  ;;  %v3562_v59 = vsel %vm389_vm3, %v2505_v1, %v8376_v6  ;;  %v8676_v30 = vunpack.i.h.bf16 %v12217_v40  ;;  %v8381_v40 = vunpack.i.h.bf16 %v11943_v26 }
 0x450   : > { %v3722_v55 = vsel %vm3610_vm13, %v3690_v29, %v8650_v12  ;;  %4013 = vmatmul.mubr.f32.gmra.mxu1 %v3625_v17  ;;  %v3626_v24 = vsel %vm3610_vm13, %v3593_v44, %v8651_v5  ;;  %v3595_v53 = vsel %vm3577_vm12, %v3562_v59, %v8456_v16  ;;  %v3661_v29 = vsel %vm389_vm3, %v2634_v28, %v8675_v7  ;;  %v2636_v16 = vld [vmem:[#allocation3 + $0x109] sm:$0xff]  ;;  %v2637_v59 = vld [vmem:[#allocation3 + $0x111] sm:$0xff] }
 0x451   : > { %v8659_v41 = vpop.permute.xlu1 %8658  ;;  %v12228_v2 = vpop.permute.xlu0 %8683  ;;  %4017 = vmatprep.mubr.f32.mxu1 %v3722_v55 }
 0x452   : > { %v8660_v4 = vunpack.i.l.bf16 %v8659_v41  ;;  %v8661_v34 = vunpack.i.h.bf16 %v8659_v41  ;;  %v8685_v46 = vunpack.i.l.bf16 %v12228_v2  ;;  %v8686_v5 = vunpack.i.h.bf16 %v12228_v2 }
 0x453   : > { %v3662_v2 = vsel %vm389_vm3, %v2635_v38, %v8676_v30  ;;  %v8470_v38 = vunpack.i.l.bf16 %v12011_v19 }
 0x454   : > { %v3691_v8 = vsel %vm3577_vm12, %v3659_v62, %v8660_v4  ;;  %4018 = vmatmul.mubr.f32.gmra.mxu1 %v3626_v24  ;;  %v3692_v18 = vsel %vm3577_vm12, %v3660_v15, %v8661_v34  ;;  %v3563_v4 = vsel %vm389_vm3, %v2506_v3, %v8380_v60  ;;  %v2507_v24 = vld [vmem:[#allocation3 + $0xe0] sm:$0xff]  ;;  %v8466_v60 = vunpack.i.h.bf16 %v11990_v21 }
 0x455   : > { %v8669_v52 = vpop.permute.xlu1 %8668  ;;  %v12241_v39 = vpop.permute.xlu0 %8693  ;;  %v3723_v13 = vsel %vm3610_vm13, %v3691_v8, %v8665_v11  ;;  %v3596_v26 = vsel %vm3577_vm12, %v3563_v4, %v8460_v56  ;;  %v2638_v3 = vld [vmem:[#allocation3 + $0x121] sm:$0xff] }
 0x456   : > { %v8670_v61 = vunpack.i.l.bf16 %v8669_v52  ;;  %4022 = vmatprep.mubr.f32.mxu1 %v3723_v13  ;;  %v8671_v22 = vunpack.i.h.bf16 %v8669_v52  ;;  %v8695_v11 = vunpack.i.l.bf16 %v12241_v39  ;;  %v3629_v62 = vsel %vm3610_vm13, %v3596_v26, %v8686_v5 }
 0x457   : > { %v3564_v52 = vsel %vm389_vm3, %v2507_v24, %v8381_v40  ;;  %v8465_v13 = vunpack.i.l.bf16 %v11990_v21  ;;  %v8696_v37 = vunpack.i.h.bf16 %v12241_v39  ;;  %v2639_v24 = vld [vmem:[#allocation3 + $0x129] sm:$0xff] }
 0x458   : > { %v3724_v23 = vsel %vm3610_vm13, %v3692_v18, %v8670_v61  ;;  %4023 = vmatmul.mubr.f32.gmra.mxu1 %v3627_v9  ;;  %v3628_v17 = vsel %vm3610_vm13, %v3595_v53, %v8671_v22  ;;  %v3597_v15 = vsel %vm3577_vm12, %v3564_v52, %v8461_v0  ;;  %v3663_v7 = vsel %vm389_vm3, %v2636_v16, %v8695_v11 }
 0x459   : > { %v8679_v27 = vpop.permute.xlu1 %8678  ;;  %v12252_v10 = vpop.permute.xlu0 %8703  ;;  %4027 = vmatprep.mubr.f32.mxu1 %v3724_v23  ;;  %v8386_v9 = vunpack.i.h.bf16 %v11930_v35 }
 0x45a   : > { %v8680_v12 = vunpack.i.l.bf16 %v8679_v27  ;;  %v8681_v58 = vunpack.i.h.bf16 %v8679_v27  ;;  %v8705_v61 = vunpack.i.l.bf16 %v12252_v10  ;;  %v8706_v48 = vunpack.i.h.bf16 %v12252_v10  ;;  %v2508_v27 = vld [vmem:[#allocation3 + $0xf0] sm:$0xff] }
 0x45b   : > { %v3565_v10 = vsel %vm389_vm3, %v2508_v27, %v8385_v63  ;;  %v8471_v63 = vunpack.i.h.bf16 %v12011_v19  ;;  %v8395_v19 = vunpack.i.l.bf16 %v11938_v32 }
 0x45c   : > { %v3693_v55 = vsel %vm3577_vm12, %v3661_v29, %v8680_v12  ;;  %4028 = vmatmul.mubr.f32.gmra.mxu1 %v3628_v17  ;;  %v3694_v34 = vsel %vm3577_vm12, %v3662_v2, %v8681_v58  ;;  %v3664_v12 = vsel %vm389_vm3, %v2637_v59, %v8696_v37  ;;  %v3598_v35 = vsel %vm3577_vm12, %v3565_v10, %v8465_v13  ;;  %v2509_v29 = vld [vmem:[#allocation3 + $0xf8] sm:$0xff] }
 0x45d   : > { %v8689_v47 = vpop.permute.xlu1 %8688  ;;  %v12265_v41 = vpop.permute.xlu0 %8713  ;;  %v3725_v33 = vsel %vm3610_vm13, %v3693_v55, %v8685_v46  ;;  %v3631_v46 = vsel %vm3610_vm13, %v3598_v35, %v8706_v48  ;;  %v3566_v17 = vsel %vm389_vm3, %v2509_v29, %v8386_v9  ;;  %v8390_v55 = vunpack.i.l.bf16 %v11951_v14 }
 0x45e   : > { %v8690_v51 = vunpack.i.l.bf16 %v8689_v47  ;;  %4032 = vmatprep.mubr.f32.mxu1 %v3725_v33  ;;  %v8691_v44 = vunpack.i.h.bf16 %v8689_v47  ;;  %v8715_v53 = vunpack.i.l.bf16 %v12265_v41  ;;  %v8716_v40 = vunpack.i.h.bf16 %v12265_v41 }
 0x45f   : > { %v3599_v33 = vsel %vm3577_vm12, %v3566_v17, %v8466_v60  ;;  %v8391_v41 = vunpack.i.h.bf16 %v11951_v14 }
 0x460   : > { %v3726_v36 = vsel %vm3610_vm13, %v3694_v34, %v8690_v51  ;;  %4033 = vmatmul.mubr.f32.gmra.mxu1 %v3629_v62  ;;  %v3630_v18 = vsel %vm3610_vm13, %v3597_v15, %v8691_v44  ;;  %v3665_v2 = vsel %vm389_vm3, %v2638_v3, %v8715_v53  ;;  %v8396_v53 = vunpack.i.h.bf16 %v11938_v32 }
 0x461   : > { %v8699_v8 = vpop.permute.xlu1 %8698  ;;  %v12276_v6 = vpop.permute.xlu0 %8723  ;;  %4037 = vmatprep.mubr.f32.mxu1 %v3726_v36  ;;  %v2510_v36 = vld [vmem:[#allocation3 + $0x108] sm:$0xff] }
 0x462   : > { %v8700_v50 = vunpack.i.l.bf16 %v8699_v8  ;;  %v8701_v57 = vunpack.i.h.bf16 %v8699_v8  ;;  %v8725_v51 = vunpack.i.l.bf16 %v12276_v6  ;;  %v8726_v0 = vunpack.i.h.bf16 %v12276_v6 }
 0x463   : > { %v3567_v52 = vsel %vm389_vm3, %v2510_v36, %v8390_v55  ;;  %v3666_v6 = vsel %vm389_vm3, %v2639_v24, %v8716_v40  ;;  %v5674_v24 = vld [vmem:[%s14659_s5 + $0x110] sm:$0xff] }
 0x464   : > { %v3695_v22 = vsel %vm3577_vm12, %v3663_v7, %v8700_v50  ;;  %4038 = vmatmul.mubr.f32.gmra.mxu1 %v3630_v18  ;;  %v3696_v28 = vsel %vm3577_vm12, %v3664_v12, %v8701_v57  ;;  %v3600_v14 = vsel %vm3577_vm12, %v3567_v52, %v8470_v38  ;;  %v2511_v57 = vld [vmem:[#allocation3 + $0x110] sm:$0xff]  ;;  %v8475_v18 = vunpack.i.l.bf16 %v11998_v54 }
 0x465   : > { %v8709_v39 = vpop.permute.xlu1 %8708  ;;  %v12289_v23 = vpop.permute.xlu0 %8733  ;;  %v3727_v1 = vsel %vm3610_vm13, %v3695_v22, %v8705_v61  ;;  %v3633_v16 = vsel %vm3610_vm13, %v3600_v14, %v8726_v0  ;;  %v3568_v48 = vsel %vm389_vm3, %v2511_v57, %v8391_v41  ;;  %v8480_v41 = vunpack.i.l.bf16 %v12017_v45  ;;  %v2643_v57 = vld [vmem:[#allocation3 + $0x159] sm:$0xff] }
 0x466   : > { %v8710_v30 = vunpack.i.l.bf16 %v8709_v39  ;;  %4042 = vmatprep.mubr.f32.mxu1 %v3727_v1  ;;  %v8711_v56 = vunpack.i.h.bf16 %v8709_v39  ;;  %v8735_v13 = vunpack.i.l.bf16 %v12289_v23  ;;  %v8736_v22 = vunpack.i.h.bf16 %v12289_v23  ;;  %v2640_v39 = vld [vmem:[#allocation3 + $0x139] sm:$0xff] }
 0x467   : > { %v3601_v59 = vsel %vm3577_vm12, %v3568_v48, %v8471_v63 }
 0x468   : > { %v3728_v58 = vsel %vm3610_vm13, %v3696_v28, %v8710_v30  ;;  %4043 = vmatmul.mubr.f32.gmra.mxu1 %v3631_v46  ;;  %v3632_v11 = vsel %vm3610_vm13, %v3599_v33, %v8711_v56  ;;  %v3667_v60 = vsel %vm389_vm3, %v2640_v39, %v8735_v13  ;;  %v2512_v28 = vld [vmem:[#allocation3 + $0x120] sm:$0xff]  ;;  %v8476_v46 = vunpack.i.h.bf16 %v11998_v54  ;;  %v2513_v54 = vld [vmem:[#allocation3 + $0x128] sm:$0xff]  ;;  %v5672_v39 = vld [vmem:[%s14659_s5 + $0x100] sm:$0xff] }
 0x469   : > { %v8719_v21 = vpop.permute.xlu1 %8718  ;;  %v12300_v5 = vpop.permute.xlu0 %8743  ;;  %4047 = vmatprep.mubr.f32.mxu1 %v3728_v58  ;;  %v2641_v56 = vld [vmem:[#allocation3 + $0x141] sm:$0xff]  ;;  %v3570_v38 = vsel %vm389_vm3, %v2513_v54, %v8396_v53  ;;  %v8486_v54 = vunpack.i.h.bf16 %v12005_v49 }
 0x46a   : > { %v8720_v47 = vunpack.i.l.bf16 %v8719_v21  ;;  %v8721_v4 = vunpack.i.h.bf16 %v8719_v21  ;;  %v8745_v1 = vunpack.i.l.bf16 %v12300_v5  ;;  %v8746_v30 = vunpack.i.h.bf16 %v12300_v5 }
 0x46b   : > { %v3569_v21 = vsel %vm389_vm3, %v2512_v28, %v8395_v19  ;;  %v3668_v5 = vsel %vm389_vm3, %v2641_v56, %v8736_v22  ;;  %v2644_v28 = vld [vmem:[#allocation3 + $0x169] sm:$0xff] }
 0x46c   : > { %v3697_v26 = vsel %vm3577_vm12, %v3665_v2, %v8720_v47  ;;  %4048 = vmatmul.mubr.f32.gmra.mxu1 %v3632_v11  ;;  %v3698_v37 = vsel %vm3577_vm12, %v3666_v6, %v8721_v4  ;;  %v3602_v32 = vsel %vm3577_vm12, %v3569_v21, %v8475_v18  ;;  %v8400_v4 = vunpack.i.l.bf16 %v11958_v25 }
 0x46d   : > { %v8729_v34 = vpop.permute.xlu1 %8728  ;;  %v12313_v44 = vpop.permute.xlu0 %8753  ;;  %v3729_v62 = vsel %vm3610_vm13, %v3697_v26, %v8725_v51  ;;  %v3635_v47 = vsel %vm3610_vm13, %v3602_v32, %v8746_v30  ;;  %v5675_v51 = vld [vmem:[%s14659_s5 + $0x118] sm:$0xff]  ;;  %v3603_v11 = vsel %vm3577_vm12, %v3570_v38, %v8476_v46  ;;  %v2642_v26 = vld [vmem:[#allocation3 + $0x151] sm:$0xff]  ;;  %v8481_v18 = vunpack.i.h.bf16 %v12017_v45 }
 0x46e   : > { %v8730_v8 = vunpack.i.l.bf16 %v8729_v34  ;;  %4052 = vmatprep.mubr.f32.mxu1 %v3729_v62  ;;  %v8731_v50 = vunpack.i.h.bf16 %v8729_v34  ;;  %v8755_v17 = vunpack.i.l.bf16 %v12313_v44  ;;  %v8756_v2 = vunpack.i.h.bf16 %v12313_v44  ;;  %8256 = vmatprep.subr.mxu1 %v5675_v51  ;;  %v4425_v44 = vld [vmem:[#allocation3 + $0x9] sm:$0xff] }
 0x46f   : > { %8257 = vmatpush3.msra.mxu1 %v5675_v51 }
 0x470   : > { %v3730_v61 = vsel %vm3610_vm13, %v3698_v37, %v8730_v8  ;;  %4053 = vmatmul.mubr.f32.gmra.mxu1 %v3633_v16  ;;  %v3634_v10 = vsel %vm3610_vm13, %v3601_v59, %v8731_v50  ;;  %v3669_v36 = vsel %vm389_vm3, %v2642_v26, %v8755_v17  ;;  %v4424_v8 = vld [vmem:[#allocation3 + $0x1] sm:$0xff]  ;;  %8258 = vmatprep.subr.mxu1 %v5674_v24  ;;  %v8401_v37 = vunpack.i.h.bf16 %v11958_v25 }
 0x471   : > { %v8739_v15 = vpop.permute.xlu1 %8738  ;;  %v12324_v7 = vpop.permute.xlu0 %8763  ;;  %4057 = vmatprep.mubr.f32.mxu1 %v3730_v61  ;;  %v8812_v14 = vpack.i.bf16 %v4425_v44, %v4424_v8  ;;  %v2514_v61 = vld [vmem:[#allocation3 + $0x138] sm:$0xff]  ;;  %v3670_v19 = vsel %vm389_vm3, %v2643_v57, %v8756_v2  ;;  %8259 = vmatpush3.msra.mxu1 %v5674_v24 }
 0x472   : > { %v8740_v9 = vunpack.i.l.bf16 %v8739_v15  ;;  %v8741_v27 = vunpack.i.h.bf16 %v8739_v15  ;;  %v8765_v34 = vunpack.i.l.bf16 %v12324_v7  ;;  %v8766_v52 = vunpack.i.h.bf16 %v12324_v7  ;;  %v5673_v15 = vld [vmem:[%s14659_s5 + $0x108] sm:$0xff] }
 0x473   : > { %v3571_v48 = vsel %vm389_vm3, %v2514_v61, %v8400_v4  ;;  %8813 = vrot.lane.b32.xlu0 %v8812_v14, %s9547_s14  ;;  %8260 = vmatprep.subr.mxu1 %v5673_v15 }
 0x474   : > { %v3699_v12 = vsel %vm3577_vm12, %v3667_v60, %v8740_v9  ;;  %4058 = vmatmul.mubr.f32.gmra.mxu1 %v3634_v10  ;;  %v3700_v55 = vsel %vm3577_vm12, %v3668_v5, %v8741_v27  ;;  %v3604_v22 = vsel %vm3577_vm12, %v3571_v48, %v8480_v41  ;;  %v2515_v60 = vld [vmem:[#allocation3 + $0x140] sm:$0xff]  ;;  %v8405_v10 = vunpack.i.l.bf16 %v11945_v42 }
 0x475   : > { %v8749_v23 = vpop.permute.xlu1 %8748  ;;  %v3731_v35 = vsel %vm3610_vm13, %v3699_v12, %v8745_v1  ;;  %v12339_v29 = vpop.permute.xlu0 %8773  ;;  %v3637_v27 = vsel %vm3610_vm13, %v3604_v22, %v8766_v52  ;;  %8261 = vmatpush3.msra.mxu1 %v5673_v15  ;;  %v3572_v30 = vsel %vm389_vm3, %v2515_v60, %v8401_v37  ;;  %v8485_v12 = vunpack.i.l.bf16 %v12005_v49  ;;  %v2646_v52 = vld [vmem:[#allocation3 + $0x181] sm:$0xff]  ;;  %v2519_v60 = vld [vmem:[#allocation3 + $0x170] sm:$0xff] }
 0x476   : > { %v8750_v58 = vunpack.i.l.bf16 %v8749_v23  ;;  %4062 = vmatprep.mubr.f32.mxu1 %v3731_v35  ;;  %v8751_v40 = vunpack.i.h.bf16 %v8749_v23  ;;  %v8775_v25 = vunpack.i.l.bf16 %v12339_v29  ;;  %8262 = vmatprep.subr.mxu1 %v5672_v39  ;;  %v8776_v53 = vunpack.i.h.bf16 %v12339_v29  ;;  %v2518_v15 = vld [vmem:[#allocation3 + $0x168] sm:$0xff] }
 0x477   : > { %8263 = vmatpush3.msra.mxu1 %v5672_v39  ;;  %v8406_v29 = vunpack.i.h.bf16 %v11945_v42  ;;  %v8411_v48 = vunpack.i.h.bf16 %v11966_v43  ;;  %v8491_v22 = vunpack.i.h.bf16 %v12026_v31 }
 0x478   : > { %v3732_v33 = vsel %vm3610_vm13, %v3700_v55, %v8750_v58  ;;  %4063 = vmatmul.mubr.f32.gmra.mxu1 %v3635_v47  ;;  %v3636_v63 = vsel %vm3610_vm13, %v3603_v11, %v8751_v40  ;;  %v3605_v58 = vsel %vm3577_vm12, %v3572_v30, %v8481_v18  ;;  %v3671_v21 = vsel %vm389_vm3, %v2644_v28, %v8775_v25  ;;  %v2516_v47 = vld [vmem:[#allocation3 + $0x150] sm:$0xff] }
 0x479   : > { %v8759_v3 = vpop.permute.xlu1 %8758  ;;  %4067 = vmatprep.mubr.f32.mxu1 %v3732_v33  ;;  %v12362_v6 = vpop.permute.xlu0 %8783  ;;  %v2645_v33 = vld [vmem:[#allocation3 + $0x171] sm:$0xff]  ;;  %v3573_v38 = vsel %vm389_vm3, %v2516_v47, %v8405_v10  ;;  %v12424_v10 = vld [vmem:[%s14658_s4] ss:$0 sm:$0xff] }
 0x47a   : > { %v8760_v0 = vunpack.i.l.bf16 %v8759_v3  ;;  %v8761_v62 = vunpack.i.h.bf16 %v8759_v3  ;;  %v8785_v56 = vunpack.i.l.bf16 %v12362_v6  ;;  %v8786_v5 = vunpack.i.h.bf16 %v12362_v6 }
 0x47b   : > { %v3672_v51 = vsel %vm389_vm3, %v2645_v33, %v8776_v53  ;;  %v3606_v2 = vsel %vm3577_vm12, %v3573_v38, %v8485_v12  ;;  %v8490_v6 = vunpack.i.l.bf16 %v12026_v31  ;;  %v8210_v31 = vpop.f32.mrf.mxu0 }
 0x47c   : > { %v3701_v13 = vsel %vm3577_vm12, %v3669_v36, %v8760_v0  ;;  %4068 = vmatmul.mubr.f32.gmra.mxu1 %v3636_v63  ;;  %v3702_v9 = vsel %vm3577_vm12, %v3670_v19, %v8761_v62  ;;  %v3639_v26 = vsel %vm3610_vm13, %v3606_v2, %v8786_v5  ;;  %v8410_v36 = vunpack.i.l.bf16 %v11966_v43  ;;  %v5654_v2 = vld [vmem:[%s14659_s5 + $0x70] sm:$0xff] }
 0x47d   : > { %v8769_v50 = vpop.permute.xlu1 %8768  ;;  %v3733_v16 = vsel %vm3610_vm13, %v3701_v13, %v8765_v34  ;;  %v8794_v23 = vpop.permute.xlu0 %8793  ;;  %v2517_v34 = vld [vmem:[#allocation3 + $0x158] sm:$0xff]  ;;  %v3576_v43 = vsel %vm389_vm3, %v2519_v60, %v8411_v48  ;;  %v4456_v60 = vld [vmem:[#allocation3 + $0x2] sm:$0xff] }
 0x47e   : > { %v8770_v7 = vunpack.i.l.bf16 %v8769_v50  ;;  %4072 = vmatprep.mubr.f32.mxu1 %v3733_v16  ;;  %v8771_v1 = vunpack.i.h.bf16 %v8769_v50  ;;  %v8795_v4 = vunpack.i.l.bf16 %v8794_v23  ;;  %v3574_v62 = vsel %vm389_vm3, %v2517_v34, %v8406_v29 }
 0x47f   : > { %v8796_v24 = vunpack.i.h.bf16 %v8794_v23  ;;  %v3607_v44 = vsel %vm3577_vm12, %v3574_v62, %v8486_v54  ;;  %v3575_v18 = vsel %vm389_vm3, %v2518_v15, %v8410_v36  ;;  %v4169_v23 = vpop.f32.mrf.mxu0  ;;  %v5652_v62 = vld [vmem:[%s14659_s5 + $0x60] sm:$0xff] }
 0x480   : > { %v3734_v59 = vsel %vm3610_vm13, %v3702_v9, %v8770_v7  ;;  %4073 = vmatmul.mubr.f32.gmra.mxu1 %v3637_v27  ;;  %v3638_v17 = vsel %vm3610_vm13, %v3605_v58, %v8771_v1  ;;  %v3673_v14 = vsel %vm389_vm3, %v2646_v52, %v8795_v4  ;;  %v2647_v7 = vld [vmem:[#allocation3 + $0x189] sm:$0xff]  ;;  %v3608_v9 = vsel %vm3577_vm12, %v3575_v18, %v8490_v6 }
 0x481   : > { %v8779_v45 = vpop.permute.xlu1 %8778  ;;  %4077 = vmatprep.mubr.f32.mxu1 %v3734_v59  ;;  %v8804_v42 = vpop.permute.xlu0 %8803  ;;  %v3674_v25 = vsel %vm389_vm3, %v2647_v7, %v8796_v24  ;;  %v5651_v24 = vld [vmem:[%s14659_s5 + $0x58] sm:$0xff]  ;;  %v5648_v7 = vld [vmem:[%s14659_s5 + $0x40] sm:$0xff] }
 0x482   : > { %v8780_v35 = vunpack.i.l.bf16 %v8779_v45  ;;  %v8781_v46 = vunpack.i.h.bf16 %v8779_v45  ;;  %v8805_v63 = vunpack.i.l.bf16 %v8804_v42  ;;  %v8806_v37 = vunpack.i.h.bf16 %v8804_v42  ;;  %v8213_v58 = vpop.f32.mrf.mxu0  ;;  %v5653_v42 = vld [vmem:[%s14659_s5 + $0x68] sm:$0xff] }
 0x483   : > { %v3609_v45 = vsel %vm3577_vm12, %v3576_v43, %v8491_v22  ;;  %v5646_v43 = vld [vmem:[%s14659_s5 + $0x30] sm:$0xff] }
 0x484   : > { %v3703_v32 = vsel %vm3577_vm12, %v3671_v21, %v8780_v35  ;;  %4078 = vmatmul.mubr.f32.gmra.mxu1 %v3638_v17  ;;  %v3704_v0 = vsel %vm3577_vm12, %v3672_v51, %v8781_v46  ;;  %v3641_v27 = vsel %vm3610_vm13, %v3608_v9, %v8806_v37  ;;  %v4179_v29 = vpop.f32.mrf.mxu0  ;;  %v5655_v51 = vld [vmem:[%s14659_s5 + $0x78] sm:$0xff]  ;;  %v5649_v37 = vld [vmem:[%s14659_s5 + $0x48] sm:$0xff] }
 0x485   : > { %v8789_v55 = vpop.permute.xlu1 %8788  ;;  %v3735_v40 = vsel %vm3610_vm13, %v3703_v32, %v8785_v56  ;;  %5780 = vmatpush1.msra.mxu0 %v5655_v51 }
 0x486   : > { %v8790_v3 = vunpack.i.l.bf16 %v8789_v55  ;;  %4082 = vmatprep.mubr.f32.mxu1 %v3735_v40  ;;  %v8791_v11 = vunpack.i.h.bf16 %v8789_v55  ;;  %v8216_v54 = vpop.f32.mrf.mxu0  ;;  %5781 = vmatprep.subr.mxu0 %v14984_v20 }
 0x487   : > { %5782 = vmatpush1.msra.mxu0 %v5654_v2  ;;  %v5642_v2 = vld [vmem:[%s14659_s5 + $0x10] sm:$0xff] }
 0x488   : > { %v3736_v41 = vsel %vm3610_vm13, %v3704_v0, %v8790_v3  ;;  %4083 = vmatmul.mubr.f32.gmra.mxu1 %v3639_v26  ;;  %v3640_v50 = vsel %vm3610_vm13, %v3607_v44, %v8791_v11  ;;  %v4189_v26 = vpop.f32.mrf.mxu0  ;;  %5783 = vmatprep.subr.mxu0 %v14984_v20 }
 0x489   : > { %v8799_v49 = vpop.permute.xlu1 %8798  ;;  %4087 = vmatprep.mubr.f32.mxu1 %v3736_v41  ;;  %5784 = vmatpush1.msra.mxu0 %v5653_v42 }
 0x48a   : > { %v8800_v8 = vunpack.i.l.bf16 %v8799_v49  ;;  %v8801_v13 = vunpack.i.h.bf16 %v8799_v49  ;;  %5785 = vmatprep.subr.mxu0 %v14984_v20  ;;  %v8219_v44 = vpop.f32.mrf.mxu0 }
 0x48b   : > { %5786 = vmatpush1.msra.mxu0 %v5652_v62 }
 0x48c   : > { %v3705_v16 = vsel %vm3577_vm12, %v3673_v14, %v8800_v8  ;;  %4088 = vmatmul.mubr.f32.gmra.mxu1 %v3640_v50  ;;  %v3706_v39 = vsel %vm3577_vm12, %v3674_v25, %v8801_v13  ;;  %5787 = vmatprep.subr.mxu0 %v14984_v20  ;;  %v5650_v13 = vld [vmem:[%s14659_s5 + $0x50] sm:$0xff] }
 0x48d   : > { %v8809_v61 = vpop.permute.xlu1 %8808  ;;  %v3737_v57 = vsel %vm3610_vm13, %v3705_v16, %v8805_v63  ;;  %5788 = vmatpush1.msra.mxu0 %v5651_v24  ;;  %v4199_v16 = vpop.f32.mrf.mxu0 }
 0x48e   : > { %v8810_v19 = vunpack.i.l.bf16 %v8809_v61  ;;  %4092 = vmatprep.mubr.f32.mxu1 %v3737_v57  ;;  %v8811_v1 = vunpack.i.h.bf16 %v8809_v61  ;;  %5789 = vmatprep.subr.mxu0 %v14984_v20 }
 0x48f   : > { %5790 = vmatpush1.msra.mxu0 %v5650_v13  ;;  %v8222_v25 = vpop.f32.mrf.mxu0 }
 0x490   : > { %v3738_v59 = vsel %vm3610_vm13, %v3706_v39, %v8810_v19  ;;  %4093 = vmatmul.mubr.f32.gmra.mxu1 %v3641_v27  ;;  %v3642_v30 = vsel %vm3610_vm13, %v3609_v45, %v8811_v1  ;;  %5791 = vmatprep.subr.mxu0 %v14984_v20  ;;  %v5647_v19 = vld [vmem:[%s14659_s5 + $0x38] sm:$0xff] }
 0x491   : > { %4097 = vmatprep.mubr.f32.mxu1 %v3738_v59  ;;  %5792 = vmatpush1.msra.mxu0 %v5649_v37 }
 0x492   : > { %5793 = vmatprep.subr.mxu0 %v14984_v20 }
 0x493   : > { %5794 = vmatpush1.msra.mxu0 %v5648_v7 }
 0x494   : > { %4098 = vmatmul.mubr.f32.gmra.mxu1 %v3642_v30  ;;  %5795 = vmatprep.subr.mxu0 %v14984_v20  ;;  %v5645_v30 = vld [vmem:[%s14659_s5 + $0x28] sm:$0xff] }
 0x495   : > { %5796 = vmatpush1.msra.mxu0 %v5647_v19  ;;  %v5671_v19 = vld [vmem:[%s14659_s5 + $0xf8] sm:$0xff] }
 0x496   : > { %5797 = vmatprep.subr.mxu0 %v14984_v20 }
 0x497   : > { %5798 = vmatpush1.msra.mxu0 %v5646_v43 }
 0x498   : > { %5799 = vmatprep.subr.mxu0 %v14984_v20 }
 0x499   : > { %5800 = vmatpush1.msra.mxu0 %v5645_v30  ;;  %v5670_v30 = vld [vmem:[%s14659_s5 + $0xf0] sm:$0xff] }
 0x49a   : > { %5801 = vmatprep.subr.mxu0 %v14984_v20 }
 0x4d8   : > { %v3944_v12 = vpop.f32.mrf.mxu1 }
 0x4d9   : > { %v3945_v53 = vadd.f32 %v12424_v10, %v3944_v12  ;;  %v4209_v12 = vpop.f32.mrf.mxu0 }
 0x4da   : > { %v3946_v35 = vpop.f32.mrf.mxu1 }
 0x4db   : > { %v4170_v28 = vadd.f32 %v4169_v23, %v3945_v53 }
 0x4dc   : > { %v3949_v56 = vpop.f32.mrf.mxu1 }
 0x4dd   : > { %9358 = vtanh.f32 %v4170_v28  ;;  %v3950_v46 = vadd.f32 %v12424_v10, %v3949_v56 }
 0x4de   : > { %v3951_v21 = vpop.f32.mrf.mxu1 }
 0x4df   : > { %v4175_v5 = vadd.f32 %v8210_v31, %v3950_v46  ;;  %v5644_v46 = vld [vmem:[%s14659_s5 + $0x20] sm:$0xff] }
 0x4e0   : > { %v3954_v17 = vpop.f32.mrf.mxu1  ;;  %5802 = vmatpush1.msra.mxu0 %v5644_v46 }
 0x4e1   : > { %9360 = vtanh.f32 %v4175_v5  ;;  %v3955_v32 = vadd.f32 %v12424_v10, %v3954_v17  ;;  %5803 = vmatprep.subr.mxu0 %v14984_v20 }
 0x4e2   : > { %v3956_v55 = vpop.f32.mrf.mxu1 }
 0x4e3   : > { %v4180_v40 = vadd.f32 %v4179_v29, %v3955_v32  ;;  %v8225_v32 = vpop.f32.mrf.mxu0 }
 0x4e4   : > { %v3959_v47 = vpop.f32.mrf.mxu1 }
 0x4e5   : > { %9362 = vtanh.f32 %v4180_v40  ;;  %v3960_v33 = vadd.f32 %v12424_v10, %v3959_v47  ;;  %v4219_v42 = vpop.f32.mrf.mxu0 }
 0x4e6   : > { %v3961_v3 = vpop.f32.mrf.mxu1 }
 0x4e7   : > { %v4185_v38 = vadd.f32 %v8213_v58, %v3960_v33 }
 0x4e8   : > { %v3964_v4 = vpop.f32.mrf.mxu1 }
 0x4e9   : > { %9364 = vtanh.f32 %v4185_v38  ;;  %v3965_v0 = vadd.f32 %v12424_v10, %v3964_v4  ;;  %v5643_v38 = vld [vmem:[%s14659_s5 + $0x18] sm:$0xff] }
 0x4ea   : > { %v9359_v11 = vpop.eup %9358  ;;  %v3966_v41 = vpop.f32.mrf.mxu1  ;;  %5804 = vmatpush1.msra.mxu0 %v5643_v38 }
 0x4eb   : > { %4360 = vst.msk [vmem:[#allocation3 + $0x19] sm:$0xff] %vm389_vm3, %v9359_v11  ;;  %v4190_v34 = vadd.f32 %v4189_v26, %v3965_v0  ;;  %5805 = vmatprep.subr.mxu0 %v14984_v20 }
 0x4ec   : > { %v3969_v49 = vpop.f32.mrf.mxu1  ;;  %5806 = vmatpush1.msra.mxu0 %v5642_v2 }
 0x4ed   : > { %9366 = vtanh.f32 %v4190_v34  ;;  %v3970_v36 = vadd.f32 %v12424_v10, %v3969_v49  ;;  %v5641_v49 = vld [vmem:[%s14659_s5 + $0x8] sm:$0xff]  ;;  %5807 = vmatprep.subr.mxu0 %v14984_v20 }
 0x4ee   : > { %v9361_v8 = vpop.eup %9360  ;;  %v3971_v52 = vpop.f32.mrf.mxu1  ;;  %5808 = vmatpush1.msra.mxu0 %v5641_v49 }
 0x4ef   : > { %4361 = vst.msk [vmem:[#allocation3 + $0x21] sm:$0xff] %vm389_vm3, %v9361_v8  ;;  %v4195_v6 = vadd.f32 %v8216_v54, %v3970_v36  ;;  %v4457_v36 = vld [vmem:[#allocation3 + $0xa] sm:$0xff]  ;;  %5809 = vmatprep.subr.mxu0 %v14984_v20 }
 0x4f0   : > { %v3974_v63 = vpop.f32.mrf.mxu1 }
 0x4f1   : > { %9368 = vtanh.f32 %v4195_v6  ;;  %v3975_v14 = vadd.f32 %v12424_v10, %v3974_v63  ;;  %v8228_v6 = vpop.f32.mrf.mxu0 }
 0x4f2   : > { %v9363_v50 = vpop.eup %9362  ;;  %v3976_v61 = vpop.f32.mrf.mxu1  ;;  %v4426_v9 = vld [vmem:[#allocation3 + $0x19] sm:$0xff] }
 0x4f3   : > { %4362 = vst.msk [vmem:[#allocation3 + $0x31] sm:$0xff] %vm389_vm3, %v9363_v50  ;;  %v4200_v57 = vadd.f32 %v4199_v16, %v3975_v14  ;;  %v4488_v26 = vld [vmem:[#allocation3 + $0x18] sm:$0xff] }
 0x4f4   : > { %v3979_v15 = vpop.f32.mrf.mxu1 }
 0x4f5   : > { %9370 = vtanh.f32 %v4200_v57  ;;  %v3980_v48 = vadd.f32 %v12424_v10, %v3979_v15  ;;  %v5640_v57 = vld [vmem:[%s14659_s5] sm:$0xff] }
 0x4f6   : > { %v9365_v18 = vpop.eup %9364  ;;  %v3981_v22 = vpop.f32.mrf.mxu1  ;;  %v4427_v39 = vld [vmem:[#allocation3 + $0x21] sm:$0xff]  ;;  %5810 = vmatpush1.msra.mxu0 %v5640_v57 }
 0x4f7   : > { %4363 = vst.msk [vmem:[#allocation3 + $0x39] sm:$0xff] %vm389_vm3, %v9365_v18  ;;  %v4205_v1 = vadd.f32 %v8219_v44, %v3980_v48  ;;  %v8817_v27 = vpack.i.bf16 %v4427_v39, %v4426_v9  ;;  %v12492_v21 = vld [vmem:[#allocation3 + $0x22] sm:$0xff]  ;;  %v12557_v9 = vld [vmem:[#allocation3 + $0x1a] sm:$0xff]  ;;  %5811 = vmatprep.subr.mxu0 %v14984_v20 }
 0x4f8   : > { %v3984_v59 = vpop.f32.mrf.mxu1  ;;  %v4489_v39 = vld [vmem:[#allocation3 + $0x20] sm:$0xff]  ;;  %5812 = vmatpush2.msra.mxu0 %v5671_v19 }
 0x4f9   : > { %9372 = vtanh.f32 %v4205_v1  ;;  %v3985_v45 = vadd.f32 %v12424_v10, %v3984_v59  ;;  %8818 = vrot.lane.b32.xlu1 %v8817_v27, %s9547_s14  ;;  %5813 = vmatprep.subr.mxu0 %v14984_v20 }
 0x4fa   : > { %v9367_v31 = vpop.eup %9366  ;;  %v3986_v53 = vpop.f32.mrf.mxu1  ;;  %v12482_v23 = vld [vmem:[#allocation3 + $0x30] sm:$0xff]  ;;  %5814 = vmatpush2.msra.mxu0 %v5670_v30 }
 0x4fb   : > { %4364 = vst.msk [vmem:[#allocation3 + $0x49] sm:$0xff] %vm389_vm3, %v9367_v31  ;;  %v4210_v35 = vadd.f32 %v4209_v12, %v3985_v45  ;;  %v8822_v28 = vpack.i.bf16 %v4456_v60, %v12482_v23  ;;  %v4428_v5 = vld [vmem:[#allocation3 + $0x31] sm:$0xff]  ;;  %5815 = vmatprep.subr.mxu0 %v14984_v20 }
 0x4fc   : > { %v3989_v56 = vpop.f32.mrf.mxu1  ;;  %v8832_v34 = vpack.i.bf16 %v4488_v26, %v4428_v5 }
 0x4fd   : > { %9374 = vtanh.f32 %v4210_v35  ;;  %v3990_v58 = vadd.f32 %v12424_v10, %v3989_v56  ;;  %8823 = vrot.lane.b32.xlu1 %v8822_v28, %s9548_s17 }
 0x4fe   : > { %v9369_v17 = vpop.eup %9368  ;;  %v3991_v29 = vpop.f32.mrf.mxu1  ;;  %v12495_v55 = vld [vmem:[#allocation3 + $0x32] sm:$0xff]  ;;  %v12497_v40 = vld [vmem:[#allocation3 + $0x3a] sm:$0xff] }
 0x4ff   : > { %v12499_v47 = vld [vmem:[#allocation3 + $0x39] sm:$0xff]  ;;  %4365 = vst.msk [vmem:[#allocation3 + $0x51] sm:$0xff] %vm389_vm3, %v9369_v17  ;;  %v4215_v33 = vadd.f32 %v8222_v25, %v3990_v58  ;;  %8264 = vmatprep.mubr.msk.f32.mxu1 %vm389_vm3, %v12495_v55  ;;  %v8837_v54 = vpack.i.bf16 %v12495_v55, %v12492_v21  ;;  %v4229_v25 = vpop.f32.mrf.mxu0 }
 0x500   : > { %v8827_v3 = vpack.i.bf16 %v12499_v47, %v4428_v5  ;;  %v3994_v51 = vpop.f32.mrf.mxu1  ;;  %8265 = vmatmul.mubr.msk.f32.vlgmr.msra.gmra.mxu1 %vm389_vm3, %v12497_v40  ;;  %v12524_v24 = vld [vmem:[#allocation3 + $0x38] sm:$0xff]  ;;  %v8852_v59 = vpack.i.bf16 %v4489_v39, %v12499_v47 }
 0x501   : > { %9376 = vtanh.f32 %v4215_v33  ;;  %v3995_v4 = vadd.f32 %v12424_v10, %v3994_v51  ;;  %8838 = vrot.lane.b32.xlu1 %v8837_v54, %s9547_s14  ;;  %v8842_v16 = vpack.i.bf16 %v4457_v36, %v12524_v24  ;;  %v8231_v12 = vpop.f32.mrf.mxu0  ;;  %v5669_v29 = vld [vmem:[%s14659_s5 + $0xe8] sm:$0xff] }
 0x502   : > { %8828 = vrot.lane.b32.xlu0 %v8827_v3, %s9547_s14  ;;  %v9371_v0 = vpop.eup %9370  ;;  %v3996_v11 = vpop.f32.mrf.mxu1  ;;  %v12528_v44 = vld [vmem:[#allocation3 + $0x49] sm:$0xff]  ;;  %5816 = vmatpush2.msra.mxu0 %v5669_v29 }
 0x503   : > { %4366 = vst.msk [vmem:[#allocation3 + $0x61] sm:$0xff] %vm389_vm3, %v9371_v0  ;;  %v4220_v41 = vadd.f32 %v4219_v42, %v3995_v4  ;;  %v12548_v7 = vld [vmem:[#allocation3 + $0x48] sm:$0xff]  ;;  %v8862_v5 = vpack.i.bf16 %v12482_v23, %v12528_v44  ;;  %v4239_v23 = vpop.f32.mrf.mxu0  ;;  %v5668_v4 = vld [vmem:[%s14659_s5 + $0xe0] sm:$0xff]  ;;  %5817 = vmatprep.subr.mxu0 %v14984_v20 }
 0x504   : > { %v3999_v62 = vpop.f32.mrf.mxu1  ;;  %v8857_v27 = vpack.i.bf16 %v12557_v9, %v12548_v7  ;;  %5818 = vmatpush2.msra.mxu0 %v5668_v4 }
 0x505   : > { %9378 = vtanh.f32 %v4220_v41  ;;  %v4000_v8 = vadd.f32 %v12424_v10, %v3999_v62  ;;  %v8234_v26 = vpop.f32.mrf.mxu0  ;;  %5819 = vmatprep.subr.mxu0 %v14984_v20 }
 0x506   : > { %8833 = vrot.lane.b32.xlu0 %v8832_v34, %s9549_s27  ;;  %v9373_v52 = vpop.eup %9372  ;;  %v4001_v63 = vpop.f32.mrf.mxu1  ;;  %v12531_v13 = vld [vmem:[#allocation3 + $0x4a] sm:$0xff]  ;;  %v12533_v14 = vld [vmem:[#allocation3 + $0x52] sm:$0xff] }
 0x507   : > { %v12535_v37 = vld [vmem:[#allocation3 + $0x51] sm:$0xff]  ;;  %4367 = vst.msk [vmem:[#allocation3 + $0x69] sm:$0xff] %vm389_vm3, %v9373_v52  ;;  %v4225_v50 = vadd.f32 %v8225_v32, %v4000_v8  ;;  %8267 = vmatprep.mubr.msk.f32.mxu1 %vm389_vm3, %v12531_v13  ;;  %v8872_v38 = vpack.i.bf16 %v12531_v13, %v12497_v40 }
 0x508   : > { %v8847_v61 = vpack.i.bf16 %v12535_v37, %v12528_v44  ;;  %v4004_v15 = vpop.f32.mrf.mxu1  ;;  %8268 = vmatmul.mubr.msk.f32.gmra.mxu1 %vm389_vm3, %v12533_v14  ;;  %v12588_v32 = vld [vmem:[#allocation3 + $0x50] sm:$0xff]  ;;  %v8882_v36 = vpack.i.bf16 %v12524_v24, %v12535_v37  ;;  %v5667_v44 = vld [vmem:[%s14659_s5 + $0xd8] sm:$0xff]  ;;  %v5666_v24 = vld [vmem:[%s14659_s5 + $0xd0] sm:$0xff] }
 0x509   : > { %9380 = vtanh.f32 %v4225_v50  ;;  %v4005_v48 = vadd.f32 %v12424_v10, %v4004_v15  ;;  %v8877_v51 = vpack.i.bf16 %v12492_v21, %v12588_v32  ;;  %v4249_v50 = vpop.f32.mrf.mxu0  ;;  %5820 = vmatpush2.msra.mxu0 %v5667_v44 }
 0x50a   : > { %8843 = vrot.lane.b32.xlu0 %v8842_v16, %s9548_s17  ;;  %8848 = vrot.lane.b32.xlu1 %v8847_v61, %s9547_s14  ;;  %v9375_v18 = vpop.eup %9374  ;;  %v4006_v22 = vpop.f32.mrf.mxu1  ;;  %v12567_v45 = vld [vmem:[#allocation3 + $0x61] sm:$0xff] }
 0x50b   : > { %4368 = vst.msk [vmem:[#allocation3 + $0x79] sm:$0xff] %vm389_vm3, %v9375_v18  ;;  %v4230_v1 = vadd.f32 %v4229_v25, %v4005_v48  ;;  %v8897_v57 = vpack.i.bf16 %v12548_v7, %v12567_v45  ;;  %5821 = vmatprep.subr.mxu0 %v14984_v20  ;;  %v5665_v7 = vld [vmem:[%s14659_s5 + $0xc8] sm:$0xff]  ;;  %v8237_v22 = vpop.f32.mrf.mxu0 }
 0x50c   : > { %v4009_v60 = vpop.f32.mrf.mxu1  ;;  %5822 = vmatpush2.msra.mxu0 %v5666_v24 }
 0x50d   : > { %9382 = vtanh.f32 %v4230_v1  ;;  %v4010_v43 = vadd.f32 %v12424_v10, %v4009_v60  ;;  %5823 = vmatprep.subr.mxu0 %v14984_v20 }
 0x50e   : > { %8858 = vrot.lane.b32.xlu0 %v8857_v27, %s9548_s17  ;;  %8853 = vrot.lane.b32.xlu1 %v8852_v59, %s9549_s27  ;;  %v9377_v31 = vpop.eup %9376  ;;  %v4011_v53 = vpop.f32.mrf.mxu1  ;;  %v12572_v35 = vld [vmem:[#allocation3 + $0x62] sm:$0xff]  ;;  %v12574_v28 = vld [vmem:[#allocation3 + $0x6a] sm:$0xff] }
 0x50f   : > { %v12576_v56 = vld [vmem:[#allocation3 + $0x69] sm:$0xff]  ;;  %4369 = vst.msk [vmem:[#allocation3 + $0x81] sm:$0xff] %vm389_vm3, %v9377_v31  ;;  %v4235_v46 = vadd.f32 %v8228_v6, %v4010_v43  ;;  %8270 = vmatprep.mubr.msk.f32.mxu1 %vm389_vm3, %v12572_v35  ;;  %v12629_v6 = vld [vmem:[#allocation3 + $0x60] sm:$0xff]  ;;  %v8902_v43 = vpack.i.bf16 %v12572_v35, %v12533_v14  ;;  %5824 = vmatpush2.msra.mxu0 %v5665_v7 }
 0x510   : > { %v8867_v58 = vpack.i.bf16 %v12576_v56, %v12567_v45  ;;  %v4014_v17 = vpop.f32.mrf.mxu1  ;;  %8271 = vmatmul.mubr.msk.f32.gmra.mxu1 %vm389_vm3, %v12574_v28  ;;  %v8892_v15 = vpack.i.bf16 %v12495_v55, %v12629_v6  ;;  %v12668_v30 = vld [vmem:[#allocation3 + $0x68] sm:$0xff]  ;;  %v5664_v31 = vld [vmem:[%s14659_s5 + $0xc0] sm:$0xff]  ;;  %5825 = vmatprep.subr.mxu0 %v14984_v20  ;;  %v8917_v29 = vpack.i.bf16 %v12588_v32, %v12576_v56 }
 0x511   : > { %9384 = vtanh.f32 %v4235_v46  ;;  %v4015_v47 = vadd.f32 %v12424_v10, %v4014_v17  ;;  %v4259_v46 = vpop.f32.mrf.mxu0  ;;  %v8912_v17 = vpack.i.bf16 %v12497_v40, %v12668_v30  ;;  %5826 = vmatpush2.msra.mxu0 %v5664_v31 }
 0x512   : > { %8868 = vrot.lane.b32.xlu0 %v8867_v58, %s9547_s14  ;;  %8863 = vrot.lane.b32.xlu1 %v8862_v5, %s9549_s27  ;;  %v9379_v33 = vpop.eup %9378  ;;  %v4016_v54 = vpop.f32.mrf.mxu1  ;;  %v12609_v42 = vld [vmem:[#allocation3 + $0x79] sm:$0xff] }
 0x513   : > { %4370 = vst.msk [vmem:[#allocation3 + $0x91] sm:$0xff] %vm389_vm3, %v9379_v33  ;;  %v4240_v3 = vadd.f32 %v4239_v23, %v4015_v47  ;;  %v5663_v47 = vld [vmem:[%s14659_s5 + $0xb8] sm:$0xff]  ;;  %v12685_v23 = vld [vmem:[#allocation3 + $0x78] sm:$0xff]  ;;  %5827 = vmatprep.subr.mxu0 %v14984_v20  ;;  %v8240_v32 = vpop.f32.mrf.mxu0 }
 0x514   : > { %v4019_v2 = vpop.f32.mrf.mxu1  ;;  %5828 = vmatpush2.msra.mxu0 %v5663_v47 }
 0x515   : > { %9386 = vtanh.f32 %v4240_v3  ;;  %v4020_v0 = vadd.f32 %v12424_v10, %v4019_v2  ;;  %5829 = vmatprep.subr.mxu0 %v14984_v20 }
 0x516   : > { %8873 = vrot.lane.b32.xlu0 %v8872_v38, %s9547_s14  ;;  %8878 = vrot.lane.b32.xlu1 %v8877_v51, %s9548_s17  ;;  %v9381_v11 = vpop.eup %9380  ;;  %v4021_v21 = vpop.f32.mrf.mxu1  ;;  %v12611_v41 = vld [vmem:[#allocation3 + $0x7a] sm:$0xff]  ;;  %v12613_v34 = vld [vmem:[#allocation3 + $0x82] sm:$0xff] }
 0x517   : > { %v12615_v49 = vld [vmem:[#allocation3 + $0x81] sm:$0xff]  ;;  %4371 = vst.msk [vmem:[#allocation3 + $0x99] sm:$0xff] %vm389_vm3, %v9381_v11  ;;  %v4245_v62 = vadd.f32 %v8231_v12, %v4020_v0  ;;  %8273 = vmatprep.mubr.msk.f32.mxu1 %vm389_vm3, %v12611_v41  ;;  %v8922_v0 = vpack.i.bf16 %v12531_v13, %v12685_v23  ;;  %v5661_v13 = vld [vmem:[%s14659_s5 + $0xa8] sm:$0xff]  ;;  %v8942_v7 = vpack.i.bf16 %v12611_v41, %v12574_v28 }
 0x518   : > { %v8887_v8 = vpack.i.bf16 %v12615_v49, %v12609_v42  ;;  %v4024_v52 = vpop.f32.mrf.mxu1  ;;  %8274 = vmatmul.mubr.msk.f32.gmra.mxu1 %vm389_vm3, %v12613_v34 }
 0x519   : > { %9388 = vtanh.f32 %v4245_v62  ;;  %v4025_v63 = vadd.f32 %v12424_v10, %v4024_v52 }
 0x51a   : > { %8883 = vrot.lane.b32.xlu0 %v8882_v36, %s9549_s27  ;;  %8888 = vrot.lane.b32.xlu1 %v8887_v8, %s9547_s14  ;;  %v9383_v37 = vpop.eup %9382  ;;  %v4026_v16 = vpop.f32.mrf.mxu1  ;;  %v12647_v18 = vld [vmem:[#allocation3 + $0x91] sm:$0xff] }
 0x51b   : > { %4372 = vst.msk [vmem:[#allocation3 + $0xa9] sm:$0xff] %vm389_vm3, %v9383_v37  ;;  %v4250_v61 = vadd.f32 %v4249_v50, %v4025_v63  ;;  %v4269_v8 = vpop.f32.mrf.mxu0  ;;  %v8932_v37 = vpack.i.bf16 %v12629_v6, %v12609_v42  ;;  %v12726_v16 = vld [vmem:[#allocation3 + $0x80] sm:$0xff] }
 0x51c   : > { %v4029_v48 = vpop.f32.mrf.mxu1 }
 0x51d   : > { %9390 = vtanh.f32 %v4250_v61  ;;  %v4030_v19 = vadd.f32 %v12424_v10, %v4029_v48  ;;  %v5660_v61 = vld [vmem:[%s14659_s5 + $0xa0] sm:$0xff] }
 0x51e   : > { %8898 = vrot.lane.b32.xlu0 %v8897_v57, %s9549_s27  ;;  %8893 = vrot.lane.b32.xlu1 %v8892_v15, %s9548_s17  ;;  %v9385_v25 = vpop.eup %9384  ;;  %v4031_v55 = vpop.f32.mrf.mxu1  ;;  %v12652_v39 = vld [vmem:[#allocation3 + $0x92] sm:$0xff]  ;;  %v12654_v1 = vld [vmem:[#allocation3 + $0x9a] sm:$0xff] }
 0x51f   : > { %v12656_v27 = vld [vmem:[#allocation3 + $0x99] sm:$0xff]  ;;  %4373 = vst.msk [vmem:[#allocation3 + $0xb1] sm:$0xff] %vm389_vm3, %v9385_v25  ;;  %v4255_v59 = vadd.f32 %v8234_v26, %v4030_v19  ;;  %8276 = vmatprep.mubr.msk.f32.mxu1 %vm389_vm3, %v12652_v39  ;;  %v8243_v15 = vpop.f32.mrf.mxu0  ;;  %v8947_v25 = vpack.i.bf16 %v12533_v14, %v12726_v16 }
 0x520   : > { %v8907_v60 = vpack.i.bf16 %v12656_v27, %v12647_v18  ;;  %v4034_v45 = vpop.f32.mrf.mxu1  ;;  %8277 = vmatmul.mubr.msk.f32.gmra.mxu1 %vm389_vm3, %v12654_v1  ;;  %v5662_v26 = vld [vmem:[%s14659_s5 + $0xb0] sm:$0xff] }
 0x521   : > { %9392 = vtanh.f32 %v4255_v59  ;;  %v4035_v12 = vadd.f32 %v12424_v10, %v4034_v45  ;;  %5830 = vmatpush2.msra.mxu0 %v5662_v26  ;;  %v12751_v59 = vld [vmem:[#allocation3 + $0x90] sm:$0xff]  ;;  %v5658_v14 = vld [vmem:[%s14659_s5 + $0x90] sm:$0xff]  ;;  %v4279_v45 = vpop.f32.mrf.mxu0 }
 0x522   : > { %8908 = vrot.lane.b32.xlu0 %v8907_v60, %s9547_s14  ;;  %8903 = vrot.lane.b32.xlu1 %v8902_v43, %s9547_s14  ;;  %v9387_v53 = vpop.eup %9386  ;;  %v4036_v58 = vpop.f32.mrf.mxu1  ;;  %v12691_v40 = vld [vmem:[#allocation3 + $0xa9] sm:$0xff] }
 0x523   : > { %4374 = vst.msk [vmem:[#allocation3 + $0xc1] sm:$0xff] %vm389_vm3, %v9387_v53  ;;  %v4260_v5 = vadd.f32 %v4259_v46, %v4035_v12  ;;  %5831 = vmatprep.subr.mxu0 %v14984_v20  ;;  %v8952_v53 = vpack.i.bf16 %v12668_v30, %v12615_v49  ;;  %v8957_v46 = vpack.i.bf16 %v12572_v35, %v12751_v59  ;;  %v8246_v49 = vpop.f32.mrf.mxu0 }
 0x524   : > { %v4039_v33 = vpop.f32.mrf.mxu1  ;;  %5832 = vmatpush2.msra.mxu0 %v5661_v13 }
 0x525   : > { %9394 = vtanh.f32 %v4260_v5  ;;  %v4040_v54 = vadd.f32 %v12424_v10, %v4039_v33  ;;  %5833 = vmatprep.subr.mxu0 %v14984_v20 }
 0x526   : > { %8913 = vrot.lane.b32.xlu0 %v8912_v17, %s9548_s17  ;;  %8918 = vrot.lane.b32.xlu1 %v8917_v29, %s9549_s27  ;;  %v9389_v56 = vpop.eup %9388  ;;  %v4041_v3 = vpop.f32.mrf.mxu1  ;;  %v12693_v38 = vld [vmem:[#allocation3 + $0xaa] sm:$0xff]  ;;  %v12695_v51 = vld [vmem:[#allocation3 + $0xb2] sm:$0xff] }
 0x527   : > { %v12697_v4 = vld [vmem:[#allocation3 + $0xb1] sm:$0xff]  ;;  %4375 = vst.msk [vmem:[#allocation3 + $0xc9] sm:$0xff] %vm389_vm3, %v9389_v56  ;;  %v4265_v2 = vadd.f32 %v8237_v22, %v4040_v54  ;;  %8279 = vmatprep.mubr.msk.f32.mxu1 %vm389_vm3, %v12693_v38  ;;  %5834 = vmatpush2.msra.mxu0 %v5660_v61  ;;  %v5659_v22 = vld [vmem:[%s14659_s5 + $0x98] sm:$0xff]  ;;  %v8962_v54 = vpack.i.bf16 %v12685_v23, %v12647_v18  ;;  %v4289_v23 = vpop.f32.mrf.mxu0 }
 0x528   : > { %v8927_v11 = vpack.i.bf16 %v12697_v4, %v12691_v40  ;;  %v4044_v21 = vpop.f32.mrf.mxu1  ;;  %8280 = vmatmul.mubr.msk.f32.gmra.mxu1 %vm389_vm3, %v12695_v51  ;;  %5835 = vmatprep.subr.mxu0 %v14984_v20  ;;  %v5657_v17 = vld [vmem:[%s14659_s5 + $0x88] sm:$0xff]  ;;  %v8967_v56 = vpack.i.bf16 %v12652_v39, %v12613_v34  ;;  %v12818_v61 = vld [vmem:[#allocation3 + $0xb0] sm:$0xff] }
 0x529   : > { %9396 = vtanh.f32 %v4265_v2  ;;  %v4045_v62 = vadd.f32 %v12424_v10, %v4044_v21  ;;  %5836 = vmatpush2.msra.mxu0 %v5659_v22  ;;  %v12786_v3 = vld [vmem:[#allocation3 + $0x98] sm:$0xff]  ;;  %v5656_v2 = vld [vmem:[%s14659_s5 + $0x80] sm:$0xff] }
 0x52a   : > { %8923 = vrot.lane.b32.xlu0 %v8922_v0, %s9548_s17  ;;  %8928 = vrot.lane.b32.xlu1 %v8927_v11, %s9547_s14  ;;  %v9391_v36 = vpop.eup %9390  ;;  %v4046_v44 = vpop.f32.mrf.mxu1  ;;  %v12718_v52 = vld [vmem:[#allocation3 + $0xc1] sm:$0xff]  ;;  %v8972_v21 = vpack.i.bf16 %v12574_v28, %v12786_v3 }
 0x52b   : > { %4376 = vst.msk [vmem:[#allocation3 + $0xd9] sm:$0xff] %vm389_vm3, %v9391_v36  ;;  %v4270_v63 = vadd.f32 %v4269_v8, %v4045_v62  ;;  %v8937_v24 = vpack.i.bf16 %v12557_v9, %v12718_v52  ;;  %5837 = vmatprep.subr.mxu0 %v14984_v20  ;;  %v8977_v62 = vpack.i.bf16 %v12726_v16, %v12656_v27  ;;  %v12800_v36 = vld [vmem:[#allocation3 + $0xa8] sm:$0xff]  ;;  %v8249_v44 = vpop.f32.mrf.mxu0 }
 0x52c   : > { %v4049_v50 = vpop.f32.mrf.mxu1  ;;  %5838 = vmatpush2.msra.mxu0 %v5658_v14 }
 0x52d   : > { %9398 = vtanh.f32 %v4270_v63  ;;  %v4050_v57 = vadd.f32 %v12424_v10, %v4049_v50  ;;  %5839 = vmatprep.subr.mxu0 %v14984_v20  ;;  %v8987_v50 = vpack.i.bf16 %v12751_v59, %v12691_v40  ;;  %v8992_v40 = vpack.i.bf16 %v12693_v38, %v12654_v1 }
 0x52e   : > { %8938 = vrot.lane.b32.xlu0 %v8937_v24, %s9547_s14  ;;  %8933 = vrot.lane.b32.xlu1 %v8932_v37, %s9549_s27  ;;  %v9393_v9 = vpop.eup %9392  ;;  %v4051_v42 = vpop.f32.mrf.mxu1  ;;  %v12734_v6 = vld [vmem:[#allocation3 + $0xc2] sm:$0xff]  ;;  %v12736_v48 = vld [vmem:[#allocation3 + $0xca] sm:$0xff]  ;;  %v8982_v37 = vpack.i.bf16 %v12611_v41, %v12800_v36 }
 0x52f   : > { %4377 = vst.msk [vmem:[#allocation3 + $0xe1] sm:$0xff] %vm389_vm3, %v9393_v9  ;;  %v4275_v19 = vadd.f32 %v8240_v32, %v4050_v57  ;;  %8282 = vmatprep.mubr.msk.f32.mxu1 %vm389_vm3, %v12734_v6  ;;  %5840 = vmatpush2.msra.mxu0 %v5657_v17  ;;  %v9017_v17 = vpack.i.bf16 %v12734_v6, %v12695_v51 }
 0x530   : > { %v4054_v55 = vpop.f32.mrf.mxu1  ;;  %8283 = vmatmul.mubr.msk.f32.gmra.mxu1 %vm389_vm3, %v12736_v48  ;;  %5841 = vmatprep.subr.mxu0 %v14984_v20 }
 0x531   : > { %9400 = vtanh.f32 %v4275_v19  ;;  %v4055_v60 = vadd.f32 %v12424_v10, %v4054_v55  ;;  %5842 = vmatpush2.msra.mxu0 %v5656_v2  ;;  %v8997_v19 = vpack.i.bf16 %v12613_v34, %v12818_v61 }
 0x532   : > { %8943 = vrot.lane.b32.xlu0 %v8942_v7, %s9547_s14  ;;  %8948 = vrot.lane.b32.xlu1 %v8947_v25, %s9548_s17  ;;  %v9395_v43 = vpop.eup %9394  ;;  %v4056_v31 = vpop.f32.mrf.mxu1  ;;  %v12828_v25 = vld [vmem:[#allocation3 + $0xc0] sm:$0xff] }
 0x533   : > { %4378 = vst.msk [vmem:[#allocation3 + $0xf1] sm:$0xff] %vm389_vm3, %v9395_v43  ;;  %v4280_v12 = vadd.f32 %v4279_v45, %v4055_v60  ;;  %v9002_v45 = vpack.i.bf16 %v12786_v3, %v12697_v4  ;;  %v9007_v31 = vpack.i.bf16 %v12652_v39, %v12828_v25  ;;  %v9012_v39 = vpack.i.bf16 %v12800_v36, %v12718_v52 }
 0x534   : > { %v4059_v58 = vpop.f32.mrf.mxu1 }
 0x535   : > { %9402 = vtanh.f32 %v4280_v12  ;;  %v4060_v5 = vadd.f32 %v12424_v10, %v4059_v58 }
 0x536   : > { %8953 = vrot.lane.b32.xlu0 %v8952_v53, %s9549_s27  ;;  %8958 = vrot.lane.b32.xlu1 %v8957_v46, %s9548_s17  ;;  %v9397_v29 = vpop.eup %9396  ;;  %v4061_v30 = vpop.f32.mrf.mxu1  ;;  %v12772_v47 = vld [vmem:[#allocation3 + $0xda] sm:$0xff]  ;;  %v12774_v35 = vld [vmem:[#allocation3 + $0xe2] sm:$0xff] }
 0x537   : > { %4379 = vst.msk [vmem:[#allocation3 + $0xf9] sm:$0xff] %vm389_vm3, %v9397_v29  ;;  %v4285_v33 = vadd.f32 %v8243_v15, %v4060_v5  ;;  %8285 = vmatprep.mubr.msk.f32.mxu1 %vm389_vm3, %v12772_v47  ;;  %v4299_v15 = vpop.f32.mrf.mxu0  ;;  %v4597_v30 = vld [vmem:[#allocation3 + $0xc8] sm:$0xff] }
 0x538   : > { %v4064_v32 = vpop.f32.mrf.mxu1  ;;  %8286 = vmatmul.mubr.msk.f32.gmra.mxu1 %vm389_vm3, %v12774_v35 }
 0x539   : > { %9404 = vtanh.f32 %v4285_v33  ;;  %v4065_v0 = vadd.f32 %v12424_v10, %v4064_v32  ;;  %v8252_v59 = vpop.f32.mrf.mxu0  ;;  %v12854_v33 = vld [vmem:[#allocation3 + $0xc9] sm:$0xff] }
 0x53a   : > { %8963 = vrot.lane.b32.xlu0 %v8962_v54, %s9549_s27  ;;  %8968 = vrot.lane.b32.xlu1 %v8967_v56, %s9547_s14  ;;  %v9399_v18 = vpop.eup %9398  ;;  %v4066_v11 = vpop.f32.mrf.mxu1 }
 0x53b   : > { %4380 = vst.msk [vmem:[#allocation3 + $0x109] sm:$0xff] %vm389_vm3, %v9399_v18  ;;  %v4290_v26 = vadd.f32 %v4289_v23, %v4065_v0  ;;  %v4309_v58 = vpop.f32.mrf.mxu0  ;;  %v9022_v0 = vpack.i.bf16 %v12654_v1, %v4597_v30  ;;  %v9027_v18 = vpack.i.bf16 %v12818_v61, %v12854_v33 }
 0x53c   : > { %v4069_v13 = vpop.f32.mrf.mxu1 }
 0x53d   : > { %9406 = vtanh.f32 %v4290_v26  ;;  %v4070_v8 = vadd.f32 %v12424_v10, %v4069_v13  ;;  %v4598_v26 = vld [vmem:[#allocation3 + $0xd8] sm:$0xff] }
 0x53e   : > { %8973 = vrot.lane.b32.xlu0 %v8972_v21, %s9548_s17  ;;  %8978 = vrot.lane.b32.xlu1 %v8977_v62, %s9549_s27  ;;  %v9401_v20 = vpop.eup %9400  ;;  %v4071_v63 = vpop.f32.mrf.mxu1  ;;  %v12805_v24 = vld [vmem:[#allocation3 + $0xf2] sm:$0xff]  ;;  %v12807_v28 = vld [vmem:[#allocation3 + $0xfa] sm:$0xff] }
 0x53f   : > { %4381 = vst.msk [vmem:[#allocation3 + $0x111] sm:$0xff] %vm389_vm3, %v9401_v20  ;;  %v4295_v27 = vadd.f32 %v8246_v49, %v4070_v8  ;;  %8288 = vmatprep.mubr.msk.f32.mxu1 %vm389_vm3, %v12805_v24  ;;  %v8255_v49 = vpop.f32.mrf.mxu0  ;;  %v12871_v21 = vld [vmem:[#allocation3 + $0xd9] sm:$0xff]  ;;  %v9032_v8 = vpack.i.bf16 %v12693_v38, %v4598_v26 }
 0x540   : > { %v4074_v16 = vpop.f32.mrf.mxu1  ;;  %8289 = vmatmul.mubr.msk.f32.gmra.mxu1 %vm389_vm3, %v12807_v28  ;;  %v9037_v20 = vpack.i.bf16 %v12828_v25, %v12871_v21  ;;  %v4599_v63 = vld [vmem:[#allocation3 + $0xe0] sm:$0xff] }
 0x541   : > { %9408 = vtanh.f32 %v4295_v27  ;;  %v4075_v57 = vadd.f32 %v12424_v10, %v4074_v16  ;;  %v4319_v11 = vpop.f32.mrf.mxu0 }
 0x542   : > { %8983 = vrot.lane.b32.xlu0 %v8982_v37, %s9548_s17  ;;  %8988 = vrot.lane.b32.xlu1 %v8987_v50, %s9549_s27  ;;  %v9403_v9 = vpop.eup %9402  ;;  %v4076_v42 = vpop.f32.mrf.mxu1 }
 0x543   : > { %4382 = vst.msk [vmem:[#allocation3 + $0x121] sm:$0xff] %vm389_vm3, %v9403_v9  ;;  %v4300_v41 = vadd.f32 %v4299_v15, %v4075_v57  ;;  %v9042_v57 = vpack.i.bf16 %v12772_v47, %v12736_v48  ;;  %v4631_v9 = vld [vmem:[#allocation3 + $0xe1] sm:$0xff]  ;;  %v4600_v15 = vld [vmem:[#allocation3 + $0xf0] sm:$0xff] }
 0x544   : > { %v4079_v7 = vpop.f32.mrf.mxu1 }
 0x545   : > { %9410 = vtanh.f32 %v4300_v41  ;;  %v4080_v22 = vadd.f32 %v12424_v10, %v4079_v7  ;;  %v9052_v41 = vpack.i.bf16 %v4597_v30, %v4631_v9 }
 0x546   : > { %8993 = vrot.lane.b32.xlu0 %v8992_v40, %s9547_s14  ;;  %8998 = vrot.lane.b32.xlu1 %v8997_v19, %s9548_s17  ;;  %v9405_v55 = vpop.eup %9404  ;;  %v4081_v60 = vpop.f32.mrf.mxu1  ;;  %v12833_v14 = vld [vmem:[#allocation3 + $0x10a] sm:$0xff]  ;;  %v12835_v43 = vld [vmem:[#allocation3 + $0x112] sm:$0xff]  ;;  %v9057_v40 = vpack.i.bf16 %v12734_v6, %v4600_v15 }
 0x547   : > { %4383 = vst.msk [vmem:[#allocation3 + $0x129] sm:$0xff] %vm389_vm3, %v9405_v55  ;;  %v4305_v34 = vadd.f32 %v8249_v44, %v4080_v22  ;;  %8291 = vmatprep.mubr.msk.f32.mxu1 %vm389_vm3, %v12833_v14  ;;  %v4632_v19 = vld [vmem:[#allocation3 + $0xf1] sm:$0xff]  ;;  %v9067_v55 = vpack.i.bf16 %v12854_v33, %v12774_v35 }
 0x548   : > { %v4084_v12 = vpop.f32.mrf.mxu1  ;;  %8292 = vmatmul.mubr.msk.f32.gmra.mxu1 %vm389_vm3, %v12835_v43  ;;  %v9062_v22 = vpack.i.bf16 %v4598_v26, %v4632_v19  ;;  %v4601_v6 = vld [vmem:[#allocation3 + $0xf8] sm:$0xff] }
 0x549   : > { %9412 = vtanh.f32 %v4305_v34  ;;  %v4085_v53 = vadd.f32 %v12424_v10, %v4084_v12  ;;  %v9072_v34 = vpack.i.bf16 %v12736_v48, %v4601_v6 }
 0x54a   : > { %9003 = vrot.lane.b32.xlu0 %v9002_v45, %s9549_s27  ;;  %9008 = vrot.lane.b32.xlu1 %v9007_v31, %s9548_s17  ;;  %v9407_v46 = vpop.eup %9406  ;;  %v4086_v5 = vpop.f32.mrf.mxu1  ;;  %v4602_v31 = vld [vmem:[#allocation3 + $0x108] sm:$0xff] }
 0x54b   : > { %4384 = vst.msk [vmem:[#allocation3 + $0x139] sm:$0xff] %vm389_vm3, %v9407_v46  ;;  %v4310_v4 = vadd.f32 %v4309_v58, %v4085_v53  ;;  %v9082_v58 = vpack.i.bf16 %v12871_v21, %v12805_v24  ;;  %v9087_v48 = vpack.i.bf16 %v12772_v47, %v4602_v31  ;;  %v4634_v5 = vld [vmem:[#allocation3 + $0x109] sm:$0xff]  ;;  %v12937_v47 = vpop.permute.xlu0 %8813 }
 0x54c   : > { %v4089_v29 = vpop.f32.mrf.mxu1 }
 0x54d   : > { %9414 = vtanh.f32 %v4310_v4  ;;  %v4090_v54 = vadd.f32 %v12424_v10, %v4089_v29  ;;  %v4603_v29 = vld [vmem:[#allocation3 + $0x110] sm:$0xff] }
 0x54e   : > { %9013 = vrot.lane.b32.xlu0 %v9012_v39, %s9549_s27  ;;  %9018 = vrot.lane.b32.xlu1 %v9017_v17, %s9547_s14  ;;  %v9409_v56 = vpop.eup %9408  ;;  %v4091_v32 = vpop.f32.mrf.mxu1  ;;  %v12859_v3 = vld [vmem:[#allocation3 + $0x122] sm:$0xff]  ;;  %v12861_v52 = vld [vmem:[#allocation3 + $0x12a] sm:$0xff]  ;;  %v9092_v39 = vpack.i.bf16 %v4600_v15, %v4634_v5  ;;  %v9097_v17 = vpack.i.bf16 %v4631_v9, %v12807_v28 }
 0x54f   : > { %4385 = vst.msk [vmem:[#allocation3 + $0x141] sm:$0xff] %vm389_vm3, %v9409_v56  ;;  %v4315_v2 = vadd.f32 %v8252_v59, %v4090_v54  ;;  %8294 = vmatprep.mubr.msk.f32.mxu1 %vm389_vm3, %v12859_v3  ;;  %v4633_v59 = vld [vmem:[#allocation3 + $0xf9] sm:$0xff]  ;;  %v9102_v54 = vpack.i.bf16 %v12774_v35, %v4603_v29 }
 0x550   : > { %v4094_v23 = vpop.f32.mrf.mxu1  ;;  %8295 = vmatmul.mubr.msk.f32.gmra.mxu1 %vm389_vm3, %v12861_v52  ;;  %v9077_v45 = vpack.i.bf16 %v4599_v63, %v4633_v59  ;;  %v4604_v32 = vld [vmem:[#allocation3 + $0x120] sm:$0xff] }
 0x551   : > { %9416 = vtanh.f32 %v4315_v2  ;;  %v4095_v62 = vadd.f32 %v12424_v10, %v4094_v23  ;;  %v9117_v23 = vpack.i.bf16 %v12805_v24, %v4604_v32 }
 0x552   : > { %9023 = vrot.lane.b32.xlu0 %v9022_v0, %s9548_s17  ;;  %9028 = vrot.lane.b32.xlu1 %v9027_v18, %s9549_s27  ;;  %v9411_v13 = vpop.eup %9410  ;;  %v4096_v1 = vpop.f32.mrf.mxu1  ;;  %v9112_v18 = vpack.i.bf16 %v4632_v19, %v12833_v14 }
 0x553   : > { %4386 = vst.msk [vmem:[#allocation3 + $0x151] sm:$0xff] %vm389_vm3, %v9411_v13  ;;  %v4320_v36 = vadd.f32 %v4319_v11, %v4095_v62  ;;  %v4636_v11 = vld [vmem:[#allocation3 + $0x121] sm:$0xff]  ;;  %v9127_v62 = vpack.i.bf16 %v4633_v59, %v12835_v43  ;;  %v4637_v1 = vld [vmem:[#allocation3 + $0x129] sm:$0xff] }
 0x554   : > { %v4099_v44 = vpop.f32.mrf.mxu1  ;;  %v9122_v21 = vpack.i.bf16 %v4602_v31, %v4636_v11  ;;  %v4605_v13 = vld [vmem:[#allocation3 + $0x128] sm:$0xff] }
 0x555   : > { %9418 = vtanh.f32 %v4320_v36  ;;  %v4100_v27 = vadd.f32 %v12424_v10, %v4099_v44  ;;  %v9047_v10 = vpack.i.bf16 %v12695_v51, %v4599_v63  ;;  %v4606_v44 = vld [vmem:[#allocation3 + $0x138] sm:$0xff] }
 0x556   : > { %9033 = vrot.lane.b32.xlu0 %v9032_v8, %s9548_s17  ;;  %9038 = vrot.lane.b32.xlu1 %v9037_v20, %s9549_s27  ;;  %v9413_v37 = vpop.eup %9412  ;;  %v4101_v50 = vpop.f32.mrf.mxu1  ;;  %v12883_v16 = vld [vmem:[#allocation3 + $0x13a] sm:$0xff]  ;;  %v12885_v61 = vld [vmem:[#allocation3 + $0x142] sm:$0xff]  ;;  %v9132_v8 = vpack.i.bf16 %v12807_v28, %v4605_v13  ;;  %v9137_v20 = vpack.i.bf16 %v4603_v29, %v4637_v1 }
 0x557   : > { %4387 = vst.msk [vmem:[#allocation3 + $0x159] sm:$0xff] %vm389_vm3, %v9413_v37  ;;  %v4325_v38 = vadd.f32 %v8255_v49, %v4100_v27  ;;  %8297 = vmatprep.mubr.msk.f32.mxu1 %vm389_vm3, %v12883_v16  ;;  %v4635_v49 = vld [vmem:[#allocation3 + $0x111] sm:$0xff]  ;;  %v9142_v37 = vpack.i.bf16 %v4634_v5, %v12859_v3  ;;  %v9147_v50 = vpack.i.bf16 %v12833_v14, %v4606_v44  ;;  %v4607_v15 = vld [vmem:[#allocation3 + $0x140] sm:$0xff] }
 0x558   : > { %8298 = vmatmul.mubr.msk.f32.gmra.mxu1 %vm389_vm3, %v12885_v61  ;;  %v9107_v56 = vpack.i.bf16 %v4601_v6, %v4635_v49  ;;  %v9157_v9 = vpack.i.bf16 %v4635_v49, %v12861_v52  ;;  %v9172_v6 = vpack.i.bf16 %v4636_v11, %v12883_v16  ;;  %v9187_v31 = vpack.i.bf16 %v4637_v1, %v12885_v61 }
 0x559   : > { %9420 = vtanh.f32 %v4325_v38  ;;  %v4638_v38 = vld [vmem:[#allocation3 + $0x139] sm:$0xff] }
 0x55a   : > { %9043 = vrot.lane.b32.xlu0 %v9042_v57, %s9547_s14  ;;  %9048 = vrot.lane.b32.xlu1 %v9047_v10, %s9548_s17  ;;  %v9415_v42 = vpop.eup %9414  ;;  %v9152_v10 = vpack.i.bf16 %v4604_v32, %v4638_v38 }
 0x55b   : > { %4388 = vst.msk [vmem:[#allocation3 + $0x169] sm:$0xff] %vm389_vm3, %v9415_v42  ;;  %v4639_v42 = vld [vmem:[#allocation3 + $0x141] sm:$0xff] }
 0x55c   : > { %v9167_v19 = vpack.i.bf16 %v4605_v13, %v4639_v42  ;;  %v4392_v13 = vld [vmem:[#allocation3] sm:$0xff] }
 0x55e   : > { %9053 = vrot.lane.b32.xlu0 %v9052_v41, %s9549_s27  ;;  %9058 = vrot.lane.b32.xlu1 %v9057_v40, %s9548_s17  ;;  %v9417_v51 = vpop.eup %9416  ;;  %v12901_v7 = vld [vmem:[#allocation3 + $0x152] sm:$0xff]  ;;  %v12903_v25 = vld [vmem:[#allocation3 + $0x15a] sm:$0xff]  ;;  %v9162_v40 = vpack.i.bf16 %v12835_v43, %v4607_v15 }
 0x55f   : > { %4389 = vst.msk [vmem:[#allocation3 + $0x171] sm:$0xff] %vm389_vm3, %v9417_v51  ;;  %8300 = vmatprep.mubr.msk.f32.mxu1 %vm389_vm3, %v12901_v7  ;;  %v4608_v51 = vld [vmem:[#allocation3 + $0x150] sm:$0xff]  ;;  %v9217_v11 = vpack.i.bf16 %v4639_v42, %v12903_v25  ;;  %v4520_v42 = vld [vmem:[#allocation3 + $0x19] sm:$0xff] }
 0x560   : > { %8301 = vmatmul.mubr.msk.f32.gmra.mxu1 %vm389_vm3, %v12903_v25  ;;  %v9177_v59 = vpack.i.bf16 %v12859_v3, %v4608_v51 }
 0x562   : > { %9063 = vrot.lane.b32.xlu0 %v9062_v22, %s9549_s27  ;;  %9068 = vrot.lane.b32.xlu1 %v9067_v55, %s9547_s14  ;;  %v9419_v60 = vpop.eup %9418  ;;  %v13031_v32 = vld [vmem:[#allocation3 + $0x169] sm:$0xff] }
 0x563   : > { %4390 = vst.msk [vmem:[#allocation3 + $0x181] sm:$0xff] %vm389_vm3, %v9419_v60  ;;  %v13000_v60 = vld [vmem:[#allocation3 + $0x151] sm:$0xff] }
 0x566   : > { %9073 = vrot.lane.b32.xlu0 %v9072_v34, %s9548_s17  ;;  %9078 = vrot.lane.b32.xlu1 %v9077_v45, %s9549_s27  ;;  %v9421_v12 = vpop.eup %9420  ;;  %v12918_v53 = vld [vmem:[#allocation3 + $0x16a] sm:$0xff]  ;;  %v12920_v46 = vld [vmem:[#allocation3 + $0x172] sm:$0xff]  ;;  %v9182_v45 = vpack.i.bf16 %v4606_v44, %v13000_v60 }
 0x567   : > { %4391 = vst.msk [vmem:[#allocation3 + $0x189] sm:$0xff] %vm389_vm3, %v9421_v12  ;;  %8303 = vmatprep.mubr.msk.f32.mxu1 %vm389_vm3, %v12918_v53  ;;  %v4609_v12 = vld [vmem:[#allocation3 + $0x158] sm:$0xff] }
 0x568   : > { %8304 = vmatmul.mubr.msk.f32.gmra.mxu1 %vm389_vm3, %v12920_v46  ;;  %v9192_v5 = vpack.i.bf16 %v12861_v52, %v4609_v12 }
 0x56a   : > { %9083 = vrot.lane.b32.xlu0 %v9082_v58, %s9547_s14  ;;  %9088 = vrot.lane.b32.xlu1 %v9087_v48, %s9548_s17  ;;  %v13010_v58 = vld [vmem:[#allocation3 + $0x159] sm:$0xff] }
 0x56b   : > { %v12932_v4 = vpop.permute.xlu1 %8818 }
 0x56e   : > { %9093 = vrot.lane.b32.xlu0 %v9092_v39, %s9549_s27  ;;  %9098 = vrot.lane.b32.xlu1 %v9097_v17, %s9547_s14  ;;  %v12939_v30 = vld [vmem:[#allocation3 + $0x182] sm:$0xff]  ;;  %v12941_v33 = vld [vmem:[#allocation3 + $0x18a] sm:$0xff]  ;;  %v9197_v39 = vpack.i.bf16 %v4607_v15, %v13010_v58 }
 0x56f   : > { %8306 = vmatprep.mubr.msk.f32.mxu1 %vm389_vm3, %v12939_v30  ;;  %v12948_v2 = vpop.permute.xlu1 %8823  ;;  %v13020_v17 = vld [vmem:[#allocation3 + $0x168] sm:$0xff] }
 0x570   : > { %8307 = vmatmul.mubr.msk.f32.gmra.mxu1 %vm389_vm3, %v12941_v33 }
 0x572   : > { %9103 = vrot.lane.b32.xlu0 %v9102_v54, %s9548_s17  ;;  %9108 = vrot.lane.b32.xlu1 %v9107_v56, %s9549_s27  ;;  %v9202_v54 = vpack.i.bf16 %v4638_v38, %v12901_v7  ;;  %v9207_v56 = vpack.i.bf16 %v12883_v16, %v13020_v17  ;;  %v8815_v16 = vunpack.i.l.bf16 %v12937_v47  ;;  %v13057_v38 = vld [vmem:[#allocation3 + $0x180] sm:$0xff] }
 0x573   : > { %v12958_v35 = vpop.permute.xlu1 %8838 }
 0x574   : > { %v12952_v0 = vpop.permute.xlu0 %8828  ;;  %v8840_v15 = vunpack.i.l.bf16 %v12958_v35 }
 0x576   : > { %9113 = vrot.lane.b32.xlu0 %v9112_v18, %s9547_s14  ;;  %9118 = vrot.lane.b32.xlu1 %v9117_v23, %s9548_s17  ;;  %v9212_v23 = vpack.i.bf16 %v4608_v51, %v13031_v32 }
 0x578   : > { %v12960_v26 = vpop.permute.xlu0 %8833 }
 0x57a   : > { %9123 = vrot.lane.b32.xlu0 %v9122_v21, %s9549_s27  ;;  %9128 = vrot.lane.b32.xlu1 %v9127_v62, %s9547_s14  ;;  %v13041_v21 = vld [vmem:[#allocation3 + $0x170] sm:$0xff] }
 0x57b   : > { %v13043_v62 = vld [vmem:[#allocation3 + $0x171] sm:$0xff] }
 0x57c   : > { %v12965_v36 = vpop.permute.xlu0 %8843  ;;  %v12967_v24 = vpop.permute.xlu1 %8848  ;;  %v9227_v44 = vpack.i.bf16 %v4609_v12, %v13043_v62  ;;  %v9237_v12 = vpack.i.bf16 %v12901_v7, %v13057_v38 }
 0x57e   : > { %9133 = vrot.lane.b32.xlu0 %v9132_v8, %s9548_s17  ;;  %9138 = vrot.lane.b32.xlu1 %v9137_v20, %s9549_s27  ;;  %v9222_v20 = vpack.i.bf16 %v12885_v61, %v13041_v21  ;;  %v8836_v61 = vunpack.i.h.bf16 %v12960_v26 }
 0x580   : > { %v12972_v63 = vpop.permute.xlu0 %8858  ;;  %v12974_v27 = vpop.permute.xlu1 %8853 }
 0x582   : > { %9143 = vrot.lane.b32.xlu0 %v9142_v37, %s9547_s14  ;;  %9148 = vrot.lane.b32.xlu1 %v9147_v50, %s9548_s17  ;;  %v8826_v37 = vunpack.i.h.bf16 %v12948_v2 }
 0x584   : > { %v12980_v28 = vpop.permute.xlu0 %8868  ;;  %v12982_v57 = vpop.permute.xlu1 %8863 }
 0x586   : > { %9153 = vrot.lane.b32.xlu0 %v9152_v10, %s9549_s27  ;;  %9158 = vrot.lane.b32.xlu1 %v9157_v9, %s9547_s14  ;;  %v5448_v10 = vsel %vm389_vm3, %v4392_v13, %v8815_v16  ;;  %v8825_v9 = vunpack.i.l.bf16 %v12948_v2  ;;  %v8855_v2 = vunpack.i.l.bf16 %v12974_v27  ;;  %v13088_v16 = vld [vmem:[#allocation3 + $0x188] sm:$0xff]  ;;  %v8860_v13 = vunpack.i.l.bf16 %v12972_v63 }
 0x588   : > { %v12987_v41 = vpop.permute.xlu0 %8873  ;;  %v12989_v14 = vpop.permute.xlu1 %8878 }
 0x58a   : > { %9163 = vrot.lane.b32.xlu0 %v9162_v40, %s9548_s17  ;;  %9168 = vrot.lane.b32.xlu1 %v9167_v19, %s9549_s27  ;;  %v8845_v40 = vunpack.i.l.bf16 %v12965_v36  ;;  %v9232_v19 = vpack.i.bf16 %v13000_v60, %v12918_v53  ;;  %v4521_v60 = vld [vmem:[#allocation3 + $0x21] sm:$0xff] }
 0x58b   : > { %v5545_v7 = vsel %vm389_vm3, %v4521_v60, %v8840_v15  ;;  %v8876_v60 = vunpack.i.h.bf16 %v12987_v41 }
 0x58c   : > { %v12994_v22 = vpop.permute.xlu0 %8883  ;;  %v12996_v55 = vpop.permute.xlu1 %8888 }
 0x58e   : > { %9173 = vrot.lane.b32.xlu0 %v9172_v6, %s9547_s14  ;;  %9178 = vrot.lane.b32.xlu1 %v9177_v59, %s9548_s17  ;;  %v8835_v6 = vunpack.i.l.bf16 %v12960_v26  ;;  %v9247_v26 = vpack.i.bf16 %v13010_v58, %v12920_v46  ;;  %v4645_v58 = vld [vmem:[#allocation3 + $0x189] sm:$0xff] }
 0x590   : > { %v13004_v43 = vpop.permute.xlu0 %8898  ;;  %v13006_v34 = vpop.permute.xlu1 %8893 }
 0x592   : > { %9183 = vrot.lane.b32.xlu0 %v9182_v45, %s9549_s27  ;;  %9188 = vrot.lane.b32.xlu1 %v9187_v31, %s9547_s14 }
 0x594   : > { %v13014_v3 = vpop.permute.xlu0 %8908  ;;  %v13016_v48 = vpop.permute.xlu1 %8903 }
 0x596   : > { %9193 = vrot.lane.b32.xlu0 %v9192_v5, %s9548_s17  ;;  %9198 = vrot.lane.b32.xlu1 %v9197_v39, %s9549_s27  ;;  %v8816_v5 = vunpack.i.h.bf16 %v12937_v47  ;;  %v5480_v39 = vsel %vm3577_vm12, %v5448_v10, %v8826_v37  ;;  %v4393_v47 = vld [vmem:[#allocation3 + $0x8] sm:$0xff]  ;;  %v8875_v37 = vunpack.i.l.bf16 %v12987_v41 }
 0x598   : > { %v13024_v29 = vpop.permute.xlu0 %8913  ;;  %v13026_v49 = vpop.permute.xlu1 %8918 }
 0x59a   : > { %9203 = vrot.lane.b32.xlu0 %v9202_v54, %s9547_s14  ;;  %9208 = vrot.lane.b32.xlu1 %v9207_v56, %s9548_s17  ;;  %v4644_v54 = vld [vmem:[#allocation3 + $0x181] sm:$0xff]  ;;  %v8841_v56 = vunpack.i.h.bf16 %v12958_v35  ;;  %v5512_v35 = vsel %vm3610_vm13, %v5480_v39, %v8836_v61  ;;  %v4522_v61 = vld [vmem:[#allocation3 + $0x31] sm:$0xff] }
 0x59b   : > { %v9242_v15 = vpack.i.bf16 %v13020_v17, %v4644_v54  ;;  %v9257_v17 = vpack.i.bf16 %v13041_v21, %v4645_v58  ;;  %v4678_v39 = vld [vmem:[#allocation3 + $0x19a] sm:$0xff]  ;;  %v8885_v54 = vunpack.i.l.bf16 %v12994_v22 }
 0x59c   : > { %v13035_v52 = vpop.permute.xlu0 %8923  ;;  %v13037_v18 = vpop.permute.xlu1 %8928  ;;  %8309 = vmatprep.mubr.msk.f32.mxu1 %vm389_vm3, %v4678_v39  ;;  %v4646_v58 = vld [vmem:[#allocation3 + $0x199] sm:$0xff] }
 0x59d   : > { %v4615_v39 = vld [vmem:[#allocation3 + $0x1a0] sm:$0xff] }
 0x59e   : > { %9213 = vrot.lane.b32.xlu0 %v9212_v23, %s9549_s27  ;;  %9218 = vrot.lane.b32.xlu1 %v9217_v11, %s9547_s14  ;;  %v8846_v23 = vunpack.i.h.bf16 %v12965_v36  ;;  %v5577_v36 = vsel %vm3577_vm12, %v5545_v7, %v8845_v40  ;;  %v9252_v40 = vpack.i.bf16 %v12903_v25, %v13088_v16  ;;  %v8895_v7 = vunpack.i.l.bf16 %v13006_v34 }
 0x5a0   : > { %v13048_v1 = vpop.permute.xlu0 %8938  ;;  %v13050_v8 = vpop.permute.xlu1 %8933 }
 0x5a1   : > { %v8941_v50 = vunpack.i.h.bf16 %v13048_v1 }
 0x5a2   : > { %9223 = vrot.lane.b32.xlu0 %v9222_v20, %s9548_s17  ;;  %9228 = vrot.lane.b32.xlu1 %v9227_v44, %s9549_s27  ;;  %v8856_v20 = vunpack.i.h.bf16 %v12974_v27  ;;  %v8865_v44 = vunpack.i.l.bf16 %v12982_v57  ;;  %v8820_v27 = vunpack.i.l.bf16 %v12932_v4 }
 0x5a3   : > { %v5544_v51 = vsel %vm389_vm3, %v4520_v42, %v8941_v50  ;;  %v5449_v42 = vsel %vm389_vm3, %v4393_v47, %v8816_v5 }
 0x5a4   : > { %v13071_v59 = vpop.permute.xlu0 %8943  ;;  %v13073_v45 = vpop.permute.xlu1 %8948  ;;  %v5576_v31 = vsel %vm3577_vm12, %v5544_v51, %v8825_v9  ;;  %v5609_v9 = vsel %vm3610_vm13, %v5577_v36, %v8855_v2  ;;  %v5481_v51 = vsel %vm3577_vm12, %v5449_v42, %v8846_v23  ;;  %v4614_v2 = vld [vmem:[#allocation3 + $0x198] sm:$0xff] }
 0x5a5   : > { %v5608_v11 = vsel %vm3610_vm13, %v5576_v31, %v8835_v6  ;;  %v5546_v6 = vsel %vm389_vm3, %v4522_v61, %v8841_v56  ;;  %v8866_v31 = vunpack.i.h.bf16 %v12982_v57  ;;  %v5513_v5 = vsel %vm3610_vm13, %v5481_v51, %v8856_v20  ;;  %v4394_v57 = vld [vmem:[#allocation3 + $0x18] sm:$0xff] }
 0x5a6   : > { %9233 = vrot.lane.b32.xlu0 %v9232_v19, %s9547_s14  ;;  %9238 = vrot.lane.b32.xlu1 %v9237_v12, %s9548_s17  ;;  %v8861_v19 = vunpack.i.h.bf16 %v12972_v63  ;;  %v8880_v12 = vunpack.i.l.bf16 %v12989_v14  ;;  %v5578_v25 = vsel %vm3577_vm12, %v5546_v6, %v8860_v13  ;;  %v4523_v63 = vld [vmem:[#allocation3 + $0x39] sm:$0xff]  ;;  %v5450_v41 = vsel %vm389_vm3, %v4394_v57, %v8820_v27  ;;  %v4679_v13 = vld [vmem:[#allocation3 + $0x1a2] sm:$0xff]  ;;  %v4396_v6 = vld [vmem:[#allocation3 + $0x30] sm:$0xff] }
 0x5a7   : > { %5843 = vmatprep.mubr.f32.mxu0 %v5608_v11  ;;  %v5610_v21 = vsel %vm3610_vm13, %v5578_v25, %v8865_v44  ;;  %v5547_v23 = vsel %vm389_vm3, %v4523_v63, %v8875_v37  ;;  %v8821_v11 = vunpack.i.h.bf16 %v12932_v4  ;;  %v9267_v47 = vpack.i.bf16 %v12918_v53, %v4614_v2  ;;  %8310 = vmatmul.mubr.msk.f32.gmra.mxu1 %vm389_vm3, %v4679_v13  ;;  %v4525_v63 = vld [vmem:[#allocation3 + $0x51] sm:$0xff] }
 0x5a8   : > { %5844 = vmatmul.mubr.f32.vlgmr.msra.gmra.mxu0 %v5512_v35  ;;  %v13096_v50 = vpop.permute.xlu0 %8953  ;;  %v13098_v10 = vpop.permute.xlu1 %8958  ;;  %v8830_v20 = vunpack.i.l.bf16 %v12952_v0  ;;  %v8881_v35 = vunpack.i.h.bf16 %v12989_v14  ;;  %v5482_v36 = vsel %vm3577_vm12, %v5450_v41, %v8861_v19  ;;  %v9262_v4 = vpack.i.bf16 %v13031_v32, %v12939_v30  ;;  %v4395_v32 = vld [vmem:[#allocation3 + $0x20] sm:$0xff]  ;;  %8108 = vmatprep.subr.msk.mxu1 %vm389_vm3, %v4679_v13 }
 0x5a9   : > { %5848 = vmatprep.mubr.f32.mxu0 %v5609_v9  ;;  %v8886_v44 = vunpack.i.h.bf16 %v12994_v22  ;;  %v8896_v37 = vunpack.i.h.bf16 %v13006_v34  ;;  %v5514_v53 = vsel %vm3610_vm13, %v5482_v36, %v8866_v31  ;;  %v5579_v9 = vsel %vm3577_vm12, %v5547_v23, %v8880_v12 }
 0x5aa   : > { %9243 = vrot.lane.b32.xlu0 %v9242_v15, %s9549_s27  ;;  %9248 = vrot.lane.b32.xlu1 %v9247_v26, %s9547_s14  ;;  %v4524_v15 = vld [vmem:[#allocation3 + $0x49] sm:$0xff]  ;;  %v8900_v14 = vunpack.i.l.bf16 %v13004_v43  ;;  %v8905_v27 = vunpack.i.l.bf16 %v13016_v48  ;;  %v5611_v22 = vsel %vm3610_vm13, %v5579_v9, %v8885_v54  ;;  %v8915_v61 = vunpack.i.l.bf16 %v13024_v29 }
 0x5ab   : > { %v5548_v34 = vsel %vm389_vm3, %v4524_v15, %v8876_v60  ;;  %v9272_v51 = vpack.i.bf16 %v13057_v38, %v4646_v58  ;;  %v9277_v2 = vpack.i.bf16 %v13043_v62, %v12941_v33  ;;  %v5452_v31 = vsel %vm389_vm3, %v4396_v6, %v8830_v20  ;;  %v4647_v60 = vld [vmem:[#allocation3 + $0x1a1] sm:$0xff] }
 0x5ac   : > { %5849 = vmatmul.mubr.f32.gmra.mxu0 %v5513_v5  ;;  %v13118_v26 = vpop.permute.xlu0 %8963  ;;  %v13120_v56 = vpop.permute.xlu1 %8968  ;;  %v5580_v19 = vsel %vm3577_vm12, %v5548_v34, %v8895_v7  ;;  %v8831_v12 = vunpack.i.h.bf16 %v12952_v0  ;;  %v8901_v5 = vunpack.i.h.bf16 %v13004_v43  ;;  %v5484_v38 = vsel %vm3577_vm12, %v5452_v31, %v8896_v37  ;;  %v4397_v7 = vld [vmem:[#allocation3 + $0x38] sm:$0xff]  ;;  %v4526_v58 = vld [vmem:[#allocation3 + $0x61] sm:$0xff] }
 0x5ad   : > { %5853 = vmatprep.mubr.f32.mxu0 %v5610_v21  ;;  %v8916_v54 = vunpack.i.h.bf16 %v13024_v29  ;;  %v8920_v21 = vunpack.i.l.bf16 %v13026_v49  ;;  %v5612_v0 = vsel %vm3610_vm13, %v5580_v19, %v8900_v14  ;;  %v5549_v43 = vsel %vm389_vm3, %v4525_v63, %v8905_v27  ;;  %v4527_v27 = vld [vmem:[#allocation3 + $0x69] sm:$0xff] }
 0x5ae   : > { %9253 = vrot.lane.b32.xlu0 %v9252_v40, %s9548_s17  ;;  %9258 = vrot.lane.b32.xlu1 %v9257_v17, %s9549_s27  ;;  %v5451_v40 = vsel %vm389_vm3, %v4395_v32, %v8821_v11  ;;  %v5581_v62 = vsel %vm3577_vm12, %v5549_v43, %v8915_v61  ;;  %v8906_v23 = vunpack.i.h.bf16 %v13016_v48  ;;  %v9282_v29 = vpack.i.bf16 %v12920_v46, %v4615_v39 }
 0x5af   : > { %v5483_v17 = vsel %vm3577_vm12, %v5451_v40, %v8881_v35  ;;  %v9287_v11 = vpack.i.bf16 %v13088_v16, %v4647_v60  ;;  %v8921_v41 = vunpack.i.h.bf16 %v13026_v49  ;;  %v5516_v13 = vsel %vm3610_vm13, %v5484_v38, %v8901_v5  ;;  %v4398_v40 = vld [vmem:[#allocation3 + $0x48] sm:$0xff]  ;;  %v4399_v5 = vld [vmem:[#allocation3 + $0x50] sm:$0xff] }
 0x5b0   : > { %5854 = vmatmul.mubr.f32.gmra.mxu0 %v5514_v53  ;;  %v13143_v42 = vpop.permute.xlu0 %8973  ;;  %v13145_v30 = vpop.permute.xlu1 %8978  ;;  %v5515_v25 = vsel %vm3610_vm13, %v5483_v17, %v8886_v44  ;;  %v5453_v20 = vsel %vm389_vm3, %v4397_v7, %v8831_v12  ;;  %v8935_v35 = vunpack.i.l.bf16 %v13050_v8  ;;  %v8945_v48 = vunpack.i.l.bf16 %v13071_v59 }
 0x5b1   : > { %5858 = vmatprep.mubr.f32.mxu0 %v5611_v22  ;;  %v5613_v46 = vsel %vm3610_vm13, %v5581_v62, %v8920_v21  ;;  %v5485_v16 = vsel %vm3577_vm12, %v5453_v20, %v8916_v54  ;;  %v8850_v49 = vunpack.i.l.bf16 %v12967_v24  ;;  %v8926_v44 = vunpack.i.h.bf16 %v13035_v52  ;;  %v4528_v21 = vld [vmem:[#allocation3 + $0x79] sm:$0xff] }
 0x5b2   : > { %9263 = vrot.lane.b32.xlu0 %v9262_v4, %s9547_s14  ;;  %9268 = vrot.lane.b32.xlu1 %v9267_v47, %s9548_s17  ;;  %v8925_v47 = vunpack.i.l.bf16 %v13035_v52  ;;  %v5550_v37 = vsel %vm389_vm3, %v4526_v58, %v8906_v23  ;;  %v8936_v53 = vunpack.i.h.bf16 %v13050_v8  ;;  %v8950_v9 = vunpack.i.l.bf16 %v13073_v45 }
 0x5b3   : > { %v5517_v15 = vsel %vm3610_vm13, %v5485_v16, %v8921_v41  ;;  %v8851_v22 = vunpack.i.h.bf16 %v12967_v24  ;;  %v8955_v32 = vunpack.i.l.bf16 %v13096_v50  ;;  %v5551_v8 = vsel %vm389_vm3, %v4527_v27, %v8945_v48 }
 0x5b4   : > { %5859 = vmatmul.mubr.f32.gmra.mxu0 %v5515_v25  ;;  %v13166_v57 = vpop.permute.xlu0 %8983  ;;  %v13168_v33 = vpop.permute.xlu1 %8988  ;;  %v5582_v14 = vsel %vm3577_vm12, %v5550_v37, %v8925_v47  ;;  %v8951_v19 = vunpack.i.h.bf16 %v13073_v45  ;;  %v8946_v6 = vunpack.i.h.bf16 %v13071_v59  ;;  %v8956_v24 = vunpack.i.h.bf16 %v13096_v50  ;;  %v4529_v47 = vld [vmem:[#allocation3 + $0x81] sm:$0xff] }
 0x5b5   : > { %5863 = vmatprep.mubr.f32.mxu0 %v5612_v0  ;;  %v5614_v61 = vsel %vm3610_vm13, %v5582_v14, %v8935_v35  ;;  %v5583_v12 = vsel %vm3577_vm12, %v5551_v8, %v8950_v9  ;;  %v8965_v45 = vunpack.i.l.bf16 %v13118_v26  ;;  %v8970_v25 = vunpack.i.l.bf16 %v13120_v56  ;;  %v4400_v35 = vld [vmem:[#allocation3 + $0x60] sm:$0xff] }
 0x5b6   : > { %9273 = vrot.lane.b32.xlu0 %v9272_v51, %s9549_s27  ;;  %9278 = vrot.lane.b32.xlu1 %v9277_v2, %s9547_s14  ;;  %v5454_v51 = vsel %vm389_vm3, %v4398_v40, %v8850_v49  ;;  %v8960_v2 = vunpack.i.l.bf16 %v13098_v10  ;;  %v5615_v50 = vsel %vm3610_vm13, %v5583_v12, %v8955_v32  ;;  %v5455_v63 = vsel %vm389_vm3, %v4399_v5, %v8851_v22 }
 0x5b7   : > { %v5486_v17 = vsel %vm3577_vm12, %v5454_v51, %v8926_v44  ;;  %v8975_v60 = vunpack.i.l.bf16 %v13143_v42  ;;  %v5487_v54 = vsel %vm3577_vm12, %v5455_v63, %v8951_v19  ;;  %v8871_v0 = vunpack.i.h.bf16 %v12980_v28  ;;  %v4530_v44 = vld [vmem:[#allocation3 + $0x91] sm:$0xff] }
 0x5b8   : > { %5864 = vmatmul.mubr.f32.gmra.mxu0 %v5516_v13  ;;  %v13184_v36 = vpop.permute.xlu0 %8993  ;;  %v13186_v4 = vpop.permute.xlu1 %8998  ;;  %v5518_v31 = vsel %vm3610_vm13, %v5486_v17, %v8936_v53  ;;  %v8961_v43 = vunpack.i.h.bf16 %v13098_v10  ;;  %v5519_v62 = vsel %vm3610_vm13, %v5487_v54, %v8956_v24  ;;  %v5552_v23 = vsel %vm389_vm3, %v4528_v21, %v8946_v6  ;;  %v4402_v19 = vld [vmem:[#allocation3 + $0x78] sm:$0xff]  ;;  %v4403_v54 = vld [vmem:[#allocation3 + $0x80] sm:$0xff] }
 0x5b9   : > { %5868 = vmatprep.mubr.f32.mxu0 %v5613_v46  ;;  %v8976_v7 = vunpack.i.h.bf16 %v13143_v42  ;;  %v5584_v41 = vsel %vm3577_vm12, %v5552_v23, %v8960_v2  ;;  %v8980_v13 = vunpack.i.l.bf16 %v13145_v30  ;;  %v5553_v48 = vsel %vm389_vm3, %v4529_v47, %v8970_v25  ;;  %v4401_v46 = vld [vmem:[#allocation3 + $0x68] sm:$0xff]  ;;  %v4531_v17 = vld [vmem:[#allocation3 + $0x99] sm:$0xff] }
 0x5ba   : > { %9283 = vrot.lane.b32.xlu0 %v9282_v29, %s9548_s17  ;;  %9288 = vrot.lane.b32.xlu1 %v9287_v11, %s9549_s27  ;;  %v8966_v29 = vunpack.i.h.bf16 %v13118_v26  ;;  %v8971_v11 = vunpack.i.h.bf16 %v13120_v56  ;;  %v5616_v10 = vsel %vm3610_vm13, %v5584_v41, %v8965_v45  ;;  %v8985_v26 = vunpack.i.l.bf16 %v13166_v57 }
 0x5bb   : > { %v5585_v42 = vsel %vm3577_vm12, %v5553_v48, %v8975_v60  ;;  %v8890_v16 = vunpack.i.l.bf16 %v12996_v55  ;;  %v5457_v58 = vsel %vm389_vm3, %v4401_v46, %v8871_v0  ;;  %v8981_v37 = vunpack.i.h.bf16 %v13145_v30 }
 0x5bc   : > { %5869 = vmatmul.mubr.f32.gmra.mxu0 %v5517_v15  ;;  %v13201_v52 = vpop.permute.xlu0 %9003  ;;  %v13203_v34 = vpop.permute.xlu1 %9008  ;;  %v5489_v9 = vsel %vm3577_vm12, %v5457_v58, %v8976_v7  ;;  %v5554_v15 = vsel %vm389_vm3, %v4530_v44, %v8971_v11  ;;  %v8986_v14 = vunpack.i.h.bf16 %v13166_v57  ;;  %v8990_v27 = vunpack.i.l.bf16 %v13168_v33  ;;  %v4532_v11 = vld [vmem:[#allocation3 + $0xa9] sm:$0xff]  ;;  %v4405_v58 = vld [vmem:[#allocation3 + $0x98] sm:$0xff] }
 0x5bd   : > { %5873 = vmatprep.mubr.f32.mxu0 %v5614_v61  ;;  %v8995_v22 = vunpack.i.l.bf16 %v13184_v36  ;;  %v5617_v40 = vsel %vm3610_vm13, %v5585_v42, %v8980_v13  ;;  %v5586_v30 = vsel %vm3577_vm12, %v5554_v15, %v8985_v26  ;;  %v8891_v8 = vunpack.i.h.bf16 %v12996_v55 }
 0x5be   : > { %7187 = vrot.lane.b32.xlu0 %v4615_v39, %s9548_s17  ;;  %v8870_v39 = vunpack.i.l.bf16 %v12980_v28  ;;  %v8991_v51 = vunpack.i.h.bf16 %v13168_v33  ;;  %v9000_v57 = vunpack.i.l.bf16 %v13186_v4  ;;  %v5521_v6 = vsel %vm3610_vm13, %v5489_v9, %v8981_v37  ;;  %v4534_v9 = vld [vmem:[#allocation3 + $0xc1] sm:$0xff] }
 0x5bf   : > { %v5458_v24 = vsel %vm389_vm3, %v4402_v19, %v8890_v16  ;;  %v9005_v2 = vunpack.i.l.bf16 %v13201_v52  ;;  %v5618_v5 = vsel %vm3610_vm13, %v5586_v30, %v8990_v27  ;;  %v5555_v33 = vsel %vm389_vm3, %v4531_v17, %v8995_v22  ;;  %v4404_v16 = vld [vmem:[#allocation3 + $0x90] sm:$0xff] }
 0x5c0   : > { %5874 = vmatmul.mubr.f32.gmra.mxu0 %v5518_v31  ;;  %v13218_v38 = vpop.permute.xlu0 %9013  ;;  %v13220_v59 = vpop.permute.xlu1 %9018  ;;  %v5456_v56 = vsel %vm389_vm3, %v4400_v35, %v8870_v39  ;;  %v5490_v55 = vsel %vm3577_vm12, %v5458_v24, %v8986_v14  ;;  %v9001_v45 = vunpack.i.h.bf16 %v13186_v4  ;;  %v8996_v25 = vunpack.i.h.bf16 %v13184_v36 }
 0x5c1   : > { %5878 = vmatprep.mubr.f32.mxu0 %v5615_v50  ;;  %v5488_v49 = vsel %vm3577_vm12, %v5456_v56, %v8961_v43  ;;  %v9006_v50 = vunpack.i.h.bf16 %v13201_v52  ;;  %v9010_v63 = vunpack.i.l.bf16 %v13203_v34  ;;  %v5522_v39 = vsel %vm3610_vm13, %v5490_v55, %v8991_v51  ;;  %v4533_v56 = vld [vmem:[#allocation3 + $0xb1] sm:$0xff] }
 0x5c2   : > { %v5520_v53 = vsel %vm3610_vm13, %v5488_v49, %v8966_v29  ;;  %v5587_v60 = vsel %vm3577_vm12, %v5555_v33, %v9000_v57  ;;  %v9015_v21 = vunpack.i.l.bf16 %v13218_v38  ;;  %v9020_v0 = vunpack.i.l.bf16 %v13220_v59 }
 0x5c3   : > { %v5619_v36 = vsel %vm3610_vm13, %v5587_v60, %v9005_v2  ;;  %v5459_v52 = vsel %vm389_vm3, %v4403_v54, %v8891_v8  ;;  %v8911_v7 = vunpack.i.h.bf16 %v13014_v3  ;;  %v9011_v41 = vunpack.i.h.bf16 %v13203_v34 }
 0x5c4   : > { %5879 = vmatmul.mubr.f32.gmra.mxu0 %v5519_v62  ;;  %v13236_v20 = vpop.permute.xlu0 %9023  ;;  %v13238_v28 = vpop.permute.xlu1 %9028  ;;  %v8910_v62 = vunpack.i.l.bf16 %v13014_v3  ;;  %v5491_v29 = vsel %vm3577_vm12, %v5459_v52, %v9001_v45  ;;  %v5556_v13 = vsel %vm389_vm3, %v4532_v11, %v8996_v25  ;;  %v9021_v35 = vunpack.i.h.bf16 %v13220_v59 }
 0x5c5   : > { %5883 = vmatprep.mubr.f32.mxu0 %v5616_v10  ;;  %v9025_v23 = vunpack.i.l.bf16 %v13236_v20  ;;  %v5523_v47 = vsel %vm3610_vm13, %v5491_v29, %v9006_v50  ;;  %v9016_v10 = vunpack.i.h.bf16 %v13218_v38  ;;  %v9026_v48 = vunpack.i.h.bf16 %v13236_v20 }
 0x5c6   : > { %v5588_v26 = vsel %vm3577_vm12, %v5556_v13, %v9010_v63  ;;  %v9030_v42 = vunpack.i.l.bf16 %v13238_v28  ;;  %v5557_v49 = vsel %vm389_vm3, %v4533_v56, %v9020_v0  ;;  %v5460_v59 = vsel %vm389_vm3, %v4404_v16, %v8910_v62  ;;  %v4537_v56 = vld [vmem:[#allocation3 + $0xe1] sm:$0xff] }
 0x5c7   : > { %v5620_v34 = vsel %vm3610_vm13, %v5588_v26, %v9015_v21  ;;  %v5589_v20 = vsel %vm3577_vm12, %v5557_v49, %v9025_v23  ;;  %v8930_v44 = vunpack.i.l.bf16 %v13037_v18  ;;  %v5492_v37 = vsel %vm3577_vm12, %v5460_v59, %v9011_v41  ;;  %v4408_v49 = vld [vmem:[#allocation3 + $0xc0] sm:$0xff] }
 0x5c8   : > { %5884 = vmatmul.mubr.f32.gmra.mxu0 %v5520_v53  ;;  %v13255_v32 = vpop.permute.xlu0 %9033  ;;  %v13257_v61 = vpop.permute.xlu1 %9038  ;;  %v5461_v53 = vsel %vm389_vm3, %v4405_v58, %v8911_v7  ;;  %v9031_v15 = vunpack.i.h.bf16 %v13238_v28  ;;  %v5524_v14 = vsel %vm3610_vm13, %v5492_v37, %v9016_v10  ;;  %v5558_v22 = vsel %vm389_vm3, %v4534_v9, %v9021_v35  ;;  %v4536_v7 = vld [vmem:[#allocation3 + $0xd9] sm:$0xff] }
 0x5c9   : > { %5888 = vmatprep.mubr.f32.mxu0 %v5617_v40  ;;  %v9035_v38 = vunpack.i.l.bf16 %v13255_v32  ;;  %v5493_v27 = vsel %vm3577_vm12, %v5461_v53, %v9026_v48  ;;  %v9036_v40 = vunpack.i.h.bf16 %v13255_v32  ;;  %v9040_v30 = vunpack.i.l.bf16 %v13257_v61 }
 0x5ca   : > { %v5621_v57 = vsel %vm3610_vm13, %v5589_v20, %v9030_v42  ;;  %v9041_v24 = vunpack.i.h.bf16 %v13257_v61  ;;  %v5525_v32 = vsel %vm3610_vm13, %v5493_v27, %v9031_v15  ;;  %v8931_v63 = vunpack.i.h.bf16 %v13037_v18  ;;  %v4409_v20 = vld [vmem:[#allocation3 + $0xc8] sm:$0xff]  ;;  %v4538_v27 = vld [vmem:[#allocation3 + $0xf1] sm:$0xff] }
 0x5cb   : > { %v5590_v28 = vsel %vm3577_vm12, %v5558_v22, %v9035_v38 }
 0x5cc   : > { %5889 = vmatmul.mubr.f32.gmra.mxu0 %v5521_v6  ;;  %v13267_v31 = vpop.permute.xlu0 %9043  ;;  %v13269_v12 = vpop.permute.xlu1 %9048  ;;  %v4406_v6 = vld [vmem:[#allocation3 + $0xa8] sm:$0xff]  ;;  %v5622_v25 = vsel %vm3610_vm13, %v5590_v28, %v9040_v30 }
 0x5cd   : > { %5893 = vmatprep.mubr.f32.mxu0 %v5618_v5  ;;  %v9045_v8 = vunpack.i.l.bf16 %v13267_v31  ;;  %v9050_v17 = vunpack.i.l.bf16 %v13269_v12  ;;  %v5462_v2 = vsel %vm389_vm3, %v4406_v6, %v8930_v44  ;;  %v4535_v5 = vld [vmem:[#allocation3 + $0xc9] sm:$0xff]  ;;  %v9051_v60 = vunpack.i.h.bf16 %v13269_v12 }
 0x5ce   : > { %v5494_v50 = vsel %vm3577_vm12, %v5462_v2, %v9036_v40  ;;  %v4407_v12 = vld [vmem:[#allocation3 + $0xb0] sm:$0xff] }
 0x5cf   : > { %v5559_v61 = vsel %vm389_vm3, %v4535_v5, %v9045_v8  ;;  %v5526_v0 = vsel %vm3610_vm13, %v5494_v50, %v9041_v24  ;;  %v5463_v11 = vsel %vm389_vm3, %v4407_v12, %v8931_v63 }
 0x5d0   : > { %5894 = vmatmul.mubr.f32.gmra.mxu0 %v5522_v39  ;;  %v13282_v43 = vpop.permute.xlu0 %9053  ;;  %v13284_v4 = vpop.permute.xlu1 %9058  ;;  %v9046_v39 = vunpack.i.h.bf16 %v13267_v31  ;;  %v5495_v13 = vsel %vm3577_vm12, %v5463_v11, %v9051_v60 }
 0x5d1   : > { %5898 = vmatprep.mubr.f32.mxu0 %v5619_v36  ;;  %v9055_v55 = vunpack.i.l.bf16 %v13282_v43  ;;  %v9056_v54 = vunpack.i.h.bf16 %v13282_v43  ;;  %v9060_v21 = vunpack.i.l.bf16 %v13284_v4  ;;  %v5591_v36 = vsel %vm3577_vm12, %v5559_v61, %v9050_v17  ;;  %v4410_v17 = vld [vmem:[#allocation3 + $0xd8] sm:$0xff] }
 0x5d2   : > { %v8940_v43 = vunpack.i.l.bf16 %v13048_v1  ;;  %v9061_v41 = vunpack.i.h.bf16 %v13284_v4  ;;  %v5560_v10 = vsel %vm389_vm3, %v4536_v7, %v9046_v39 }
 0x5d3   : > { %v5623_v31 = vsel %vm3610_vm13, %v5591_v36, %v9055_v55  ;;  %v5527_v1 = vsel %vm3610_vm13, %v5495_v13, %v9056_v54  ;;  %v5592_v26 = vsel %vm3577_vm12, %v5560_v10, %v9060_v21  ;;  %v4411_v54 = vld [vmem:[#allocation3 + $0xe0] sm:$0xff] }
 0x5d4   : > { %5899 = vmatmul.mubr.f32.gmra.mxu0 %v5523_v47  ;;  %v13300_v46 = vpop.permute.xlu0 %9063  ;;  %v13302_v3 = vpop.permute.xlu1 %9068  ;;  %v5464_v38 = vsel %vm389_vm3, %v4408_v49, %v8940_v43 }
 0x5d5   : > { %5903 = vmatprep.mubr.f32.mxu0 %v5620_v34  ;;  %v9065_v52 = vunpack.i.l.bf16 %v13300_v46  ;;  %v9070_v62 = vunpack.i.l.bf16 %v13302_v3  ;;  %v9071_v47 = vunpack.i.h.bf16 %v13302_v3  ;;  %v9066_v35 = vunpack.i.h.bf16 %v13300_v46 }
 0x5d6   : > { %v5496_v44 = vsel %vm3577_vm12, %v5464_v38, %v9061_v41 }
 0x5d7   : > { %v5624_v16 = vsel %vm3610_vm13, %v5592_v26, %v9065_v52  ;;  %v5561_v46 = vsel %vm389_vm3, %v4537_v56, %v9070_v62  ;;  %v5465_v37 = vsel %vm389_vm3, %v4409_v20, %v9071_v47  ;;  %v5528_v15 = vsel %vm3610_vm13, %v5496_v44, %v9066_v35 }
 0x5d8   : > { %5904 = vmatmul.mubr.f32.gmra.mxu0 %v5524_v14  ;;  %v13319_v19 = vpop.permute.xlu0 %9073  ;;  %v13321_v51 = vpop.permute.xlu1 %9078 }
 0x5d9   : > { %5908 = vmatprep.mubr.f32.mxu0 %v5621_v57  ;;  %v9075_v29 = vunpack.i.l.bf16 %v13319_v19  ;;  %v9076_v48 = vunpack.i.h.bf16 %v13319_v19  ;;  %v9080_v42 = vunpack.i.l.bf16 %v13321_v51  ;;  %v9081_v58 = vunpack.i.h.bf16 %v13321_v51 }
 0x5db   : > { %v5593_v59 = vsel %vm3577_vm12, %v5561_v46, %v9075_v29  ;;  %v5497_v14 = vsel %vm3577_vm12, %v5465_v37, %v9076_v48  ;;  %v4412_v48 = vld [vmem:[#allocation3 + $0xf0] sm:$0xff] }
 0x5dc   : > { %5909 = vmatmul.mubr.f32.gmra.mxu0 %v5525_v32  ;;  %v13330_v33 = vpop.permute.xlu0 %9083  ;;  %v13332_v45 = vpop.permute.xlu1 %9088  ;;  %v5625_v19 = vsel %vm3610_vm13, %v5593_v59, %v9080_v42  ;;  %v5529_v24 = vsel %vm3610_vm13, %v5497_v14, %v9081_v58  ;;  %v4413_v58 = vld [vmem:[#allocation3 + $0xf8] sm:$0xff]  ;;  %v6358_v14 = vld [vmem:[#allocation3 + $0xa] sm:$0xff] }
 0x5dd   : > { %5913 = vmatprep.mubr.f32.mxu0 %v5622_v25  ;;  %v9085_v34 = vunpack.i.l.bf16 %v13330_v33  ;;  %v9086_v53 = vunpack.i.h.bf16 %v13330_v33  ;;  %v9090_v9 = vunpack.i.l.bf16 %v13332_v45  ;;  %v9091_v28 = vunpack.i.h.bf16 %v13332_v45  ;;  %v4539_v33 = vld [vmem:[#allocation3 + $0xf9] sm:$0xff] }
 0x5df   : > { %v5562_v51 = vsel %vm389_vm3, %v4538_v27, %v9085_v34  ;;  %v5466_v55 = vsel %vm389_vm3, %v4410_v17, %v9086_v53 }
 0x5e0   : > { %5914 = vmatmul.mubr.f32.gmra.mxu0 %v5526_v0  ;;  %v13346_v23 = vpop.permute.xlu0 %9093  ;;  %v13348_v18 = vpop.permute.xlu1 %9098  ;;  %v5594_v5 = vsel %vm3577_vm12, %v5562_v51, %v9090_v9  ;;  %v5498_v0 = vsel %vm3577_vm12, %v5466_v55, %v9091_v28 }
 0x5e1   : > { %5918 = vmatprep.mubr.f32.mxu0 %v5623_v31  ;;  %v9095_v22 = vunpack.i.l.bf16 %v13346_v23  ;;  %v9100_v40 = vunpack.i.l.bf16 %v13348_v18  ;;  %v9101_v6 = vunpack.i.h.bf16 %v13348_v18  ;;  %v9096_v32 = vunpack.i.h.bf16 %v13346_v23  ;;  %v4540_v31 = vld [vmem:[#allocation3 + $0x109] sm:$0xff] }
 0x5e3   : > { %v5626_v45 = vsel %vm3610_vm13, %v5594_v5, %v9095_v22  ;;  %v5563_v39 = vsel %vm389_vm3, %v4539_v33, %v9100_v40  ;;  %v5467_v36 = vsel %vm389_vm3, %v4411_v54, %v9101_v6  ;;  %v5530_v23 = vsel %vm3610_vm13, %v5498_v0, %v9096_v32  ;;  %v4414_v32 = vld [vmem:[#allocation3 + $0x108] sm:$0xff] }
 0x5e4   : > { %5919 = vmatmul.mubr.f32.gmra.mxu0 %v5527_v1  ;;  %v9104_v4 = vpop.permute.xlu0 %9103  ;;  %v13364_v3 = vpop.permute.xlu1 %9108  ;;  %v6326_v1 = vld [vmem:[#allocation3 + $0x9] sm:$0xff]  ;;  %v6325_v5 = vld [vmem:[#allocation3 + $0x1] sm:$0xff] }
 0x5e5   : > { %5923 = vmatprep.mubr.f32.mxu0 %v5624_v16  ;;  %v9105_v57 = vunpack.i.l.bf16 %v9104_v4  ;;  %v9106_v2 = vunpack.i.h.bf16 %v9104_v4  ;;  %v9110_v25 = vunpack.i.l.bf16 %v13364_v3  ;;  %v9111_v21 = vunpack.i.h.bf16 %v13364_v3  ;;  %v4541_v4 = vld [vmem:[#allocation3 + $0x111] sm:$0xff]  ;;  %6615 = vrot.lane.b32.xlu1 %v6326_v1, %s9547_s14  ;;  %v4543_v54 = vld [vmem:[#allocation3 + $0x129] sm:$0xff]  ;;  %v6547_v1 = vld [vmem:[#allocation3 + $0x199] sm:$0xff] }
 0x5e7   : > { %v5595_v60 = vsel %vm3577_vm12, %v5563_v39, %v9105_v57  ;;  %v5499_v18 = vsel %vm3577_vm12, %v5467_v36, %v9106_v2  ;;  %v6548_v2 = vld [vmem:[#allocation3 + $0x1a1] sm:$0xff]  ;;  %v4415_v36 = vld [vmem:[#allocation3 + $0x110] sm:$0xff] }
 0x5e8   : > { %5924 = vmatmul.mubr.f32.gmra.mxu0 %v5528_v15  ;;  %v9114_v30 = vpop.permute.xlu0 %9113  ;;  %v13379_v8 = vpop.permute.xlu1 %9118  ;;  %v5627_v7 = vsel %vm3610_vm13, %v5595_v60, %v9110_v25  ;;  %v5531_v35 = vsel %vm3610_vm13, %v5499_v18, %v9111_v21  ;;  %v4542_v15 = vld [vmem:[#allocation3 + $0x121] sm:$0xff]  ;;  %7315 = vrot.lane.b32.xlu0 %v6548_v2, %s9549_s27 }
 0x5e9   : > { %5928 = vmatprep.mubr.f32.mxu0 %v5625_v19  ;;  %v9115_v50 = vunpack.i.l.bf16 %v9114_v30  ;;  %v9116_v52 = vunpack.i.h.bf16 %v9114_v30  ;;  %v9120_v62 = vunpack.i.l.bf16 %v13379_v8  ;;  %v9121_v13 = vunpack.i.h.bf16 %v13379_v8  ;;  %6743 = vrot.lane.b32.xlu1 %v6358_v14, %s9548_s17 }
 0x5eb   : > { %v5564_v41 = vsel %vm389_vm3, %v4540_v31, %v9115_v50  ;;  %v5468_v34 = vsel %vm389_vm3, %v4412_v48, %v9116_v52  ;;  %v6515_v52 = vld [vmem:[#allocation3 + $0x198] sm:$0xff]  ;;  %v4416_v48 = vld [vmem:[#allocation3 + $0x120] sm:$0xff] }
 0x5ec   : > { %5929 = vmatmul.mubr.f32.gmra.mxu0 %v5529_v24  ;;  %v9124_v61 = vpop.permute.xlu0 %9123  ;;  %v9129_v63 = vpop.permute.xlu1 %9128  ;;  %v5596_v42 = vsel %vm3577_vm12, %v5564_v41, %v9120_v62  ;;  %v5500_v53 = vsel %vm3577_vm12, %v5468_v34, %v9121_v13  ;;  %v6357_v62 = vld [vmem:[#allocation3 + $0x2] sm:$0xff]  ;;  %7185 = vrot.lane.b32.xlu0 %v6515_v52, %s9548_s17 }
 0x5ed   : > { %5933 = vmatprep.mubr.f32.mxu0 %v5626_v45  ;;  %v9125_v12 = vunpack.i.l.bf16 %v9124_v61  ;;  %v9130_v43 = vunpack.i.l.bf16 %v9129_v63  ;;  %v9131_v10 = vunpack.i.h.bf16 %v9129_v63  ;;  %v9126_v26 = vunpack.i.h.bf16 %v9124_v61  ;;  %6613 = vrot.lane.b32.xlu1 %v6325_v5, %s9547_s14  ;;  %v4546_v5 = vld [vmem:[#allocation3 + $0x151] sm:$0xff] }
 0x5ef   : > { %v5628_v46 = vsel %vm3610_vm13, %v5596_v42, %v9125_v12  ;;  %v5565_v38 = vsel %vm389_vm3, %v4541_v4, %v9130_v43  ;;  %v5469_v9 = vsel %vm389_vm3, %v4413_v58, %v9131_v10  ;;  %v5532_v22 = vsel %vm3610_vm13, %v5500_v53, %v9126_v26 }
 0x5f0   : > { %5934 = vmatmul.mubr.f32.gmra.mxu0 %v5530_v23  ;;  %v9134_v29 = vpop.permute.xlu0 %9133  ;;  %v9139_v11 = vpop.permute.xlu1 %9138  ;;  %7313 = vrot.lane.b32.xlu0 %v6547_v1, %s9549_s27 }
 0x5f1   : > { %v9135_v47 = vunpack.i.l.bf16 %v9134_v29  ;;  %5938 = vmatprep.mubr.f32.mxu0 %v5627_v7  ;;  %v9136_v56 = vunpack.i.h.bf16 %v9134_v29  ;;  %v9140_v3 = vunpack.i.l.bf16 %v9139_v11  ;;  %v9141_v44 = vunpack.i.h.bf16 %v9139_v11  ;;  %6741 = vrot.lane.b32.xlu1 %v6357_v62, %s9548_s17 }
 0x5f3   : > { %v5597_v20 = vsel %vm3577_vm12, %v5565_v38, %v9135_v47  ;;  %v5501_v40 = vsel %vm3577_vm12, %v5469_v9, %v9136_v56 }
 0x5f4   : > { %5939 = vmatmul.mubr.f32.gmra.mxu0 %v5531_v35  ;;  %v9144_v16 = vpop.permute.xlu0 %9143  ;;  %v9149_v49 = vpop.permute.xlu1 %9148  ;;  %v5629_v51 = vsel %vm3610_vm13, %v5597_v20, %v9140_v3  ;;  %v5533_v24 = vsel %vm3610_vm13, %v5501_v40, %v9141_v44  ;;  %v4544_v35 = vld [vmem:[#allocation3 + $0x139] sm:$0xff] }
 0x5f5   : > { %v9145_v59 = vunpack.i.l.bf16 %v9144_v16  ;;  %5943 = vmatprep.mubr.f32.mxu0 %v5628_v46  ;;  %v9150_v37 = vunpack.i.l.bf16 %v9149_v49  ;;  %v9146_v27 = vunpack.i.h.bf16 %v9144_v16  ;;  %v9151_v28 = vunpack.i.h.bf16 %v9149_v49 }
 0x5f7   : > { %v5566_v30 = vsel %vm389_vm3, %v4542_v15, %v9145_v59  ;;  %v5470_v50 = vsel %vm389_vm3, %v4414_v32, %v9146_v27  ;;  %v4545_v27 = vld [vmem:[#allocation3 + $0x141] sm:$0xff] }
 0x5f8   : > { %5944 = vmatmul.mubr.f32.gmra.mxu0 %v5532_v22  ;;  %v9154_v8 = vpop.permute.xlu0 %9153  ;;  %v9159_v19 = vpop.permute.xlu1 %9158  ;;  %v5598_v17 = vsel %vm3577_vm12, %v5566_v30, %v9150_v37  ;;  %v5502_v21 = vsel %vm3577_vm12, %v5470_v50, %v9151_v28  ;;  %v4417_v22 = vld [vmem:[#allocation3 + $0x128] sm:$0xff] }
 0x5f9   : > { %v9155_v57 = vunpack.i.l.bf16 %v9154_v8  ;;  %5948 = vmatprep.mubr.f32.mxu0 %v5629_v51  ;;  %v9160_v6 = vunpack.i.l.bf16 %v9159_v19  ;;  %v9156_v55 = vunpack.i.h.bf16 %v9154_v8  ;;  %v9161_v33 = vunpack.i.h.bf16 %v9159_v19 }
 0x5fb   : > { %v5630_v25 = vsel %vm3610_vm13, %v5598_v17, %v9155_v57  ;;  %v5567_v0 = vsel %vm389_vm3, %v4543_v54, %v9160_v6  ;;  %v5534_v18 = vsel %vm3610_vm13, %v5502_v21, %v9156_v55  ;;  %v5471_v12 = vsel %vm389_vm3, %v4415_v36, %v9161_v33  ;;  %v4418_v55 = vld [vmem:[#allocation3 + $0x138] sm:$0xff] }
 0x5fc   : > { %5949 = vmatmul.mubr.f32.gmra.mxu0 %v5533_v24  ;;  %v9164_v61 = vpop.permute.xlu0 %9163  ;;  %v9169_v63 = vpop.permute.xlu1 %9168 }
 0x5fd   : > { %v9166_v45 = vunpack.i.h.bf16 %v9164_v61  ;;  %v9165_v39 = vunpack.i.l.bf16 %v9164_v61  ;;  %v9170_v60 = vunpack.i.l.bf16 %v9169_v63  ;;  %5953 = vmatprep.mubr.f32.mxu0 %v5630_v25  ;;  %v9171_v23 = vunpack.i.h.bf16 %v9169_v63 }
 0x5ff   : > { %v5599_v31 = vsel %vm3577_vm12, %v5567_v0, %v9165_v39  ;;  %v5503_v7 = vsel %vm3577_vm12, %v5471_v12, %v9166_v45 }
 0x600   : > { %5954 = vmatmul.mubr.f32.gmra.mxu0 %v5534_v18  ;;  %v9174_v43 = vpop.permute.xlu0 %9173  ;;  %v9179_v29 = vpop.permute.xlu1 %9178  ;;  %v5631_v11 = vsel %vm3610_vm13, %v5599_v31, %v9170_v60  ;;  %v5535_v26 = vsel %vm3610_vm13, %v5503_v7, %v9171_v23 }
 0x601   : > { %v9176_v41 = vunpack.i.h.bf16 %v9174_v43  ;;  %v9175_v47 = vunpack.i.l.bf16 %v9174_v43  ;;  %5958 = vmatprep.mubr.f32.mxu0 %v5631_v11  ;;  %v9181_v13 = vunpack.i.h.bf16 %v9179_v29  ;;  %v9180_v10 = vunpack.i.l.bf16 %v9179_v29  ;;  %v4547_v43 = vld [vmem:[#allocation3 + $0x159] sm:$0xff] }
 0x602   : > { %v4419_v29 = vld [vmem:[#allocation3 + $0x140] sm:$0xff] }
 0x603   : > { %v5568_v56 = vsel %vm389_vm3, %v4544_v35, %v9175_v47  ;;  %v5472_v42 = vsel %vm389_vm3, %v4416_v48, %v9176_v41 }
 0x604   : > { %5959 = vmatmul.mubr.f32.gmra.mxu0 %v5535_v26  ;;  %v9184_v34 = vpop.permute.xlu0 %9183  ;;  %v9189_v4 = vpop.permute.xlu1 %9188  ;;  %v5600_v38 = vsel %vm3577_vm12, %v5568_v56, %v9180_v10  ;;  %v5504_v59 = vsel %vm3577_vm12, %v5472_v42, %v9181_v13 }
 0x605   : > { %v9186_v3 = vunpack.i.h.bf16 %v9184_v34  ;;  %v9185_v16 = vunpack.i.l.bf16 %v9184_v34  ;;  %v9191_v49 = vunpack.i.h.bf16 %v9189_v4  ;;  %v9190_v46 = vunpack.i.l.bf16 %v9189_v4  ;;  %v4548_v34 = vld [vmem:[#allocation3 + $0x169] sm:$0xff] }
 0x606   : > { %v4420_v4 = vld [vmem:[#allocation3 + $0x150] sm:$0xff] }
 0x607   : > { %v5632_v20 = vsel %vm3610_vm13, %v5600_v38, %v9185_v16  ;;  %v5536_v58 = vsel %vm3610_vm13, %v5504_v59, %v9186_v3  ;;  %v5569_v40 = vsel %vm389_vm3, %v4545_v27, %v9190_v46  ;;  %v5473_v30 = vsel %vm389_vm3, %v4417_v22, %v9191_v49 }
 0x608   : > { %v9194_v44 = vpop.permute.xlu0 %9193  ;;  %v9199_v37 = vpop.permute.xlu1 %9198  ;;  %5963 = vmatprep.mubr.f32.mxu0 %v5632_v20 }
 0x609   : > { %v9196_v53 = vunpack.i.h.bf16 %v9194_v44  ;;  %v9195_v9 = vunpack.i.l.bf16 %v9194_v44  ;;  %v9201_v15 = vunpack.i.h.bf16 %v9199_v37  ;;  %v9200_v14 = vunpack.i.l.bf16 %v9199_v37  ;;  %5964 = vmatmul.mubr.f32.gmra.mxu0 %v5536_v58 }
 0x60b   : > { %v5601_v8 = vsel %vm3577_vm12, %v5569_v40, %v9195_v9  ;;  %v5505_v19 = vsel %vm3577_vm12, %v5473_v30, %v9196_v53 }
 0x60c   : > { %v9204_v51 = vpop.permute.xlu0 %9203  ;;  %v9209_v57 = vpop.permute.xlu1 %9208  ;;  %v5633_v28 = vsel %vm3610_vm13, %v5601_v8, %v9200_v14  ;;  %v5537_v6 = vsel %vm3610_vm13, %v5505_v19, %v9201_v15  ;;  %v4549_v8 = vld [vmem:[#allocation3 + $0x171] sm:$0xff] }
 0x60d   : > { %v9206_v24 = vunpack.i.h.bf16 %v9204_v51  ;;  %v9205_v17 = vunpack.i.l.bf16 %v9204_v51  ;;  %5968 = vmatprep.mubr.f32.mxu0 %v5633_v28  ;;  %v9211_v32 = vunpack.i.h.bf16 %v9209_v57  ;;  %v9210_v2 = vunpack.i.l.bf16 %v9209_v57  ;;  %v4421_v19 = vld [vmem:[#allocation3 + $0x158] sm:$0xff] }
 0x60e   : > { %5969 = vmatmul.mubr.f32.gmra.mxu0 %v5537_v6 }
 0x60f   : > { %v5570_v33 = vsel %vm389_vm3, %v4546_v5, %v9205_v17  ;;  %v5474_v25 = vsel %vm389_vm3, %v4418_v55, %v9206_v24 }
 0x610   : > { %v9214_v50 = vpop.permute.xlu0 %9213  ;;  %v9219_v61 = vpop.permute.xlu1 %9218  ;;  %v5602_v54 = vsel %vm3577_vm12, %v5570_v33, %v9210_v2  ;;  %v5506_v21 = vsel %vm3577_vm12, %v5474_v25, %v9211_v32 }
 0x611   : > { %v9216_v63 = vunpack.i.h.bf16 %v9214_v50  ;;  %v9215_v45 = vunpack.i.l.bf16 %v9214_v50  ;;  %v9221_v39 = vunpack.i.h.bf16 %v9219_v61  ;;  %v9220_v60 = vunpack.i.l.bf16 %v9219_v61  ;;  %v4550_v50 = vld [vmem:[#allocation3 + $0x181] sm:$0xff] }
 0x612   : > { %v4422_v61 = vld [vmem:[#allocation3 + $0x168] sm:$0xff] }
 0x613   : > { %v5634_v0 = vsel %vm3610_vm13, %v5602_v54, %v9215_v45  ;;  %v5538_v36 = vsel %vm3610_vm13, %v5506_v21, %v9216_v63  ;;  %v5571_v11 = vsel %vm389_vm3, %v4547_v43, %v9220_v60  ;;  %v5475_v7 = vsel %vm389_vm3, %v4419_v29, %v9221_v39 }
 0x614   : > { %v9224_v52 = vpop.permute.xlu0 %9223  ;;  %v9229_v62 = vpop.permute.xlu1 %9228  ;;  %5973 = vmatprep.mubr.f32.mxu0 %v5634_v0 }
 0x615   : > { %v9226_v23 = vunpack.i.h.bf16 %v9224_v52  ;;  %v9225_v18 = vunpack.i.l.bf16 %v9224_v52  ;;  %v9231_v31 = vunpack.i.h.bf16 %v9229_v62  ;;  %v9230_v12 = vunpack.i.l.bf16 %v9229_v62  ;;  %5974 = vmatmul.mubr.f32.gmra.mxu0 %v5538_v36 }
 0x617   : > { %v5603_v41 = vsel %vm3577_vm12, %v5571_v11, %v9225_v18  ;;  %v5507_v47 = vsel %vm3577_vm12, %v5475_v7, %v9226_v23 }
 0x618   : > { %v9234_v13 = vpop.permute.xlu0 %9233  ;;  %v9239_v10 = vpop.permute.xlu1 %9238  ;;  %v5635_v35 = vsel %vm3610_vm13, %v5603_v41, %v9230_v12  ;;  %v5539_v48 = vsel %vm3610_vm13, %v5507_v47, %v9231_v31  ;;  %v4551_v41 = vld [vmem:[#allocation3 + $0x189] sm:$0xff] }
 0x619   : > { %v9236_v1 = vunpack.i.h.bf16 %v9234_v13  ;;  %v9235_v26 = vunpack.i.l.bf16 %v9234_v13  ;;  %5978 = vmatprep.mubr.f32.mxu0 %v5635_v35  ;;  %v9241_v56 = vunpack.i.h.bf16 %v9239_v10  ;;  %v9240_v42 = vunpack.i.l.bf16 %v9239_v10  ;;  %v4423_v47 = vld [vmem:[#allocation3 + $0x170] sm:$0xff] }
 0x61a   : > { %5979 = vmatmul.mubr.f32.gmra.mxu0 %v5539_v48 }
 0x61b   : > { %v5572_v3 = vsel %vm389_vm3, %v4548_v34, %v9235_v26  ;;  %v5476_v16 = vsel %vm389_vm3, %v4420_v4, %v9236_v1 }
 0x61c   : > { %v9244_v49 = vpop.permute.xlu0 %9243  ;;  %v9249_v46 = vpop.permute.xlu1 %9248  ;;  %v5604_v44 = vsel %vm3577_vm12, %v5572_v3, %v9240_v42  ;;  %v5508_v37 = vsel %vm3577_vm12, %v5476_v16, %v9241_v56  ;;  %v13484_v42 = vld [vmem:[%s14660_s6] ss:$0 sm:$0xff] }
 0x61d   : > { %v9246_v38 = vunpack.i.h.bf16 %v9244_v49  ;;  %v9245_v59 = vunpack.i.l.bf16 %v9244_v49  ;;  %v9251_v20 = vunpack.i.h.bf16 %v9249_v46  ;;  %v9250_v58 = vunpack.i.l.bf16 %v9249_v46  ;;  %v8266_v56 = vpop.f32.mrf.mxu1 }
 0x61f   : > { %v5636_v53 = vsel %vm3610_vm13, %v5604_v44, %v9245_v59  ;;  %v5540_v9 = vsel %vm3610_vm13, %v5508_v37, %v9246_v38  ;;  %v5573_v51 = vsel %vm389_vm3, %v4549_v8, %v9250_v58  ;;  %v5477_v57 = vsel %vm389_vm3, %v4421_v19, %v9251_v20  ;;  %v6070_v3 = vpop.f32.mrf.mxu1 }
 0x620   : > { %v9254_v15 = vpop.permute.xlu0 %9253  ;;  %v9259_v14 = vpop.permute.xlu1 %9258  ;;  %5983 = vmatprep.mubr.f32.mxu0 %v5636_v53 }
 0x621   : > { %v9256_v27 = vunpack.i.h.bf16 %v9254_v15  ;;  %v9255_v22 = vunpack.i.l.bf16 %v9254_v15  ;;  %v9261_v40 = vunpack.i.h.bf16 %v9259_v14  ;;  %v9260_v30 = vunpack.i.l.bf16 %v9259_v14  ;;  %5984 = vmatmul.mubr.f32.gmra.mxu0 %v5540_v9  ;;  %v8269_v59 = vpop.f32.mrf.mxu1 }
 0x623   : > { %v5605_v28 = vsel %vm3577_vm12, %v5573_v51, %v9255_v22  ;;  %v5509_v6 = vsel %vm3577_vm12, %v5477_v57, %v9256_v27  ;;  %v6080_v53 = vpop.f32.mrf.mxu1 }
 0x624   : > { %v9264_v24 = vpop.permute.xlu0 %9263  ;;  %v9269_v17 = vpop.permute.xlu1 %9268  ;;  %v5637_v32 = vsel %vm3610_vm13, %v5605_v28, %v9260_v30  ;;  %v5541_v2 = vsel %vm3610_vm13, %v5509_v6, %v9261_v40 }
 0x625   : > { %v9266_v5 = vunpack.i.h.bf16 %v9264_v24  ;;  %v9265_v55 = vunpack.i.l.bf16 %v9264_v24  ;;  %5988 = vmatprep.mubr.f32.mxu0 %v5637_v32  ;;  %v9271_v33 = vunpack.i.h.bf16 %v9269_v17  ;;  %v9270_v25 = vunpack.i.l.bf16 %v9269_v17  ;;  %v8272_v22 = vpop.f32.mrf.mxu1 }
 0x626   : > { %5989 = vmatmul.mubr.f32.gmra.mxu0 %v5541_v2 }
 0x627   : > { %v5574_v63 = vsel %vm389_vm3, %v4550_v50, %v9265_v55  ;;  %v5478_v45 = vsel %vm389_vm3, %v4422_v61, %v9266_v5  ;;  %v6090_v57 = vpop.f32.mrf.mxu1 }
 0x628   : > { %v9274_v39 = vpop.permute.xlu0 %9273  ;;  %v9279_v60 = vpop.permute.xlu1 %9278  ;;  %v5606_v52 = vsel %vm3577_vm12, %v5574_v63, %v9270_v25  ;;  %v5510_v62 = vsel %vm3577_vm12, %v5478_v45, %v9271_v33 }
 0x629   : > { %v9276_v54 = vunpack.i.h.bf16 %v9274_v39  ;;  %v9275_v21 = vunpack.i.l.bf16 %v9274_v39  ;;  %v9281_v0 = vunpack.i.h.bf16 %v9279_v60  ;;  %v9280_v36 = vunpack.i.l.bf16 %v9279_v60  ;;  %v8275_v2 = vpop.f32.mrf.mxu1 }
 0x62b   : > { %v5638_v23 = vsel %vm3610_vm13, %v5606_v52, %v9275_v21  ;;  %v5542_v18 = vsel %vm3610_vm13, %v5510_v62, %v9276_v54  ;;  %v5575_v13 = vsel %vm389_vm3, %v4551_v41, %v9280_v36  ;;  %v5479_v10 = vsel %vm389_vm3, %v4423_v47, %v9281_v0  ;;  %v6100_v61 = vpop.f32.mrf.mxu1 }
 0x62c   : > { %v9284_v31 = vpop.permute.xlu0 %9283  ;;  %v9289_v12 = vpop.permute.xlu1 %9288  ;;  %5993 = vmatprep.mubr.f32.mxu0 %v5638_v23 }
 0x62d   : > { %v9286_v43 = vunpack.i.h.bf16 %v9284_v31  ;;  %v9285_v29 = vunpack.i.l.bf16 %v9284_v31  ;;  %v9291_v11 = vunpack.i.h.bf16 %v9289_v12  ;;  %v9290_v7 = vunpack.i.l.bf16 %v9289_v12  ;;  %5994 = vmatmul.mubr.f32.gmra.mxu0 %v5542_v18  ;;  %v8278_v0 = vpop.f32.mrf.mxu1 }
 0x62f   : > { %v5607_v35 = vsel %vm3577_vm12, %v5575_v13, %v9285_v29  ;;  %v5511_v48 = vsel %vm3577_vm12, %v5479_v10, %v9286_v43  ;;  %v6110_v43 = vpop.f32.mrf.mxu1 }
 0x630   : > { %v5639_v1 = vsel %vm3610_vm13, %v5607_v35, %v9290_v7  ;;  %v5543_v26 = vsel %vm3610_vm13, %v5511_v48, %v9291_v11 }
 0x631   : > { %5998 = vmatprep.mubr.f32.mxu0 %v5639_v1  ;;  %v8281_v35 = vpop.f32.mrf.mxu1 }
 0x632   : > { %5999 = vmatmul.mubr.f32.gmra.mxu0 %v5543_v26 }
 0x668   : > { %v5845_v34 = vpop.f32.mrf.mxu0 }
 0x669   : > { %v5846_v4 = vadd.f32 %v13484_v42, %v5845_v34 }
 0x66a   : > { %v5847_v16 = vpop.f32.mrf.mxu0 }
 0x66b   : > { %v6071_v49 = vadd.f32 %v6070_v3, %v5846_v4  ;;  %v6120_v3 = vpop.f32.mrf.mxu1 }
 0x66c   : > { %v5850_v46 = vpop.f32.mrf.mxu0 }
 0x66d   : > { %9422 = vtanh.f32 %v6071_v49  ;;  %v5851_v38 = vadd.f32 %v13484_v42, %v5850_v46 }
 0x66e   : > { %v5852_v20 = vpop.f32.mrf.mxu0 }
 0x66f   : > { %v6076_v58 = vadd.f32 %v8266_v56, %v5851_v38 }
 0x670   : > { %v5855_v44 = vpop.f32.mrf.mxu0 }
 0x671   : > { %9424 = vtanh.f32 %v6076_v58  ;;  %v5856_v37 = vadd.f32 %v13484_v42, %v5855_v44  ;;  %v8284_v58 = vpop.f32.mrf.mxu1 }
 0x672   : > { %v5857_v9 = vpop.f32.mrf.mxu0 }
 0x673   : > { %v6081_v15 = vadd.f32 %v6080_v53, %v5856_v37 }
 0x674   : > { %v5860_v14 = vpop.f32.mrf.mxu0 }
 0x675   : > { %9426 = vtanh.f32 %v6081_v15  ;;  %v5861_v27 = vadd.f32 %v13484_v42, %v5860_v14 }
 0x676   : > { %v5862_v40 = vpop.f32.mrf.mxu0 }
 0x677   : > { %v6086_v30 = vadd.f32 %v8269_v59, %v5861_v27 }
 0x678   : > { %v5865_v8 = vpop.f32.mrf.mxu0 }
 0x679   : > { %9428 = vtanh.f32 %v6086_v30  ;;  %v5866_v19 = vadd.f32 %v13484_v42, %v5865_v8 }
 0x67a   : > { %v9423_v51 = vpop.eup %9422  ;;  %v5867_v28 = vpop.f32.mrf.mxu0 }
 0x67b   : > { %6261 = vst.msk [vmem:[#allocation3 + $0x19] sm:$0xff] %vm389_vm3, %v9423_v51  ;;  %v6091_v6 = vadd.f32 %v6090_v57, %v5866_v19 }
 0x67c   : > { %v5870_v24 = vpop.f32.mrf.mxu0 }
 0x67d   : > { %9430 = vtanh.f32 %v6091_v6  ;;  %v5871_v17 = vadd.f32 %v13484_v42, %v5870_v24 }
 0x67e   : > { %v9425_v32 = vpop.eup %9424  ;;  %v5872_v5 = vpop.f32.mrf.mxu0 }
 0x67f   : > { %6262 = vst.msk [vmem:[#allocation3 + $0x21] sm:$0xff] %vm389_vm3, %v9425_v32  ;;  %v6096_v55 = vadd.f32 %v8272_v22, %v5871_v17  ;;  %v6130_v22 = vpop.f32.mrf.mxu1 }
 0x680   : > { %v5875_v33 = vpop.f32.mrf.mxu0 }
 0x681   : > { %9432 = vtanh.f32 %v6096_v55  ;;  %v5876_v25 = vadd.f32 %v13484_v42, %v5875_v33  ;;  %v8287_v28 = vpop.f32.mrf.mxu1 }
 0x682   : > { %v9427_v50 = vpop.eup %9426  ;;  %v5877_v63 = vpop.f32.mrf.mxu0  ;;  %v6327_v45 = vld [vmem:[#allocation3 + $0x19] sm:$0xff] }
 0x683   : > { %6263 = vst.msk [vmem:[#allocation3 + $0x31] sm:$0xff] %vm389_vm3, %v9427_v50  ;;  %v6101_v39 = vadd.f32 %v6100_v61, %v5876_v25  ;;  %6617 = vrot.lane.b32.xlu1 %v6327_v45, %s9547_s14  ;;  %v6389_v52 = vld [vmem:[#allocation3 + $0x18] sm:$0xff]  ;;  %v6140_v55 = vpop.f32.mrf.mxu1 }
 0x684   : > { %v5880_v60 = vpop.f32.mrf.mxu0 }
 0x685   : > { %9434 = vtanh.f32 %v6101_v39  ;;  %v5881_v54 = vadd.f32 %v13484_v42, %v5880_v60  ;;  %v8290_v39 = vpop.f32.mrf.mxu1 }
 0x686   : > { %v9429_v21 = vpop.eup %9428  ;;  %v5882_v36 = vpop.f32.mrf.mxu0  ;;  %v6454_v62 = vld [vmem:[#allocation3 + $0x22] sm:$0xff]  ;;  %v6453_v11 = vld [vmem:[#allocation3 + $0x1a] sm:$0xff] }
 0x687   : > { %6264 = vst.msk [vmem:[#allocation3 + $0x39] sm:$0xff] %vm389_vm3, %v9429_v21  ;;  %v6106_v23 = vadd.f32 %v8275_v2, %v5881_v54  ;;  %6869 = vrot.lane.b32.xlu1 %v6389_v52, %s9549_s27  ;;  %6999 = vrot.lane.b32.xlu0 %v6454_v62, %s9547_s14  ;;  %v6328_v7 = vld [vmem:[#allocation3 + $0x21] sm:$0xff] }
 0x688   : > { %v5885_v18 = vpop.f32.mrf.mxu0  ;;  %v6390_v53 = vld [vmem:[#allocation3 + $0x20] sm:$0xff] }
 0x689   : > { %9436 = vtanh.f32 %v6106_v23  ;;  %v5886_v31 = vadd.f32 %v13484_v42, %v5885_v18 }
 0x68a   : > { %v9431_v12 = vpop.eup %9430  ;;  %v5887_v29 = vpop.f32.mrf.mxu0  ;;  %v6485_v1 = vld [vmem:[#allocation3 + $0x30] sm:$0xff] }
 0x68b   : > { %6265 = vst.msk [vmem:[#allocation3 + $0x49] sm:$0xff] %vm389_vm3, %v9431_v12  ;;  %v6111_v41 = vadd.f32 %v6110_v43, %v5886_v31  ;;  %6997 = vrot.lane.b32.xlu0 %v6453_v11, %s9547_s14  ;;  %6619 = vrot.lane.b32.xlu1 %v6328_v7, %s9547_s14  ;;  %v6517_v49 = vld [vmem:[#allocation3 + $0x31] sm:$0xff] }
 0x68c   : > { %v5890_v47 = vpop.f32.mrf.mxu0 }
 0x68d   : > { %9438 = vtanh.f32 %v6111_v41  ;;  %v5891_v13 = vadd.f32 %v13484_v42, %v5890_v47 }
 0x68e   : > { %v9433_v10 = vpop.eup %9432  ;;  %v5892_v48 = vpop.f32.mrf.mxu0  ;;  %v13514_v37 = vld [vmem:[#allocation3 + $0x3a] sm:$0xff]  ;;  %v13521_v30 = vld [vmem:[#allocation3 + $0x32] sm:$0xff] }
 0x68f   : > { %6266 = vst.msk [vmem:[#allocation3 + $0x51] sm:$0xff] %vm389_vm3, %v9433_v10  ;;  %v6116_v26 = vadd.f32 %v8278_v0, %v5891_v13  ;;  %7125 = vrot.lane.b32.xlu0 %v6485_v1, %s9548_s17  ;;  %6747 = vrot.lane.b32.xlu1 %v6454_v62, %s9548_s17  ;;  %v6486_v24 = vld [vmem:[#allocation3 + $0x38] sm:$0xff]  ;;  %v6150_v62 = vpop.f32.mrf.mxu1 }
 0x690   : > { %v5895_v56 = vpop.f32.mrf.mxu0  ;;  %v6518_v25 = vld [vmem:[#allocation3 + $0x39] sm:$0xff] }
 0x691   : > { %9440 = vtanh.f32 %v6116_v26  ;;  %v5896_v34 = vadd.f32 %v13484_v42, %v5895_v56 }
 0x692   : > { %v9435_v4 = vpop.eup %9434  ;;  %v5897_v16 = vpop.f32.mrf.mxu0  ;;  %v6487_v54 = vld [vmem:[#allocation3 + $0x48] sm:$0xff] }
 0x693   : > { %6267 = vst.msk [vmem:[#allocation3 + $0x61] sm:$0xff] %vm389_vm3, %v9435_v4  ;;  %v6121_v46 = vadd.f32 %v6120_v3, %v5896_v34  ;;  %7253 = vrot.lane.b32.xlu0 %v6517_v49, %s9549_s27  ;;  %6745 = vrot.lane.b32.xlu1 %v6453_v11, %s9548_s17  ;;  %v6519_v18 = vld [vmem:[#allocation3 + $0x49] sm:$0xff]  ;;  %v8293_v11 = vpop.f32.mrf.mxu1 }
 0x694   : > { %v5900_v38 = vpop.f32.mrf.mxu0 }
 0x695   : > { %9442 = vtanh.f32 %v6121_v46  ;;  %v5901_v59 = vadd.f32 %v13484_v42, %v5900_v38  ;;  %v6160_v48 = vpop.f32.mrf.mxu1 }
 0x696   : > { %v9437_v20 = vpop.eup %9436  ;;  %v5902_v44 = vpop.f32.mrf.mxu0  ;;  %v13546_v41 = vld [vmem:[#allocation3 + $0x52] sm:$0xff]  ;;  %v13553_v26 = vld [vmem:[#allocation3 + $0x4a] sm:$0xff] }
 0x697   : > { %6268 = vst.msk [vmem:[#allocation3 + $0x69] sm:$0xff] %vm389_vm3, %v9437_v20  ;;  %v6126_v9 = vadd.f32 %v8281_v35, %v5901_v59  ;;  %7003 = vrot.lane.b32.xlu0 %v13514_v37, %s9547_s14  ;;  %6871 = vrot.lane.b32.xlu1 %v6390_v53, %s9549_s27  ;;  %v8296_v16 = vpop.f32.mrf.mxu1  ;;  %v6488_v46 = vld [vmem:[#allocation3 + $0x50] sm:$0xff] }
 0x698   : > { %v5905_v15 = vpop.f32.mrf.mxu0 }
 0x699   : > { %9444 = vtanh.f32 %v6126_v9  ;;  %v5906_v14 = vadd.f32 %v13484_v42, %v5905_v15  ;;  %v6170_v44 = vpop.f32.mrf.mxu1  ;;  %v6520_v9 = vld [vmem:[#allocation3 + $0x51] sm:$0xff] }
 0x69a   : > { %v9439_v27 = vpop.eup %9438  ;;  %v5907_v40 = vpop.f32.mrf.mxu0 }
 0x69b   : > { %6269 = vst.msk [vmem:[#allocation3 + $0x79] sm:$0xff] %vm389_vm3, %v9439_v27  ;;  %v6131_v8 = vadd.f32 %v6130_v22, %v5906_v14  ;;  %7001 = vrot.lane.b32.xlu0 %v13521_v30, %s9547_s14  ;;  %6621 = vrot.lane.b32.xlu1 %v6517_v49, %s9547_s14  ;;  %v8299_v40 = vpop.f32.mrf.mxu1 }
 0x69c   : > { %v5910_v19 = vpop.f32.mrf.mxu0 }
 0x69d   : > { %9446 = vtanh.f32 %v6131_v8  ;;  %v5911_v51 = vadd.f32 %v13484_v42, %v5910_v19  ;;  %v6489_v19 = vld [vmem:[#allocation3 + $0x60] sm:$0xff] }
 0x69e   : > { %v9441_v57 = vpop.eup %9440  ;;  %v5912_v6 = vpop.f32.mrf.mxu0 }
 0x69f   : > { %6270 = vst.msk [vmem:[#allocation3 + $0x81] sm:$0xff] %vm389_vm3, %v9441_v57  ;;  %v6136_v17 = vadd.f32 %v8284_v58, %v5911_v51  ;;  %7127 = vrot.lane.b32.xlu0 %v6486_v24, %s9548_s17  ;;  %6873 = vrot.lane.b32.xlu1 %v6485_v1, %s9549_s27 }
 0x6a0   : > { %v5915_v32 = vpop.f32.mrf.mxu0 }
 0x6a1   : > { %9448 = vtanh.f32 %v6136_v17  ;;  %v5916_v2 = vadd.f32 %v13484_v42, %v5915_v32  ;;  %v6521_v32 = vld [vmem:[#allocation3 + $0x61] sm:$0xff] }
 0x6a2   : > { %v9443_v5 = vpop.eup %9442  ;;  %v5917_v33 = vpop.f32.mrf.mxu0 }
 0x6a3   : > { %6271 = vst.msk [vmem:[#allocation3 + $0x91] sm:$0xff] %vm389_vm3, %v9443_v5  ;;  %v6141_v50 = vadd.f32 %v6140_v55, %v5916_v2  ;;  %7255 = vrot.lane.b32.xlu0 %v6518_v25, %s9549_s27  ;;  %6623 = vrot.lane.b32.xlu1 %v6518_v25, %s9547_s14 }
 0x6a4   : > { %v5920_v61 = vpop.f32.mrf.mxu0 }
 0x6a5   : > { %9450 = vtanh.f32 %v6141_v50  ;;  %v5921_v63 = vadd.f32 %v13484_v42, %v5920_v61 }
 0x6a6   : > { %v9445_v45 = vpop.eup %9444  ;;  %v5922_v60 = vpop.f32.mrf.mxu0 }
 0x6a7   : > { %6272 = vst.msk [vmem:[#allocation3 + $0x99] sm:$0xff] %vm389_vm3, %v9445_v45  ;;  %v6146_v21 = vadd.f32 %v8287_v28, %v5921_v63  ;;  %6751 = vrot.lane.b32.xlu1 %v13514_v37, %s9548_s17  ;;  %7129 = vrot.lane.b32.xlu0 %v6487_v54, %s9548_s17  ;;  %v13581_v45 = vld [vmem:[#allocation3 + $0x6a] sm:$0xff] }
 0x6a8   : > { %v5925_v0 = vpop.f32.mrf.mxu0 }
 0x6a9   : > { %9452 = vtanh.f32 %v6146_v21  ;;  %v5926_v36 = vadd.f32 %v13484_v42, %v5925_v0 }
 0x6aa   : > { %v9447_v52 = vpop.eup %9446  ;;  %v5927_v23 = vpop.f32.mrf.mxu0 }
 0x6ab   : > { %6273 = vst.msk [vmem:[#allocation3 + $0xa9] sm:$0xff] %vm389_vm3, %v9447_v52  ;;  %v6151_v31 = vadd.f32 %v6150_v62, %v5926_v36  ;;  %6749 = vrot.lane.b32.xlu1 %v13521_v30, %s9548_s17  ;;  %7257 = vrot.lane.b32.xlu0 %v6519_v18, %s9549_s27  ;;  %v13589_v52 = vld [vmem:[#allocation3 + $0x62] sm:$0xff] }
 0x6ac   : > { %v5930_v12 = vpop.f32.mrf.mxu0 }
 0x6ad   : > { %9454 = vtanh.f32 %v6151_v31  ;;  %v5931_v43 = vadd.f32 %v13484_v42, %v5930_v12 }
 0x6ae   : > { %v9449_v29 = vpop.eup %9448  ;;  %v5932_v7 = vpop.f32.mrf.mxu0 }
 0x6af   : > { %6274 = vst.msk [vmem:[#allocation3 + $0xb1] sm:$0xff] %vm389_vm3, %v9449_v29  ;;  %v6156_v47 = vadd.f32 %v8290_v39, %v5931_v43  ;;  %6875 = vrot.lane.b32.xlu1 %v6486_v24, %s9549_s27  ;;  %7007 = vrot.lane.b32.xlu0 %v13546_v41, %s9547_s14  ;;  %v6180_v24 = vpop.f32.mrf.mxu1  ;;  %v9516_v39 = vld [vmem:[#allocation3 + $0x19a] sm:$0xff]  ;;  %v13596_v43 = vld [vmem:[#allocation3 + $0x68] sm:$0xff] }
 0x6b0   : > { %v5935_v13 = vpop.f32.mrf.mxu0  ;;  %15035 = vst [vmem:[#allocation7_spill] sm:$0xff] %v13596_v43 }
 0x6b1   : > { %9456 = vtanh.f32 %v6156_v47  ;;  %v5936_v10 = vadd.f32 %v13484_v42, %v5935_v13  ;;  %v8302_v61 = vpop.f32.mrf.mxu1  ;;  %v13601_v47 = vld [vmem:[#allocation3 + $0x69] sm:$0xff] }
 0x6b2   : > { %v9451_v35 = vpop.eup %9450  ;;  %v5937_v1 = vpop.f32.mrf.mxu0  ;;  %15036 = vst [vmem:[#allocation9_spill] sm:$0xff] %v13601_v47 }
 0x6b3   : > { %6275 = vst.msk [vmem:[#allocation3 + $0xc1] sm:$0xff] %vm389_vm3, %v9451_v35  ;;  %v6161_v56 = vadd.f32 %v6160_v48, %v5936_v10  ;;  %7005 = vrot.lane.b32.xlu0 %v13553_v26, %s9547_s14  ;;  %6625 = vrot.lane.b32.xlu1 %v6519_v18, %s9547_s14  ;;  %v6190_v36 = vpop.f32.mrf.mxu1 }
 0x6b4   : > { %v5940_v34 = vpop.f32.mrf.mxu0 }
 0x6b5   : > { %9458 = vtanh.f32 %v6161_v56  ;;  %v5941_v4 = vadd.f32 %v13484_v42, %v5940_v34  ;;  %v8305_v13 = vpop.f32.mrf.mxu1  ;;  %v13610_v56 = vld [vmem:[#allocation3 + $0x78] sm:$0xff] }
 0x6b6   : > { %v9453_v3 = vpop.eup %9452  ;;  %v5942_v49 = vpop.f32.mrf.mxu0  ;;  %15037 = vst [vmem:[#allocation63_spill] sm:$0xff] %v13610_v56 }
 0x6b7   : > { %6276 = vst.msk [vmem:[#allocation3 + $0xc9] sm:$0xff] %vm389_vm3, %v9453_v3  ;;  %v6166_v38 = vadd.f32 %v8293_v11, %v5941_v4  ;;  %7131 = vrot.lane.b32.xlu0 %v6488_v46, %s9548_s17  ;;  %6877 = vrot.lane.b32.xlu1 %v6487_v54, %s9549_s27  ;;  %v6200_v1 = vpop.f32.mrf.mxu1 }
 0x6b8   : > { %v5945_v59 = vpop.f32.mrf.mxu0 }
 0x6b9   : > { %9460 = vtanh.f32 %v6166_v38  ;;  %v5946_v20 = vadd.f32 %v13484_v42, %v5945_v59 }
 0x6ba   : > { %v9455_v58 = vpop.eup %9454  ;;  %v5947_v53 = vpop.f32.mrf.mxu0 }
 0x6bb   : > { %6277 = vst.msk [vmem:[#allocation3 + $0xd9] sm:$0xff] %vm389_vm3, %v9455_v58  ;;  %v6171_v15 = vadd.f32 %v6170_v44, %v5946_v20  ;;  %7259 = vrot.lane.b32.xlu0 %v6520_v9, %s9549_s27  ;;  %6627 = vrot.lane.b32.xlu1 %v6520_v9, %s9547_s14  ;;  %v13624_v20 = vpop.permute.xlu1 %6615  ;;  %v8308_v58 = vpop.f32.mrf.mxu1  ;;  %v13626_v44 = vld [vmem:[#allocation3 + $0x82] sm:$0xff] }
 0x6bc   : > { %v5950_v14 = vpop.f32.mrf.mxu0  ;;  %15039 = vst [vmem:[#allocation11_spill] sm:$0xff] %v13624_v20 }
 0x6bd   : > { %9462 = vtanh.f32 %v6171_v15  ;;  %v5951_v27 = vadd.f32 %v13484_v42, %v5950_v14  ;;  %v13633_v15 = vpop.permute.xlu0 %7187  ;;  %v6210_v14 = vpop.f32.mrf.mxu1 }
 0x6be   : > { %v9457_v22 = vpop.eup %9456  ;;  %v5952_v8 = vpop.f32.mrf.mxu0  ;;  %15040 = vst [vmem:[#allocation16_spill] sm:$0xff] %v13633_v15 }
 0x6bf   : > { %6278 = vst.msk [vmem:[#allocation3 + $0xe1] sm:$0xff] %vm389_vm3, %v9457_v22  ;;  %v6176_v51 = vadd.f32 %v8296_v16, %v5951_v27  ;;  %6755 = vrot.lane.b32.xlu1 %v13546_v41, %s9548_s17  ;;  %7133 = vrot.lane.b32.xlu0 %v6489_v19, %s9548_s17  ;;  %v13636_v22 = vld [vmem:[#allocation3 + $0x7a] sm:$0xff]  ;;  %v13640_v8 = vpop.permute.xlu1 %6743 }
 0x6c0   : > { %v5955_v57 = vpop.f32.mrf.mxu0  ;;  %15041 = vst [vmem:[#allocation14_spill] sm:$0xff] %v13640_v8 }
 0x6c1   : > { %9464 = vtanh.f32 %v6176_v51  ;;  %v5956_v28 = vadd.f32 %v13484_v42, %v5955_v57 }
 0x6c2   : > { %v9459_v6 = vpop.eup %9458  ;;  %v5957_v17 = vpop.f32.mrf.mxu0 }
 0x6c3   : > { %6279 = vst.msk [vmem:[#allocation3 + $0xf1] sm:$0xff] %vm389_vm3, %v9459_v6  ;;  %v6181_v2 = vadd.f32 %v6180_v24, %v5956_v28  ;;  %6753 = vrot.lane.b32.xlu1 %v13553_v26, %s9548_s17  ;;  %7261 = vrot.lane.b32.xlu0 %v6521_v32, %s9549_s27  ;;  %v13645_v6 = vld [vmem:[#allocation3 + $0x80] sm:$0xff]  ;;  %v13649_v24 = vpop.permute.xlu0 %7315 }
 0x6c4   : > { %v5960_v5 = vpop.f32.mrf.mxu0  ;;  %15042 = vst [vmem:[#allocation19_spill] sm:$0xff] %v13649_v24 }
 0x6c5   : > { %9466 = vtanh.f32 %v6181_v2  ;;  %v5961_v55 = vadd.f32 %v13484_v42, %v5960_v5  ;;  %v13654_v5 = vpop.permute.xlu1 %6613 }
 0x6c6   : > { %v9461_v33 = vpop.eup %9460  ;;  %v5962_v25 = vpop.f32.mrf.mxu0  ;;  %v6564_v50 = vld [vmem:[#allocation3 + $0xe2] sm:$0xff]  ;;  %v6563_v0 = vld [vmem:[#allocation3 + $0xda] sm:$0xff]  ;;  %15043 = vst [vmem:[#allocation17_spill] sm:$0xff] %v13654_v5 }
 0x6c7   : > { %6280 = vst.msk [vmem:[#allocation3 + $0xf9] sm:$0xff] %vm389_vm3, %v9461_v33  ;;  %v6186_v63 = vadd.f32 %v8299_v40, %v5961_v55  ;;  %6879 = vrot.lane.b32.xlu1 %v6488_v46, %s9549_s27  ;;  %8109 = vmatpush3.xpose.msk.msra.mxu1 %vm389_vm3, %v6564_v50  ;;  %v13617_v46 = vld [vmem:[#allocation3 + $0x79] sm:$0xff]  ;;  %v13656_v55 = vld [vmem:[#allocation3 + $0x81] sm:$0xff] }
 0x6c8   : > { %7011 = vrot.lane.b32.xlu0 %v13581_v45, %s9547_s14  ;;  %8110 = vmatprep.subr.msk.mxu1 %vm389_vm3, %v9516_v39  ;;  %15038 = vst [vmem:[#allocation13_spill] sm:$0xff] %v13617_v46  ;;  %15044 = vst [vmem:[#allocation22_spill] sm:$0xff] %v13656_v55  ;;  %v13666_v39 = vld [vmem:[#allocation3 + $0x90] sm:$0xff] }
 0x6c9   : > { %9468 = vtanh.f32 %v6186_v63  ;;  %v5965_v60 = vpop.f32.mrf.mxu0 }
 0x6ca   : > { %v9463_v54 = vpop.eup %9462  ;;  %v5966_v21 = vadd.f32 %v13484_v42, %v5965_v60 }
 0x6cb   : > { %6281 = vst.msk [vmem:[#allocation3 + $0x109] sm:$0xff] %vm389_vm3, %v9463_v54  ;;  %8111 = vmatpush3.xpose.msk.msra.mxu1 %vm389_vm3, %v6563_v0  ;;  %6629 = vrot.lane.b32.xlu1 %v6521_v32, %s9547_s14  ;;  %v5967_v62 = vpop.f32.mrf.mxu0  ;;  %v8311_v32 = vpop.f32.mrf.mxu1 }
 0x6cc   : > { %v6191_v23 = vadd.f32 %v6190_v36, %v5966_v21  ;;  %7009 = vrot.lane.b32.xlu0 %v13589_v52, %s9547_s14  ;;  %v13670_v54 = vpop.permute.xlu1 %6741 }
 0x6cd   : > { %v6220_v25 = vpop.f32.mrf.mxu1  ;;  %15046 = vst [vmem:[#allocation124_spill] sm:$0xff] %v13670_v54 }
 0x6ce   : > { %v9465_v18 = vpop.eup %9464  ;;  %9470 = vtanh.f32 %v6191_v23  ;;  %v5970_v31 = vpop.f32.mrf.mxu0  ;;  %v13675_v23 = vld [vmem:[#allocation3 + $0x91] sm:$0xff] }
 0x6cf   : > { %6282 = vst.msk [vmem:[#allocation3 + $0x111] sm:$0xff] %vm389_vm3, %v9465_v18  ;;  %v5971_v12 = vadd.f32 %v13484_v42, %v5970_v31  ;;  %6881 = vrot.lane.b32.xlu1 %v6489_v19, %s9549_s27 }
 0x6d0   : > { %7135 = vrot.lane.b32.xlu0 %v13596_v43, %s9548_s17  ;;  %v5972_v29 = vpop.f32.mrf.mxu0 }
 0x6d1   : > { %v6196_v11 = vadd.f32 %v8302_v61, %v5971_v12  ;;  %v13663_v61 = vpop.permute.xlu0 %7185 }
 0x6d2   : > { %v9467_v7 = vpop.eup %9466  ;;  %15045 = vst [vmem:[#allocation20_spill] sm:$0xff] %v13663_v61 }
 0x6d3   : > { %6283 = vst.msk [vmem:[#allocation3 + $0x121] sm:$0xff] %vm389_vm3, %v9467_v7  ;;  %9472 = vtanh.f32 %v6196_v11  ;;  %6631 = vrot.lane.b32.xlu1 %v13601_v47, %s9547_s14  ;;  %v13686_v11 = vld [vmem:[#allocation3 + $0x9a] sm:$0xff] }
 0x6d4   : > { %7263 = vrot.lane.b32.xlu0 %v13601_v47, %s9549_s27 }
 0x6d5   : > { %v5975_v10 = vpop.f32.mrf.mxu0  ;;  %v13679_v18 = vpop.permute.xlu0 %7313 }
 0x6d6   : > { %v9469_v35 = vpop.eup %9468  ;;  %v5976_v48 = vadd.f32 %v13484_v42, %v5975_v10  ;;  %15047 = vst [vmem:[#allocation51_spill] sm:$0xff] %v13679_v18  ;;  %v13697_v10 = vld [vmem:[#allocation3 + $0x92] sm:$0xff] }
 0x6d7   : > { %6284 = vst.msk [vmem:[#allocation3 + $0x129] sm:$0xff] %vm389_vm3, %v9469_v35  ;;  %6759 = vrot.lane.b32.xlu1 %v13581_v45, %s9548_s17  ;;  %v5977_v34 = vpop.f32.mrf.mxu0 }
 0x6d8   : > { %v6201_v4 = vadd.f32 %v6200_v1, %v5976_v48  ;;  %7137 = vrot.lane.b32.xlu0 %v13610_v56, %s9548_s17  ;;  %v13707_v34 = vld [vmem:[#allocation3 + $0x98] sm:$0xff] }
 0x6da   : > { %9474 = vtanh.f32 %v6201_v4  ;;  %v5980_v3 = vpop.f32.mrf.mxu0 }
 0x6db   : > { %v9471_v16 = vpop.eup %9470  ;;  %v5981_v49 = vadd.f32 %v13484_v42, %v5980_v3  ;;  %6757 = vrot.lane.b32.xlu1 %v13589_v52, %s9548_s17 }
 0x6dc   : > { %6285 = vst.msk [vmem:[#allocation3 + $0x139] sm:$0xff] %vm389_vm3, %v9471_v16  ;;  %7265 = vrot.lane.b32.xlu0 %v13617_v46, %s9549_s27  ;;  %v5982_v38 = vpop.f32.mrf.mxu0  ;;  %v13718_v16 = vld [vmem:[#allocation3 + $0x99] sm:$0xff] }
 0x6dd   : > { %v6206_v59 = vadd.f32 %v8305_v13, %v5981_v49 }
 0x6de   : > { %v13849_v15 = vld [vmem:[#allocation3 + $0x12a] sm:$0xff] }
 0x6df   : > { %9476 = vtanh.f32 %v6206_v59  ;;  %6883 = vrot.lane.b32.xlu1 %v13596_v43, %s9549_s27 }
 0x6e0   : > { %v9473_v53 = vpop.eup %9472  ;;  %7015 = vrot.lane.b32.xlu0 %v13626_v44, %s9547_s14 }
 0x6e1   : > { %6286 = vst.msk [vmem:[#allocation3 + $0x141] sm:$0xff] %vm389_vm3, %v9473_v53  ;;  %v5985_v9 = vpop.f32.mrf.mxu0 }
 0x6e2   : > { %v5986_v27 = vadd.f32 %v13484_v42, %v5985_v9 }
 0x6e3   : > { %6633 = vrot.lane.b32.xlu1 %v13617_v46, %s9547_s14  ;;  %v5987_v40 = vpop.f32.mrf.mxu0  ;;  %v14135_v46 = vld [vmem:[#allocation3 + $0x109] sm:$0xff] }
 0x6e4   : > { %v6211_v19 = vadd.f32 %v6210_v14, %v5986_v27  ;;  %7013 = vrot.lane.b32.xlu0 %v13636_v22, %s9547_s14  ;;  %v13739_v14 = vld [vmem:[#allocation3 + $0xa9] sm:$0xff]  ;;  %15121 = vst [vmem:[#allocation35_spill] sm:$0xff] %v14135_v46 }
 0x6e6   : > { %9478 = vtanh.f32 %v6211_v19  ;;  %v5990_v51 = vpop.f32.mrf.mxu0 }
 0x6e7   : > { %v9475_v57 = vpop.eup %9474  ;;  %v5991_v28 = vadd.f32 %v13484_v42, %v5990_v51  ;;  %6885 = vrot.lane.b32.xlu1 %v13610_v56, %s9549_s27  ;;  %v6562_v51 = vld [vmem:[#allocation3 + $0xca] sm:$0xff] }
 0x6e8   : > { %6287 = vst.msk [vmem:[#allocation3 + $0x151] sm:$0xff] %vm389_vm3, %v9475_v57  ;;  %7139 = vrot.lane.b32.xlu0 %v13645_v6, %s9548_s17  ;;  %v5992_v17 = vpop.f32.mrf.mxu0  ;;  %v13821_v24 = vld [vmem:[#allocation3 + $0x142] sm:$0xff] }
 0x6e9   : > { %v6216_v2 = vadd.f32 %v8308_v58, %v5991_v28  ;;  %v13729_v58 = vld [vmem:[#allocation3 + $0xa8] sm:$0xff]  ;;  %v6466_v28 = vld [vmem:[#allocation3 + $0xb2] sm:$0xff] }
 0x6eb   : > { %9480 = vtanh.f32 %v6216_v2  ;;  %6635 = vrot.lane.b32.xlu1 %v13656_v55, %s9547_s14  ;;  %v6561_v2 = vld [vmem:[#allocation3 + $0xc2] sm:$0xff] }
 0x6ec   : > { %v9477_v33 = vpop.eup %9476  ;;  %7267 = vrot.lane.b32.xlu0 %v13656_v55, %s9549_s27 }
 0x6ed   : > { %6288 = vst.msk [vmem:[#allocation3 + $0x159] sm:$0xff] %vm389_vm3, %v9477_v33  ;;  %v5995_v50 = vpop.f32.mrf.mxu0 }
 0x6ee   : > { %v5996_v63 = vadd.f32 %v13484_v42, %v5995_v50 }
 0x6ef   : > { %6763 = vrot.lane.b32.xlu1 %v13626_v44, %s9548_s17  ;;  %v5997_v60 = vpop.f32.mrf.mxu0 }
 0x6f0   : > { %7141 = vrot.lane.b32.xlu0 %v13666_v39, %s9548_s17  ;;  %v6221_v21 = vadd.f32 %v6220_v25, %v5996_v63  ;;  %v6465_v25 = vld [vmem:[#allocation3 + $0xaa] sm:$0xff] }
 0x6f2   : > { %9482 = vtanh.f32 %v6221_v21  ;;  %v6000_v0 = vpop.f32.mrf.mxu0  ;;  %v13780_v21 = vld [vmem:[#allocation3 + $0xb0] sm:$0xff] }
 0x6f3   : > { %v9479_v36 = vpop.eup %9478  ;;  %v6001_v62 = vadd.f32 %v13484_v42, %v6000_v0  ;;  %6761 = vrot.lane.b32.xlu1 %v13636_v22, %s9548_s17 }
 0x6f4   : > { %6289 = vst.msk [vmem:[#allocation3 + $0x169] sm:$0xff] %vm389_vm3, %v9479_v36  ;;  %7269 = vrot.lane.b32.xlu0 %v13675_v23, %s9549_s27  ;;  %v6002_v31 = vpop.f32.mrf.mxu0 }
 0x6f5   : > { %v6226_v12 = vadd.f32 %v8311_v32, %v6001_v62  ;;  %v13684_v29 = vpop.permute.xlu1 %6617  ;;  %v13793_v62 = vld [vmem:[#allocation3 + $0xb1] sm:$0xff]  ;;  %v13795_v31 = vld [vmem:[#allocation3 + $0x15a] sm:$0xff] }
 0x6f6   : > { %15048 = vst [vmem:[#allocation123_spill] sm:$0xff] %v13684_v29 }
 0x6f7   : > { %9484 = vtanh.f32 %v6226_v12  ;;  %6887 = vrot.lane.b32.xlu1 %v13645_v6, %s9549_s27 }
 0x6f8   : > { %v9481_v42 = vpop.eup %9480  ;;  %7019 = vrot.lane.b32.xlu0 %v13686_v11, %s9547_s14 }
 0x6f9   : > { %6290 = vst.msk [vmem:[#allocation3 + $0x171] sm:$0xff] %vm389_vm3, %v9481_v42  ;;  %v13693_v7 = vpop.permute.xlu1 %6869  ;;  %v13695_v13 = vpop.permute.xlu0 %6999 }
 0x6fa   : > { %15049 = vst [vmem:[#allocation26_spill] sm:$0xff] %v13693_v7  ;;  %15050 = vst [vmem:[#allocation65_spill] sm:$0xff] %v13695_v13  ;;  %v13929_v13 = vld [vmem:[#allocation3 + $0xe0] sm:$0xff] }
 0x6fb   : > { %6637 = vrot.lane.b32.xlu1 %v13675_v23, %s9547_s14  ;;  %15088 = vst [vmem:[#allocation92_spill] sm:$0xff] %v13929_v13 }
 0x6fc   : > { %7017 = vrot.lane.b32.xlu0 %v13697_v10, %s9547_s14 }
 0x6fd   : > { %v13703_v35 = vpop.permute.xlu0 %6997  ;;  %v13705_v48 = vpop.permute.xlu1 %6619 }
 0x6fe   : > { %15051 = vst [vmem:[#allocation24_spill] sm:$0xff] %v13703_v35  ;;  %15052 = vst [vmem:[#allocation86_spill] sm:$0xff] %v13705_v48  ;;  %v13893_v35 = vld [vmem:[#allocation3 + $0xd8] sm:$0xff] }
 0x6ff   : > { %v9483_v1 = vpop.eup %9482  ;;  %6889 = vrot.lane.b32.xlu1 %v13666_v39, %s9549_s27  ;;  %15081 = vst [vmem:[#allocation15_spill] sm:$0xff] %v13893_v35 }
 0x700   : > { %6291 = vst.msk [vmem:[#allocation3 + $0x181] sm:$0xff] %vm389_vm3, %v9483_v1  ;;  %7143 = vrot.lane.b32.xlu0 %v13707_v34, %s9548_s17  ;;  %v13766_v33 = vld [vmem:[#allocation3 + $0x172] sm:$0xff]  ;;  %v13778_v60 = vld [vmem:[#allocation3 + $0x16a] sm:$0xff] }
 0x701   : > { %v13714_v4 = vpop.permute.xlu0 %7125  ;;  %v13716_v3 = vpop.permute.xlu1 %6747  ;;  %v13809_v1 = vld [vmem:[#allocation3 + $0x152] sm:$0xff] }
 0x702   : > { %15053 = vst [vmem:[#allocation64_spill] sm:$0xff] %v13714_v4  ;;  %15054 = vst [vmem:[#allocation8_spill] sm:$0xff] %v13716_v3  ;;  %v13877_v4 = vld [vmem:[#allocation3 + $0xc9] sm:$0xff]  ;;  %v13961_v3 = vld [vmem:[#allocation3 + $0x151] sm:$0xff] }
 0x703   : > { %6639 = vrot.lane.b32.xlu1 %v13718_v16, %s9547_s14  ;;  %15095 = vst [vmem:[#allocation108_spill] sm:$0xff] %v13961_v3 }
 0x704   : > { %v9485_v49 = vpop.eup %9484  ;;  %7271 = vrot.lane.b32.xlu0 %v13718_v16, %s9549_s27 }
 0x705   : > { %6292 = vst.msk [vmem:[#allocation3 + $0x189] sm:$0xff] %vm389_vm3, %v9485_v49  ;;  %v13725_v38 = vpop.permute.xlu0 %7253  ;;  %v13727_v59 = vpop.permute.xlu1 %6745  ;;  %v6497_v49 = vld [vmem:[#allocation3 + $0xc0] sm:$0xff] }
 0x706   : > { %15055 = vst [vmem:[#allocation85_spill] sm:$0xff] %v13725_v38  ;;  %15056 = vst [vmem:[#allocation55_spill] sm:$0xff] %v13727_v59  ;;  %v13927_v59 = vld [vmem:[#allocation3 + $0xf2] sm:$0xff] }
 0x707   : > { %6767 = vrot.lane.b32.xlu1 %v13686_v11, %s9548_s17 }
 0x708   : > { %7145 = vrot.lane.b32.xlu0 %v13729_v58, %s9548_s17 }
 0x709   : > { %v13735_v53 = vpop.permute.xlu0 %7003  ;;  %v13737_v9 = vpop.permute.xlu1 %6871 }
 0x70a   : > { %15057 = vst [vmem:[#allocation6_spill] sm:$0xff] %v13735_v53  ;;  %15058 = vst [vmem:[#allocation126_spill] sm:$0xff] %v13737_v9  ;;  %v13861_v9 = vld [vmem:[#allocation3 + $0x122] sm:$0xff] }
 0x70b   : > { %6765 = vrot.lane.b32.xlu1 %v13697_v10, %s9548_s17 }
 0x70c   : > { %7273 = vrot.lane.b32.xlu0 %v13739_v14, %s9549_s27  ;;  %v13745_v27 = vld [vmem:[#allocation3 + $0x18a] sm:$0xff]  ;;  %v13754_v57 = vld [vmem:[#allocation3 + $0x182] sm:$0xff] }
 0x70d   : > { %v13747_v40 = vpop.permute.xlu0 %7001  ;;  %v13749_v19 = vpop.permute.xlu1 %6621  ;;  %8112 = vmatprep.subr.msk.mxu1 %vm389_vm3, %v13745_v27 }
 0x70e   : > { %15059 = vst [vmem:[#allocation53_spill] sm:$0xff] %v13747_v40  ;;  %15060 = vst [vmem:[#allocation125_spill] sm:$0xff] %v13749_v19  ;;  %8113 = vmatpush3.xpose.msk.msra.mxu1 %vm389_vm3, %v6562_v51 }
 0x70f   : > { %6891 = vrot.lane.b32.xlu1 %v13707_v34, %s9549_s27  ;;  %8114 = vmatprep.subr.msk.mxu1 %vm389_vm3, %v13754_v57 }
 0x710   : > { %7023 = vrot.lane.b32.xlu0 %v6466_v28, %s9547_s14 }
 0x711   : > { %v13761_v17 = vpop.permute.xlu0 %7127  ;;  %v13763_v32 = vpop.permute.xlu1 %6873 }
 0x712   : > { %15061 = vst [vmem:[#allocation30_spill] sm:$0xff] %v13761_v17  ;;  %15062 = vst [vmem:[#allocation67_spill] sm:$0xff] %v13763_v32  ;;  %8115 = vmatpush3.xpose.msk.msra.mxu1 %vm389_vm3, %v6561_v2  ;;  %v13909_v32 = vld [vmem:[#allocation3 + $0xfa] sm:$0xff] }
 0x713   : > { %6641 = vrot.lane.b32.xlu1 %v13739_v14, %s9547_s14  ;;  %8116 = vmatprep.subr.msk.mxu1 %vm389_vm3, %v13766_v33  ;;  %v13911_v17 = vld [vmem:[#allocation3 + $0xd9] sm:$0xff] }
 0x714   : > { %7021 = vrot.lane.b32.xlu0 %v6465_v25, %s9547_s14  ;;  %15085 = vst [vmem:[#allocation38_spill] sm:$0xff] %v13911_v17 }
 0x715   : > { %v13773_v50 = vpop.permute.xlu0 %7255  ;;  %v13775_v63 = vpop.permute.xlu1 %6623 }
 0x716   : > { %15063 = vst [vmem:[#allocation28_spill] sm:$0xff] %v13773_v50  ;;  %15064 = vst [vmem:[#allocation88_spill] sm:$0xff] %v13775_v63  ;;  %8117 = vmatpush3.xpose.msk.msra.mxu1 %vm389_vm3, %v6466_v28 }
 0x717   : > { %6893 = vrot.lane.b32.xlu1 %v13729_v58, %s9549_s27  ;;  %8118 = vmatprep.subr.msk.mxu1 %vm389_vm3, %v13778_v60 }
 0x718   : > { %7147 = vrot.lane.b32.xlu0 %v13780_v21, %s9548_s17 }
 0x719   : > { %v13788_v0 = vpop.permute.xlu1 %6751  ;;  %v13790_v36 = vpop.permute.xlu0 %7129 }
 0x71a   : > { %15065 = vst [vmem:[#allocation66_spill] sm:$0xff] %v13788_v0  ;;  %15066 = vst [vmem:[#allocation12_spill] sm:$0xff] %v13790_v36  ;;  %8119 = vmatpush3.xpose.msk.msra.mxu1 %vm389_vm3, %v6465_v25 }
 0x71b   : > { %6643 = vrot.lane.b32.xlu1 %v13793_v62, %s9547_s14  ;;  %8120 = vmatprep.subr.msk.mxu1 %vm389_vm3, %v13795_v31 }
 0x71c   : > { %7275 = vrot.lane.b32.xlu0 %v13793_v62, %s9549_s27 }
 0x71d   : > { %v13803_v12 = vpop.permute.xlu1 %6749  ;;  %v13805_v42 = vpop.permute.xlu0 %7257 }
 0x71e   : > { %15067 = vst [vmem:[#allocation87_spill] sm:$0xff] %v13803_v12  ;;  %15068 = vst [vmem:[#allocation105_spill] sm:$0xff] %v13805_v42  ;;  %8121 = vmatpush3.xpose.msk.msra.mxu1 %vm389_vm3, %v13686_v11  ;;  %v13823_v11 = vld [vmem:[#allocation3 + $0xc1] sm:$0xff]  ;;  %v13983_v12 = vld [vmem:[#allocation3 + $0x158] sm:$0xff] }
 0x71f   : > { %6771 = vrot.lane.b32.xlu1 %v6466_v28, %s9548_s17  ;;  %8122 = vmatprep.subr.msk.mxu1 %vm389_vm3, %v13809_v1  ;;  %15102 = vst [vmem:[#allocation61_spill] sm:$0xff] %v13983_v12 }
 0x720   : > { %7149 = vrot.lane.b32.xlu0 %v6497_v49, %s9548_s17 }
 0x721   : > { %v13815_v18 = vpop.permute.xlu1 %6875  ;;  %v13817_v61 = vpop.permute.xlu0 %7007 }
 0x722   : > { %15069 = vst [vmem:[#allocation10_spill] sm:$0xff] %v13815_v18  ;;  %15070 = vst [vmem:[#allocation128_spill] sm:$0xff] %v13817_v61  ;;  %8123 = vmatpush3.xpose.msk.msra.mxu1 %vm389_vm3, %v13697_v10  ;;  %v13836_v10 = vld [vmem:[#allocation3 + $0x13a] sm:$0xff] }
 0x723   : > { %6769 = vrot.lane.b32.xlu1 %v6465_v25, %s9548_s17  ;;  %8124 = vmatprep.subr.msk.mxu1 %vm389_vm3, %v13821_v24 }
 0x724   : > { %7277 = vrot.lane.b32.xlu0 %v13823_v11, %s9549_s27 }
 0x725   : > { %v13830_v28 = vpop.permute.xlu0 %7005  ;;  %v13832_v7 = vpop.permute.xlu1 %6625 }
 0x726   : > { %15071 = vst [vmem:[#allocation58_spill] sm:$0xff] %v13830_v28  ;;  %15072 = vst [vmem:[#allocation127_spill] sm:$0xff] %v13832_v7  ;;  %8125 = vmatpush3.xpose.msk.msra.mxu1 %vm389_vm3, %v13626_v44  ;;  %v14003_v28 = vld [vmem:[#allocation3 + $0x169] sm:$0xff] }
 0x727   : > { %6895 = vrot.lane.b32.xlu1 %v13780_v21, %s9549_s27  ;;  %8126 = vmatprep.subr.msk.mxu1 %vm389_vm3, %v13836_v10  ;;  %15107 = vst [vmem:[#allocation110_spill] sm:$0xff] %v14003_v28 }
 0x728   : > { %7027 = vrot.lane.b32.xlu0 %v6562_v51, %s9547_s14  ;;  %v6498_v51 = vld [vmem:[#allocation3 + $0xc8] sm:$0xff] }
 0x729   : > { %v13843_v25 = vpop.permute.xlu0 %7131  ;;  %v13845_v54 = vpop.permute.xlu1 %6877 }
 0x72a   : > { %15073 = vst [vmem:[#allocation34_spill] sm:$0xff] %v13843_v25  ;;  %15074 = vst [vmem:[#allocation69_spill] sm:$0xff] %v13845_v54  ;;  %8127 = vmatpush3.xpose.msk.msra.mxu1 %vm389_vm3, %v13636_v22  ;;  %v13971_v54 = vld [vmem:[#allocation3 + $0x150] sm:$0xff] }
 0x72b   : > { %6897 = vrot.lane.b32.xlu1 %v6497_v49, %s9549_s27  ;;  %8128 = vmatprep.subr.msk.mxu1 %vm389_vm3, %v13849_v15  ;;  %v13873_v49 = vld [vmem:[#allocation3 + $0x129] sm:$0xff]  ;;  %15098 = vst [vmem:[#allocation73_spill] sm:$0xff] %v13971_v54 }
 0x72c   : > { %7025 = vrot.lane.b32.xlu0 %v6561_v2, %s9547_s14 }
 0x72d   : > { %v13855_v44 = vpop.permute.xlu0 %7259  ;;  %v13857_v38 = vpop.permute.xlu1 %6627 }
 0x72e   : > { %15075 = vst [vmem:[#allocation32_spill] sm:$0xff] %v13855_v44  ;;  %15076 = vst [vmem:[#allocation90_spill] sm:$0xff] %v13857_v38  ;;  %8129 = vmatpush3.xpose.msk.msra.mxu1 %vm389_vm3, %v13581_v45  ;;  %v13875_v45 = vld [vmem:[#allocation3 + $0x112] sm:$0xff]  ;;  %v6514_v38 = vld [vmem:[#allocation3 + $0x188] sm:$0xff] }
 0x72f   : > { %6899 = vrot.lane.b32.xlu1 %v6498_v51, %s9549_s27  ;;  %8130 = vmatprep.subr.msk.mxu1 %vm389_vm3, %v13861_v9 }
 0x730   : > { %7151 = vrot.lane.b32.xlu0 %v6498_v51, %s9548_s17 }
 0x731   : > { %v13867_v22 = vpop.permute.xlu1 %6755  ;;  %v13869_v2 = vpop.permute.xlu0 %7133 }
 0x732   : > { %15077 = vst [vmem:[#allocation68_spill] sm:$0xff] %v13867_v22  ;;  %15078 = vst [vmem:[#allocation18_spill] sm:$0xff] %v13869_v2  ;;  %8131 = vmatpush3.xpose.msk.msra.mxu1 %vm389_vm3, %v13589_v52  ;;  %v13891_v52 = vld [vmem:[#allocation3 + $0x10a] sm:$0xff] }
 0x733   : > { %6663 = vrot.lane.b32.xlu1 %v13873_v49, %s9547_s14  ;;  %8132 = vmatprep.subr.msk.mxu1 %vm389_vm3, %v13875_v45 }
 0x734   : > { %7279 = vrot.lane.b32.xlu0 %v13877_v4, %s9549_s27 }
 0x735   : > { %v13885_v51 = vpop.permute.xlu1 %6753  ;;  %v13887_v5 = vpop.permute.xlu0 %7261 }
 0x736   : > { %15079 = vst [vmem:[#allocation89_spill] sm:$0xff] %v13885_v51  ;;  %15080 = vst [vmem:[#allocation107_spill] sm:$0xff] %v13887_v5  ;;  %8133 = vmatpush3.xpose.msk.msra.mxu1 %vm389_vm3, %v13546_v41  ;;  %v13907_v41 = vld [vmem:[#allocation3 + $0x139] sm:$0xff]  ;;  %v13993_v5 = vld [vmem:[#allocation3 + $0x168] sm:$0xff] }
 0x737   : > { %6791 = vrot.lane.b32.xlu1 %v13849_v15, %s9548_s17  ;;  %8134 = vmatprep.subr.msk.mxu1 %vm389_vm3, %v13891_v52  ;;  %15084 = vst [vmem:[#allocation129_spill] sm:$0xff] %v13907_v41  ;;  %15104 = vst [vmem:[#allocation72_spill] sm:$0xff] %v13993_v5 }
 0x738   : > { %7153 = vrot.lane.b32.xlu0 %v13893_v35, %s9548_s17 }
 0x739   : > { %v13901_v8 = vpop.permute.xlu1 %6879 }
 0x73a   : > { %15082 = vst [vmem:[#allocation130_spill] sm:$0xff] %v13901_v8  ;;  %v13903_v50 = vpop.permute.xlu0 %7011  ;;  %8135 = vmatpush3.xpose.msk.msra.mxu1 %vm389_vm3, %v13553_v26  ;;  %v13925_v26 = vld [vmem:[#allocation3 + $0x141] sm:$0xff] }
 0x73b   : > { %15083 = vst [vmem:[#allocation106_spill] sm:$0xff] %v13903_v50  ;;  %6665 = vrot.lane.b32.xlu1 %v13907_v41, %s9547_s14  ;;  %8136 = vmatprep.subr.msk.mxu1 %vm389_vm3, %v13909_v32  ;;  %v6413_v50 = vld [vmem:[#allocation3 + $0x138] sm:$0xff] }
 0x73c   : > { %7281 = vrot.lane.b32.xlu0 %v13911_v17, %s9549_s27  ;;  %v6412_v17 = vld [vmem:[#allocation3 + $0x128] sm:$0xff] }
 0x73d   : > { %v13919_v35 = vpop.permute.xlu1 %6629 }
 0x73e   : > { %15086 = vst [vmem:[#allocation71_spill] sm:$0xff] %v13919_v35  ;;  %v13921_v20 = vpop.permute.xlu0 %7009  ;;  %8137 = vmatpush3.xpose.msk.msra.mxu1 %vm389_vm3, %v13514_v37  ;;  %v13943_v37 = vld [vmem:[#allocation3 + $0xe1] sm:$0xff] }
 0x73f   : > { %15087 = vst [vmem:[#allocation36_spill] sm:$0xff] %v13921_v20  ;;  %6667 = vrot.lane.b32.xlu1 %v13925_v26, %s9547_s14  ;;  %8138 = vmatprep.subr.msk.mxu1 %vm389_vm3, %v13927_v59 }
 0x740   : > { %7155 = vrot.lane.b32.xlu0 %v13929_v13, %s9548_s17  ;;  %v13981_v13 = vld [vmem:[#allocation3 + $0x159] sm:$0xff] }
 0x741   : > { %v13937_v29 = vpop.permute.xlu1 %6881  ;;  %15101 = vst [vmem:[#allocation111_spill] sm:$0xff] %v13981_v13 }
 0x742   : > { %15089 = vst [vmem:[#allocation70_spill] sm:$0xff] %v13937_v29  ;;  %v13939_v42 = vpop.permute.xlu0 %7135  ;;  %8139 = vmatpush3.xpose.msk.msra.mxu1 %vm389_vm3, %v13521_v30 }
 0x743   : > { %15090 = vst [vmem:[#allocation23_spill] sm:$0xff] %v13939_v42  ;;  %6795 = vrot.lane.b32.xlu1 %v13821_v24, %s9548_s17  ;;  %v14029_v42 = vld [vmem:[#allocation3 + $0x170] sm:$0xff] }
 0x744   : > { %7283 = vrot.lane.b32.xlu0 %v13943_v37, %s9549_s27  ;;  %15112 = vst [vmem:[#allocation113_spill] sm:$0xff] %v14029_v42 }
 0x745   : > { %v13949_v18 = vpop.permute.xlu1 %6631 }
 0x746   : > { %15091 = vst [vmem:[#allocation91_spill] sm:$0xff] %v13949_v18  ;;  %v13951_v36 = vpop.permute.xlu0 %7263 }
 0x747   : > { %15092 = vst [vmem:[#allocation109_spill] sm:$0xff] %v13951_v36  ;;  %6793 = vrot.lane.b32.xlu1 %v13836_v10, %s9548_s17 }
 0x748   : > { %7047 = vrot.lane.b32.xlu0 %v13821_v24, %s9547_s14 }
 0x749   : > { %v13957_v40 = vpop.permute.xlu1 %6759 }
 0x74a   : > { %15093 = vst [vmem:[#allocation21_spill] sm:$0xff] %v13957_v40  ;;  %v13959_v30 = vpop.permute.xlu0 %7137 }
 0x74b   : > { %15094 = vst [vmem:[#allocation4_spill] sm:$0xff] %v13959_v30  ;;  %6669 = vrot.lane.b32.xlu1 %v13961_v3, %s9547_s14  ;;  %v14056_v30 = vld [vmem:[#allocation3 + $0x181] sm:$0xff] }
 0x74c   : > { %7051 = vrot.lane.b32.xlu0 %v13795_v31, %s9547_s14  ;;  %15117 = vst [vmem:[#allocation112_spill] sm:$0xff] %v14056_v30 }
 0x74d   : > { %v13967_v48 = vpop.permute.xlu1 %6757 }
 0x74e   : > { %15096 = vst [vmem:[#allocation131_spill] sm:$0xff] %v13967_v48  ;;  %v13969_v44 = vpop.permute.xlu0 %7265 }
 0x74f   : > { %15097 = vst [vmem:[#allocation42_spill] sm:$0xff] %v13969_v44  ;;  %6921 = vrot.lane.b32.xlu1 %v13971_v54, %s9549_s27 }
 0x750   : > { %7049 = vrot.lane.b32.xlu0 %v13809_v1, %s9547_s14 }
 0x751   : > { %v13977_v24 = vpop.permute.xlu1 %6883 }
 0x752   : > { %15099 = vst [vmem:[#allocation94_spill] sm:$0xff] %v13977_v24  ;;  %v13979_v25 = vpop.permute.xlu0 %7015 }
 0x753   : > { %15100 = vst [vmem:[#allocation27_spill] sm:$0xff] %v13979_v25  ;;  %6671 = vrot.lane.b32.xlu1 %v13981_v13, %s9547_s14  ;;  %v14166_v25 = vld [vmem:[#allocation3 + $0x110] sm:$0xff] }
 0x754   : > { %7175 = vrot.lane.b32.xlu0 %v13983_v12, %s9548_s17  ;;  %15124 = vst [vmem:[#allocation76_spill] sm:$0xff] %v14166_v25 }
 0x755   : > { %v13989_v53 = vpop.permute.xlu1 %6633 }
 0x756   : > { %v13991_v19 = vpop.permute.xlu0 %7013 }
 0x757   : > { %15103 = vst [vmem:[#allocation40_spill] sm:$0xff] %v13991_v19  ;;  %6799 = vrot.lane.b32.xlu1 %v13795_v31, %s9548_s17 }
 0x758   : > { %7177 = vrot.lane.b32.xlu0 %v13993_v5, %s9548_s17 }
 0x759   : > { %v13999_v8 = vpop.permute.xlu1 %6885 }
 0x75a   : > { %15105 = vst [vmem:[#allocation93_spill] sm:$0xff] %v13999_v8  ;;  %v14001_v2 = vpop.permute.xlu0 %7139  ;;  %v14087_v8 = vld [vmem:[#allocation3 + $0x189] sm:$0xff] }
 0x75b   : > { %15106 = vst [vmem:[#allocation25_spill] sm:$0xff] %v14001_v2  ;;  %6797 = vrot.lane.b32.xlu1 %v13809_v1, %s9548_s17  ;;  %15119 = vst [vmem:[#allocation77_spill] sm:$0xff] %v14087_v8  ;;  %v14096_v2 = vld [vmem:[#allocation3 + $0x121] sm:$0xff] }
 0x75c   : > { %7305 = vrot.lane.b32.xlu0 %v14003_v28, %s9549_s27 }
 0x75d   : > { %v14009_v0 = vpop.permute.xlu1 %6635 }
 0x75e   : > { %v14011_v63 = vpop.permute.xlu0 %7267 }
 0x75f   : > { %15108 = vst [vmem:[#allocation46_spill] sm:$0xff] %v14011_v63  ;;  %6923 = vrot.lane.b32.xlu1 %v13983_v12, %s9549_s27  ;;  %v6414_v63 = vld [vmem:[#allocation3 + $0x140] sm:$0xff] }
 0x760   : > { %7055 = vrot.lane.b32.xlu0 %v13766_v33, %s9547_s14 }
 0x761   : > { %v14017_v31 = vpop.permute.xlu1 %6763 }
 0x762   : > { %v14019_v36 = vpop.permute.xlu0 %7141 }
 0x763   : > { %15109 = vst [vmem:[#allocation75_spill] sm:$0xff] %v14019_v36  ;;  %6673 = vrot.lane.b32.xlu1 %v14003_v28, %s9547_s14  ;;  %v14039_v28 = vld [vmem:[#allocation3 + $0x171] sm:$0xff] }
 0x764   : > { %7053 = vrot.lane.b32.xlu0 %v13778_v60, %s9547_s14  ;;  %15114 = vst [vmem:[#allocation74_spill] sm:$0xff] %v14039_v28 }
 0x765   : > { %v14025_v1 = vpop.permute.xlu1 %6761 }
 0x766   : > { %15110 = vst [vmem:[#allocation96_spill] sm:$0xff] %v14025_v1  ;;  %v14027_v29 = vpop.permute.xlu0 %7269  ;;  %v14154_v1 = vld [vmem:[#allocation3 + $0xf9] sm:$0xff] }
 0x767   : > { %15111 = vst [vmem:[#allocation31_spill] sm:$0xff] %v14027_v29  ;;  %6925 = vrot.lane.b32.xlu1 %v13993_v5, %s9549_s27  ;;  %v6513_v5 = vld [vmem:[#allocation3 + $0x180] sm:$0xff]  ;;  %v14117_v29 = vld [vmem:[#allocation3 + $0x111] sm:$0xff]  ;;  %15123 = vst [vmem:[#allocation48_spill] sm:$0xff] %v14154_v1 }
 0x768   : > { %7179 = vrot.lane.b32.xlu0 %v14029_v42, %s9548_s17  ;;  %15120 = vst [vmem:[#allocation98_spill] sm:$0xff] %v14117_v29 }
 0x769   : > { %v14035_v12 = vpop.permute.xlu1 %6887 }
 0x76a   : > { %15113 = vst [vmem:[#allocation44_spill] sm:$0xff] %v14035_v12  ;;  %v14037_v51 = vpop.permute.xlu0 %7019 }
 0x76b   : > { %6675 = vrot.lane.b32.xlu1 %v14039_v28, %s9547_s14 }
 0x76c   : > { %7307 = vrot.lane.b32.xlu0 %v14039_v28, %s9549_s27 }
 0x76d   : > { %v14045_v61 = vpop.permute.xlu1 %6637 }
 0x76e   : > { %v14047_v7 = vpop.permute.xlu0 %7017 }
 0x76f   : > { %6803 = vrot.lane.b32.xlu1 %v13766_v33, %s9548_s17 }
 0x770   : > { %7181 = vrot.lane.b32.xlu0 %v6513_v5, %s9548_s17 }
 0x771   : > { %v14052_v44 = vpop.permute.xlu1 %6889 }
 0x772   : > { %15115 = vst [vmem:[#allocation95_spill] sm:$0xff] %v14052_v44  ;;  %v14054_v24 = vpop.permute.xlu0 %7143 }
 0x773   : > { %15116 = vst [vmem:[#allocation29_spill] sm:$0xff] %v14054_v24  ;;  %6801 = vrot.lane.b32.xlu1 %v13778_v60, %s9548_s17 }
 0x774   : > { %7309 = vrot.lane.b32.xlu0 %v14056_v30, %s9549_s27 }
 0x775   : > { %v14062_v28 = vpop.permute.xlu1 %6639 }
 0x776   : > { %v14064_v20 = vpop.permute.xlu0 %7271 }
 0x777   : > { %15118 = vst [vmem:[#allocation50_spill] sm:$0xff] %v14064_v20  ;;  %6927 = vrot.lane.b32.xlu1 %v14029_v42, %s9549_s27  ;;  %v14146_v20 = vld [vmem:[#allocation3 + $0x120] sm:$0xff] }
 0x778   : > { %7059 = vrot.lane.b32.xlu0 %v13745_v27, %s9547_s14 }
 0x779   : > { %v14070_v33 = vpop.permute.xlu1 %6767 }
 0x77a   : > { %v14072_v22 = vpop.permute.xlu0 %7145 }
 0x77b   : > { %6929 = vrot.lane.b32.xlu1 %v6513_v5, %s9549_s27 }
 0x77c   : > { %7057 = vrot.lane.b32.xlu0 %v13754_v57, %s9547_s14 }
 0x77d   : > { %v14077_v60 = vpop.permute.xlu1 %6765 }
 0x77e   : > { %v14079_v30 = vpop.permute.xlu0 %7273 }
 0x77f   : > { %6931 = vrot.lane.b32.xlu1 %v6514_v38, %s9549_s27 }
 0x780   : > { %7183 = vrot.lane.b32.xlu0 %v6514_v38, %s9548_s17 }
 0x781   : > { %v14083_v42 = vpop.permute.xlu1 %6891 }
 0x782   : > { %v14085_v27 = vpop.permute.xlu0 %7023 }
 0x783   : > { %6919 = vrot.lane.b32.xlu1 %v6414_v63, %s9549_s27 }
 0x784   : > { %7311 = vrot.lane.b32.xlu0 %v14087_v8, %s9549_s27 }
 0x785   : > { %v14092_v5 = vpop.permute.xlu1 %6641 }
 0x786   : > { %v14094_v57 = vpop.permute.xlu0 %7021 }
 0x787   : > { %6661 = vrot.lane.b32.xlu1 %v14096_v2, %s9547_s14 }
 0x788   : > { %7303 = vrot.lane.b32.xlu0 %v13981_v13, %s9549_s27 }
 0x789   : > { %v14102_v38 = vpop.permute.xlu1 %6893 }
 0x78a   : > { %v14104_v48 = vpop.permute.xlu0 %7147 }
 0x78b   : > { %6789 = vrot.lane.b32.xlu1 %v13861_v9, %s9548_s17 }
 0x78c   : > { %7045 = vrot.lane.b32.xlu0 %v13836_v10, %s9547_s14 }
 0x78d   : > { %v6644_v8 = vpop.permute.xlu1 %6643 }
 0x78e   : > { %v14110_v47 = vpop.permute.xlu0 %7275 }
 0x78f   : > { %6917 = vrot.lane.b32.xlu1 %v6413_v50, %s9549_s27 }
 0x790   : > { %7173 = vrot.lane.b32.xlu0 %v13971_v54, %s9548_s17 }
 0x791   : > { %v6772_v13 = vpop.permute.xlu1 %6771 }
 0x792   : > { %v14115_v35 = vpop.permute.xlu0 %7149 }
 0x793   : > { %6659 = vrot.lane.b32.xlu1 %v14117_v29, %s9547_s14 }
 0x794   : > { %7301 = vrot.lane.b32.xlu0 %v13961_v3, %s9549_s27 }
 0x795   : > { %v14123_v10 = vpop.permute.xlu1 %6769 }
 0x796   : > { %v14125_v12 = vpop.permute.xlu0 %7277 }
 0x797   : > { %6787 = vrot.lane.b32.xlu1 %v13875_v45, %s9548_s17 }
 0x798   : > { %7043 = vrot.lane.b32.xlu0 %v13849_v15, %s9547_s14 }
 0x799   : > { %v14131_v54 = vpop.permute.xlu1 %6895 }
 0x79a   : > { %v7028_v36 = vpop.permute.xlu0 %7027 }
 0x79b   : > { %6915 = vrot.lane.b32.xlu1 %v6412_v17, %s9549_s27 }
 0x79c   : > { %7171 = vrot.lane.b32.xlu0 %v6414_v63, %s9548_s17 }
 0x79d   : > { %v6898_v29 = vpop.permute.xlu1 %6897 }
 0x79e   : > { %v7026_v3 = vpop.permute.xlu0 %7025 }
 0x79f   : > { %6657 = vrot.lane.b32.xlu1 %v14135_v46, %s9547_s14 }
 0x7a0   : > { %7299 = vrot.lane.b32.xlu0 %v13925_v26, %s9549_s27 }
 0x7a1   : > { %v6900_v19 = vpop.permute.xlu1 %6899 }
 0x7a2   : > { %v7152_v15 = vpop.permute.xlu0 %7151 }
 0x7a3   : > { %6785 = vrot.lane.b32.xlu1 %v13891_v52, %s9548_s17 }
 0x7a4   : > { %7041 = vrot.lane.b32.xlu0 %v13861_v9, %s9547_s14 }
 0x7a5   : > { %v6664_v40 = vpop.permute.xlu1 %6663 }
 0x7a6   : > { %v7280_v43 = vpop.permute.xlu0 %7279  ;;  %v7374_v18 = vsel %vm389_vm3, %v6412_v17, %v6664_v40 }
 0x7a7   : > { %6913 = vrot.lane.b32.xlu1 %v14146_v20, %s9549_s27 }
 0x7a8   : > { %7169 = vrot.lane.b32.xlu0 %v6413_v50, %s9548_s17 }
 0x7a9   : > { %v6792_v46 = vpop.permute.xlu1 %6791 }
 0x7aa   : > { %v7154_v44 = vpop.permute.xlu0 %7153  ;;  %v14152_v24 = vsel %vm3577_vm12, %v7374_v18, %v6792_v46 }
 0x7ab   : > { %15122 = vst [vmem:[#allocation115_spill] sm:$0xff] %v14152_v24  ;;  %6655 = vrot.lane.b32.xlu1 %v14154_v1, %s9547_s14 }
 0x7ac   : > { %7297 = vrot.lane.b32.xlu0 %v13907_v41, %s9549_s27  ;;  %v7364_v41 = vsel %vm389_vm3, %v13780_v21, %v6644_v8 }
 0x7ad   : > { %v6666_v9 = vpop.permute.xlu1 %6665 }
 0x7ae   : > { %v7282_v40 = vpop.permute.xlu0 %7281  ;;  %v7375_v55 = vsel %vm389_vm3, %v6413_v50, %v6666_v9  ;;  %v7460_v50 = vsel %vm389_vm3, %v13877_v4, %v7028_v36 }
 0x7af   : > { %6783 = vrot.lane.b32.xlu1 %v13909_v32, %s9548_s17 }
 0x7b0   : > { %7039 = vrot.lane.b32.xlu0 %v13875_v45, %s9547_s14 }
 0x7b1   : > { %v6668_v46 = vpop.permute.xlu1 %6667 }
 0x7b2   : > { %v7156_v18 = vpop.permute.xlu0 %7155  ;;  %v7376_v24 = vsel %vm389_vm3, %v6414_v63, %v6668_v46  ;;  %v14179_v63 = vld [vmem:[#allocation3 + $0xf1] sm:$0xff]  ;;  %v7396_v46 = vsel %vm3577_vm12, %v7364_v41, %v6772_v13 }
 0x7b3   : > { %6911 = vrot.lane.b32.xlu1 %v14166_v25, %s9549_s27  ;;  %v7492_v45 = vsel %vm3577_vm12, %v7460_v50, %v7156_v18  ;;  %v7428_v8 = vsel %vm3610_vm13, %v7396_v46, %v6900_v19  ;;  %v7458_v19 = vsel %vm389_vm3, %v13793_v62, %v14085_v27  ;;  %v7362_v62 = vsel %vm389_vm3, %v13707_v34, %v14062_v28  ;;  %v15126_v18 = vld [vmem:[#allocation27_spill] sm:$0xff] }
 0x7b4   : > { %7167 = vrot.lane.b32.xlu0 %v6412_v17, %s9548_s17  ;;  %v7459_v17 = vsel %vm389_vm3, %v13823_v11, %v7026_v3  ;;  %v7363_v3 = vsel %vm389_vm3, %v13729_v58, %v14092_v5  ;;  %v14215_v5 = vld [vmem:[#allocation3 + $0x108] sm:$0xff] }
 0x7b5   : > { %v6796_v9 = vpop.permute.xlu1 %6795  ;;  %v7491_v21 = vsel %vm3577_vm12, %v7459_v17, %v7154_v44  ;;  %v7395_v44 = vsel %vm3577_vm12, %v7363_v3, %v14123_v10  ;;  %v15130_v46 = vld [vmem:[#allocation95_spill] sm:$0xff]  ;;  %v15131_v17 = vld [vmem:[#allocation76_spill] sm:$0xff] }
 0x7b6   : > { %v7284_v1 = vpop.permute.xlu0 %7283  ;;  %v14177_v56 = vsel %vm3577_vm12, %v7376_v24, %v6796_v9  ;;  %v7523_v36 = vsel %vm3610_vm13, %v7491_v21, %v7282_v40  ;;  %v15134_v3 = vld [vmem:[#allocation7_spill] sm:$0xff] }
 0x7b7   : > { %v7524_v25 = vsel %vm3610_vm13, %v7492_v45, %v7284_v1  ;;  %6653 = vrot.lane.b32.xlu1 %v14179_v63, %s9547_s14  ;;  %v7490_v1 = vsel %vm3577_vm12, %v7458_v19, %v7152_v15  ;;  %v15135_v19 = vld [vmem:[#allocation21_spill] sm:$0xff] }
 0x7b8   : > { %7295 = vrot.lane.b32.xlu0 %v13873_v49, %s9549_s27  ;;  %7651 = vmatprep.subr.mxu0 %v7524_v25  ;;  %v7427_v25 = vsel %vm3610_vm13, %v7395_v44, %v6898_v29  ;;  %v7394_v29 = vsel %vm3577_vm12, %v7362_v62, %v14070_v33  ;;  %v15138_v62 = vld [vmem:[#allocation38_spill] sm:$0xff] }
 0x7b9   : > { %7652 = vmatpush1.xpose.msra.mxu0 %v7428_v8  ;;  %v6794_v13 = vpop.permute.xlu1 %6793  ;;  %v7426_v34 = vsel %vm3610_vm13, %v7394_v29, %v14131_v54  ;;  %v7456_v54 = vsel %vm389_vm3, %v13718_v16, %v14037_v51  ;;  %v7360_v51 = vsel %vm389_vm3, %v13645_v6, %v14009_v0  ;;  %v15132_v8 = vld [vmem:[#allocation50_spill] sm:$0xff]  ;;  %v15139_v29 = vld [vmem:[#allocation75_spill] sm:$0xff] }
 0x7ba   : > { %v7048_v41 = vpop.permute.xlu0 %7047  ;;  %7653 = vmatprep.subr.mxu0 %v7523_v36  ;;  %v7407_v24 = vsel %vm3577_vm12, %v7375_v55, %v6794_v13  ;;  %v7522_v55 = vsel %vm3610_vm13, %v7490_v1, %v7280_v43  ;;  %v15133_v13 = vld [vmem:[#allocation91_spill] sm:$0xff]  ;;  %v15137_v1 = vld [vmem:[#allocation13_spill] sm:$0xff] }
 0x7bb   : > { %6781 = vrot.lane.b32.xlu1 %v13927_v59, %s9548_s17 }
 0x7bc   : > { %7037 = vrot.lane.b32.xlu0 %v13891_v52, %s9547_s14  ;;  %v7457_v52 = vsel %vm389_vm3, %v13739_v14, %v14094_v57  ;;  %v7361_v14 = vsel %vm389_vm3, %v13666_v39, %v14045_v61 }
 0x7bd   : > { %7654 = vmatpush1.xpose.msra.mxu0 %v7427_v25  ;;  %v14208_v58 = vpop.permute.xlu1 %6669  ;;  %v7489_v43 = vsel %vm3577_vm12, %v7457_v52, %v14115_v35  ;;  %v7393_v10 = vsel %vm3577_vm12, %v7361_v14, %v14077_v60  ;;  %v14262_v60 = vld [vmem:[#allocation3 + $0xe2] sm:$0xff]  ;;  %v15136_v25 = vld [vmem:[#allocation40_spill] sm:$0xff] }
 0x7be   : > { %v14213_v27 = vpop.permute.xlu0 %7051  ;;  %7655 = vmatprep.subr.mxu0 %v7522_v55  ;;  %v7521_v28 = vsel %vm3610_vm13, %v7489_v43, %v14125_v12  ;;  %v7488_v12 = vsel %vm3577_vm12, %v7456_v54, %v14104_v48  ;;  %v7425_v61 = vsel %vm3610_vm13, %v7393_v10, %v14102_v38  ;;  %v7392_v38 = vsel %vm3577_vm12, %v7360_v51, %v14017_v31  ;;  %v15140_v43 = vld [vmem:[#allocation44_spill] sm:$0xff]  ;;  %v15142_v14 = vld [vmem:[#allocation31_spill] sm:$0xff]  ;;  %v9517_v10 = vld [vmem:[#allocation3 + $0x60] sm:$0xff] }
 0x7bf   : > { %6909 = vrot.lane.b32.xlu1 %v14215_v5, %s9549_s27  ;;  %v7520_v39 = vsel %vm3610_vm13, %v7488_v12, %v14110_v47  ;;  %v7455_v47 = vsel %vm389_vm3, %v13675_v23, %v14047_v7  ;;  %v7424_v0 = vsel %vm3610_vm13, %v7392_v38, %v14083_v42  ;;  %v15125_v7 = vld [vmem:[#allocation63_spill] sm:$0xff]  ;;  %v15127_v42 = vld [vmem:[#allocation22_spill] sm:$0xff]  ;;  %v7453_v55 = vsel %vm389_vm3, %v15137_v1, %v15136_v25 }
 0x7c0   : > { %7165 = vrot.lane.b32.xlu0 %v14146_v20, %s9548_s17  ;;  %v7487_v6 = vsel %vm3577_vm12, %v7455_v47, %v14072_v22  ;;  %v7359_v31 = vsel %vm389_vm3, %v15125_v7, %v13989_v53  ;;  %v14289_v22 = vld [vmem:[#allocation3 + $0xf8] sm:$0xff]  ;;  %v7454_v50 = vsel %vm389_vm3, %v15127_v42, %v15126_v18  ;;  %v7485_v52 = vsel %vm3577_vm12, %v7453_v55, %v15139_v29  ;;  %v15143_v12 = vld [vmem:[#allocation71_spill] sm:$0xff]  ;;  %v15149_v42 = vld [vmem:[#allocation46_spill] sm:$0xff] }
 0x7c1   : > { %7656 = vmatpush1.xpose.msra.mxu0 %v7426_v34  ;;  %v6922_v33 = vpop.permute.xlu1 %6921  ;;  %v7517_v54 = vsel %vm3610_vm13, %v7485_v52, %v15142_v14  ;;  %v14334_v51 = vld [vmem:[#allocation3 + $0xda] sm:$0xff]  ;;  %v15146_v47 = vld [vmem:[#allocation131_spill] sm:$0xff]  ;;  %v15157_v14 = vld [vmem:[#allocation128_spill] sm:$0xff] }
 0x7c2   : > { %v14235_v57 = vpop.permute.xlu0 %7049  ;;  %7657 = vmatprep.subr.mxu0 %v7521_v28  ;;  %v14238_v35 = vsel %vm3610_vm13, %v7407_v24, %v6922_v33  ;;  %v15141_v28 = vld [vmem:[#allocation98_spill] sm:$0xff]  ;;  %v15148_v7 = vld [vmem:[#allocation93_spill] sm:$0xff]  ;;  %v15156_v29 = vld [vmem:[#allocation127_spill] sm:$0xff] }
 0x7c3   : > { %6651 = vrot.lane.b32.xlu1 %v13943_v37, %s9547_s14  ;;  %v7470_v37 = vsel %vm389_vm3, %v13925_v26, %v7048_v41  ;;  %v7519_v26 = vsel %vm3610_vm13, %v7487_v6, %v14079_v30  ;;  %v15129_v30 = vld [vmem:[#allocation29_spill] sm:$0xff]  ;;  %v7358_v41 = vsel %vm389_vm3, %v15134_v3, %v15133_v13  ;;  %v15153_v3 = vld [vmem:[#allocation4_spill] sm:$0xff]  ;;  %v15155_v1 = vld [vmem:[#allocation42_spill] sm:$0xff] }
 0x7c4   : > { %7293 = vrot.lane.b32.xlu0 %v14096_v2, %s9549_s27  ;;  %v7486_v45 = vsel %vm3577_vm12, %v7454_v50, %v15129_v30  ;;  %v7390_v44 = vsel %vm3577_vm12, %v7358_v41, %v15135_v19  ;;  %v15154_v19 = vld [vmem:[#allocation94_spill] sm:$0xff] }
 0x7c5   : > { %7658 = vmatpush1.xpose.msra.mxu0 %v7425_v61  ;;  %v14255_v16 = vpop.permute.xlu1 %6671  ;;  %v7518_v21 = vsel %vm3610_vm13, %v7486_v45, %v15132_v8  ;;  %v7422_v34 = vsel %vm3610_vm13, %v7390_v44, %v15140_v43  ;;  %v7357_v61 = vsel %vm389_vm3, %v9517_v10, %v15143_v12  ;;  %v15158_v10 = vld [vmem:[#allocation89_spill] sm:$0xff] }
 0x7c6   : > { %v7176_v48 = vpop.permute.xlu0 %7175  ;;  %7659 = vmatprep.subr.mxu0 %v7520_v39  ;;  %v7389_v6 = vsel %vm3577_vm12, %v7357_v61, %v15146_v47  ;;  %v15159_v61 = vld [vmem:[#allocation23_spill] sm:$0xff] }
 0x7c7   : > { %v14270_v15 = vsel %vm3577_vm12, %v7470_v37, %v7176_v48  ;;  %6779 = vrot.lane.b32.xlu1 %v14262_v60, %s9548_s17  ;;  %v15144_v37 = vld [vmem:[#allocation106_spill] sm:$0xff]  ;;  %v15145_v48 = vld [vmem:[#allocation9_spill] sm:$0xff]  ;;  %v15161_v47 = vld [vmem:[#allocation35_spill] sm:$0xff] }
 0x7c8   : > { %7035 = vrot.lane.b32.xlu0 %v13909_v32, %s9547_s14  ;;  %v15128_v32 = vld [vmem:[#allocation96_spill] sm:$0xff]  ;;  %v7452_v38 = vsel %vm389_vm3, %v15145_v48, %v15144_v37  ;;  %v15160_v48 = vld [vmem:[#allocation70_spill] sm:$0xff] }
 0x7c9   : > { %7660 = vmatpush1.xpose.msra.mxu0 %v7424_v0  ;;  %v14282_v23 = vpop.permute.xlu1 %6799  ;;  %v7391_v9 = vsel %vm3577_vm12, %v7359_v31, %v15128_v32  ;;  %v15147_v0 = vld [vmem:[#allocation25_spill] sm:$0xff]  ;;  %v7421_v31 = vsel %vm3610_vm13, %v7389_v6, %v15148_v7  ;;  %v9518_v32 = vld [vmem:[#allocation3 + $0x50] sm:$0xff] }
 0x7ca   : > { %v14287_v40 = vpop.permute.xlu0 %7177  ;;  %7661 = vmatprep.subr.mxu0 %v7519_v26  ;;  %v7423_v53 = vsel %vm3610_vm13, %v7391_v9, %v15130_v46  ;;  %v7484_v26 = vsel %vm3577_vm12, %v7452_v38, %v15147_v0  ;;  %v15150_v9 = vld [vmem:[#allocation90_spill] sm:$0xff]  ;;  %v14357_v46 = vld [vmem:[#allocation3 + $0xf0] sm:$0xff]  ;;  %v15162_v0 = vld [vmem:[#allocation109_spill] sm:$0xff] }
 0x7cb   : > { %6907 = vrot.lane.b32.xlu1 %v14289_v22, %s9549_s27  ;;  %v7516_v50 = vsel %vm3610_vm13, %v7484_v26, %v15149_v42  ;;  %v7356_v30 = vsel %vm389_vm3, %v9518_v32, %v15150_v9  ;;  %v9522_v7 = vld [vmem:[#allocation3 + $0x38] sm:$0xff]  ;;  %v15164_v32 = vld [vmem:[#allocation66_spill] sm:$0xff] }
 0x7cc   : > { %7163 = vrot.lane.b32.xlu0 %v15131_v17, %s9548_s17 }
 0x7cd   : > { %7662 = vmatpush1.xpose.msra.mxu0 %v7423_v53  ;;  %v14306_v36 = vpop.permute.xlu1 %6797  ;;  %v15151_v53 = vld [vmem:[#allocation68_spill] sm:$0xff] }
 0x7ce   : > { %v14311_v24 = vpop.permute.xlu0 %7305  ;;  %7663 = vmatprep.subr.mxu0 %v7518_v21  ;;  %v7388_v8 = vsel %vm3577_vm12, %v7356_v30, %v15151_v53  ;;  %v9519_v21 = vld [vmem:[#allocation3 + $0x61] sm:$0xff]  ;;  %v9523_v30 = vld [vmem:[#allocation3 + $0x49] sm:$0xff] }
 0x7cf   : > { %6649 = vrot.lane.b32.xlu1 %v15138_v62, %s9547_s14  ;;  %v7420_v44 = vsel %vm3610_vm13, %v7388_v8, %v15154_v19  ;;  %v9520_v62 = vld [vmem:[#allocation3 + $0x48] sm:$0xff]  ;;  %v15165_v53 = vld [vmem:[#allocation58_spill] sm:$0xff] }
 0x7d0   : > { %7291 = vrot.lane.b32.xlu0 %v15141_v28, %s9549_s27  ;;  %v7355_v52 = vsel %vm389_vm3, %v9520_v62, %v15156_v29  ;;  %v7449_v8 = vsel %vm389_vm3, %v9523_v30, %v15165_v53  ;;  %v15168_v19 = vld [vmem:[#allocation107_spill] sm:$0xff]  ;;  %v9527_v30 = vld [vmem:[#allocation3 + $0x31] sm:$0xff] }
 0x7d1   : > { %7664 = vmatpush1.xpose.msra.mxu0 %v7422_v34  ;;  %v14326_v33 = vpop.permute.xlu1 %6923  ;;  %v9521_v34 = vld [vmem:[#allocation3 + $0x51] sm:$0xff]  ;;  %v7387_v12 = vsel %vm3577_vm12, %v7355_v52, %v15158_v10  ;;  %v9525_v52 = vld [vmem:[#allocation3 + $0x39] sm:$0xff] }
 0x7d2   : > { %v14332_v39 = vpop.permute.xlu0 %7055  ;;  %7665 = vmatprep.subr.mxu0 %v7517_v54  ;;  %v7450_v54 = vsel %vm389_vm3, %v9521_v34, %v15157_v14  ;;  %v7419_v38 = vsel %vm3610_vm13, %v7387_v12, %v15160_v48  ;;  %v15170_v34 = vld [vmem:[#allocation6_spill] sm:$0xff]  ;;  %v15172_v10 = vld [vmem:[#allocation92_spill] sm:$0xff]  ;;  %v15178_v53 = vld [vmem:[#allocation53_spill] sm:$0xff] }
 0x7d3   : > { %6777 = vrot.lane.b32.xlu1 %v14334_v51, %s9548_s17  ;;  %v7482_v37 = vsel %vm3577_vm12, %v7450_v54, %v15159_v61  ;;  %v7448_v14 = vsel %vm389_vm3, %v9525_v52, %v15170_v34  ;;  %v15171_v54 = vld [vmem:[#allocation87_spill] sm:$0xff]  ;;  %v15173_v12 = vld [vmem:[#allocation34_spill] sm:$0xff]  ;;  %v9528_v52 = vld [vmem:[#allocation3 + $0x18] sm:$0xff] }
 0x7d4   : > { %7033 = vrot.lane.b32.xlu0 %v13927_v59, %s9547_s14  ;;  %v15152_v59 = vld [vmem:[#allocation36_spill] sm:$0xff]  ;;  %v7514_v26 = vsel %vm3610_vm13, %v7482_v37, %v15162_v0  ;;  %v7480_v61 = vsel %vm3577_vm12, %v7448_v14, %v15173_v12  ;;  %v15174_v37 = vld [vmem:[#allocation69_spill] sm:$0xff]  ;;  %v15183_v34 = vld [vmem:[#allocation123_spill] sm:$0xff] }
 0x7d5   : > { %7666 = vmatpush1.xpose.msra.mxu0 %v7421_v31  ;;  %v14349_v18 = vpop.permute.xlu1 %6673  ;;  %v7451_v13 = vsel %vm389_vm3, %v9519_v21, %v15152_v59  ;;  %v15163_v31 = vld [vmem:[#allocation88_spill] sm:$0xff]  ;;  %v15166_v21 = vld [vmem:[#allocation18_spill] sm:$0xff]  ;;  %v7351_v14 = vsel %vm389_vm3, %v9528_v52, %v15183_v34  ;;  %v15192_v52 = vld [vmem:[#allocation77_spill] sm:$0xff] }
 0x7d6   : > { %v14355_v45 = vpop.permute.xlu0 %7053  ;;  %7667 = vmatprep.subr.mxu0 %v7516_v50  ;;  %v7483_v41 = vsel %vm3577_vm12, %v7451_v13, %v15153_v3  ;;  %v7354_v42 = vsel %vm389_vm3, %v9522_v7, %v15163_v31  ;;  %v6374_v50 = vld [vmem:[#allocation3 + $0xca] sm:$0xff]  ;;  %v7481_v59 = vsel %vm3577_vm12, %v7449_v8, %v15166_v21  ;;  %v15167_v13 = vld [vmem:[#allocation130_spill] sm:$0xff]  ;;  %v7447_v8 = vsel %vm389_vm3, %v9527_v30, %v15178_v53 }
 0x7d7   : > { %6905 = vrot.lane.b32.xlu1 %v14357_v46, %s9549_s27  ;;  %v7515_v55 = vsel %vm3610_vm13, %v7483_v41, %v15155_v1  ;;  %v7386_v9 = vsel %vm3577_vm12, %v7354_v42, %v15164_v32  ;;  %v9524_v1 = vld [vmem:[#allocation3 + $0x30] sm:$0xff]  ;;  %v9526_v7 = vld [vmem:[#allocation3 + $0x20] sm:$0xff] }
 0x7d8   : > { %7161 = vrot.lane.b32.xlu0 %v14215_v5, %s9548_s17  ;;  %v7418_v3 = vsel %vm3610_vm13, %v7386_v9, %v15167_v13  ;;  %v15175_v0 = vld [vmem:[#allocation32_spill] sm:$0xff]  ;;  %v15176_v31 = vld [vmem:[#allocation86_spill] sm:$0xff] }
 0x7d9   : > { %7668 = vmatpush1.xpose.msra.mxu0 %v7420_v44  ;;  %v14371_v25 = vpop.permute.xlu1 %6925  ;;  %v7513_v44 = vsel %vm3610_vm13, %v7481_v59, %v15168_v19  ;;  %v7352_v42 = vsel %vm389_vm3, %v9526_v7, %v15176_v31  ;;  %v15177_v32 = vld [vmem:[#allocation8_spill] sm:$0xff]  ;;  %v15180_v13 = vld [vmem:[#allocation10_spill] sm:$0xff]  ;;  %v15186_v7 = vld [vmem:[#allocation11_spill] sm:$0xff] }
 0x7da   : > { %v14377_v43 = vpop.permute.xlu0 %7179  ;;  %7669 = vmatprep.subr.mxu0 %v7515_v55  ;;  %v15169_v55 = vld [vmem:[#allocation125_spill] sm:$0xff]  ;;  %v7384_v9 = vsel %vm3577_vm12, %v7352_v42, %v15177_v32  ;;  %v15179_v21 = vld [vmem:[#allocation12_spill] sm:$0xff]  ;;  %v9529_v12 = vld [vmem:[#allocation3 + $0x21] sm:$0xff] }
 0x7db   : > { %6647 = vrot.lane.b32.xlu1 %v13877_v4, %s9547_s14  ;;  %v7353_v62 = vsel %vm389_vm3, %v9524_v1, %v15169_v55  ;;  %v7479_v59 = vsel %vm3577_vm12, %v7447_v8, %v15179_v21  ;;  %v15181_v19 = vld [vmem:[#allocation48_spill] sm:$0xff]  ;;  %v15182_v55 = vld [vmem:[#allocation105_spill] sm:$0xff]  ;;  %v15187_v42 = vld [vmem:[#allocation30_spill] sm:$0xff] }
 0x7dc   : > { %7289 = vrot.lane.b32.xlu0 %v15161_v47, %s9549_s27  ;;  %v6293_v53 = vld [vmem:[#allocation3] sm:$0xff]  ;;  %v15189_v21 = vld [vmem:[#allocation28_spill] sm:$0xff] }
 0x7dd   : > { %7670 = vmatpush1.xpose.msra.mxu0 %v7419_v38  ;;  %v14391_v6 = vpop.permute.xlu1 %6675 }
 0x7de   : > { %v14397_v4 = vpop.permute.xlu0 %7307  ;;  %7671 = vmatprep.subr.mxu0 %v7514_v26  ;;  %v7512_v26 = vsel %vm3610_vm13, %v7480_v61, %v15175_v0  ;;  %v15184_v61 = vld [vmem:[#allocation65_spill] sm:$0xff] }
 0x7df   : > { %6775 = vrot.lane.b32.xlu1 %v6374_v50, %s9548_s17 }
 0x7e0   : > { %7031 = vrot.lane.b32.xlu0 %v14262_v60, %s9547_s14  ;;  %v7385_v60 = vsel %vm3577_vm12, %v7353_v62, %v15171_v54  ;;  %v7511_v62 = vsel %vm3610_vm13, %v7479_v59, %v15182_v55  ;;  %v9530_v55 = vld [vmem:[#allocation3 + $0x19] sm:$0xff] }
 0x7e1   : > { %7672 = vmatpush1.xpose.msra.mxu0 %v7418_v3  ;;  %v14410_v41 = vpop.permute.xlu1 %6803  ;;  %v7417_v48 = vsel %vm3610_vm13, %v7385_v60, %v15174_v37  ;;  %v7416_v3 = vsel %vm3610_vm13, %v7384_v9, %v15180_v13  ;;  %v6373_v60 = vld [vmem:[#allocation3 + $0xc2] sm:$0xff]  ;;  %v7446_v37 = vsel %vm389_vm3, %v9529_v12, %v15184_v61  ;;  %v15195_v61 = vld [vmem:[#allocation64_spill] sm:$0xff] }
 0x7e2   : > { %v14416_v29 = vpop.permute.xlu0 %7181  ;;  %7673 = vmatprep.subr.mxu0 %v7513_v44  ;;  %v6294_v44 = vld [vmem:[#allocation3 + $0x8] sm:$0xff]  ;;  %v7478_v32 = vsel %vm3577_vm12, %v7446_v37, %v15187_v42  ;;  %v15198_v42 = vld [vmem:[#allocation16_spill] sm:$0xff] }
 0x7e3   : > { %6903 = vrot.lane.b32.xlu1 %v15172_v10, %s9549_s27  ;;  %v7350_v31 = vsel %vm389_vm3, %v6294_v44, %v15186_v7  ;;  %v15188_v9 = vld [vmem:[#allocation67_spill] sm:$0xff]  ;;  %v7510_v59 = vsel %vm3610_vm13, %v7478_v32, %v15189_v21 }
 0x7e4   : > { %7159 = vrot.lane.b32.xlu0 %v14289_v22, %s9548_s17 }
 0x7e5   : > { %7674 = vmatpush1.xpose.msra.mxu0 %v7417_v48  ;;  %v14430_v38 = vpop.permute.xlu1 %6801  ;;  %v15185_v48 = vld [vmem:[#allocation55_spill] sm:$0xff] }
 0x7e6   : > { %v14436_v50 = vpop.permute.xlu0 %7309  ;;  %7675 = vmatprep.subr.mxu0 %v7512_v26  ;;  %v7383_v0 = vsel %vm3577_vm12, %v7351_v14, %v15185_v48  ;;  %v7542_v26 = vld [vmem:[%s14661_s7 + $0x8] sm:$0xf]  ;;  %v15193_v14 = vld [vmem:[#allocation15_spill] sm:$0xff]  ;;  %v15196_v48 = vld [vmem:[#allocation126_spill] sm:$0xff] }
 0x7e7   : > { %6645 = vrot.lane.b32.xlu1 %v13823_v11, %s9547_s14  ;;  %v14457_v11 = vld [vmem:[%s14661_s7] sm:$0xff]  ;;  %v7415_v30 = vsel %vm3610_vm13, %v7383_v0, %v15188_v9  ;;  %8140 = vmatprep.mubr.msk.f32.mxu1 %vm389_vm3, %v7542_v26 }
 0x7e8   : > { %7287 = vrot.lane.b32.xlu0 %v15181_v19, %s9549_s27  ;;  %v7551_v10 = vcombine.high %v14457_v11, %v14457_v11  ;;  %8141 = vmatmul.mubr.msk.f32.vlgmr.msra.gmra.mxu1 %vm389_vm3, %v7542_v26  ;;  %v15199_v9 = vld [vmem:[#allocation124_spill] sm:$0xff] }
 0x7e9   : > { %7676 = vmatpush1.xpose.msra.mxu0 %v7416_v3  ;;  %v14450_v1 = vpop.permute.xlu1 %6927  ;;  %v15190_v3 = vld [vmem:[#allocation14_spill] sm:$0xff] }
 0x7ea   : > { %v7060_v54 = vpop.permute.xlu0 %7059  ;;  %7677 = vmatprep.subr.mxu0 %v7511_v62  ;;  %7715 = vmatprep.mubr.f32.mxu0 %v7551_v10  ;;  %v7382_v44 = vsel %vm3577_vm12, %v7350_v31, %v15190_v3  ;;  %v15191_v62 = vld [vmem:[#allocation24_spill] sm:$0xff]  ;;  %v15194_v10 = vld [vmem:[#allocation17_spill] sm:$0xff] }
 0x7eb   : > { %6773 = vrot.lane.b32.xlu1 %v6373_v60, %s9548_s17  ;;  %v7476_v34 = vsel %vm389_vm3, %v15192_v52, %v7060_v54  ;;  %v9550_v60 = vmov 0   ;;  %v7349_v12 = vsel %vm389_vm3, %v6293_v53, %v15194_v10  ;;  %v7414_v0 = vsel %vm3610_vm13, %v7382_v44, %v15196_v48  ;;  %v15197_v54 = vld [vmem:[#allocation85_spill] sm:$0xff]  ;;  %v15200_v53 = vld [vmem:[#allocation112_spill] sm:$0xff] }
 0x7ec   : > { %7029 = vrot.lane.b32.xlu0 %v14334_v51, %s9547_s14  ;;  %v7445_v51 = vsel %vm389_vm3, %v9530_v55, %v15191_v62  ;;  %v7508_v32 = vsel %vm3577_vm12, %v7476_v34, %v15198_v42  ;;  %v15202_v55 = vld [vmem:[#allocation19_spill] sm:$0xff]  ;;  %v15203_v52 = vld [vmem:[#allocation113_spill] sm:$0xff] }
 0x7ed   : > { %7678 = vmatpush1.xpose.msra.mxu0 %v7415_v30  ;;  %v6930_v8 = vpop.permute.xlu1 %6929  ;;  %9292 = vset.pattern.permute.xlu0 %v9550_v60  ;;  %v7477_v37 = vsel %vm3577_vm12, %v7445_v51, %v15195_v61  ;;  %v7381_v30 = vsel %vm3577_vm12, %v7349_v12, %v15199_v9  ;;  %v7540_v62 = vsel %vm3610_vm13, %v7508_v32, %v15202_v55  ;;  %v7543_v51 = vld [vmem:[%s14662_s8] sm:$0xf]  ;;  %v15210_v55 = vld [vmem:[#allocation73_spill] sm:$0xff] }
 0x7ee   : > { %v7058_v13 = vpop.permute.xlu0 %7057  ;;  %7679 = vmatprep.subr.mxu0 %v7510_v59  ;;  %v7509_v7 = vsel %vm3610_vm13, %v7477_v37, %v15197_v54  ;;  %v15201_v59 = vld [vmem:[#allocation26_spill] sm:$0xff]  ;;  %v7380_v34 = vsel %vm389_vm3, %v15203_v52, %v14391_v6  ;;  %v15205_v37 = vld [vmem:[#allocation51_spill] sm:$0xff] }
 0x7ef   : > { %6901 = vrot.lane.b32.xlu1 %v15193_v14, %s9549_s27  ;;  %v7475_v21 = vsel %vm389_vm3, %v15200_v53, %v7058_v13  ;;  %v7413_v3 = vsel %vm3610_vm13, %v7381_v30, %v15201_v59  ;;  %v15204_v14 = vld [vmem:[#allocation20_spill] sm:$0xff]  ;;  %v7412_v10 = vsel %vm3577_vm12, %v7380_v34, %v14410_v41  ;;  %v15208_v53 = vld [vmem:[#allocation61_spill] sm:$0xff]  ;;  %v15209_v59 = vld [vmem:[#allocation110_spill] sm:$0xff] }
 0x7f0   : > { %7157 = vrot.lane.b32.xlu0 %v14357_v46, %s9548_s17  ;;  %v7507_v60 = vsel %vm3577_vm12, %v7475_v21, %v15204_v14 }
 0x7f1   : > { %7680 = vmatpush1.xpose.msra.mxu0 %v7414_v0  ;;  %v6932_v26 = vpop.permute.xlu1 %6931  ;;  %v7539_v48 = vsel %vm3610_vm13, %v7507_v60, %v15205_v37  ;;  %v15206_v0 = vld [vmem:[#allocation72_spill] sm:$0xff]  ;;  %v15214_v37 = vld [vmem:[#allocation115_spill] sm:$0xff] }
 0x7f2   : > { %v7184_v31 = vpop.permute.xlu0 %7183  ;;  %7681 = vmatprep.subr.mxu0 %v7509_v7  ;;  %v7444_v12 = vsel %vm3610_vm13, %v7412_v10, %v6932_v26  ;;  %v7379_v6 = vsel %vm389_vm3, %v15206_v0, %v14349_v18  ;;  %v15207_v7 = vld [vmem:[#allocation74_spill] sm:$0xff]  ;;  %v7378_v18 = vsel %vm389_vm3, %v15208_v53, %v14255_v16 }
 0x7f3   : > { %v7474_v42 = vsel %vm389_vm3, %v15207_v7, %v14332_v39  ;;  %v7411_v41 = vsel %vm3577_vm12, %v7379_v6, %v14430_v38  ;;  %v7410_v39 = vsel %vm3577_vm12, %v7378_v18, %v14282_v23  ;;  %v7473_v38 = vsel %vm389_vm3, %v15209_v59, %v14355_v45 }
 0x7f4   : > { %7285 = vrot.lane.b32.xlu0 %v14179_v63, %s9549_s27  ;;  %v7443_v26 = vsel %vm3610_vm13, %v7411_v41, %v6930_v8  ;;  %v7506_v32 = vsel %vm3577_vm12, %v7474_v42, %v7184_v31  ;;  %v7505_v8 = vsel %vm3577_vm12, %v7473_v38, %v14416_v29  ;;  %v7442_v31 = vsel %vm3610_vm13, %v7410_v39, %v14450_v1  ;;  %s7998_s27 = sshll.u32 %s15216_s10, 3 }
 0x7f5   : > { %7682 = vmatpush1.xpose.msra.mxu0 %v7413_v3  ;;  %v6920_v44 = vpop.permute.xlu1 %6919  ;;  %v7537_v16 = vsel %vm3610_vm13, %v7505_v8, %v14436_v50  ;;  %s332_s23 = scalar_lea.vmem %s14663_s9, %s7998_s27 }
 0x7f6   : > { %v7312_v13 = vpop.permute.xlu0 %7311  ;;  %7683 = vmatprep.subr.mxu0 %v7540_v62  ;;  %v7377_v62 = vsel %vm389_vm3, %v15210_v55, %v14208_v58 }
 0x7f7   : > { %v7538_v30 = vsel %vm3610_vm13, %v7506_v32, %v7312_v13  ;;  %v7409_v29 = vsel %vm3577_vm12, %v7377_v62, %v14306_v36  ;;  %v15212_v13 = vld [vmem:[#allocation108_spill] sm:$0xff] }
 0x7f8   : > { %7546 = vperm.xlu0 %9292, %v7543_v51   ;;  %v15211_v51 = vld [vmem:[#allocation111_spill] sm:$0xff]  ;;  %v7441_v52 = vsel %vm3610_vm13, %v7409_v29, %v14371_v25 }
 0x7f9   : > { %7684 = vmatpush2.xpose.msra.mxu0 %v7444_v12  ;;  %v6662_v61 = vpop.permute.xlu1 %6661  ;;  %v7472_v45 = vsel %vm389_vm3, %v15211_v51, %v14213_v27  ;;  %v7471_v27 = vsel %vm389_vm3, %v15212_v13, %v14235_v57 }
 0x7fa   : > { %v7304_v54 = vpop.permute.xlu0 %7303  ;;  %7685 = vmatprep.subr.mxu0 %v7539_v48  ;;  %v7504_v1 = vsel %vm3577_vm12, %v7472_v45, %v14377_v43  ;;  %v7503_v36 = vsel %vm3577_vm12, %v7471_v27, %v14287_v40  ;;  %v7440_v43 = vsel %vm3610_vm13, %v14177_v56, %v14326_v33  ;;  %v15213_v40 = vld [vmem:[#allocation129_spill] sm:$0xff]  ;;  %v7438_v56 = vsel %vm3610_vm13, %v15214_v37, %v6920_v44 }
 0x7fb   : > { %v7536_v58 = vsel %vm3610_vm13, %v7504_v1, %v14397_v4  ;;  %v7535_v14 = vsel %vm3610_vm13, %v7503_v36, %v14311_v24  ;;  %v7534_v57 = vsel %vm3610_vm13, %v14270_v15, %v7304_v54 }
 0x7fd   : > { %7686 = vmatpush2.xpose.msra.mxu0 %v7443_v26  ;;  %v6790_v9 = vpop.permute.xlu1 %6789 }
 0x7fe   : > { %v7046_v21 = vpop.permute.xlu0 %7045  ;;  %7687 = vmatprep.subr.mxu0 %v7538_v30 }
 0x7ff   : > { %v7469_v12 = vsel %vm389_vm3, %v15213_v40, %v7046_v21 }
 0x801   : > { %7688 = vmatpush2.xpose.msra.mxu0 %v7442_v31  ;;  %v6918_v3 = vpop.permute.xlu1 %6917 }
 0x802   : > { %v7174_v23 = vpop.permute.xlu0 %7173  ;;  %7689 = vmatprep.subr.mxu0 %v7537_v16 }
 0x803   : > { %v7501_v33 = vsel %vm3577_vm12, %v7469_v12, %v7174_v23 }
 0x805   : > { %7690 = vmatpush2.xpose.msra.mxu0 %v7441_v52  ;;  %v6660_v50 = vpop.permute.xlu1 %6659 }
 0x806   : > { %v7302_v34 = vpop.permute.xlu0 %7301  ;;  %7691 = vmatprep.subr.mxu0 %v7536_v58  ;;  %v7372_v41 = vsel %vm389_vm3, %v15131_v17, %v6660_v50 }
 0x807   : > { %v7533_v48 = vsel %vm3610_vm13, %v7501_v33, %v7302_v34 }
 0x809   : > { %7692 = vmatpush2.xpose.msra.mxu0 %v7440_v43  ;;  %v6788_v25 = vpop.permute.xlu1 %6787 }
 0x80a   : > { %v7044_v60 = vpop.permute.xlu0 %7043  ;;  %7693 = vmatprep.subr.mxu0 %v7535_v14 }
 0x80b   : > { %v7468_v6 = vsel %vm389_vm3, %v13873_v49, %v7044_v60 }
 0x80d   : > { %7694 = vmatpush2.xpose.msra.mxu0 %v14238_v35  ;;  %v6916_v4 = vpop.permute.xlu1 %6915  ;;  %v7373_v35 = vsel %vm389_vm3, %v14146_v20, %v6662_v61  ;;  %v7404_v20 = vsel %vm3577_vm12, %v7372_v41, %v6788_v25 }
 0x80e   : > { %v7172_v10 = vpop.permute.xlu0 %7171  ;;  %7695 = vmatprep.subr.mxu0 %v7534_v57  ;;  %v7405_v15 = vsel %vm3577_vm12, %v7373_v35, %v6790_v9  ;;  %v7436_v61 = vsel %vm3610_vm13, %v7404_v20, %v6916_v4 }
 0x80f   : > { %v7437_v54 = vsel %vm3610_vm13, %v7405_v15, %v6918_v3  ;;  %v7500_v44 = vsel %vm3577_vm12, %v7468_v6, %v7172_v10  ;;  %v6311_v15 = vld [vmem:[#allocation3 + $0xd8] sm:$0xff] }
 0x811   : > { %7696 = vmatpush2.xpose.msra.mxu0 %v7438_v56  ;;  %v6658_v24 = vpop.permute.xlu1 %6657 }
 0x812   : > { %v7300_v0 = vpop.permute.xlu0 %7299  ;;  %7697 = vmatprep.subr.mxu0 %v7533_v48  ;;  %v7371_v53 = vsel %vm389_vm3, %v14215_v5, %v6658_v24 }
 0x813   : > { %v7532_v42 = vsel %vm3610_vm13, %v7500_v44, %v7300_v0 }
 0x815   : > { %7698 = vmatpush2.xpose.msra.mxu0 %v7437_v54  ;;  %v6786_v7 = vpop.permute.xlu1 %6785 }
 0x816   : > { %v7042_v26 = vpop.permute.xlu0 %7041  ;;  %7699 = vmatprep.subr.mxu0 %v7532_v42  ;;  %v7403_v17 = vsel %vm3577_vm12, %v7371_v53, %v6786_v7 }
 0x817   : > { %v7467_v9 = vsel %vm389_vm3, %v14096_v2, %v7042_v26 }
 0x819   : > { %7700 = vmatpush2.xpose.msra.mxu0 %v7436_v61  ;;  %v6914_v32 = vpop.permute.xlu1 %6913 }
 0x81a   : > { %v7170_v49 = vpop.permute.xlu0 %7169  ;;  %v7435_v59 = vsel %vm3610_vm13, %v7403_v17, %v6914_v32 }
 0x81b   : > { %v7499_v18 = vsel %vm3577_vm12, %v7467_v9, %v7170_v49  ;;  %v6438_v9 = vld [vmem:[#allocation3 + $0xe1] sm:$0xff] }
 0x81d   : > { %v6656_v30 = vpop.permute.xlu1 %6655 }
 0x81e   : > { %v7298_v21 = vpop.permute.xlu0 %7297  ;;  %v7370_v5 = vsel %vm389_vm3, %v14289_v22, %v6656_v30 }
 0x81f   : > { %v7531_v39 = vsel %vm3610_vm13, %v7499_v18, %v7298_v21 }
 0x820   : > { %7701 = vmatprep.subr.mxu0 %v7531_v39 }
 0x821   : > { %7702 = vmatpush2.xpose.msra.mxu0 %v7435_v59  ;;  %v6784_v38 = vpop.permute.xlu1 %6783 }
 0x822   : > { %v7040_v8 = vpop.permute.xlu0 %7039  ;;  %v7402_v23 = vsel %vm3577_vm12, %v7370_v5, %v6784_v38 }
 0x823   : > { %v7466_v2 = vsel %vm389_vm3, %v15141_v28, %v7040_v8 }
 0x825   : > { %v6912_v31 = vpop.permute.xlu1 %6911 }
 0x826   : > { %v7168_v3 = vpop.permute.xlu0 %7167  ;;  %v7434_v45 = vsel %vm3610_vm13, %v7402_v23, %v6912_v31 }
 0x827   : > { %v7498_v55 = vsel %vm3577_vm12, %v7466_v2, %v7168_v3  ;;  %v6437_v2 = vld [vmem:[#allocation3 + $0xd9] sm:$0xff] }
 0x829   : > { %v6654_v16 = vpop.permute.xlu1 %6653 }
 0x82a   : > { %v7296_v62 = vpop.permute.xlu0 %7295  ;;  %v7369_v22 = vsel %vm389_vm3, %v14357_v46, %v6654_v16  ;;  %v6309_v16 = vld [vmem:[#allocation3 + $0xc0] sm:$0xff] }
 0x82b   : > { %v7530_v51 = vsel %vm3610_vm13, %v7498_v55, %v7296_v62 }
 0x82c   : > { %7703 = vmatprep.subr.mxu0 %v7530_v51 }
 0x82d   : > { %7704 = vmatpush2.xpose.msra.mxu0 %v7434_v45  ;;  %v6782_v29 = vpop.permute.xlu1 %6781 }
 0x82e   : > { %v7038_v1 = vpop.permute.xlu0 %7037  ;;  %v7401_v27 = vsel %vm3577_vm12, %v7369_v22, %v6782_v29 }
 0x82f   : > { %v7465_v28 = vsel %vm389_vm3, %v15161_v47, %v7038_v1  ;;  %v6312_v47 = vld [vmem:[#allocation3 + $0xe0] sm:$0xff] }
 0x831   : > { %v6910_v52 = vpop.permute.xlu1 %6909 }
 0x832   : > { %v7166_v50 = vpop.permute.xlu0 %7165  ;;  %v7433_v43 = vsel %vm3610_vm13, %v7401_v27, %v6910_v52 }
 0x833   : > { %v7497_v34 = vsel %vm3577_vm12, %v7465_v28, %v7166_v50 }
 0x835   : > { %v6652_v58 = vpop.permute.xlu1 %6651 }
 0x836   : > { %v7294_v13 = vpop.permute.xlu0 %7293  ;;  %v7368_v10 = vsel %vm389_vm3, %v6312_v47, %v6652_v58 }
 0x837   : > { %v7529_v36 = vsel %vm3610_vm13, %v7497_v34, %v7294_v13 }
 0x838   : > { %7705 = vmatprep.subr.mxu0 %v7529_v36 }
 0x839   : > { %7706 = vmatpush2.xpose.msra.mxu0 %v7433_v43  ;;  %v6780_v25 = vpop.permute.xlu1 %6779 }
 0x83a   : > { %v7036_v14 = vpop.permute.xlu0 %7035  ;;  %v7400_v37 = vsel %vm3577_vm12, %v7368_v10, %v6780_v25 }
 0x83b   : > { %v7464_v57 = vsel %vm389_vm3, %v15181_v19, %v7036_v14 }
 0x83d   : > { %v6908_v60 = vpop.permute.xlu1 %6907 }
 0x83e   : > { %v7164_v4 = vpop.permute.xlu0 %7163  ;;  %v7432_v33 = vsel %vm3610_vm13, %v7400_v37, %v6908_v60 }
 0x83f   : > { %v7496_v40 = vsel %vm3577_vm12, %v7464_v57, %v7164_v4 }
 0x841   : > { %v6650_v46 = vpop.permute.xlu1 %6649 }
 0x842   : > { %v7292_v12 = vpop.permute.xlu0 %7291  ;;  %v7367_v54 = vsel %vm389_vm3, %v6311_v15, %v6650_v46 }
 0x843   : > { %v7528_v56 = vsel %vm3610_vm13, %v7496_v40, %v7292_v12 }
 0x844   : > { %7707 = vmatprep.subr.mxu0 %v7528_v56 }
 0x845   : > { %7708 = vmatpush2.xpose.msra.mxu0 %v7432_v33  ;;  %v6778_v24 = vpop.permute.xlu1 %6777 }
 0x846   : > { %v7034_v48 = vpop.permute.xlu0 %7033  ;;  %v7399_v42 = vsel %vm3577_vm12, %v7367_v54, %v6778_v24 }
 0x847   : > { %v7463_v19 = vsel %vm389_vm3, %v14179_v63, %v7034_v48  ;;  %v6310_v63 = vld [vmem:[#allocation3 + $0xc8] sm:$0xff] }
 0x849   : > { %v6906_v35 = vpop.permute.xlu1 %6905 }
 0x84a   : > { %v7162_v0 = vpop.permute.xlu0 %7161  ;;  %v7431_v26 = vsel %vm3610_vm13, %v7399_v42, %v6906_v35 }
 0x84b   : > { %v7495_v44 = vsel %vm3577_vm12, %v7463_v19, %v7162_v0 }
 0x84d   : > { %v6648_v6 = vpop.permute.xlu1 %6647 }
 0x84e   : > { %v7290_v7 = vpop.permute.xlu0 %7289  ;;  %v7366_v18 = vsel %vm389_vm3, %v6310_v63, %v6648_v6 }
 0x84f   : > { %v7527_v41 = vsel %vm3610_vm13, %v7495_v44, %v7290_v7 }
 0x850   : > { %7709 = vmatprep.subr.mxu0 %v7527_v41 }
 0x851   : > { %7710 = vmatpush2.xpose.msra.mxu0 %v7431_v26  ;;  %v6776_v20 = vpop.permute.xlu1 %6775 }
 0x852   : > { %v7032_v61 = vpop.permute.xlu0 %7031  ;;  %v7398_v39 = vsel %vm3577_vm12, %v7366_v18, %v6776_v20 }
 0x853   : > { %v7462_v30 = vsel %vm389_vm3, %v6438_v9, %v7032_v61 }
 0x855   : > { %v6904_v32 = vpop.permute.xlu1 %6903 }
 0x856   : > { %v7160_v49 = vpop.permute.xlu0 %7159  ;;  %v7430_v38 = vsel %vm3610_vm13, %v7398_v39, %v6904_v32 }
 0x857   : > { %v7494_v21 = vsel %vm3577_vm12, %v7462_v30, %v7160_v49 }
 0x859   : > { %v6646_v53 = vpop.permute.xlu1 %6645 }
 0x85a   : > { %v7288_v17 = vpop.permute.xlu0 %7287  ;;  %v7365_v62 = vsel %vm389_vm3, %v6309_v16, %v6646_v53 }
 0x85b   : > { %v7526_v59 = vsel %vm3610_vm13, %v7494_v21, %v7288_v17 }
 0x85c   : > { %7711 = vmatprep.subr.mxu0 %v7526_v59 }
 0x85d   : > { %7712 = vmatpush2.xpose.msra.mxu0 %v7430_v38  ;;  %v6774_v31 = vpop.permute.xlu1 %6773 }
 0x85e   : > { %v7030_v8 = vpop.permute.xlu0 %7029  ;;  %v7397_v45 = vsel %vm3577_vm12, %v7365_v62, %v6774_v31 }
 0x85f   : > { %v7461_v5 = vsel %vm389_vm3, %v6437_v2, %v7030_v8 }
 0x861   : > { %v6902_v55 = vpop.permute.xlu1 %6901 }
 0x862   : > { %v7158_v3 = vpop.permute.xlu0 %7157  ;;  %v7429_v1 = vsel %vm3610_vm13, %v7397_v45, %v6902_v55 }
 0x863   : > { %v7493_v23 = vsel %vm3577_vm12, %v7461_v5, %v7158_v3 }
 0x866   : > { %v7286_v51 = vpop.permute.xlu0 %7285 }
 0x867   : > { %v7525_v29 = vsel %vm3610_vm13, %v7493_v23, %v7286_v51 }
 0x868   : > { %7713 = vmatprep.subr.mxu0 %v7525_v29 }
 0x869   : > { %7714 = vmatpush2.xpose.msra.mxu0 %v7429_v1 }
 0x86c   : > { %7716 = vmatmul.mubr.f32.vlgmr.msra.gmra.mxu0 %v14457_v11 }
 0x873   : > { %v7547_v52 = vpop.permute.xlu0 %7546 }
 0x8a8   : > { %v7788_v28 = vpop.f32.mrf.mxu1 }
 0x8aa   : > { %v7790_v13 = vpop.f32.mrf.mxu1 }
 0x92c   : > { %v7717_v50 = vpop.f32.mrf.mxu0 }
 0x92d   : > { %v7718_v58 = vadd.f32 %v7717_v50, %v7547_v52 }
 0x92e   : > { %v7719_v22 = vpop.f32.mrf.mxu0 }
 0x92f   : > { %v7720_v34 = vadd.f32 %v7719_v22, %v7547_v52  ;;  %v7789_v27 = vadd.f32 %v7788_v28, %v7718_v58 }
 0x931   : > { %v7791_v36 = vadd.f32 %v7790_v13, %v7720_v34 }
 0x933   : > { %v7795_v43 = vcombine.low %v7789_v27, %v7791_v36 }
 0x935   : > { %7797 = vst [vmem:[%s332_s23] sm:$0xff] %v7795_v43 }
 0x936 PF: > { %s19_s30 = sadd.s32 1, %s9537_s30  }
 0x937   : > { %p16_p4 = scmp.ge.s32.totalorder %s19_s30, 4  }
 0x939   :  { %18 = sbr.rel (!%p16_p4) target bundleno = 1 (0x1), region = 90 }

</bundles_post_ra>
